<compile_context>
chip_gen: v7x
topology: tpu7x:2x2x1
jax: 0.10.0
libtpu: 0.0.40
codegen_flags: <defaults>
</compile_context>

<pallas_src>
import functools

import jax
import jax.numpy as jnp
from jax.experimental import pallas as pl
from jax.experimental.pallas import tpu as pltpu


# ---------------------------------------------------------------------------
# Kernel A: fused upconv(k4,s4) + conv3x3(pad 1) + partial BN stats.
# ---------------------------------------------------------------------------
def _fused_up_conv3x3_kernel(x_ref, w_ref, s_ref, cb_ref, z_ref, st_ref, *,
                             tr, w_in, c4):
    """One (batch, row-tile) step.

    x_ref : (1, Cin+1, H+2, W+2)  zero-padded input, extra all-ones channel
    w_ref : (4*c4, 9*(Cin+1))     fused weights, rows ordered (dj, co, di)
    s_ref : (4, W, 4W)            column scatter matrices S[dj, j, 4j+dj] = 1
    cb_ref: (c4, 1)               3x3-conv bias, rows ordered (co, di)
    z_ref : (1, tr, c4, 4W)       z rows: (co, di) x full upsampled width
    st_ref: (1, 1, c4, 2)         partial (sum, sum_sq) per (co, di)
    """
    wu = 4 * w_in
    base = pl.program_id(1) * tr

    wmat = w_ref[...]
    cb = cb_ref[...]
    s_mats = [s_ref[dj] for dj in range(4)]

    sum_acc = jnp.zeros((c4, wu), jnp.float32)
    sq_acc = jnp.zeros((c4, wu), jnp.float32)

    for ii in range(tr):
        # im2col for one input row, read straight from the ref (no value
        # slicing of a materialized padded image):
        #   G[(si, sj, ci), j] = xpad[ci, base+ii+si, j+sj]
        taps = []
        for si in range(3):
            for sj in range(3):
                tap = x_ref[0, :, pl.ds(base + ii + si, 1), pl.ds(sj, w_in)]
                taps.append(tap[:, 0, :])                    # (Cin+1, W)
        g = jnp.concatenate(taps, axis=0)                    # (9*(Cin+1), W)

        # all (dj, co, di) channels of this input row in one matmul (K = 9*Cin1)
        t_all = jnp.dot(wmat, g, preferred_element_type=jnp.float32)  # (4*c4, W)

        # column interleave: rows[(co,di), 4j+dj] = t_all[dj block][(co,di), j]
        rows = cb                                            # (c4, 1) -> bcast
        for dj in range(4):
            rows = rows + jnp.dot(t_all[dj * c4:(dj + 1) * c4, :], s_mats[dj],
                                  preferred_element_type=jnp.float32)

        z_ref[0, ii, :, :] = rows                            # (c4, 4W)
        sum_acc = sum_acc + rows
        sq_acc = sq_acc + rows * rows

    st_ref[0, 0, :, :] = jnp.concatenate(
        [jnp.sum(sum_acc, axis=1, keepdims=True),
         jnp.sum(sq_acc, axis=1, keepdims=True)], axis=1)    # (c4, 2)


# ---------------------------------------------------------------------------
# Kernel B: BN (folded scale/shift) -> ReLU -> 1x1 conv -> softmax over labels.
# Writes the final NCHW output directly (rows 4*i+di of the upsampled image).
# ---------------------------------------------------------------------------
def _bn_relu_fc_softmax_kernel(z_ref, sc_ref, sh_ref, fw_ref, fb_ref, o_ref, *,
                               tr, n_labels):
    """z_ref : (1, tr, c4, 4W)
       sc_ref, sh_ref : (c4, 1)          folded BN scale / shift, rows (co, di)
       fw_ref: (n_labels*4, c4)          1x1 conv weights, rows (l, di)
       fb_ref: (n_labels*4, 1)
       o_ref : (1, n_labels, 4*tr, 4W)   final NCHW output block
    """
    sc = sc_ref[...]
    sh = sh_ref[...]
    fw = fw_ref[...]
    fb = fb_ref[...]
    for ii in range(tr):
        slab = z_ref[0, ii, :, :]                            # (c4, 4W)
        h = jnp.maximum(slab * sc + sh, 0.0)
        logits = jnp.dot(fw, h, preferred_element_type=jnp.float32) + fb
        # softmax over labels at every (di, column); label chunks are 4 rows
        chunks = [logits[4 * l:4 * l + 4, :] for l in range(n_labels)]
        m = chunks[0]
        for l in range(1, n_labels):
            m = jnp.maximum(m, chunks[l])
        exps = [jnp.exp(c - m) for c in chunks]
        denom = exps[0]
        for l in range(1, n_labels):
            denom = denom + exps[l]
        # exact reciprocal; pl.reciprocal(denom, approx=True) is a free EUP
        # micro-win if a looser tolerance is acceptable.
        inv = pl.reciprocal(denom)
        for l in range(n_labels):
            o_ref[0, l, 4 * ii:4 * ii + 4, :] = exps[l] * inv


# ---------------------------------------------------------------------------
# Host-side helpers (tiny, one-time weight re-packing)
# ---------------------------------------------------------------------------
def _pick_row_tile(h):
    for d in (16, 8, 4, 2, 1):
        if h % d == 0:
            return d
    return 1


def _fused_weights(up_w, up_b, conv_w):
    """Fold upconv(k4,s4) and conv3x3 into one weight matrix.

    up_w  : (Cin, Cmid, 4, 4)  ConvTranspose2d weight layout
    conv_w: (3, 3, Cmid, Cout) HWIO
    Returns Wcat of shape (4*Cout*4, 9*(Cin+1)); rows ordered (dj, co, di),
    columns ordered (si, sj, ci') matching the in-kernel im2col.
    """
    cin, cmid = up_w.shape[0], up_w.shape[1]
    cout = conv_w.shape[3]
    cin1 = cin + 1
    up_wa = jnp.concatenate(
        [up_w, jnp.broadcast_to(up_b[None, :, None, None], (1, cmid, 4, 4))],
        axis=0).astype(jnp.float32)                          # (Cin+1, Cmid, 4, 4)
    w_eff = jnp.zeros((3, 3, cin1, cout, 4, 4), jnp.float32)
    for dh in range(3):
        for dw in range(3):
            for di in range(4):
                for dj in range(4):
                    a, b = di + dh - 1, dj + dw - 1
                    si, sj = a // 4 + 1, b // 4 + 1          # python floor div
                    contrib = jnp.einsum('mo,im->io', conv_w[dh, dw],
                                         up_wa[:, :, a % 4, b % 4])
                    w_eff = w_eff.at[si, sj, :, :, di, dj].add(contrib)
    wcat = jnp.transpose(w_eff, (5, 3, 4, 0, 1, 2)).reshape(4 * cout * 4,
                                                            9 * cin1)
    return wcat


# ---------------------------------------------------------------------------
# Full forward
# ---------------------------------------------------------------------------
def output_transition(x_nchw, params):
    n, cin, h, w = x_nchw.shape
    cout = params["conv_w"].shape[3]
    n_labels = params["fc_w"].shape[1]
    hu, wu = 4 * h, 4 * w
    c4 = cout * 4
    cin1 = cin + 1
    tr = _pick_row_tile(h)
    n_tiles = h // tr

    x = x_nchw.astype(jnp.float32)

    # Augmented (ones channel carries the upconv bias) + 1-pixel zero pad.
    # These XLA ops touch only the *small* pre-upsample image.
    xa = jnp.concatenate([x, jnp.ones((n, 1, h, w), jnp.float32)], axis=1)
    xap = jnp.pad(xa, ((0, 0), (0, 0), (1, 1), (1, 1)))

    # Fused (upconv + 3x3 conv) weights, column-scatter matrices, conv bias.
    wcat = _fused_weights(params["up_w"], params["up_b"], params["conv_w"])
    col = jnp.arange(wu)[None, :]
    row4 = 4 * jnp.arange(w)[:, None]
    s = jnp.stack([(col == row4 + dj).astype(jnp.float32) for dj in range(4)],
                  axis=0)                                    # (4, W, 4W)
    cb = jnp.repeat(params["conv_b"].astype(jnp.float32), 4).reshape(c4, 1)

    kernel_a = functools.partial(_fused_up_conv3x3_kernel,
                                 tr=tr, w_in=w, c4=c4)
    z, stats = pl.pallas_call(
        kernel_a,
        out_shape=(jax.ShapeDtypeStruct((n, h, c4, wu), jnp.float32),
                   jax.ShapeDtypeStruct((n, n_tiles, c4, 2), jnp.float32)),
        grid=(n, n_tiles),
        in_specs=[
            pl.BlockSpec((1, cin1, h + 2, w + 2), lambda b, t: (b, 0, 0, 0)),
            pl.BlockSpec((4 * c4, 9 * cin1), lambda b, t: (0, 0)),
            pl.BlockSpec((4, w, wu), lambda b, t: (0, 0, 0)),
            pl.BlockSpec((c4, 1), lambda b, t: (0, 0)),
        ],
        out_specs=(
            pl.BlockSpec((1, tr, c4, wu), lambda b, t: (b, t, 0, 0)),
            pl.BlockSpec((1, 1, c4, 2), lambda b, t: (b, t, 0, 0)),
        ),
        compiler_params=pltpu.CompilerParams(
            dimension_semantics=("parallel", "parallel"),
            vmem_limit_bytes=32 * 1024 * 1024),
    )(xap, wcat, s, cb)

    # Tiny BN-stat finalize in plain JAX (training-mode BN, biased variance).
    tot = jnp.sum(stats, axis=(0, 1)).reshape(cout, 4, 2).sum(axis=1)  # (cout,2)
    count = n * hu * wu
    mean = tot[:, 0] / count
    var = jnp.maximum(tot[:, 1] / count - mean * mean, 0.0)   # clamp: no cancellation blowup
    inv_std = jax.lax.rsqrt(var + 1e-5)
    scale = params["bn_gamma"] * inv_std
    shift = params["bn_beta"] - mean * scale
    scale16 = jnp.repeat(scale, 4).reshape(c4, 1).astype(jnp.float32)
    shift16 = jnp.repeat(shift, 4).reshape(c4, 1).astype(jnp.float32)

    # 1x1 conv packed so rows are (label, di) and cols are (co, di).
    fw = jnp.einsum('cl,de->ldce', params["fc_w"].astype(jnp.float32),
                    jnp.eye(4, dtype=jnp.float32)).reshape(n_labels * 4, c4)
    fb = jnp.repeat(params["fc_b"].astype(jnp.float32), 4).reshape(n_labels * 4, 1)

    kernel_b = functools.partial(_bn_relu_fc_softmax_kernel,
                                 tr=tr, n_labels=n_labels)
    out = pl.pallas_call(
        kernel_b,
        out_shape=jax.ShapeDtypeStruct((n, n_labels, hu, wu), jnp.float32),
        grid=(n, n_tiles),
        in_specs=[
            pl.BlockSpec((1, tr, c4, wu), lambda b, t: (b, t, 0, 0)),
            pl.BlockSpec((c4, 1), lambda b, t: (0, 0)),
            pl.BlockSpec((c4, 1), lambda b, t: (0, 0)),
            pl.BlockSpec((n_labels * 4, c4), lambda b, t: (0, 0)),
            pl.BlockSpec((n_labels * 4, 1), lambda b, t: (0, 0)),
        ],
        out_specs=pl.BlockSpec((1, n_labels, 4 * tr, wu),
                               lambda b, t: (b, 0, t, 0)),
        compiler_params=pltpu.CompilerParams(
            dimension_semantics=("parallel", "parallel"),
            vmem_limit_bytes=32 * 1024 * 1024),
    )(z, scale16, shift16, fw, fb)

    return out  # already NCHW (N, n_labels, 4H, 4W): no trailing transpose


# ---------------------------------------------------------------------------
# Pure-JAX reference (for correctness check)
# ---------------------------------------------------------------------------
def reference(x_nchw, params):
    N, Cin, H, W = x_nchw.shape
    # ConvTranspose2d k4/s4: disjoint 4x4 blocks
    up = jnp.einsum("nihw,iodk->nohdwk", x_nchw, params["up_w"])
    up = up.reshape(N, Cin, 4 * H, 4 * W) + params["up_b"][None, :, None, None]
    # 3x3 conv, padding 1
    w_oihw = jnp.transpose(params["conv_w"], (3, 2, 0, 1))
    z = jax.lax.conv_general_dilated(
        up, w_oihw, window_strides=(1, 1), padding=((1, 1), (1, 1)),
        dimension_numbers=("NCHW", "OIHW", "NCHW"),
    ) + params["conv_b"][None, :, None, None]
    # BN (training mode: batch stats, biased variance)
    mean = jnp.mean(z, axis=(0, 2, 3), keepdims=True)
    var = jnp.mean((z - mean) ** 2, axis=(0, 2, 3), keepdims=True)
    zn = (z - mean) / jnp.sqrt(var + 1e-5)
    zn = zn * params["bn_gamma"][None, :, None, None] + params["bn_beta"][None, :, None, None]
    h = jnp.maximum(zn, 0.0)
    logits = jnp.einsum("nchw,cl->nlhw", h, params["fc_w"]) + params["fc_b"][None, :, None, None]
    return jax.nn.softmax(logits, axis=1)


# ---------------------------------------------------------------------------
if __name__ == "__main__":
    N, Cin, H, W = 2, 4, 16, 16
    n_labels = 3

    key = jax.random.PRNGKey(0)
    k = jax.random.split(key, 7)
    params = {
        "up_w": 0.1 * jax.random.normal(k[0], (Cin, Cin, 4, 4), jnp.float32),
        "up_b": 0.1 * jax.random.normal(k[1], (Cin,), jnp.float32),
        "conv_w": 0.1 * jax.random.normal(k[2], (3, 3, Cin, Cin), jnp.float32),  # HWIO
        "conv_b": 0.1 * jax.random.normal(k[3], (Cin,), jnp.float32),
        "bn_gamma": jnp.ones((Cin,), jnp.float32),
        "bn_beta": jnp.zeros((Cin,), jnp.float32),
        "fc_w": 0.1 * jax.random.normal(k[4], (Cin, n_labels), jnp.float32),
        "fc_b": 0.1 * jax.random.normal(k[5], (n_labels,), jnp.float32),
    }
    x = jax.random.normal(k[6], (N, Cin, H, W), jnp.float32)

    fwd = jax.jit(output_transition)
    out = jax.block_until_ready(fwd(x, params))
    ref = jax.block_until_ready(reference(x, params))

    assert out.shape == (N, n_labels, 4 * H, 4 * W), out.shape
    # softmax over channel dim must sum to 1
    assert jnp.allclose(jnp.sum(out, axis=1), 1.0, atol=1e-4), "softmax sums != 1"
    assert jnp.allclose(out, ref, atol=1e-4, rtol=1e-4), float(jnp.max(jnp.abs(out - ref)))

    print("KERNEL_OK")
</pallas_src>

<mosaic_0001>
module attributes {stable_mosaic.version = 11 : i64} {
  func.func @_bn_relu_fc_softmax_kernel(%arg0: i32, %arg1: i32, %arg2: memref<1x16x16x64xf32, #tpu.memory_space<vmem>>, %arg3: memref<16x1xf32, #tpu.memory_space<vmem>>, %arg4: memref<16x1xf32, #tpu.memory_space<vmem>>, %arg5: memref<12x16xf32, #tpu.memory_space<vmem>>, %arg6: memref<12x1xf32, #tpu.memory_space<vmem>>, %arg7: memref<1x3x64x64xf32, #tpu.memory_space<vmem>>) attributes {dimension_semantics = [#tpu.dimension_semantics<parallel>, #tpu.dimension_semantics<parallel>], iteration_bounds = array<i64: 2, 1>, scalar_prefetch = 0 : i64, scratch_operands = 0 : i64, tpu.core_type = #tpu.core_type<tc>, window_params = [{transform_indices = @transform_0, window_bounds = array<i64: 1, 16, 16, 64>}, {pipeline_mode = #tpu.pipeline_mode<synchronous>, transform_indices = @transform_1, window_bounds = array<i64: 16, 1>}, {pipeline_mode = #tpu.pipeline_mode<synchronous>, transform_indices = @transform_2, window_bounds = array<i64: 16, 1>}, {pipeline_mode = #tpu.pipeline_mode<synchronous>, transform_indices = @transform_3, window_bounds = array<i64: 12, 16>}, {pipeline_mode = #tpu.pipeline_mode<synchronous>, transform_indices = @transform_4, window_bounds = array<i64: 12, 1>}, {transform_indices = @transform_5, window_bounds = array<i64: 1, 3, 64, 64>}]} {
    %c0 = arith.constant 0 : index
    %c0_0 = arith.constant 0 : index
    %0 = vector.load %arg3[%c0, %c0_0] : memref<16x1xf32, #tpu.memory_space<vmem>>, vector<16x1xf32>
    %c0_1 = arith.constant 0 : index
    %c0_2 = arith.constant 0 : index
    %1 = vector.load %arg4[%c0_1, %c0_2] : memref<16x1xf32, #tpu.memory_space<vmem>>, vector<16x1xf32>
    %c0_3 = arith.constant 0 : index
    %c0_4 = arith.constant 0 : index
    %2 = vector.load %arg5[%c0_3, %c0_4] : memref<12x16xf32, #tpu.memory_space<vmem>>, vector<12x16xf32>
    %c0_5 = arith.constant 0 : index
    %c0_6 = arith.constant 0 : index
    %3 = vector.load %arg6[%c0_5, %c0_6] : memref<12x1xf32, #tpu.memory_space<vmem>>, vector<12x1xf32>
    %c0_7 = arith.constant 0 : index
    %c0_8 = arith.constant 0 : index
    %c0_9 = arith.constant 0 : index
    %c0_10 = arith.constant 0 : index
    %4 = vector.load %arg2[%c0_7, %c0_8, %c0_9, %c0_10] : memref<1x16x16x64xf32, #tpu.memory_space<vmem>>, vector<1x1x16x64xf32>
    %5 = vector.shape_cast %4 : vector<1x1x16x64xf32> to vector<16x64xf32>
    %6 = vector.broadcast %0 : vector<16x1xf32> to vector<16x64xf32>
    %7 = arith.mulf %5, %6 : vector<16x64xf32>
    %8 = vector.broadcast %1 : vector<16x1xf32> to vector<16x64xf32>
    %9 = arith.addf %7, %8 : vector<16x64xf32>
    %cst = arith.constant 0.000000e+00 : f32
    %10 = vector.broadcast %cst : f32 to vector<16x64xf32>
    %11 = arith.maximumf %9, %10 : vector<16x64xf32>
    %cst_11 = arith.constant dense<0.000000e+00> : vector<12x64xf32>
    %12 = tpu.matmul %2, %11, %cst_11 {dimension_numbers = #tpu.dot_dimension_numbers<[1], [0], [0], [1], [0, 0, 1, 1], [], []>} : vector<12x16xf32>, vector<16x64xf32>, vector<12x64xf32> -> vector<12x64xf32>
    %13 = vector.broadcast %3 : vector<12x1xf32> to vector<12x64xf32>
    %14 = arith.addf %12, %13 : vector<12x64xf32>
    %15 = vector.extract_strided_slice %14 {offsets = [0, 0], sizes = [4, 64], strides = [1, 1]} : vector<12x64xf32> to vector<4x64xf32>
    %16 = vector.extract_strided_slice %14 {offsets = [4, 0], sizes = [4, 64], strides = [1, 1]} : vector<12x64xf32> to vector<4x64xf32>
    %17 = vector.extract_strided_slice %14 {offsets = [8, 0], sizes = [4, 64], strides = [1, 1]} : vector<12x64xf32> to vector<4x64xf32>
    %18 = arith.maximumf %15, %16 : vector<4x64xf32>
    %19 = arith.maximumf %18, %17 : vector<4x64xf32>
    %20 = arith.subf %15, %19 : vector<4x64xf32>
    %21 = math.exp %20 : vector<4x64xf32>
    %22 = arith.subf %16, %19 : vector<4x64xf32>
    %23 = math.exp %22 : vector<4x64xf32>
    %24 = arith.subf %17, %19 : vector<4x64xf32>
    %25 = math.exp %24 : vector<4x64xf32>
    %26 = arith.addf %21, %23 : vector<4x64xf32>
    %27 = arith.addf %26, %25 : vector<4x64xf32>
    %28 = tpu.reciprocal %27 : vector<4x64xf32> -> vector<4x64xf32>
    %29 = arith.mulf %21, %28 : vector<4x64xf32>
    %c0_12 = arith.constant 0 : index
    %c0_13 = arith.constant 0 : index
    %c0_14 = arith.constant 0 : index
    %c0_15 = arith.constant 0 : index
    %30 = vector.load %arg7[%c0_12, %c0_13, %c0_14, %c0_15] : memref<1x3x64x64xf32, #tpu.memory_space<vmem>>, vector<1x1x4x64xf32>
    %31 = vector.shape_cast %30 : vector<1x1x4x64xf32> to vector<4x64xf32>
    %32 = vector.shape_cast %29 : vector<4x64xf32> to vector<1x1x4x64xf32>
    tpu.vector_store %arg7[%c0_12, %c0_13, %c0_14, %c0_15], %32 {strides = array<i32>} : memref<1x3x64x64xf32, #tpu.memory_space<vmem>>, vector<1x1x4x64xf32>,
    %33 = arith.mulf %23, %28 : vector<4x64xf32>
    %c0_16 = arith.constant 0 : index
    %c1 = arith.constant 1 : index
    %c0_17 = arith.constant 0 : index
    %c0_18 = arith.constant 0 : index
    %34 = vector.load %arg7[%c0_16, %c1, %c0_17, %c0_18] : memref<1x3x64x64xf32, #tpu.memory_space<vmem>>, vector<1x1x4x64xf32>
    %35 = vector.shape_cast %34 : vector<1x1x4x64xf32> to vector<4x64xf32>
    %36 = vector.shape_cast %33 : vector<4x64xf32> to vector<1x1x4x64xf32>
    tpu.vector_store %arg7[%c0_16, %c1, %c0_17, %c0_18], %36 {strides = array<i32>} : memref<1x3x64x64xf32, #tpu.memory_space<vmem>>, vector<1x1x4x64xf32>,
    %37 = arith.mulf %25, %28 : vector<4x64xf32>
    %c0_19 = arith.constant 0 : index
    %c2 = arith.constant 2 : index
    %c0_20 = arith.constant 0 : index
    %c0_21 = arith.constant 0 : index
    %38 = vector.load %arg7[%c0_19, %c2, %c0_20, %c0_21] : memref<1x3x64x64xf32, #tpu.memory_space<vmem>>, vector<1x1x4x64xf32>
    %39 = vector.shape_cast %38 : vector<1x1x4x64xf32> to vector<4x64xf32>
    %40 = vector.shape_cast %37 : vector<4x64xf32> to vector<1x1x4x64xf32>
    tpu.vector_store %arg7[%c0_19, %c2, %c0_20, %c0_21], %40 {strides = array<i32>} : memref<1x3x64x64xf32, #tpu.memory_space<vmem>>, vector<1x1x4x64xf32>,
    %c0_22 = arith.constant 0 : index
    %c1_23 = arith.constant 1 : index
    %c0_24 = arith.constant 0 : index
    %c0_25 = arith.constant 0 : index
    %41 = vector.load %arg2[%c0_22, %c1_23, %c0_24, %c0_25] : memref<1x16x16x64xf32, #tpu.memory_space<vmem>>, vector<1x1x16x64xf32>
    %42 = vector.shape_cast %41 : vector<1x1x16x64xf32> to vector<16x64xf32>
    %43 = vector.broadcast %0 : vector<16x1xf32> to vector<16x64xf32>
    %44 = arith.mulf %42, %43 : vector<16x64xf32>
    %45 = vector.broadcast %1 : vector<16x1xf32> to vector<16x64xf32>
    %46 = arith.addf %44, %45 : vector<16x64xf32>
    %cst_26 = arith.constant 0.000000e+00 : f32
    %47 = vector.broadcast %cst_26 : f32 to vector<16x64xf32>
    %48 = arith.maximumf %46, %47 : vector<16x64xf32>
    %cst_27 = arith.constant dense<0.000000e+00> : vector<12x64xf32>
    %49 = tpu.matmul %2, %48, %cst_27 {dimension_numbers = #tpu.dot_dimension_numbers<[1], [0], [0], [1], [0, 0, 1, 1], [], []>} : vector<12x16xf32>, vector<16x64xf32>, vector<12x64xf32> -> vector<12x64xf32>
    %50 = vector.broadcast %3 : vector<12x1xf32> to vector<12x64xf32>
    %51 = arith.addf %49, %50 : vector<12x64xf32>
    %52 = vector.extract_strided_slice %51 {offsets = [0, 0], sizes = [4, 64], strides = [1, 1]} : vector<12x64xf32> to vector<4x64xf32>
    %53 = vector.extract_strided_slice %51 {offsets = [4, 0], sizes = [4, 64], strides = [1, 1]} : vector<12x64xf32> to vector<4x64xf32>
    %54 = vector.extract_strided_slice %51 {offsets = [8, 0], sizes = [4, 64], strides = [1, 1]} : vector<12x64xf32> to vector<4x64xf32>
    %55 = arith.maximumf %52, %53 : vector<4x64xf32>
    %56 = arith.maximumf %55, %54 : vector<4x64xf32>
    %57 = arith.subf %52, %56 : vector<4x64xf32>
    %58 = math.exp %57 : vector<4x64xf32>
    %59 = arith.subf %53, %56 : vector<4x64xf32>
    %60 = math.exp %59 : vector<4x64xf32>
    %61 = arith.subf %54, %56 : vector<4x64xf32>
    %62 = math.exp %61 : vector<4x64xf32>
    %63 = arith.addf %58, %60 : vector<4x64xf32>
    %64 = arith.addf %63, %62 : vector<4x64xf32>
    %65 = tpu.reciprocal %64 : vector<4x64xf32> -> vector<4x64xf32>
    %66 = arith.mulf %58, %65 : vector<4x64xf32>
    %c0_28 = arith.constant 0 : index
    %c0_29 = arith.constant 0 : index
    %c4 = arith.constant 4 : index
    %c0_30 = arith.constant 0 : index
    %67 = vector.load %arg7[%c0_28, %c0_29, %c4, %c0_30] : memref<1x3x64x64xf32, #tpu.memory_space<vmem>>, vector<1x1x4x64xf32>
    %68 = vector.shape_cast %67 : vector<1x1x4x64xf32> to vector<4x64xf32>
    %69 = vector.shape_cast %66 : vector<4x64xf32> to vector<1x1x4x64xf32>
    tpu.vector_store %arg7[%c0_28, %c0_29, %c4, %c0_30], %69 {strides = array<i32>} : memref<1x3x64x64xf32, #tpu.memory_space<vmem>>, vector<1x1x4x64xf32>,
    %70 = arith.mulf %60, %65 : vector<4x64xf32>
    %c0_31 = arith.constant 0 : index
    %c1_32 = arith.constant 1 : index
    %c4_33 = arith.constant 4 : index
    %c0_34 = arith.constant 0 : index
    %71 = vector.load %arg7[%c0_31, %c1_32, %c4_33, %c0_34] : memref<1x3x64x64xf32, #tpu.memory_space<vmem>>, vector<1x1x4x64xf32>
    %72 = vector.shape_cast %71 : vector<1x1x4x64xf32> to vector<4x64xf32>
    %73 = vector.shape_cast %70 : vector<4x64xf32> to vector<1x1x4x64xf32>
    tpu.vector_store %arg7[%c0_31, %c1_32, %c4_33, %c0_34], %73 {strides = array<i32>} : memref<1x3x64x64xf32, #tpu.memory_space<vmem>>, vector<1x1x4x64xf32>,
    %74 = arith.mulf %62, %65 : vector<4x64xf32>
    %c0_35 = arith.constant 0 : index
    %c2_36 = arith.constant 2 : index
    %c4_37 = arith.constant 4 : index
    %c0_38 = arith.constant 0 : index
    %75 = vector.load %arg7[%c0_35, %c2_36, %c4_37, %c0_38] : memref<1x3x64x64xf32, #tpu.memory_space<vmem>>, vector<1x1x4x64xf32>
    %76 = vector.shape_cast %75 : vector<1x1x4x64xf32> to vector<4x64xf32>
    %77 = vector.shape_cast %74 : vector<4x64xf32> to vector<1x1x4x64xf32>
    tpu.vector_store %arg7[%c0_35, %c2_36, %c4_37, %c0_38], %77 {strides = array<i32>} : memref<1x3x64x64xf32, #tpu.memory_space<vmem>>, vector<1x1x4x64xf32>,
    %c0_39 = arith.constant 0 : index
    %c2_40 = arith.constant 2 : index
    %c0_41 = arith.constant 0 : index
    %c0_42 = arith.constant 0 : index
    %78 = vector.load %arg2[%c0_39, %c2_40, %c0_41, %c0_42] : memref<1x16x16x64xf32, #tpu.memory_space<vmem>>, vector<1x1x16x64xf32>
    %79 = vector.shape_cast %78 : vector<1x1x16x64xf32> to vector<16x64xf32>
    %80 = vector.broadcast %0 : vector<16x1xf32> to vector<16x64xf32>
    %81 = arith.mulf %79, %80 : vector<16x64xf32>
    %82 = vector.broadcast %1 : vector<16x1xf32> to vector<16x64xf32>
    %83 = arith.addf %81, %82 : vector<16x64xf32>
    %cst_43 = arith.constant 0.000000e+00 : f32
    %84 = vector.broadcast %cst_43 : f32 to vector<16x64xf32>
    %85 = arith.maximumf %83, %84 : vector<16x64xf32>
    %cst_44 = arith.constant dense<0.000000e+00> : vector<12x64xf32>
    %86 = tpu.matmul %2, %85, %cst_44 {dimension_numbers = #tpu.dot_dimension_numbers<[1], [0], [0], [1], [0, 0, 1, 1], [], []>} : vector<12x16xf32>, vector<16x64xf32>, vector<12x64xf32> -> vector<12x64xf32>
    %87 = vector.broadcast %3 : vector<12x1xf32> to vector<12x64xf32>
    %88 = arith.addf %86, %87 : vector<12x64xf32>
    %89 = vector.extract_strided_slice %88 {offsets = [0, 0], sizes = [4, 64], strides = [1, 1]} : vector<12x64xf32> to vector<4x64xf32>
    %90 = vector.extract_strided_slice %88 {offsets = [4, 0], sizes = [4, 64], strides = [1, 1]} : vector<12x64xf32> to vector<4x64xf32>
    %91 = vector.extract_strided_slice %88 {offsets = [8, 0], sizes = [4, 64], strides = [1, 1]} : vector<12x64xf32> to vector<4x64xf32>
    %92 = arith.maximumf %89, %90 : vector<4x64xf32>
    %93 = arith.maximumf %92, %91 : vector<4x64xf32>
    %94 = arith.subf %89, %93 : vector<4x64xf32>
    %95 = math.exp %94 : vector<4x64xf32>
    %96 = arith.subf %90, %93 : vector<4x64xf32>
    %97 = math.exp %96 : vector<4x64xf32>
    %98 = arith.subf %91, %93 : vector<4x64xf32>
    %99 = math.exp %98 : vector<4x64xf32>
    %100 = arith.addf %95, %97 : vector<4x64xf32>
    %101 = arith.addf %100, %99 : vector<4x64xf32>
    %102 = tpu.reciprocal %101 : vector<4x64xf32> -> vector<4x64xf32>
    %103 = arith.mulf %95, %102 : vector<4x64xf32>
    %c0_45 = arith.constant 0 : index
    %c0_46 = arith.constant 0 : index
    %c8 = arith.constant 8 : index
    %c0_47 = arith.constant 0 : index
    %104 = vector.load %arg7[%c0_45, %c0_46, %c8, %c0_47] : memref<1x3x64x64xf32, #tpu.memory_space<vmem>>, vector<1x1x4x64xf32>
    %105 = vector.shape_cast %104 : vector<1x1x4x64xf32> to vector<4x64xf32>
    %106 = vector.shape_cast %103 : vector<4x64xf32> to vector<1x1x4x64xf32>
    tpu.vector_store %arg7[%c0_45, %c0_46, %c8, %c0_47], %106 {strides = array<i32>} : memref<1x3x64x64xf32, #tpu.memory_space<vmem>>, vector<1x1x4x64xf32>,
    %107 = arith.mulf %97, %102 : vector<4x64xf32>
    %c0_48 = arith.constant 0 : index
    %c1_49 = arith.constant 1 : index
    %c8_50 = arith.constant 8 : index
    %c0_51 = arith.constant 0 : index
    %108 = vector.load %arg7[%c0_48, %c1_49, %c8_50, %c0_51] : memref<1x3x64x64xf32, #tpu.memory_space<vmem>>, vector<1x1x4x64xf32>
    %109 = vector.shape_cast %108 : vector<1x1x4x64xf32> to vector<4x64xf32>
    %110 = vector.shape_cast %107 : vector<4x64xf32> to vector<1x1x4x64xf32>
    tpu.vector_store %arg7[%c0_48, %c1_49, %c8_50, %c0_51], %110 {strides = array<i32>} : memref<1x3x64x64xf32, #tpu.memory_space<vmem>>, vector<1x1x4x64xf32>,
    %111 = arith.mulf %99, %102 : vector<4x64xf32>
    %c0_52 = arith.constant 0 : index
    %c2_53 = arith.constant 2 : index
    %c8_54 = arith.constant 8 : index
    %c0_55 = arith.constant 0 : index
    %112 = vector.load %arg7[%c0_52, %c2_53, %c8_54, %c0_55] : memref<1x3x64x64xf32, #tpu.memory_space<vmem>>, vector<1x1x4x64xf32>
    %113 = vector.shape_cast %112 : vector<1x1x4x64xf32> to vector<4x64xf32>
    %114 = vector.shape_cast %111 : vector<4x64xf32> to vector<1x1x4x64xf32>
    tpu.vector_store %arg7[%c0_52, %c2_53, %c8_54, %c0_55], %114 {strides = array<i32>} : memref<1x3x64x64xf32, #tpu.memory_space<vmem>>, vector<1x1x4x64xf32>,
    %c0_56 = arith.constant 0 : index
    %c3 = arith.constant 3 : index
    %c0_57 = arith.constant 0 : index
    %c0_58 = arith.constant 0 : index
    %115 = vector.load %arg2[%c0_56, %c3, %c0_57, %c0_58] : memref<1x16x16x64xf32, #tpu.memory_space<vmem>>, vector<1x1x16x64xf32>
    %116 = vector.shape_cast %115 : vector<1x1x16x64xf32> to vector<16x64xf32>
    %117 = vector.broadcast %0 : vector<16x1xf32> to vector<16x64xf32>
    %118 = arith.mulf %116, %117 : vector<16x64xf32>
    %119 = vector.broadcast %1 : vector<16x1xf32> to vector<16x64xf32>
    %120 = arith.addf %118, %119 : vector<16x64xf32>
    %cst_59 = arith.constant 0.000000e+00 : f32
    %121 = vector.broadcast %cst_59 : f32 to vector<16x64xf32>
    %122 = arith.maximumf %120, %121 : vector<16x64xf32>
    %cst_60 = arith.constant dense<0.000000e+00> : vector<12x64xf32>
    %123 = tpu.matmul %2, %122, %cst_60 {dimension_numbers = #tpu.dot_dimension_numbers<[1], [0], [0], [1], [0, 0, 1, 1], [], []>} : vector<12x16xf32>, vector<16x64xf32>, vector<12x64xf32> -> vector<12x64xf32>
    %124 = vector.broadcast %3 : vector<12x1xf32> to vector<12x64xf32>
    %125 = arith.addf %123, %124 : vector<12x64xf32>
    %126 = vector.extract_strided_slice %125 {offsets = [0, 0], sizes = [4, 64], strides = [1, 1]} : vector<12x64xf32> to vector<4x64xf32>
    %127 = vector.extract_strided_slice %125 {offsets = [4, 0], sizes = [4, 64], strides = [1, 1]} : vector<12x64xf32> to vector<4x64xf32>
    %128 = vector.extract_strided_slice %125 {offsets = [8, 0], sizes = [4, 64], strides = [1, 1]} : vector<12x64xf32> to vector<4x64xf32>
    %129 = arith.maximumf %126, %127 : vector<4x64xf32>
    %130 = arith.maximumf %129, %128 : vector<4x64xf32>
    %131 = arith.subf %126, %130 : vector<4x64xf32>
    %132 = math.exp %131 : vector<4x64xf32>
    %133 = arith.subf %127, %130 : vector<4x64xf32>
    %134 = math.exp %133 : vector<4x64xf32>
    %135 = arith.subf %128, %130 : vector<4x64xf32>
    %136 = math.exp %135 : vector<4x64xf32>
    %137 = arith.addf %132, %134 : vector<4x64xf32>
    %138 = arith.addf %137, %136 : vector<4x64xf32>
    %139 = tpu.reciprocal %138 : vector<4x64xf32> -> vector<4x64xf32>
    %140 = arith.mulf %132, %139 : vector<4x64xf32>
    %c0_61 = arith.constant 0 : index
    %c0_62 = arith.constant 0 : index
    %c12 = arith.constant 12 : index
    %c0_63 = arith.constant 0 : index
    %141 = vector.load %arg7[%c0_61, %c0_62, %c12, %c0_63] : memref<1x3x64x64xf32, #tpu.memory_space<vmem>>, vector<1x1x4x64xf32>
    %142 = vector.shape_cast %141 : vector<1x1x4x64xf32> to vector<4x64xf32>
    %143 = vector.shape_cast %140 : vector<4x64xf32> to vector<1x1x4x64xf32>
    tpu.vector_store %arg7[%c0_61, %c0_62, %c12, %c0_63], %143 {strides = array<i32>} : memref<1x3x64x64xf32, #tpu.memory_space<vmem>>, vector<1x1x4x64xf32>,
    %144 = arith.mulf %134, %139 : vector<4x64xf32>
    %c0_64 = arith.constant 0 : index
    %c1_65 = arith.constant 1 : index
    %c12_66 = arith.constant 12 : index
    %c0_67 = arith.constant 0 : index
    %145 = vector.load %arg7[%c0_64, %c1_65, %c12_66, %c0_67] : memref<1x3x64x64xf32, #tpu.memory_space<vmem>>, vector<1x1x4x64xf32>
    %146 = vector.shape_cast %145 : vector<1x1x4x64xf32> to vector<4x64xf32>
    %147 = vector.shape_cast %144 : vector<4x64xf32> to vector<1x1x4x64xf32>
    tpu.vector_store %arg7[%c0_64, %c1_65, %c12_66, %c0_67], %147 {strides = array<i32>} : memref<1x3x64x64xf32, #tpu.memory_space<vmem>>, vector<1x1x4x64xf32>,
    %148 = arith.mulf %136, %139 : vector<4x64xf32>
    %c0_68 = arith.constant 0 : index
    %c2_69 = arith.constant 2 : index
    %c12_70 = arith.constant 12 : index
    %c0_71 = arith.constant 0 : index
    %149 = vector.load %arg7[%c0_68, %c2_69, %c12_70, %c0_71] : memref<1x3x64x64xf32, #tpu.memory_space<vmem>>, vector<1x1x4x64xf32>
    %150 = vector.shape_cast %149 : vector<1x1x4x64xf32> to vector<4x64xf32>
    %151 = vector.shape_cast %148 : vector<4x64xf32> to vector<1x1x4x64xf32>
    tpu.vector_store %arg7[%c0_68, %c2_69, %c12_70, %c0_71], %151 {strides = array<i32>} : memref<1x3x64x64xf32, #tpu.memory_space<vmem>>, vector<1x1x4x64xf32>,
    %c0_72 = arith.constant 0 : index
    %c4_73 = arith.constant 4 : index
    %c0_74 = arith.constant 0 : index
    %c0_75 = arith.constant 0 : index
    %152 = vector.load %arg2[%c0_72, %c4_73, %c0_74, %c0_75] : memref<1x16x16x64xf32, #tpu.memory_space<vmem>>, vector<1x1x16x64xf32>
    %153 = vector.shape_cast %152 : vector<1x1x16x64xf32> to vector<16x64xf32>
    %154 = vector.broadcast %0 : vector<16x1xf32> to vector<16x64xf32>
    %155 = arith.mulf %153, %154 : vector<16x64xf32>
    %156 = vector.broadcast %1 : vector<16x1xf32> to vector<16x64xf32>
    %157 = arith.addf %155, %156 : vector<16x64xf32>
    %cst_76 = arith.constant 0.000000e+00 : f32
    %158 = vector.broadcast %cst_76 : f32 to vector<16x64xf32>
    %159 = arith.maximumf %157, %158 : vector<16x64xf32>
    %cst_77 = arith.constant dense<0.000000e+00> : vector<12x64xf32>
    %160 = tpu.matmul %2, %159, %cst_77 {dimension_numbers = #tpu.dot_dimension_numbers<[1], [0], [0], [1], [0, 0, 1, 1], [], []>} : vector<12x16xf32>, vector<16x64xf32>, vector<12x64xf32> -> vector<12x64xf32>
    %161 = vector.broadcast %3 : vector<12x1xf32> to vector<12x64xf32>
    %162 = arith.addf %160, %161 : vector<12x64xf32>
    %163 = vector.extract_strided_slice %162 {offsets = [0, 0], sizes = [4, 64], strides = [1, 1]} : vector<12x64xf32> to vector<4x64xf32>
    %164 = vector.extract_strided_slice %162 {offsets = [4, 0], sizes = [4, 64], strides = [1, 1]} : vector<12x64xf32> to vector<4x64xf32>
    %165 = vector.extract_strided_slice %162 {offsets = [8, 0], sizes = [4, 64], strides = [1, 1]} : vector<12x64xf32> to vector<4x64xf32>
    %166 = arith.maximumf %163, %164 : vector<4x64xf32>
    %167 = arith.maximumf %166, %165 : vector<4x64xf32>
    %168 = arith.subf %163, %167 : vector<4x64xf32>
    %169 = math.exp %168 : vector<4x64xf32>
    %170 = arith.subf %164, %167 : vector<4x64xf32>
    %171 = math.exp %170 : vector<4x64xf32>
    %172 = arith.subf %165, %167 : vector<4x64xf32>
    %173 = math.exp %172 : vector<4x64xf32>
    %174 = arith.addf %169, %171 : vector<4x64xf32>
    %175 = arith.addf %174, %173 : vector<4x64xf32>
    %176 = tpu.reciprocal %175 : vector<4x64xf32> -> vector<4x64xf32>
    %177 = arith.mulf %169, %176 : vector<4x64xf32>
    %c0_78 = arith.constant 0 : index
    %c0_79 = arith.constant 0 : index
    %c16 = arith.constant 16 : index
    %c0_80 = arith.constant 0 : index
    %178 = vector.load %arg7[%c0_78, %c0_79, %c16, %c0_80] : memref<1x3x64x64xf32, #tpu.memory_space<vmem>>, vector<1x1x4x64xf32>
    %179 = vector.shape_cast %178 : vector<1x1x4x64xf32> to vector<4x64xf32>
    %180 = vector.shape_cast %177 : vector<4x64xf32> to vector<1x1x4x64xf32>
    tpu.vector_store %arg7[%c0_78, %c0_79, %c16, %c0_80], %180 {strides = array<i32>} : memref<1x3x64x64xf32, #tpu.memory_space<vmem>>, vector<1x1x4x64xf32>,
    %181 = arith.mulf %171, %176 : vector<4x64xf32>
    %c0_81 = arith.constant 0 : index
    %c1_82 = arith.constant 1 : index
    %c16_83 = arith.constant 16 : index
    %c0_84 = arith.constant 0 : index
    %182 = vector.load %arg7[%c0_81, %c1_82, %c16_83, %c0_84] : memref<1x3x64x64xf32, #tpu.memory_space<vmem>>, vector<1x1x4x64xf32>
    %183 = vector.shape_cast %182 : vector<1x1x4x64xf32> to vector<4x64xf32>
    %184 = vector.shape_cast %181 : vector<4x64xf32> to vector<1x1x4x64xf32>
    tpu.vector_store %arg7[%c0_81, %c1_82, %c16_83, %c0_84], %184 {strides = array<i32>} : memref<1x3x64x64xf32, #tpu.memory_space<vmem>>, vector<1x1x4x64xf32>,
    %185 = arith.mulf %173, %176 : vector<4x64xf32>
    %c0_85 = arith.constant 0 : index
    %c2_86 = arith.constant 2 : index
    %c16_87 = arith.constant 16 : index
    %c0_88 = arith.constant 0 : index
    %186 = vector.load %arg7[%c0_85, %c2_86, %c16_87, %c0_88] : memref<1x3x64x64xf32, #tpu.memory_space<vmem>>, vector<1x1x4x64xf32>
    %187 = vector.shape_cast %186 : vector<1x1x4x64xf32> to vector<4x64xf32>
    %188 = vector.shape_cast %185 : vector<4x64xf32> to vector<1x1x4x64xf32>
    tpu.vector_store %arg7[%c0_85, %c2_86, %c16_87, %c0_88], %188 {strides = array<i32>} : memref<1x3x64x64xf32, #tpu.memory_space<vmem>>, vector<1x1x4x64xf32>,
    %c0_89 = arith.constant 0 : index
    %c5 = arith.constant 5 : index
    %c0_90 = arith.constant 0 : index
    %c0_91 = arith.constant 0 : index
    %189 = vector.load %arg2[%c0_89, %c5, %c0_90, %c0_91] : memref<1x16x16x64xf32, #tpu.memory_space<vmem>>, vector<1x1x16x64xf32>
    %190 = vector.shape_cast %189 : vector<1x1x16x64xf32> to vector<16x64xf32>
    %191 = vector.broadcast %0 : vector<16x1xf32> to vector<16x64xf32>
    %192 = arith.mulf %190, %191 : vector<16x64xf32>
    %193 = vector.broadcast %1 : vector<16x1xf32> to vector<16x64xf32>
    %194 = arith.addf %192, %193 : vector<16x64xf32>
    %cst_92 = arith.constant 0.000000e+00 : f32
    %195 = vector.broadcast %cst_92 : f32 to vector<16x64xf32>
    %196 = arith.maximumf %194, %195 : vector<16x64xf32>
    %cst_93 = arith.constant dense<0.000000e+00> : vector<12x64xf32>
    %197 = tpu.matmul %2, %196, %cst_93 {dimension_numbers = #tpu.dot_dimension_numbers<[1], [0], [0], [1], [0, 0, 1, 1], [], []>} : vector<12x16xf32>, vector<16x64xf32>, vector<12x64xf32> -> vector<12x64xf32>
    %198 = vector.broadcast %3 : vector<12x1xf32> to vector<12x64xf32>
    %199 = arith.addf %197, %198 : vector<12x64xf32>
    %200 = vector.extract_strided_slice %199 {offsets = [0, 0], sizes = [4, 64], strides = [1, 1]} : vector<12x64xf32> to vector<4x64xf32>
    %201 = vector.extract_strided_slice %199 {offsets = [4, 0], sizes = [4, 64], strides = [1, 1]} : vector<12x64xf32> to vector<4x64xf32>
    %202 = vector.extract_strided_slice %199 {offsets = [8, 0], sizes = [4, 64], strides = [1, 1]} : vector<12x64xf32> to vector<4x64xf32>
    %203 = arith.maximumf %200, %201 : vector<4x64xf32>
    %204 = arith.maximumf %203, %202 : vector<4x64xf32>
    %205 = arith.subf %200, %204 : vector<4x64xf32>
    %206 = math.exp %205 : vector<4x64xf32>
    %207 = arith.subf %201, %204 : vector<4x64xf32>
    %208 = math.exp %207 : vector<4x64xf32>
    %209 = arith.subf %202, %204 : vector<4x64xf32>
    %210 = math.exp %209 : vector<4x64xf32>
    %211 = arith.addf %206, %208 : vector<4x64xf32>
    %212 = arith.addf %211, %210 : vector<4x64xf32>
    %213 = tpu.reciprocal %212 : vector<4x64xf32> -> vector<4x64xf32>
    %214 = arith.mulf %206, %213 : vector<4x64xf32>
    %c0_94 = arith.constant 0 : index
    %c0_95 = arith.constant 0 : index
    %c20 = arith.constant 20 : index
    %c0_96 = arith.constant 0 : index
    %215 = vector.load %arg7[%c0_94, %c0_95, %c20, %c0_96] : memref<1x3x64x64xf32, #tpu.memory_space<vmem>>, vector<1x1x4x64xf32>
    %216 = vector.shape_cast %215 : vector<1x1x4x64xf32> to vector<4x64xf32>
    %217 = vector.shape_cast %214 : vector<4x64xf32> to vector<1x1x4x64xf32>
    tpu.vector_store %arg7[%c0_94, %c0_95, %c20, %c0_96], %217 {strides = array<i32>} : memref<1x3x64x64xf32, #tpu.memory_space<vmem>>, vector<1x1x4x64xf32>,
    %218 = arith.mulf %208, %213 : vector<4x64xf32>
    %c0_97 = arith.constant 0 : index
    %c1_98 = arith.constant 1 : index
    %c20_99 = arith.constant 20 : index
    %c0_100 = arith.constant 0 : index
    %219 = vector.load %arg7[%c0_97, %c1_98, %c20_99, %c0_100] : memref<1x3x64x64xf32, #tpu.memory_space<vmem>>, vector<1x1x4x64xf32>
    %220 = vector.shape_cast %219 : vector<1x1x4x64xf32> to vector<4x64xf32>
    %221 = vector.shape_cast %218 : vector<4x64xf32> to vector<1x1x4x64xf32>
    tpu.vector_store %arg7[%c0_97, %c1_98, %c20_99, %c0_100], %221 {strides = array<i32>} : memref<1x3x64x64xf32, #tpu.memory_space<vmem>>, vector<1x1x4x64xf32>,
    %222 = arith.mulf %210, %213 : vector<4x64xf32>
    %c0_101 = arith.constant 0 : index
    %c2_102 = arith.constant 2 : index
    %c20_103 = arith.constant 20 : index
    %c0_104 = arith.constant 0 : index
    %223 = vector.load %arg7[%c0_101, %c2_102, %c20_103, %c0_104] : memref<1x3x64x64xf32, #tpu.memory_space<vmem>>, vector<1x1x4x64xf32>
    %224 = vector.shape_cast %223 : vector<1x1x4x64xf32> to vector<4x64xf32>
    %225 = vector.shape_cast %222 : vector<4x64xf32> to vector<1x1x4x64xf32>
    tpu.vector_store %arg7[%c0_101, %c2_102, %c20_103, %c0_104], %225 {strides = array<i32>} : memref<1x3x64x64xf32, #tpu.memory_space<vmem>>, vector<1x1x4x64xf32>,
    %c0_105 = arith.constant 0 : index
    %c6 = arith.constant 6 : index
    %c0_106 = arith.constant 0 : index
    %c0_107 = arith.constant 0 : index
    %226 = vector.load %arg2[%c0_105, %c6, %c0_106, %c0_107] : memref<1x16x16x64xf32, #tpu.memory_space<vmem>>, vector<1x1x16x64xf32>
    %227 = vector.shape_cast %226 : vector<1x1x16x64xf32> to vector<16x64xf32>
    %228 = vector.broadcast %0 : vector<16x1xf32> to vector<16x64xf32>
    %229 = arith.mulf %227, %228 : vector<16x64xf32>
    %230 = vector.broadcast %1 : vector<16x1xf32> to vector<16x64xf32>
    %231 = arith.addf %229, %230 : vector<16x64xf32>
    %cst_108 = arith.constant 0.000000e+00 : f32
    %232 = vector.broadcast %cst_108 : f32 to vector<16x64xf32>
    %233 = arith.maximumf %231, %232 : vector<16x64xf32>
    %cst_109 = arith.constant dense<0.000000e+00> : vector<12x64xf32>
    %234 = tpu.matmul %2, %233, %cst_109 {dimension_numbers = #tpu.dot_dimension_numbers<[1], [0], [0], [1], [0, 0, 1, 1], [], []>} : vector<12x16xf32>, vector<16x64xf32>, vector<12x64xf32> -> vector<12x64xf32>
    %235 = vector.broadcast %3 : vector<12x1xf32> to vector<12x64xf32>
    %236 = arith.addf %234, %235 : vector<12x64xf32>
    %237 = vector.extract_strided_slice %236 {offsets = [0, 0], sizes = [4, 64], strides = [1, 1]} : vector<12x64xf32> to vector<4x64xf32>
    %238 = vector.extract_strided_slice %236 {offsets = [4, 0], sizes = [4, 64], strides = [1, 1]} : vector<12x64xf32> to vector<4x64xf32>
    %239 = vector.extract_strided_slice %236 {offsets = [8, 0], sizes = [4, 64], strides = [1, 1]} : vector<12x64xf32> to vector<4x64xf32>
    %240 = arith.maximumf %237, %238 : vector<4x64xf32>
    %241 = arith.maximumf %240, %239 : vector<4x64xf32>
    %242 = arith.subf %237, %241 : vector<4x64xf32>
    %243 = math.exp %242 : vector<4x64xf32>
    %244 = arith.subf %238, %241 : vector<4x64xf32>
    %245 = math.exp %244 : vector<4x64xf32>
    %246 = arith.subf %239, %241 : vector<4x64xf32>
    %247 = math.exp %246 : vector<4x64xf32>
    %248 = arith.addf %243, %245 : vector<4x64xf32>
    %249 = arith.addf %248, %247 : vector<4x64xf32>
    %250 = tpu.reciprocal %249 : vector<4x64xf32> -> vector<4x64xf32>
    %251 = arith.mulf %243, %250 : vector<4x64xf32>
    %c0_110 = arith.constant 0 : index
    %c0_111 = arith.constant 0 : index
    %c24 = arith.constant 24 : index
    %c0_112 = arith.constant 0 : index
    %252 = vector.load %arg7[%c0_110, %c0_111, %c24, %c0_112] : memref<1x3x64x64xf32, #tpu.memory_space<vmem>>, vector<1x1x4x64xf32>
    %253 = vector.shape_cast %252 : vector<1x1x4x64xf32> to vector<4x64xf32>
    %254 = vector.shape_cast %251 : vector<4x64xf32> to vector<1x1x4x64xf32>
    tpu.vector_store %arg7[%c0_110, %c0_111, %c24, %c0_112], %254 {strides = array<i32>} : memref<1x3x64x64xf32, #tpu.memory_space<vmem>>, vector<1x1x4x64xf32>,
    %255 = arith.mulf %245, %250 : vector<4x64xf32>
    %c0_113 = arith.constant 0 : index
    %c1_114 = arith.constant 1 : index
    %c24_115 = arith.constant 24 : index
    %c0_116 = arith.constant 0 : index
    %256 = vector.load %arg7[%c0_113, %c1_114, %c24_115, %c0_116] : memref<1x3x64x64xf32, #tpu.memory_space<vmem>>, vector<1x1x4x64xf32>
    %257 = vector.shape_cast %256 : vector<1x1x4x64xf32> to vector<4x64xf32>
    %258 = vector.shape_cast %255 : vector<4x64xf32> to vector<1x1x4x64xf32>
    tpu.vector_store %arg7[%c0_113, %c1_114, %c24_115, %c0_116], %258 {strides = array<i32>} : memref<1x3x64x64xf32, #tpu.memory_space<vmem>>, vector<1x1x4x64xf32>,
    %259 = arith.mulf %247, %250 : vector<4x64xf32>
    %c0_117 = arith.constant 0 : index
    %c2_118 = arith.constant 2 : index
    %c24_119 = arith.constant 24 : index
    %c0_120 = arith.constant 0 : index
    %260 = vector.load %arg7[%c0_117, %c2_118, %c24_119, %c0_120] : memref<1x3x64x64xf32, #tpu.memory_space<vmem>>, vector<1x1x4x64xf32>
    %261 = vector.shape_cast %260 : vector<1x1x4x64xf32> to vector<4x64xf32>
    %262 = vector.shape_cast %259 : vector<4x64xf32> to vector<1x1x4x64xf32>
    tpu.vector_store %arg7[%c0_117, %c2_118, %c24_119, %c0_120], %262 {strides = array<i32>} : memref<1x3x64x64xf32, #tpu.memory_space<vmem>>, vector<1x1x4x64xf32>,
    %c0_121 = arith.constant 0 : index
    %c7 = arith.constant 7 : index
    %c0_122 = arith.constant 0 : index
    %c0_123 = arith.constant 0 : index
    %263 = vector.load %arg2[%c0_121, %c7, %c0_122, %c0_123] : memref<1x16x16x64xf32, #tpu.memory_space<vmem>>, vector<1x1x16x64xf32>
    %264 = vector.shape_cast %263 : vector<1x1x16x64xf32> to vector<16x64xf32>
    %265 = vector.broadcast %0 : vector<16x1xf32> to vector<16x64xf32>
    %266 = arith.mulf %264, %265 : vector<16x64xf32>
    %267 = vector.broadcast %1 : vector<16x1xf32> to vector<16x64xf32>
    %268 = arith.addf %266, %267 : vector<16x64xf32>
    %cst_124 = arith.constant 0.000000e+00 : f32
    %269 = vector.broadcast %cst_124 : f32 to vector<16x64xf32>
    %270 = arith.maximumf %268, %269 : vector<16x64xf32>
    %cst_125 = arith.constant dense<0.000000e+00> : vector<12x64xf32>
    %271 = tpu.matmul %2, %270, %cst_125 {dimension_numbers = #tpu.dot_dimension_numbers<[1], [0], [0], [1], [0, 0, 1, 1], [], []>} : vector<12x16xf32>, vector<16x64xf32>, vector<12x64xf32> -> vector<12x64xf32>
    %272 = vector.broadcast %3 : vector<12x1xf32> to vector<12x64xf32>
    %273 = arith.addf %271, %272 : vector<12x64xf32>
    %274 = vector.extract_strided_slice %273 {offsets = [0, 0], sizes = [4, 64], strides = [1, 1]} : vector<12x64xf32> to vector<4x64xf32>
    %275 = vector.extract_strided_slice %273 {offsets = [4, 0], sizes = [4, 64], strides = [1, 1]} : vector<12x64xf32> to vector<4x64xf32>
    %276 = vector.extract_strided_slice %273 {offsets = [8, 0], sizes = [4, 64], strides = [1, 1]} : vector<12x64xf32> to vector<4x64xf32>
    %277 = arith.maximumf %274, %275 : vector<4x64xf32>
    %278 = arith.maximumf %277, %276 : vector<4x64xf32>
    %279 = arith.subf %274, %278 : vector<4x64xf32>
    %280 = math.exp %279 : vector<4x64xf32>
    %281 = arith.subf %275, %278 : vector<4x64xf32>
    %282 = math.exp %281 : vector<4x64xf32>
    %283 = arith.subf %276, %278 : vector<4x64xf32>
    %284 = math.exp %283 : vector<4x64xf32>
    %285 = arith.addf %280, %282 : vector<4x64xf32>
    %286 = arith.addf %285, %284 : vector<4x64xf32>
    %287 = tpu.reciprocal %286 : vector<4x64xf32> -> vector<4x64xf32>
    %288 = arith.mulf %280, %287 : vector<4x64xf32>
    %c0_126 = arith.constant 0 : index
    %c0_127 = arith.constant 0 : index
    %c28 = arith.constant 28 : index
    %c0_128 = arith.constant 0 : index
    %289 = vector.load %arg7[%c0_126, %c0_127, %c28, %c0_128] : memref<1x3x64x64xf32, #tpu.memory_space<vmem>>, vector<1x1x4x64xf32>
    %290 = vector.shape_cast %289 : vector<1x1x4x64xf32> to vector<4x64xf32>
    %291 = vector.shape_cast %288 : vector<4x64xf32> to vector<1x1x4x64xf32>
    tpu.vector_store %arg7[%c0_126, %c0_127, %c28, %c0_128], %291 {strides = array<i32>} : memref<1x3x64x64xf32, #tpu.memory_space<vmem>>, vector<1x1x4x64xf32>,
    %292 = arith.mulf %282, %287 : vector<4x64xf32>
    %c0_129 = arith.constant 0 : index
    %c1_130 = arith.constant 1 : index
    %c28_131 = arith.constant 28 : index
    %c0_132 = arith.constant 0 : index
    %293 = vector.load %arg7[%c0_129, %c1_130, %c28_131, %c0_132] : memref<1x3x64x64xf32, #tpu.memory_space<vmem>>, vector<1x1x4x64xf32>
    %294 = vector.shape_cast %293 : vector<1x1x4x64xf32> to vector<4x64xf32>
    %295 = vector.shape_cast %292 : vector<4x64xf32> to vector<1x1x4x64xf32>
    tpu.vector_store %arg7[%c0_129, %c1_130, %c28_131, %c0_132], %295 {strides = array<i32>} : memref<1x3x64x64xf32, #tpu.memory_space<vmem>>, vector<1x1x4x64xf32>,
    %296 = arith.mulf %284, %287 : vector<4x64xf32>
    %c0_133 = arith.constant 0 : index
    %c2_134 = arith.constant 2 : index
    %c28_135 = arith.constant 28 : index
    %c0_136 = arith.constant 0 : index
    %297 = vector.load %arg7[%c0_133, %c2_134, %c28_135, %c0_136] : memref<1x3x64x64xf32, #tpu.memory_space<vmem>>, vector<1x1x4x64xf32>
    %298 = vector.shape_cast %297 : vector<1x1x4x64xf32> to vector<4x64xf32>
    %299 = vector.shape_cast %296 : vector<4x64xf32> to vector<1x1x4x64xf32>
    tpu.vector_store %arg7[%c0_133, %c2_134, %c28_135, %c0_136], %299 {strides = array<i32>} : memref<1x3x64x64xf32, #tpu.memory_space<vmem>>, vector<1x1x4x64xf32>,
    %c0_137 = arith.constant 0 : index
    %c8_138 = arith.constant 8 : index
    %c0_139 = arith.constant 0 : index
    %c0_140 = arith.constant 0 : index
    %300 = vector.load %arg2[%c0_137, %c8_138, %c0_139, %c0_140] : memref<1x16x16x64xf32, #tpu.memory_space<vmem>>, vector<1x1x16x64xf32>
    %301 = vector.shape_cast %300 : vector<1x1x16x64xf32> to vector<16x64xf32>
    %302 = vector.broadcast %0 : vector<16x1xf32> to vector<16x64xf32>
    %303 = arith.mulf %301, %302 : vector<16x64xf32>
    %304 = vector.broadcast %1 : vector<16x1xf32> to vector<16x64xf32>
    %305 = arith.addf %303, %304 : vector<16x64xf32>
    %cst_141 = arith.constant 0.000000e+00 : f32
    %306 = vector.broadcast %cst_141 : f32 to vector<16x64xf32>
    %307 = arith.maximumf %305, %306 : vector<16x64xf32>
    %cst_142 = arith.constant dense<0.000000e+00> : vector<12x64xf32>
    %308 = tpu.matmul %2, %307, %cst_142 {dimension_numbers = #tpu.dot_dimension_numbers<[1], [0], [0], [1], [0, 0, 1, 1], [], []>} : vector<12x16xf32>, vector<16x64xf32>, vector<12x64xf32> -> vector<12x64xf32>
    %309 = vector.broadcast %3 : vector<12x1xf32> to vector<12x64xf32>
    %310 = arith.addf %308, %309 : vector<12x64xf32>
    %311 = vector.extract_strided_slice %310 {offsets = [0, 0], sizes = [4, 64], strides = [1, 1]} : vector<12x64xf32> to vector<4x64xf32>
    %312 = vector.extract_strided_slice %310 {offsets = [4, 0], sizes = [4, 64], strides = [1, 1]} : vector<12x64xf32> to vector<4x64xf32>
    %313 = vector.extract_strided_slice %310 {offsets = [8, 0], sizes = [4, 64], strides = [1, 1]} : vector<12x64xf32> to vector<4x64xf32>
    %314 = arith.maximumf %311, %312 : vector<4x64xf32>
    %315 = arith.maximumf %314, %313 : vector<4x64xf32>
    %316 = arith.subf %311, %315 : vector<4x64xf32>
    %317 = math.exp %316 : vector<4x64xf32>
    %318 = arith.subf %312, %315 : vector<4x64xf32>
    %319 = math.exp %318 : vector<4x64xf32>
    %320 = arith.subf %313, %315 : vector<4x64xf32>
    %321 = math.exp %320 : vector<4x64xf32>
    %322 = arith.addf %317, %319 : vector<4x64xf32>
    %323 = arith.addf %322, %321 : vector<4x64xf32>
    %324 = tpu.reciprocal %323 : vector<4x64xf32> -> vector<4x64xf32>
    %325 = arith.mulf %317, %324 : vector<4x64xf32>
    %c0_143 = arith.constant 0 : index
    %c0_144 = arith.constant 0 : index
    %c32 = arith.constant 32 : index
    %c0_145 = arith.constant 0 : index
    %326 = vector.load %arg7[%c0_143, %c0_144, %c32, %c0_145] : memref<1x3x64x64xf32, #tpu.memory_space<vmem>>, vector<1x1x4x64xf32>
    %327 = vector.shape_cast %326 : vector<1x1x4x64xf32> to vector<4x64xf32>
    %328 = vector.shape_cast %325 : vector<4x64xf32> to vector<1x1x4x64xf32>
    tpu.vector_store %arg7[%c0_143, %c0_144, %c32, %c0_145], %328 {strides = array<i32>} : memref<1x3x64x64xf32, #tpu.memory_space<vmem>>, vector<1x1x4x64xf32>,
    %329 = arith.mulf %319, %324 : vector<4x64xf32>
    %c0_146 = arith.constant 0 : index
    %c1_147 = arith.constant 1 : index
    %c32_148 = arith.constant 32 : index
    %c0_149 = arith.constant 0 : index
    %330 = vector.load %arg7[%c0_146, %c1_147, %c32_148, %c0_149] : memref<1x3x64x64xf32, #tpu.memory_space<vmem>>, vector<1x1x4x64xf32>
    %331 = vector.shape_cast %330 : vector<1x1x4x64xf32> to vector<4x64xf32>
    %332 = vector.shape_cast %329 : vector<4x64xf32> to vector<1x1x4x64xf32>
    tpu.vector_store %arg7[%c0_146, %c1_147, %c32_148, %c0_149], %332 {strides = array<i32>} : memref<1x3x64x64xf32, #tpu.memory_space<vmem>>, vector<1x1x4x64xf32>,
    %333 = arith.mulf %321, %324 : vector<4x64xf32>
    %c0_150 = arith.constant 0 : index
    %c2_151 = arith.constant 2 : index
    %c32_152 = arith.constant 32 : index
    %c0_153 = arith.constant 0 : index
    %334 = vector.load %arg7[%c0_150, %c2_151, %c32_152, %c0_153] : memref<1x3x64x64xf32, #tpu.memory_space<vmem>>, vector<1x1x4x64xf32>
    %335 = vector.shape_cast %334 : vector<1x1x4x64xf32> to vector<4x64xf32>
    %336 = vector.shape_cast %333 : vector<4x64xf32> to vector<1x1x4x64xf32>
    tpu.vector_store %arg7[%c0_150, %c2_151, %c32_152, %c0_153], %336 {strides = array<i32>} : memref<1x3x64x64xf32, #tpu.memory_space<vmem>>, vector<1x1x4x64xf32>,
    %c0_154 = arith.constant 0 : index
    %c9 = arith.constant 9 : index
    %c0_155 = arith.constant 0 : index
    %c0_156 = arith.constant 0 : index
    %337 = vector.load %arg2[%c0_154, %c9, %c0_155, %c0_156] : memref<1x16x16x64xf32, #tpu.memory_space<vmem>>, vector<1x1x16x64xf32>
    %338 = vector.shape_cast %337 : vector<1x1x16x64xf32> to vector<16x64xf32>
    %339 = vector.broadcast %0 : vector<16x1xf32> to vector<16x64xf32>
    %340 = arith.mulf %338, %339 : vector<16x64xf32>
    %341 = vector.broadcast %1 : vector<16x1xf32> to vector<16x64xf32>
    %342 = arith.addf %340, %341 : vector<16x64xf32>
    %cst_157 = arith.constant 0.000000e+00 : f32
    %343 = vector.broadcast %cst_157 : f32 to vector<16x64xf32>
    %344 = arith.maximumf %342, %343 : vector<16x64xf32>
    %cst_158 = arith.constant dense<0.000000e+00> : vector<12x64xf32>
    %345 = tpu.matmul %2, %344, %cst_158 {dimension_numbers = #tpu.dot_dimension_numbers<[1], [0], [0], [1], [0, 0, 1, 1], [], []>} : vector<12x16xf32>, vector<16x64xf32>, vector<12x64xf32> -> vector<12x64xf32>
    %346 = vector.broadcast %3 : vector<12x1xf32> to vector<12x64xf32>
    %347 = arith.addf %345, %346 : vector<12x64xf32>
    %348 = vector.extract_strided_slice %347 {offsets = [0, 0], sizes = [4, 64], strides = [1, 1]} : vector<12x64xf32> to vector<4x64xf32>
    %349 = vector.extract_strided_slice %347 {offsets = [4, 0], sizes = [4, 64], strides = [1, 1]} : vector<12x64xf32> to vector<4x64xf32>
    %350 = vector.extract_strided_slice %347 {offsets = [8, 0], sizes = [4, 64], strides = [1, 1]} : vector<12x64xf32> to vector<4x64xf32>
    %351 = arith.maximumf %348, %349 : vector<4x64xf32>
    %352 = arith.maximumf %351, %350 : vector<4x64xf32>
    %353 = arith.subf %348, %352 : vector<4x64xf32>
    %354 = math.exp %353 : vector<4x64xf32>
    %355 = arith.subf %349, %352 : vector<4x64xf32>
    %356 = math.exp %355 : vector<4x64xf32>
    %357 = arith.subf %350, %352 : vector<4x64xf32>
    %358 = math.exp %357 : vector<4x64xf32>
    %359 = arith.addf %354, %356 : vector<4x64xf32>
    %360 = arith.addf %359, %358 : vector<4x64xf32>
    %361 = tpu.reciprocal %360 : vector<4x64xf32> -> vector<4x64xf32>
    %362 = arith.mulf %354, %361 : vector<4x64xf32>
    %c0_159 = arith.constant 0 : index
    %c0_160 = arith.constant 0 : index
    %c36 = arith.constant 36 : index
    %c0_161 = arith.constant 0 : index
    %363 = vector.load %arg7[%c0_159, %c0_160, %c36, %c0_161] : memref<1x3x64x64xf32, #tpu.memory_space<vmem>>, vector<1x1x4x64xf32>
    %364 = vector.shape_cast %363 : vector<1x1x4x64xf32> to vector<4x64xf32>
    %365 = vector.shape_cast %362 : vector<4x64xf32> to vector<1x1x4x64xf32>
    tpu.vector_store %arg7[%c0_159, %c0_160, %c36, %c0_161], %365 {strides = array<i32>} : memref<1x3x64x64xf32, #tpu.memory_space<vmem>>, vector<1x1x4x64xf32>,
    %366 = arith.mulf %356, %361 : vector<4x64xf32>
    %c0_162 = arith.constant 0 : index
    %c1_163 = arith.constant 1 : index
    %c36_164 = arith.constant 36 : index
    %c0_165 = arith.constant 0 : index
    %367 = vector.load %arg7[%c0_162, %c1_163, %c36_164, %c0_165] : memref<1x3x64x64xf32, #tpu.memory_space<vmem>>, vector<1x1x4x64xf32>
    %368 = vector.shape_cast %367 : vector<1x1x4x64xf32> to vector<4x64xf32>
    %369 = vector.shape_cast %366 : vector<4x64xf32> to vector<1x1x4x64xf32>
    tpu.vector_store %arg7[%c0_162, %c1_163, %c36_164, %c0_165], %369 {strides = array<i32>} : memref<1x3x64x64xf32, #tpu.memory_space<vmem>>, vector<1x1x4x64xf32>,
    %370 = arith.mulf %358, %361 : vector<4x64xf32>
    %c0_166 = arith.constant 0 : index
    %c2_167 = arith.constant 2 : index
    %c36_168 = arith.constant 36 : index
    %c0_169 = arith.constant 0 : index
    %371 = vector.load %arg7[%c0_166, %c2_167, %c36_168, %c0_169] : memref<1x3x64x64xf32, #tpu.memory_space<vmem>>, vector<1x1x4x64xf32>
    %372 = vector.shape_cast %371 : vector<1x1x4x64xf32> to vector<4x64xf32>
    %373 = vector.shape_cast %370 : vector<4x64xf32> to vector<1x1x4x64xf32>
    tpu.vector_store %arg7[%c0_166, %c2_167, %c36_168, %c0_169], %373 {strides = array<i32>} : memref<1x3x64x64xf32, #tpu.memory_space<vmem>>, vector<1x1x4x64xf32>,
    %c0_170 = arith.constant 0 : index
    %c10 = arith.constant 10 : index
    %c0_171 = arith.constant 0 : index
    %c0_172 = arith.constant 0 : index
    %374 = vector.load %arg2[%c0_170, %c10, %c0_171, %c0_172] : memref<1x16x16x64xf32, #tpu.memory_space<vmem>>, vector<1x1x16x64xf32>
    %375 = vector.shape_cast %374 : vector<1x1x16x64xf32> to vector<16x64xf32>
    %376 = vector.broadcast %0 : vector<16x1xf32> to vector<16x64xf32>
    %377 = arith.mulf %375, %376 : vector<16x64xf32>
    %378 = vector.broadcast %1 : vector<16x1xf32> to vector<16x64xf32>
    %379 = arith.addf %377, %378 : vector<16x64xf32>
    %cst_173 = arith.constant 0.000000e+00 : f32
    %380 = vector.broadcast %cst_173 : f32 to vector<16x64xf32>
    %381 = arith.maximumf %379, %380 : vector<16x64xf32>
    %cst_174 = arith.constant dense<0.000000e+00> : vector<12x64xf32>
    %382 = tpu.matmul %2, %381, %cst_174 {dimension_numbers = #tpu.dot_dimension_numbers<[1], [0], [0], [1], [0, 0, 1, 1], [], []>} : vector<12x16xf32>, vector<16x64xf32>, vector<12x64xf32> -> vector<12x64xf32>
    %383 = vector.broadcast %3 : vector<12x1xf32> to vector<12x64xf32>
    %384 = arith.addf %382, %383 : vector<12x64xf32>
    %385 = vector.extract_strided_slice %384 {offsets = [0, 0], sizes = [4, 64], strides = [1, 1]} : vector<12x64xf32> to vector<4x64xf32>
    %386 = vector.extract_strided_slice %384 {offsets = [4, 0], sizes = [4, 64], strides = [1, 1]} : vector<12x64xf32> to vector<4x64xf32>
    %387 = vector.extract_strided_slice %384 {offsets = [8, 0], sizes = [4, 64], strides = [1, 1]} : vector<12x64xf32> to vector<4x64xf32>
    %388 = arith.maximumf %385, %386 : vector<4x64xf32>
    %389 = arith.maximumf %388, %387 : vector<4x64xf32>
    %390 = arith.subf %385, %389 : vector<4x64xf32>
    %391 = math.exp %390 : vector<4x64xf32>
    %392 = arith.subf %386, %389 : vector<4x64xf32>
    %393 = math.exp %392 : vector<4x64xf32>
    %394 = arith.subf %387, %389 : vector<4x64xf32>
    %395 = math.exp %394 : vector<4x64xf32>
    %396 = arith.addf %391, %393 : vector<4x64xf32>
    %397 = arith.addf %396, %395 : vector<4x64xf32>
    %398 = tpu.reciprocal %397 : vector<4x64xf32> -> vector<4x64xf32>
    %399 = arith.mulf %391, %398 : vector<4x64xf32>
    %c0_175 = arith.constant 0 : index
    %c0_176 = arith.constant 0 : index
    %c40 = arith.constant 40 : index
    %c0_177 = arith.constant 0 : index
    %400 = vector.load %arg7[%c0_175, %c0_176, %c40, %c0_177] : memref<1x3x64x64xf32, #tpu.memory_space<vmem>>, vector<1x1x4x64xf32>
    %401 = vector.shape_cast %400 : vector<1x1x4x64xf32> to vector<4x64xf32>
    %402 = vector.shape_cast %399 : vector<4x64xf32> to vector<1x1x4x64xf32>
    tpu.vector_store %arg7[%c0_175, %c0_176, %c40, %c0_177], %402 {strides = array<i32>} : memref<1x3x64x64xf32, #tpu.memory_space<vmem>>, vector<1x1x4x64xf32>,
    %403 = arith.mulf %393, %398 : vector<4x64xf32>
    %c0_178 = arith.constant 0 : index
    %c1_179 = arith.constant 1 : index
    %c40_180 = arith.constant 40 : index
    %c0_181 = arith.constant 0 : index
    %404 = vector.load %arg7[%c0_178, %c1_179, %c40_180, %c0_181] : memref<1x3x64x64xf32, #tpu.memory_space<vmem>>, vector<1x1x4x64xf32>
    %405 = vector.shape_cast %404 : vector<1x1x4x64xf32> to vector<4x64xf32>
    %406 = vector.shape_cast %403 : vector<4x64xf32> to vector<1x1x4x64xf32>
    tpu.vector_store %arg7[%c0_178, %c1_179, %c40_180, %c0_181], %406 {strides = array<i32>} : memref<1x3x64x64xf32, #tpu.memory_space<vmem>>, vector<1x1x4x64xf32>,
    %407 = arith.mulf %395, %398 : vector<4x64xf32>
    %c0_182 = arith.constant 0 : index
    %c2_183 = arith.constant 2 : index
    %c40_184 = arith.constant 40 : index
    %c0_185 = arith.constant 0 : index
    %408 = vector.load %arg7[%c0_182, %c2_183, %c40_184, %c0_185] : memref<1x3x64x64xf32, #tpu.memory_space<vmem>>, vector<1x1x4x64xf32>
    %409 = vector.shape_cast %408 : vector<1x1x4x64xf32> to vector<4x64xf32>
    %410 = vector.shape_cast %407 : vector<4x64xf32> to vector<1x1x4x64xf32>
    tpu.vector_store %arg7[%c0_182, %c2_183, %c40_184, %c0_185], %410 {strides = array<i32>} : memref<1x3x64x64xf32, #tpu.memory_space<vmem>>, vector<1x1x4x64xf32>,
    %c0_186 = arith.constant 0 : index
    %c11 = arith.constant 11 : index
    %c0_187 = arith.constant 0 : index
    %c0_188 = arith.constant 0 : index
    %411 = vector.load %arg2[%c0_186, %c11, %c0_187, %c0_188] : memref<1x16x16x64xf32, #tpu.memory_space<vmem>>, vector<1x1x16x64xf32>
    %412 = vector.shape_cast %411 : vector<1x1x16x64xf32> to vector<16x64xf32>
    %413 = vector.broadcast %0 : vector<16x1xf32> to vector<16x64xf32>
    %414 = arith.mulf %412, %413 : vector<16x64xf32>
    %415 = vector.broadcast %1 : vector<16x1xf32> to vector<16x64xf32>
    %416 = arith.addf %414, %415 : vector<16x64xf32>
    %cst_189 = arith.constant 0.000000e+00 : f32
    %417 = vector.broadcast %cst_189 : f32 to vector<16x64xf32>
    %418 = arith.maximumf %416, %417 : vector<16x64xf32>
    %cst_190 = arith.constant dense<0.000000e+00> : vector<12x64xf32>
    %419 = tpu.matmul %2, %418, %cst_190 {dimension_numbers = #tpu.dot_dimension_numbers<[1], [0], [0], [1], [0, 0, 1, 1], [], []>} : vector<12x16xf32>, vector<16x64xf32>, vector<12x64xf32> -> vector<12x64xf32>
    %420 = vector.broadcast %3 : vector<12x1xf32> to vector<12x64xf32>
    %421 = arith.addf %419, %420 : vector<12x64xf32>
    %422 = vector.extract_strided_slice %421 {offsets = [0, 0], sizes = [4, 64], strides = [1, 1]} : vector<12x64xf32> to vector<4x64xf32>
    %423 = vector.extract_strided_slice %421 {offsets = [4, 0], sizes = [4, 64], strides = [1, 1]} : vector<12x64xf32> to vector<4x64xf32>
    %424 = vector.extract_strided_slice %421 {offsets = [8, 0], sizes = [4, 64], strides = [1, 1]} : vector<12x64xf32> to vector<4x64xf32>
    %425 = arith.maximumf %422, %423 : vector<4x64xf32>
    %426 = arith.maximumf %425, %424 : vector<4x64xf32>
    %427 = arith.subf %422, %426 : vector<4x64xf32>
    %428 = math.exp %427 : vector<4x64xf32>
    %429 = arith.subf %423, %426 : vector<4x64xf32>
    %430 = math.exp %429 : vector<4x64xf32>
    %431 = arith.subf %424, %426 : vector<4x64xf32>
    %432 = math.exp %431 : vector<4x64xf32>
    %433 = arith.addf %428, %430 : vector<4x64xf32>
    %434 = arith.addf %433, %432 : vector<4x64xf32>
    %435 = tpu.reciprocal %434 : vector<4x64xf32> -> vector<4x64xf32>
    %436 = arith.mulf %428, %435 : vector<4x64xf32>
    %c0_191 = arith.constant 0 : index
    %c0_192 = arith.constant 0 : index
    %c44 = arith.constant 44 : index
    %c0_193 = arith.constant 0 : index
    %437 = vector.load %arg7[%c0_191, %c0_192, %c44, %c0_193] : memref<1x3x64x64xf32, #tpu.memory_space<vmem>>, vector<1x1x4x64xf32>
    %438 = vector.shape_cast %437 : vector<1x1x4x64xf32> to vector<4x64xf32>
    %439 = vector.shape_cast %436 : vector<4x64xf32> to vector<1x1x4x64xf32>
    tpu.vector_store %arg7[%c0_191, %c0_192, %c44, %c0_193], %439 {strides = array<i32>} : memref<1x3x64x64xf32, #tpu.memory_space<vmem>>, vector<1x1x4x64xf32>,
    %440 = arith.mulf %430, %435 : vector<4x64xf32>
    %c0_194 = arith.constant 0 : index
    %c1_195 = arith.constant 1 : index
    %c44_196 = arith.constant 44 : index
    %c0_197 = arith.constant 0 : index
    %441 = vector.load %arg7[%c0_194, %c1_195, %c44_196, %c0_197] : memref<1x3x64x64xf32, #tpu.memory_space<vmem>>, vector<1x1x4x64xf32>
    %442 = vector.shape_cast %441 : vector<1x1x4x64xf32> to vector<4x64xf32>
    %443 = vector.shape_cast %440 : vector<4x64xf32> to vector<1x1x4x64xf32>
    tpu.vector_store %arg7[%c0_194, %c1_195, %c44_196, %c0_197], %443 {strides = array<i32>} : memref<1x3x64x64xf32, #tpu.memory_space<vmem>>, vector<1x1x4x64xf32>,
    %444 = arith.mulf %432, %435 : vector<4x64xf32>
    %c0_198 = arith.constant 0 : index
    %c2_199 = arith.constant 2 : index
    %c44_200 = arith.constant 44 : index
    %c0_201 = arith.constant 0 : index
    %445 = vector.load %arg7[%c0_198, %c2_199, %c44_200, %c0_201] : memref<1x3x64x64xf32, #tpu.memory_space<vmem>>, vector<1x1x4x64xf32>
    %446 = vector.shape_cast %445 : vector<1x1x4x64xf32> to vector<4x64xf32>
    %447 = vector.shape_cast %444 : vector<4x64xf32> to vector<1x1x4x64xf32>
    tpu.vector_store %arg7[%c0_198, %c2_199, %c44_200, %c0_201], %447 {strides = array<i32>} : memref<1x3x64x64xf32, #tpu.memory_space<vmem>>, vector<1x1x4x64xf32>,
    %c0_202 = arith.constant 0 : index
    %c12_203 = arith.constant 12 : index
    %c0_204 = arith.constant 0 : index
    %c0_205 = arith.constant 0 : index
    %448 = vector.load %arg2[%c0_202, %c12_203, %c0_204, %c0_205] : memref<1x16x16x64xf32, #tpu.memory_space<vmem>>, vector<1x1x16x64xf32>
    %449 = vector.shape_cast %448 : vector<1x1x16x64xf32> to vector<16x64xf32>
    %450 = vector.broadcast %0 : vector<16x1xf32> to vector<16x64xf32>
    %451 = arith.mulf %449, %450 : vector<16x64xf32>
    %452 = vector.broadcast %1 : vector<16x1xf32> to vector<16x64xf32>
    %453 = arith.addf %451, %452 : vector<16x64xf32>
    %cst_206 = arith.constant 0.000000e+00 : f32
    %454 = vector.broadcast %cst_206 : f32 to vector<16x64xf32>
    %455 = arith.maximumf %453, %454 : vector<16x64xf32>
    %cst_207 = arith.constant dense<0.000000e+00> : vector<12x64xf32>
    %456 = tpu.matmul %2, %455, %cst_207 {dimension_numbers = #tpu.dot_dimension_numbers<[1], [0], [0], [1], [0, 0, 1, 1], [], []>} : vector<12x16xf32>, vector<16x64xf32>, vector<12x64xf32> -> vector<12x64xf32>
    %457 = vector.broadcast %3 : vector<12x1xf32> to vector<12x64xf32>
    %458 = arith.addf %456, %457 : vector<12x64xf32>
    %459 = vector.extract_strided_slice %458 {offsets = [0, 0], sizes = [4, 64], strides = [1, 1]} : vector<12x64xf32> to vector<4x64xf32>
    %460 = vector.extract_strided_slice %458 {offsets = [4, 0], sizes = [4, 64], strides = [1, 1]} : vector<12x64xf32> to vector<4x64xf32>
    %461 = vector.extract_strided_slice %458 {offsets = [8, 0], sizes = [4, 64], strides = [1, 1]} : vector<12x64xf32> to vector<4x64xf32>
    %462 = arith.maximumf %459, %460 : vector<4x64xf32>
    %463 = arith.maximumf %462, %461 : vector<4x64xf32>
    %464 = arith.subf %459, %463 : vector<4x64xf32>
    %465 = math.exp %464 : vector<4x64xf32>
    %466 = arith.subf %460, %463 : vector<4x64xf32>
    %467 = math.exp %466 : vector<4x64xf32>
    %468 = arith.subf %461, %463 : vector<4x64xf32>
    %469 = math.exp %468 : vector<4x64xf32>
    %470 = arith.addf %465, %467 : vector<4x64xf32>
    %471 = arith.addf %470, %469 : vector<4x64xf32>
    %472 = tpu.reciprocal %471 : vector<4x64xf32> -> vector<4x64xf32>
    %473 = arith.mulf %465, %472 : vector<4x64xf32>
    %c0_208 = arith.constant 0 : index
    %c0_209 = arith.constant 0 : index
    %c48 = arith.constant 48 : index
    %c0_210 = arith.constant 0 : index
    %474 = vector.load %arg7[%c0_208, %c0_209, %c48, %c0_210] : memref<1x3x64x64xf32, #tpu.memory_space<vmem>>, vector<1x1x4x64xf32>
    %475 = vector.shape_cast %474 : vector<1x1x4x64xf32> to vector<4x64xf32>
    %476 = vector.shape_cast %473 : vector<4x64xf32> to vector<1x1x4x64xf32>
    tpu.vector_store %arg7[%c0_208, %c0_209, %c48, %c0_210], %476 {strides = array<i32>} : memref<1x3x64x64xf32, #tpu.memory_space<vmem>>, vector<1x1x4x64xf32>,
    %477 = arith.mulf %467, %472 : vector<4x64xf32>
    %c0_211 = arith.constant 0 : index
    %c1_212 = arith.constant 1 : index
    %c48_213 = arith.constant 48 : index
    %c0_214 = arith.constant 0 : index
    %478 = vector.load %arg7[%c0_211, %c1_212, %c48_213, %c0_214] : memref<1x3x64x64xf32, #tpu.memory_space<vmem>>, vector<1x1x4x64xf32>
    %479 = vector.shape_cast %478 : vector<1x1x4x64xf32> to vector<4x64xf32>
    %480 = vector.shape_cast %477 : vector<4x64xf32> to vector<1x1x4x64xf32>
    tpu.vector_store %arg7[%c0_211, %c1_212, %c48_213, %c0_214], %480 {strides = array<i32>} : memref<1x3x64x64xf32, #tpu.memory_space<vmem>>, vector<1x1x4x64xf32>,
    %481 = arith.mulf %469, %472 : vector<4x64xf32>
    %c0_215 = arith.constant 0 : index
    %c2_216 = arith.constant 2 : index
    %c48_217 = arith.constant 48 : index
    %c0_218 = arith.constant 0 : index
    %482 = vector.load %arg7[%c0_215, %c2_216, %c48_217, %c0_218] : memref<1x3x64x64xf32, #tpu.memory_space<vmem>>, vector<1x1x4x64xf32>
    %483 = vector.shape_cast %482 : vector<1x1x4x64xf32> to vector<4x64xf32>
    %484 = vector.shape_cast %481 : vector<4x64xf32> to vector<1x1x4x64xf32>
    tpu.vector_store %arg7[%c0_215, %c2_216, %c48_217, %c0_218], %484 {strides = array<i32>} : memref<1x3x64x64xf32, #tpu.memory_space<vmem>>, vector<1x1x4x64xf32>,
    %c0_219 = arith.constant 0 : index
    %c13 = arith.constant 13 : index
    %c0_220 = arith.constant 0 : index
    %c0_221 = arith.constant 0 : index
    %485 = vector.load %arg2[%c0_219, %c13, %c0_220, %c0_221] : memref<1x16x16x64xf32, #tpu.memory_space<vmem>>, vector<1x1x16x64xf32>
    %486 = vector.shape_cast %485 : vector<1x1x16x64xf32> to vector<16x64xf32>
    %487 = vector.broadcast %0 : vector<16x1xf32> to vector<16x64xf32>
    %488 = arith.mulf %486, %487 : vector<16x64xf32>
    %489 = vector.broadcast %1 : vector<16x1xf32> to vector<16x64xf32>
    %490 = arith.addf %488, %489 : vector<16x64xf32>
    %cst_222 = arith.constant 0.000000e+00 : f32
    %491 = vector.broadcast %cst_222 : f32 to vector<16x64xf32>
    %492 = arith.maximumf %490, %491 : vector<16x64xf32>
    %cst_223 = arith.constant dense<0.000000e+00> : vector<12x64xf32>
    %493 = tpu.matmul %2, %492, %cst_223 {dimension_numbers = #tpu.dot_dimension_numbers<[1], [0], [0], [1], [0, 0, 1, 1], [], []>} : vector<12x16xf32>, vector<16x64xf32>, vector<12x64xf32> -> vector<12x64xf32>
    %494 = vector.broadcast %3 : vector<12x1xf32> to vector<12x64xf32>
    %495 = arith.addf %493, %494 : vector<12x64xf32>
    %496 = vector.extract_strided_slice %495 {offsets = [0, 0], sizes = [4, 64], strides = [1, 1]} : vector<12x64xf32> to vector<4x64xf32>
    %497 = vector.extract_strided_slice %495 {offsets = [4, 0], sizes = [4, 64], strides = [1, 1]} : vector<12x64xf32> to vector<4x64xf32>
    %498 = vector.extract_strided_slice %495 {offsets = [8, 0], sizes = [4, 64], strides = [1, 1]} : vector<12x64xf32> to vector<4x64xf32>
    %499 = arith.maximumf %496, %497 : vector<4x64xf32>
    %500 = arith.maximumf %499, %498 : vector<4x64xf32>
    %501 = arith.subf %496, %500 : vector<4x64xf32>
    %502 = math.exp %501 : vector<4x64xf32>
    %503 = arith.subf %497, %500 : vector<4x64xf32>
    %504 = math.exp %503 : vector<4x64xf32>
    %505 = arith.subf %498, %500 : vector<4x64xf32>
    %506 = math.exp %505 : vector<4x64xf32>
    %507 = arith.addf %502, %504 : vector<4x64xf32>
    %508 = arith.addf %507, %506 : vector<4x64xf32>
    %509 = tpu.reciprocal %508 : vector<4x64xf32> -> vector<4x64xf32>
    %510 = arith.mulf %502, %509 : vector<4x64xf32>
    %c0_224 = arith.constant 0 : index
    %c0_225 = arith.constant 0 : index
    %c52 = arith.constant 52 : index
    %c0_226 = arith.constant 0 : index
    %511 = vector.load %arg7[%c0_224, %c0_225, %c52, %c0_226] : memref<1x3x64x64xf32, #tpu.memory_space<vmem>>, vector<1x1x4x64xf32>
    %512 = vector.shape_cast %511 : vector<1x1x4x64xf32> to vector<4x64xf32>
    %513 = vector.shape_cast %510 : vector<4x64xf32> to vector<1x1x4x64xf32>
    tpu.vector_store %arg7[%c0_224, %c0_225, %c52, %c0_226], %513 {strides = array<i32>} : memref<1x3x64x64xf32, #tpu.memory_space<vmem>>, vector<1x1x4x64xf32>,
    %514 = arith.mulf %504, %509 : vector<4x64xf32>
    %c0_227 = arith.constant 0 : index
    %c1_228 = arith.constant 1 : index
    %c52_229 = arith.constant 52 : index
    %c0_230 = arith.constant 0 : index
    %515 = vector.load %arg7[%c0_227, %c1_228, %c52_229, %c0_230] : memref<1x3x64x64xf32, #tpu.memory_space<vmem>>, vector<1x1x4x64xf32>
    %516 = vector.shape_cast %515 : vector<1x1x4x64xf32> to vector<4x64xf32>
    %517 = vector.shape_cast %514 : vector<4x64xf32> to vector<1x1x4x64xf32>
    tpu.vector_store %arg7[%c0_227, %c1_228, %c52_229, %c0_230], %517 {strides = array<i32>} : memref<1x3x64x64xf32, #tpu.memory_space<vmem>>, vector<1x1x4x64xf32>,
    %518 = arith.mulf %506, %509 : vector<4x64xf32>
    %c0_231 = arith.constant 0 : index
    %c2_232 = arith.constant 2 : index
    %c52_233 = arith.constant 52 : index
    %c0_234 = arith.constant 0 : index
    %519 = vector.load %arg7[%c0_231, %c2_232, %c52_233, %c0_234] : memref<1x3x64x64xf32, #tpu.memory_space<vmem>>, vector<1x1x4x64xf32>
    %520 = vector.shape_cast %519 : vector<1x1x4x64xf32> to vector<4x64xf32>
    %521 = vector.shape_cast %518 : vector<4x64xf32> to vector<1x1x4x64xf32>
    tpu.vector_store %arg7[%c0_231, %c2_232, %c52_233, %c0_234], %521 {strides = array<i32>} : memref<1x3x64x64xf32, #tpu.memory_space<vmem>>, vector<1x1x4x64xf32>,
    %c0_235 = arith.constant 0 : index
    %c14 = arith.constant 14 : index
    %c0_236 = arith.constant 0 : index
    %c0_237 = arith.constant 0 : index
    %522 = vector.load %arg2[%c0_235, %c14, %c0_236, %c0_237] : memref<1x16x16x64xf32, #tpu.memory_space<vmem>>, vector<1x1x16x64xf32>
    %523 = vector.shape_cast %522 : vector<1x1x16x64xf32> to vector<16x64xf32>
    %524 = vector.broadcast %0 : vector<16x1xf32> to vector<16x64xf32>
    %525 = arith.mulf %523, %524 : vector<16x64xf32>
    %526 = vector.broadcast %1 : vector<16x1xf32> to vector<16x64xf32>
    %527 = arith.addf %525, %526 : vector<16x64xf32>
    %cst_238 = arith.constant 0.000000e+00 : f32
    %528 = vector.broadcast %cst_238 : f32 to vector<16x64xf32>
    %529 = arith.maximumf %527, %528 : vector<16x64xf32>
    %cst_239 = arith.constant dense<0.000000e+00> : vector<12x64xf32>
    %530 = tpu.matmul %2, %529, %cst_239 {dimension_numbers = #tpu.dot_dimension_numbers<[1], [0], [0], [1], [0, 0, 1, 1], [], []>} : vector<12x16xf32>, vector<16x64xf32>, vector<12x64xf32> -> vector<12x64xf32>
    %531 = vector.broadcast %3 : vector<12x1xf32> to vector<12x64xf32>
    %532 = arith.addf %530, %531 : vector<12x64xf32>
    %533 = vector.extract_strided_slice %532 {offsets = [0, 0], sizes = [4, 64], strides = [1, 1]} : vector<12x64xf32> to vector<4x64xf32>
    %534 = vector.extract_strided_slice %532 {offsets = [4, 0], sizes = [4, 64], strides = [1, 1]} : vector<12x64xf32> to vector<4x64xf32>
    %535 = vector.extract_strided_slice %532 {offsets = [8, 0], sizes = [4, 64], strides = [1, 1]} : vector<12x64xf32> to vector<4x64xf32>
    %536 = arith.maximumf %533, %534 : vector<4x64xf32>
    %537 = arith.maximumf %536, %535 : vector<4x64xf32>
    %538 = arith.subf %533, %537 : vector<4x64xf32>
    %539 = math.exp %538 : vector<4x64xf32>
    %540 = arith.subf %534, %537 : vector<4x64xf32>
    %541 = math.exp %540 : vector<4x64xf32>
    %542 = arith.subf %535, %537 : vector<4x64xf32>
    %543 = math.exp %542 : vector<4x64xf32>
    %544 = arith.addf %539, %541 : vector<4x64xf32>
    %545 = arith.addf %544, %543 : vector<4x64xf32>
    %546 = tpu.reciprocal %545 : vector<4x64xf32> -> vector<4x64xf32>
    %547 = arith.mulf %539, %546 : vector<4x64xf32>
    %c0_240 = arith.constant 0 : index
    %c0_241 = arith.constant 0 : index
    %c56 = arith.constant 56 : index
    %c0_242 = arith.constant 0 : index
    %548 = vector.load %arg7[%c0_240, %c0_241, %c56, %c0_242] : memref<1x3x64x64xf32, #tpu.memory_space<vmem>>, vector<1x1x4x64xf32>
    %549 = vector.shape_cast %548 : vector<1x1x4x64xf32> to vector<4x64xf32>
    %550 = vector.shape_cast %547 : vector<4x64xf32> to vector<1x1x4x64xf32>
    tpu.vector_store %arg7[%c0_240, %c0_241, %c56, %c0_242], %550 {strides = array<i32>} : memref<1x3x64x64xf32, #tpu.memory_space<vmem>>, vector<1x1x4x64xf32>,
    %551 = arith.mulf %541, %546 : vector<4x64xf32>
    %c0_243 = arith.constant 0 : index
    %c1_244 = arith.constant 1 : index
    %c56_245 = arith.constant 56 : index
    %c0_246 = arith.constant 0 : index
    %552 = vector.load %arg7[%c0_243, %c1_244, %c56_245, %c0_246] : memref<1x3x64x64xf32, #tpu.memory_space<vmem>>, vector<1x1x4x64xf32>
    %553 = vector.shape_cast %552 : vector<1x1x4x64xf32> to vector<4x64xf32>
    %554 = vector.shape_cast %551 : vector<4x64xf32> to vector<1x1x4x64xf32>
    tpu.vector_store %arg7[%c0_243, %c1_244, %c56_245, %c0_246], %554 {strides = array<i32>} : memref<1x3x64x64xf32, #tpu.memory_space<vmem>>, vector<1x1x4x64xf32>,
    %555 = arith.mulf %543, %546 : vector<4x64xf32>
    %c0_247 = arith.constant 0 : index
    %c2_248 = arith.constant 2 : index
    %c56_249 = arith.constant 56 : index
    %c0_250 = arith.constant 0 : index
    %556 = vector.load %arg7[%c0_247, %c2_248, %c56_249, %c0_250] : memref<1x3x64x64xf32, #tpu.memory_space<vmem>>, vector<1x1x4x64xf32>
    %557 = vector.shape_cast %556 : vector<1x1x4x64xf32> to vector<4x64xf32>
    %558 = vector.shape_cast %555 : vector<4x64xf32> to vector<1x1x4x64xf32>
    tpu.vector_store %arg7[%c0_247, %c2_248, %c56_249, %c0_250], %558 {strides = array<i32>} : memref<1x3x64x64xf32, #tpu.memory_space<vmem>>, vector<1x1x4x64xf32>,
    %c0_251 = arith.constant 0 : index
    %c15 = arith.constant 15 : index
    %c0_252 = arith.constant 0 : index
    %c0_253 = arith.constant 0 : index
    %559 = vector.load %arg2[%c0_251, %c15, %c0_252, %c0_253] : memref<1x16x16x64xf32, #tpu.memory_space<vmem>>, vector<1x1x16x64xf32>
    %560 = vector.shape_cast %559 : vector<1x1x16x64xf32> to vector<16x64xf32>
    %561 = vector.broadcast %0 : vector<16x1xf32> to vector<16x64xf32>
    %562 = arith.mulf %560, %561 : vector<16x64xf32>
    %563 = vector.broadcast %1 : vector<16x1xf32> to vector<16x64xf32>
    %564 = arith.addf %562, %563 : vector<16x64xf32>
    %cst_254 = arith.constant 0.000000e+00 : f32
    %565 = vector.broadcast %cst_254 : f32 to vector<16x64xf32>
    %566 = arith.maximumf %564, %565 : vector<16x64xf32>
    %cst_255 = arith.constant dense<0.000000e+00> : vector<12x64xf32>
    %567 = tpu.matmul %2, %566, %cst_255 {dimension_numbers = #tpu.dot_dimension_numbers<[1], [0], [0], [1], [0, 0, 1, 1], [], []>} : vector<12x16xf32>, vector<16x64xf32>, vector<12x64xf32> -> vector<12x64xf32>
    %568 = vector.broadcast %3 : vector<12x1xf32> to vector<12x64xf32>
    %569 = arith.addf %567, %568 : vector<12x64xf32>
    %570 = vector.extract_strided_slice %569 {offsets = [0, 0], sizes = [4, 64], strides = [1, 1]} : vector<12x64xf32> to vector<4x64xf32>
    %571 = vector.extract_strided_slice %569 {offsets = [4, 0], sizes = [4, 64], strides = [1, 1]} : vector<12x64xf32> to vector<4x64xf32>
    %572 = vector.extract_strided_slice %569 {offsets = [8, 0], sizes = [4, 64], strides = [1, 1]} : vector<12x64xf32> to vector<4x64xf32>
    %573 = arith.maximumf %570, %571 : vector<4x64xf32>
    %574 = arith.maximumf %573, %572 : vector<4x64xf32>
    %575 = arith.subf %570, %574 : vector<4x64xf32>
    %576 = math.exp %575 : vector<4x64xf32>
    %577 = arith.subf %571, %574 : vector<4x64xf32>
    %578 = math.exp %577 : vector<4x64xf32>
    %579 = arith.subf %572, %574 : vector<4x64xf32>
    %580 = math.exp %579 : vector<4x64xf32>
    %581 = arith.addf %576, %578 : vector<4x64xf32>
    %582 = arith.addf %581, %580 : vector<4x64xf32>
    %583 = tpu.reciprocal %582 : vector<4x64xf32> -> vector<4x64xf32>
    %584 = arith.mulf %576, %583 : vector<4x64xf32>
    %c0_256 = arith.constant 0 : index
    %c0_257 = arith.constant 0 : index
    %c60 = arith.constant 60 : index
    %c0_258 = arith.constant 0 : index
    %585 = vector.load %arg7[%c0_256, %c0_257, %c60, %c0_258] : memref<1x3x64x64xf32, #tpu.memory_space<vmem>>, vector<1x1x4x64xf32>
    %586 = vector.shape_cast %585 : vector<1x1x4x64xf32> to vector<4x64xf32>
    %587 = vector.shape_cast %584 : vector<4x64xf32> to vector<1x1x4x64xf32>
    tpu.vector_store %arg7[%c0_256, %c0_257, %c60, %c0_258], %587 {strides = array<i32>} : memref<1x3x64x64xf32, #tpu.memory_space<vmem>>, vector<1x1x4x64xf32>,
    %588 = arith.mulf %578, %583 : vector<4x64xf32>
    %c0_259 = arith.constant 0 : index
    %c1_260 = arith.constant 1 : index
    %c60_261 = arith.constant 60 : index
    %c0_262 = arith.constant 0 : index
    %589 = vector.load %arg7[%c0_259, %c1_260, %c60_261, %c0_262] : memref<1x3x64x64xf32, #tpu.memory_space<vmem>>, vector<1x1x4x64xf32>
    %590 = vector.shape_cast %589 : vector<1x1x4x64xf32> to vector<4x64xf32>
    %591 = vector.shape_cast %588 : vector<4x64xf32> to vector<1x1x4x64xf32>
    tpu.vector_store %arg7[%c0_259, %c1_260, %c60_261, %c0_262], %591 {strides = array<i32>} : memref<1x3x64x64xf32, #tpu.memory_space<vmem>>, vector<1x1x4x64xf32>,
    %592 = arith.mulf %580, %583 : vector<4x64xf32>
    %c0_263 = arith.constant 0 : index
    %c2_264 = arith.constant 2 : index
    %c60_265 = arith.constant 60 : index
    %c0_266 = arith.constant 0 : index
    %593 = vector.load %arg7[%c0_263, %c2_264, %c60_265, %c0_266] : memref<1x3x64x64xf32, #tpu.memory_space<vmem>>, vector<1x1x4x64xf32>
    %594 = vector.shape_cast %593 : vector<1x1x4x64xf32> to vector<4x64xf32>
    %595 = vector.shape_cast %592 : vector<4x64xf32> to vector<1x1x4x64xf32>
    tpu.vector_store %arg7[%c0_263, %c2_264, %c60_265, %c0_266], %595 {strides = array<i32>} : memref<1x3x64x64xf32, #tpu.memory_space<vmem>>, vector<1x1x4x64xf32>,
    return
  }
  func.func @transform_0(%arg0: i32, %arg1: i32) -> (i32, i32, i32, i32) {
    %c0_i32 = arith.constant 0 : i32
    %c0_i32_0 = arith.constant 0 : i32
    %c0_i32_1 = arith.constant 0 : i32
    return %arg0, %arg1, %c0_i32, %c0_i32_0 : i32, i32, i32, i32
  }
  func.func @transform_1(%arg0: i32, %arg1: i32) -> (i32, i32) {
    %c0_i32 = arith.constant 0 : i32
    %c0_i32_0 = arith.constant 0 : i32
    %c0_i32_1 = arith.constant 0 : i32
    return %c0_i32, %c0_i32_0 : i32, i32
  }
  func.func @transform_2(%arg0: i32, %arg1: i32) -> (i32, i32) {
    %c0_i32 = arith.constant 0 : i32
    %c0_i32_0 = arith.constant 0 : i32
    %c0_i32_1 = arith.constant 0 : i32
    return %c0_i32, %c0_i32_0 : i32, i32
  }
  func.func @transform_3(%arg0: i32, %arg1: i32) -> (i32, i32) {
    %c0_i32 = arith.constant 0 : i32
    %c0_i32_0 = arith.constant 0 : i32
    %c0_i32_1 = arith.constant 0 : i32
    return %c0_i32, %c0_i32_0 : i32, i32
  }
  func.func @transform_4(%arg0: i32, %arg1: i32) -> (i32, i32) {
    %c0_i32 = arith.constant 0 : i32
    %c0_i32_0 = arith.constant 0 : i32
    %c0_i32_1 = arith.constant 0 : i32
    return %c0_i32, %c0_i32_0 : i32, i32
  }
  func.func @transform_5(%arg0: i32, %arg1: i32) -> (i32, i32, i32, i32) {
    %c0_i32 = arith.constant 0 : i32
    %c0_i32_0 = arith.constant 0 : i32
    %c0_i32_1 = arith.constant 0 : i32
    return %arg0, %c0_i32, %arg1, %c0_i32_0 : i32, i32, i32, i32
  }
}

module attributes {stable_mosaic.version = 11 : i64} {
  func.func @_fused_up_conv3x3_kernel(%arg0: i32, %arg1: i32, %arg2: memref<1x5x18x18xf32, #tpu.memory_space<vmem>>, %arg3: memref<64x45xf32, #tpu.memory_space<vmem>>, %arg4: memref<4x16x64xf32, #tpu.memory_space<vmem>>, %arg5: memref<16x1xf32, #tpu.memory_space<vmem>>, %arg6: memref<1x16x16x64xf32, #tpu.memory_space<vmem>>, %arg7: memref<1x1x16x2xf32, #tpu.memory_space<vmem>>) attributes {dimension_semantics = [#tpu.dimension_semantics<parallel>, #tpu.dimension_semantics<parallel>], iteration_bounds = array<i64: 2, 1>, scalar_prefetch = 0 : i64, scratch_operands = 0 : i64, tpu.core_type = #tpu.core_type<tc>, window_params = [{transform_indices = @transform_0, window_bounds = array<i64: 1, 5, 18, 18>}, {pipeline_mode = #tpu.pipeline_mode<synchronous>, transform_indices = @transform_1, window_bounds = array<i64: 64, 45>}, {pipeline_mode = #tpu.pipeline_mode<synchronous>, transform_indices = @transform_2, window_bounds = array<i64: 4, 16, 64>}, {pipeline_mode = #tpu.pipeline_mode<synchronous>, transform_indices = @transform_3, window_bounds = array<i64: 16, 1>}, {transform_indices = @transform_4, window_bounds = array<i64: 1, 16, 16, 64>}, {transform_indices = @transform_5, window_bounds = array<i64: 1, 1, 16, 2>}]} {
    %c16_i32 = arith.constant 16 : i32
    %0 = arith.muli %arg1, %c16_i32 : i32
    %c0 = arith.constant 0 : index
    %c0_0 = arith.constant 0 : index
    %1 = vector.load %arg3[%c0, %c0_0] : memref<64x45xf32, #tpu.memory_space<vmem>>, vector<64x45xf32>
    %c0_1 = arith.constant 0 : index
    %c0_2 = arith.constant 0 : index
    %2 = vector.load %arg5[%c0_1, %c0_2] : memref<16x1xf32, #tpu.memory_space<vmem>>, vector<16x1xf32>
    %c0_3 = arith.constant 0 : index
    %c0_4 = arith.constant 0 : index
    %c0_5 = arith.constant 0 : index
    %3 = vector.load %arg4[%c0_3, %c0_4, %c0_5] : memref<4x16x64xf32, #tpu.memory_space<vmem>>, vector<1x16x64xf32>
    %4 = vector.shape_cast %3 : vector<1x16x64xf32> to vector<16x64xf32>
    %c1 = arith.constant 1 : index
    %c0_6 = arith.constant 0 : index
    %c0_7 = arith.constant 0 : index
    %5 = vector.load %arg4[%c1, %c0_6, %c0_7] : memref<4x16x64xf32, #tpu.memory_space<vmem>>, vector<1x16x64xf32>
    %6 = vector.shape_cast %5 : vector<1x16x64xf32> to vector<16x64xf32>
    %c2 = arith.constant 2 : index
    %c0_8 = arith.constant 0 : index
    %c0_9 = arith.constant 0 : index
    %7 = vector.load %arg4[%c2, %c0_8, %c0_9] : memref<4x16x64xf32, #tpu.memory_space<vmem>>, vector<1x16x64xf32>
    %8 = vector.shape_cast %7 : vector<1x16x64xf32> to vector<16x64xf32>
    %c3 = arith.constant 3 : index
    %c0_10 = arith.constant 0 : index
    %c0_11 = arith.constant 0 : index
    %9 = vector.load %arg4[%c3, %c0_10, %c0_11] : memref<4x16x64xf32, #tpu.memory_space<vmem>>, vector<1x16x64xf32>
    %10 = vector.shape_cast %9 : vector<1x16x64xf32> to vector<16x64xf32>
    %cst = arith.constant 0.000000e+00 : f32
    %11 = vector.broadcast %cst : f32 to vector<16x64xf32>
    %cst_12 = arith.constant 0.000000e+00 : f32
    %12 = vector.broadcast %cst_12 : f32 to vector<16x64xf32>
    %c0_i32 = arith.constant 0 : i32
    %13 = arith.addi %0, %c0_i32 : i32
    %c0_i32_13 = arith.constant 0 : i32
    %14 = arith.addi %13, %c0_i32_13 : i32
    %c0_14 = arith.constant 0 : index
    %c0_15 = arith.constant 0 : index
    %15 = arith.index_cast %14 : i32 to index
    %c0_16 = arith.constant 0 : index
    %16 = vector.load %arg2[%c0_14, %c0_15, %15, %c0_16] : memref<1x5x18x18xf32, #tpu.memory_space<vmem>>, vector<1x5x1x16xf32>
    %17 = vector.shape_cast %16 : vector<1x5x1x16xf32> to vector<5x1x16xf32>
    %18 = vector.shape_cast %17 : vector<5x1x16xf32> to vector<5x16xf32>
    %c0_i32_17 = arith.constant 0 : i32
    %19 = arith.addi %0, %c0_i32_17 : i32
    %c0_i32_18 = arith.constant 0 : i32
    %20 = arith.addi %19, %c0_i32_18 : i32
    %c0_19 = arith.constant 0 : index
    %c0_20 = arith.constant 0 : index
    %21 = arith.index_cast %20 : i32 to index
    %c1_21 = arith.constant 1 : index
    %22 = vector.load %arg2[%c0_19, %c0_20, %21, %c1_21] : memref<1x5x18x18xf32, #tpu.memory_space<vmem>>, vector<1x5x1x16xf32>
    %23 = vector.shape_cast %22 : vector<1x5x1x16xf32> to vector<5x1x16xf32>
    %24 = vector.shape_cast %23 : vector<5x1x16xf32> to vector<5x16xf32>
    %c0_i32_22 = arith.constant 0 : i32
    %25 = arith.addi %0, %c0_i32_22 : i32
    %c0_i32_23 = arith.constant 0 : i32
    %26 = arith.addi %25, %c0_i32_23 : i32
    %c0_24 = arith.constant 0 : index
    %c0_25 = arith.constant 0 : index
    %27 = arith.index_cast %26 : i32 to index
    %c2_26 = arith.constant 2 : index
    %28 = vector.load %arg2[%c0_24, %c0_25, %27, %c2_26] : memref<1x5x18x18xf32, #tpu.memory_space<vmem>>, vector<1x5x1x16xf32>
    %29 = vector.shape_cast %28 : vector<1x5x1x16xf32> to vector<5x1x16xf32>
    %30 = vector.shape_cast %29 : vector<5x1x16xf32> to vector<5x16xf32>
    %c0_i32_27 = arith.constant 0 : i32
    %31 = arith.addi %0, %c0_i32_27 : i32
    %c1_i32 = arith.constant 1 : i32
    %32 = arith.addi %31, %c1_i32 : i32
    %c0_28 = arith.constant 0 : index
    %c0_29 = arith.constant 0 : index
    %33 = arith.index_cast %32 : i32 to index
    %c0_30 = arith.constant 0 : index
    %34 = vector.load %arg2[%c0_28, %c0_29, %33, %c0_30] : memref<1x5x18x18xf32, #tpu.memory_space<vmem>>, vector<1x5x1x16xf32>
    %35 = vector.shape_cast %34 : vector<1x5x1x16xf32> to vector<5x1x16xf32>
    %36 = vector.shape_cast %35 : vector<5x1x16xf32> to vector<5x16xf32>
    %c0_i32_31 = arith.constant 0 : i32
    %37 = arith.addi %0, %c0_i32_31 : i32
    %c1_i32_32 = arith.constant 1 : i32
    %38 = arith.addi %37, %c1_i32_32 : i32
    %c0_33 = arith.constant 0 : index
    %c0_34 = arith.constant 0 : index
    %39 = arith.index_cast %38 : i32 to index
    %c1_35 = arith.constant 1 : index
    %40 = vector.load %arg2[%c0_33, %c0_34, %39, %c1_35] : memref<1x5x18x18xf32, #tpu.memory_space<vmem>>, vector<1x5x1x16xf32>
    %41 = vector.shape_cast %40 : vector<1x5x1x16xf32> to vector<5x1x16xf32>
    %42 = vector.shape_cast %41 : vector<5x1x16xf32> to vector<5x16xf32>
    %c0_i32_36 = arith.constant 0 : i32
    %43 = arith.addi %0, %c0_i32_36 : i32
    %c1_i32_37 = arith.constant 1 : i32
    %44 = arith.addi %43, %c1_i32_37 : i32
    %c0_38 = arith.constant 0 : index
    %c0_39 = arith.constant 0 : index
    %45 = arith.index_cast %44 : i32 to index
    %c2_40 = arith.constant 2 : index
    %46 = vector.load %arg2[%c0_38, %c0_39, %45, %c2_40] : memref<1x5x18x18xf32, #tpu.memory_space<vmem>>, vector<1x5x1x16xf32>
    %47 = vector.shape_cast %46 : vector<1x5x1x16xf32> to vector<5x1x16xf32>
    %48 = vector.shape_cast %47 : vector<5x1x16xf32> to vector<5x16xf32>
    %c0_i32_41 = arith.constant 0 : i32
    %49 = arith.addi %0, %c0_i32_41 : i32
    %c2_i32 = arith.constant 2 : i32
    %50 = arith.addi %49, %c2_i32 : i32
    %c0_42 = arith.constant 0 : index
    %c0_43 = arith.constant 0 : index
    %51 = arith.index_cast %50 : i32 to index
    %c0_44 = arith.constant 0 : index
    %52 = vector.load %arg2[%c0_42, %c0_43, %51, %c0_44] : memref<1x5x18x18xf32, #tpu.memory_space<vmem>>, vector<1x5x1x16xf32>
    %53 = vector.shape_cast %52 : vector<1x5x1x16xf32> to vector<5x1x16xf32>
    %54 = vector.shape_cast %53 : vector<5x1x16xf32> to vector<5x16xf32>
    %c0_i32_45 = arith.constant 0 : i32
    %55 = arith.addi %0, %c0_i32_45 : i32
    %c2_i32_46 = arith.constant 2 : i32
    %56 = arith.addi %55, %c2_i32_46 : i32
    %c0_47 = arith.constant 0 : index
    %c0_48 = arith.constant 0 : index
    %57 = arith.index_cast %56 : i32 to index
    %c1_49 = arith.constant 1 : index
    %58 = vector.load %arg2[%c0_47, %c0_48, %57, %c1_49] : memref<1x5x18x18xf32, #tpu.memory_space<vmem>>, vector<1x5x1x16xf32>
    %59 = vector.shape_cast %58 : vector<1x5x1x16xf32> to vector<5x1x16xf32>
    %60 = vector.shape_cast %59 : vector<5x1x16xf32> to vector<5x16xf32>
    %c0_i32_50 = arith.constant 0 : i32
    %61 = arith.addi %0, %c0_i32_50 : i32
    %c2_i32_51 = arith.constant 2 : i32
    %62 = arith.addi %61, %c2_i32_51 : i32
    %c0_52 = arith.constant 0 : index
    %c0_53 = arith.constant 0 : index
    %63 = arith.index_cast %62 : i32 to index
    %c2_54 = arith.constant 2 : index
    %64 = vector.load %arg2[%c0_52, %c0_53, %63, %c2_54] : memref<1x5x18x18xf32, #tpu.memory_space<vmem>>, vector<1x5x1x16xf32>
    %65 = vector.shape_cast %64 : vector<1x5x1x16xf32> to vector<5x1x16xf32>
    %66 = vector.shape_cast %65 : vector<5x1x16xf32> to vector<5x16xf32>
    %67 = tpu.concatenate %18, %24, %30, %36, %42, %48, %54, %60, %66 in 0 : vector<5x16xf32>, vector<5x16xf32>, vector<5x16xf32>, vector<5x16xf32>, vector<5x16xf32>, vector<5x16xf32>, vector<5x16xf32>, vector<5x16xf32>, vector<5x16xf32> -> vector<45x16xf32>
    %cst_55 = arith.constant dense<0.000000e+00> : vector<64x16xf32>
    %68 = tpu.matmul %1, %67, %cst_55 {dimension_numbers = #tpu.dot_dimension_numbers<[1], [0], [0], [1], [0, 0, 1, 1], [], []>} : vector<64x45xf32>, vector<45x16xf32>, vector<64x16xf32> -> vector<64x16xf32>
    %69 = vector.extract_strided_slice %68 {offsets = [0, 0], sizes = [16, 16], strides = [1, 1]} : vector<64x16xf32> to vector<16x16xf32>
    %cst_56 = arith.constant dense<0.000000e+00> : vector<16x64xf32>
    %70 = tpu.matmul %69, %4, %cst_56 {dimension_numbers = #tpu.dot_dimension_numbers<[1], [0], [0], [1], [0, 0, 1, 1], [], []>} : vector<16x16xf32>, vector<16x64xf32>, vector<16x64xf32> -> vector<16x64xf32>
    %71 = vector.broadcast %2 : vector<16x1xf32> to vector<16x64xf32>
    %72 = arith.addf %71, %70 : vector<16x64xf32>
    %73 = vector.extract_strided_slice %68 {offsets = [16, 0], sizes = [16, 16], strides = [1, 1]} : vector<64x16xf32> to vector<16x16xf32>
    %cst_57 = arith.constant dense<0.000000e+00> : vector<16x64xf32>
    %74 = tpu.matmul %73, %6, %cst_57 {dimension_numbers = #tpu.dot_dimension_numbers<[1], [0], [0], [1], [0, 0, 1, 1], [], []>} : vector<16x16xf32>, vector<16x64xf32>, vector<16x64xf32> -> vector<16x64xf32>
    %75 = arith.addf %72, %74 : vector<16x64xf32>
    %76 = vector.extract_strided_slice %68 {offsets = [32, 0], sizes = [16, 16], strides = [1, 1]} : vector<64x16xf32> to vector<16x16xf32>
    %cst_58 = arith.constant dense<0.000000e+00> : vector<16x64xf32>
    %77 = tpu.matmul %76, %8, %cst_58 {dimension_numbers = #tpu.dot_dimension_numbers<[1], [0], [0], [1], [0, 0, 1, 1], [], []>} : vector<16x16xf32>, vector<16x64xf32>, vector<16x64xf32> -> vector<16x64xf32>
    %78 = arith.addf %75, %77 : vector<16x64xf32>
    %79 = vector.extract_strided_slice %68 {offsets = [48, 0], sizes = [16, 16], strides = [1, 1]} : vector<64x16xf32> to vector<16x16xf32>
    %cst_59 = arith.constant dense<0.000000e+00> : vector<16x64xf32>
    %80 = tpu.matmul %79, %10, %cst_59 {dimension_numbers = #tpu.dot_dimension_numbers<[1], [0], [0], [1], [0, 0, 1, 1], [], []>} : vector<16x16xf32>, vector<16x64xf32>, vector<16x64xf32> -> vector<16x64xf32>
    %81 = arith.addf %78, %80 : vector<16x64xf32>
    %c0_60 = arith.constant 0 : index
    %c0_61 = arith.constant 0 : index
    %c0_62 = arith.constant 0 : index
    %c0_63 = arith.constant 0 : index
    %82 = vector.load %arg6[%c0_60, %c0_61, %c0_62, %c0_63] : memref<1x16x16x64xf32, #tpu.memory_space<vmem>>, vector<1x1x16x64xf32>
    %83 = vector.shape_cast %82 : vector<1x1x16x64xf32> to vector<16x64xf32>
    %84 = vector.shape_cast %81 : vector<16x64xf32> to vector<1x1x16x64xf32>
    tpu.vector_store %arg6[%c0_60, %c0_61, %c0_62, %c0_63], %84 {strides = array<i32>} : memref<1x16x16x64xf32, #tpu.memory_space<vmem>>, vector<1x1x16x64xf32>,
    %85 = arith.addf %11, %81 : vector<16x64xf32>
    %86 = arith.mulf %81, %81 : vector<16x64xf32>
    %87 = arith.addf %12, %86 : vector<16x64xf32>
    %c1_i32_64 = arith.constant 1 : i32
    %88 = arith.addi %0, %c1_i32_64 : i32
    %c0_i32_65 = arith.constant 0 : i32
    %89 = arith.addi %88, %c0_i32_65 : i32
    %c0_66 = arith.constant 0 : index
    %c0_67 = arith.constant 0 : index
    %90 = arith.index_cast %89 : i32 to index
    %c0_68 = arith.constant 0 : index
    %91 = vector.load %arg2[%c0_66, %c0_67, %90, %c0_68] : memref<1x5x18x18xf32, #tpu.memory_space<vmem>>, vector<1x5x1x16xf32>
    %92 = vector.shape_cast %91 : vector<1x5x1x16xf32> to vector<5x1x16xf32>
    %93 = vector.shape_cast %92 : vector<5x1x16xf32> to vector<5x16xf32>
    %c1_i32_69 = arith.constant 1 : i32
    %94 = arith.addi %0, %c1_i32_69 : i32
    %c0_i32_70 = arith.constant 0 : i32
    %95 = arith.addi %94, %c0_i32_70 : i32
    %c0_71 = arith.constant 0 : index
    %c0_72 = arith.constant 0 : index
    %96 = arith.index_cast %95 : i32 to index
    %c1_73 = arith.constant 1 : index
    %97 = vector.load %arg2[%c0_71, %c0_72, %96, %c1_73] : memref<1x5x18x18xf32, #tpu.memory_space<vmem>>, vector<1x5x1x16xf32>
    %98 = vector.shape_cast %97 : vector<1x5x1x16xf32> to vector<5x1x16xf32>
    %99 = vector.shape_cast %98 : vector<5x1x16xf32> to vector<5x16xf32>
    %c1_i32_74 = arith.constant 1 : i32
    %100 = arith.addi %0, %c1_i32_74 : i32
    %c0_i32_75 = arith.constant 0 : i32
    %101 = arith.addi %100, %c0_i32_75 : i32
    %c0_76 = arith.constant 0 : index
    %c0_77 = arith.constant 0 : index
    %102 = arith.index_cast %101 : i32 to index
    %c2_78 = arith.constant 2 : index
    %103 = vector.load %arg2[%c0_76, %c0_77, %102, %c2_78] : memref<1x5x18x18xf32, #tpu.memory_space<vmem>>, vector<1x5x1x16xf32>
    %104 = vector.shape_cast %103 : vector<1x5x1x16xf32> to vector<5x1x16xf32>
    %105 = vector.shape_cast %104 : vector<5x1x16xf32> to vector<5x16xf32>
    %c1_i32_79 = arith.constant 1 : i32
    %106 = arith.addi %0, %c1_i32_79 : i32
    %c1_i32_80 = arith.constant 1 : i32
    %107 = arith.addi %106, %c1_i32_80 : i32
    %c0_81 = arith.constant 0 : index
    %c0_82 = arith.constant 0 : index
    %108 = arith.index_cast %107 : i32 to index
    %c0_83 = arith.constant 0 : index
    %109 = vector.load %arg2[%c0_81, %c0_82, %108, %c0_83] : memref<1x5x18x18xf32, #tpu.memory_space<vmem>>, vector<1x5x1x16xf32>
    %110 = vector.shape_cast %109 : vector<1x5x1x16xf32> to vector<5x1x16xf32>
    %111 = vector.shape_cast %110 : vector<5x1x16xf32> to vector<5x16xf32>
    %c1_i32_84 = arith.constant 1 : i32
    %112 = arith.addi %0, %c1_i32_84 : i32
    %c1_i32_85 = arith.constant 1 : i32
    %113 = arith.addi %112, %c1_i32_85 : i32
    %c0_86 = arith.constant 0 : index
    %c0_87 = arith.constant 0 : index
    %114 = arith.index_cast %113 : i32 to index
    %c1_88 = arith.constant 1 : index
    %115 = vector.load %arg2[%c0_86, %c0_87, %114, %c1_88] : memref<1x5x18x18xf32, #tpu.memory_space<vmem>>, vector<1x5x1x16xf32>
    %116 = vector.shape_cast %115 : vector<1x5x1x16xf32> to vector<5x1x16xf32>
    %117 = vector.shape_cast %116 : vector<5x1x16xf32> to vector<5x16xf32>
    %c1_i32_89 = arith.constant 1 : i32
    %118 = arith.addi %0, %c1_i32_89 : i32
    %c1_i32_90 = arith.constant 1 : i32
    %119 = arith.addi %118, %c1_i32_90 : i32
    %c0_91 = arith.constant 0 : index
    %c0_92 = arith.constant 0 : index
    %120 = arith.index_cast %119 : i32 to index
    %c2_93 = arith.constant 2 : index
    %121 = vector.load %arg2[%c0_91, %c0_92, %120, %c2_93] : memref<1x5x18x18xf32, #tpu.memory_space<vmem>>, vector<1x5x1x16xf32>
    %122 = vector.shape_cast %121 : vector<1x5x1x16xf32> to vector<5x1x16xf32>
    %123 = vector.shape_cast %122 : vector<5x1x16xf32> to vector<5x16xf32>
    %c1_i32_94 = arith.constant 1 : i32
    %124 = arith.addi %0, %c1_i32_94 : i32
    %c2_i32_95 = arith.constant 2 : i32
    %125 = arith.addi %124, %c2_i32_95 : i32
    %c0_96 = arith.constant 0 : index
    %c0_97 = arith.constant 0 : index
    %126 = arith.index_cast %125 : i32 to index
    %c0_98 = arith.constant 0 : index
    %127 = vector.load %arg2[%c0_96, %c0_97, %126, %c0_98] : memref<1x5x18x18xf32, #tpu.memory_space<vmem>>, vector<1x5x1x16xf32>
    %128 = vector.shape_cast %127 : vector<1x5x1x16xf32> to vector<5x1x16xf32>
    %129 = vector.shape_cast %128 : vector<5x1x16xf32> to vector<5x16xf32>
    %c1_i32_99 = arith.constant 1 : i32
    %130 = arith.addi %0, %c1_i32_99 : i32
    %c2_i32_100 = arith.constant 2 : i32
    %131 = arith.addi %130, %c2_i32_100 : i32
    %c0_101 = arith.constant 0 : index
    %c0_102 = arith.constant 0 : index
    %132 = arith.index_cast %131 : i32 to index
    %c1_103 = arith.constant 1 : index
    %133 = vector.load %arg2[%c0_101, %c0_102, %132, %c1_103] : memref<1x5x18x18xf32, #tpu.memory_space<vmem>>, vector<1x5x1x16xf32>
    %134 = vector.shape_cast %133 : vector<1x5x1x16xf32> to vector<5x1x16xf32>
    %135 = vector.shape_cast %134 : vector<5x1x16xf32> to vector<5x16xf32>
    %c1_i32_104 = arith.constant 1 : i32
    %136 = arith.addi %0, %c1_i32_104 : i32
    %c2_i32_105 = arith.constant 2 : i32
    %137 = arith.addi %136, %c2_i32_105 : i32
    %c0_106 = arith.constant 0 : index
    %c0_107 = arith.constant 0 : index
    %138 = arith.index_cast %137 : i32 to index
    %c2_108 = arith.constant 2 : index
    %139 = vector.load %arg2[%c0_106, %c0_107, %138, %c2_108] : memref<1x5x18x18xf32, #tpu.memory_space<vmem>>, vector<1x5x1x16xf32>
    %140 = vector.shape_cast %139 : vector<1x5x1x16xf32> to vector<5x1x16xf32>
    %141 = vector.shape_cast %140 : vector<5x1x16xf32> to vector<5x16xf32>
    %142 = tpu.concatenate %93, %99, %105, %111, %117, %123, %129, %135, %141 in 0 : vector<5x16xf32>, vector<5x16xf32>, vector<5x16xf32>, vector<5x16xf32>, vector<5x16xf32>, vector<5x16xf32>, vector<5x16xf32>, vector<5x16xf32>, vector<5x16xf32> -> vector<45x16xf32>
    %cst_109 = arith.constant dense<0.000000e+00> : vector<64x16xf32>
    %143 = tpu.matmul %1, %142, %cst_109 {dimension_numbers = #tpu.dot_dimension_numbers<[1], [0], [0], [1], [0, 0, 1, 1], [], []>} : vector<64x45xf32>, vector<45x16xf32>, vector<64x16xf32> -> vector<64x16xf32>
    %144 = vector.extract_strided_slice %143 {offsets = [0, 0], sizes = [16, 16], strides = [1, 1]} : vector<64x16xf32> to vector<16x16xf32>
    %cst_110 = arith.constant dense<0.000000e+00> : vector<16x64xf32>
    %145 = tpu.matmul %144, %4, %cst_110 {dimension_numbers = #tpu.dot_dimension_numbers<[1], [0], [0], [1], [0, 0, 1, 1], [], []>} : vector<16x16xf32>, vector<16x64xf32>, vector<16x64xf32> -> vector<16x64xf32>
    %146 = vector.broadcast %2 : vector<16x1xf32> to vector<16x64xf32>
    %147 = arith.addf %146, %145 : vector<16x64xf32>
    %148 = vector.extract_strided_slice %143 {offsets = [16, 0], sizes = [16, 16], strides = [1, 1]} : vector<64x16xf32> to vector<16x16xf32>
    %cst_111 = arith.constant dense<0.000000e+00> : vector<16x64xf32>
    %149 = tpu.matmul %148, %6, %cst_111 {dimension_numbers = #tpu.dot_dimension_numbers<[1], [0], [0], [1], [0, 0, 1, 1], [], []>} : vector<16x16xf32>, vector<16x64xf32>, vector<16x64xf32> -> vector<16x64xf32>
    %150 = arith.addf %147, %149 : vector<16x64xf32>
    %151 = vector.extract_strided_slice %143 {offsets = [32, 0], sizes = [16, 16], strides = [1, 1]} : vector<64x16xf32> to vector<16x16xf32>
    %cst_112 = arith.constant dense<0.000000e+00> : vector<16x64xf32>
    %152 = tpu.matmul %151, %8, %cst_112 {dimension_numbers = #tpu.dot_dimension_numbers<[1], [0], [0], [1], [0, 0, 1, 1], [], []>} : vector<16x16xf32>, vector<16x64xf32>, vector<16x64xf32> -> vector<16x64xf32>
    %153 = arith.addf %150, %152 : vector<16x64xf32>
    %154 = vector.extract_strided_slice %143 {offsets = [48, 0], sizes = [16, 16], strides = [1, 1]} : vector<64x16xf32> to vector<16x16xf32>
    %cst_113 = arith.constant dense<0.000000e+00> : vector<16x64xf32>
    %155 = tpu.matmul %154, %10, %cst_113 {dimension_numbers = #tpu.dot_dimension_numbers<[1], [0], [0], [1], [0, 0, 1, 1], [], []>} : vector<16x16xf32>, vector<16x64xf32>, vector<16x64xf32> -> vector<16x64xf32>
    %156 = arith.addf %153, %155 : vector<16x64xf32>
    %c0_114 = arith.constant 0 : index
    %c1_115 = arith.constant 1 : index
    %c0_116 = arith.constant 0 : index
    %c0_117 = arith.constant 0 : index
    %157 = vector.load %arg6[%c0_114, %c1_115, %c0_116, %c0_117] : memref<1x16x16x64xf32, #tpu.memory_space<vmem>>, vector<1x1x16x64xf32>
    %158 = vector.shape_cast %157 : vector<1x1x16x64xf32> to vector<16x64xf32>
    %159 = vector.shape_cast %156 : vector<16x64xf32> to vector<1x1x16x64xf32>
    tpu.vector_store %arg6[%c0_114, %c1_115, %c0_116, %c0_117], %159 {strides = array<i32>} : memref<1x16x16x64xf32, #tpu.memory_space<vmem>>, vector<1x1x16x64xf32>,
    %160 = arith.addf %85, %156 : vector<16x64xf32>
    %161 = arith.mulf %156, %156 : vector<16x64xf32>
    %162 = arith.addf %87, %161 : vector<16x64xf32>
    %c2_i32_118 = arith.constant 2 : i32
    %163 = arith.addi %0, %c2_i32_118 : i32
    %c0_i32_119 = arith.constant 0 : i32
    %164 = arith.addi %163, %c0_i32_119 : i32
    %c0_120 = arith.constant 0 : index
    %c0_121 = arith.constant 0 : index
    %165 = arith.index_cast %164 : i32 to index
    %c0_122 = arith.constant 0 : index
    %166 = vector.load %arg2[%c0_120, %c0_121, %165, %c0_122] : memref<1x5x18x18xf32, #tpu.memory_space<vmem>>, vector<1x5x1x16xf32>
    %167 = vector.shape_cast %166 : vector<1x5x1x16xf32> to vector<5x1x16xf32>
    %168 = vector.shape_cast %167 : vector<5x1x16xf32> to vector<5x16xf32>
    %c2_i32_123 = arith.constant 2 : i32
    %169 = arith.addi %0, %c2_i32_123 : i32
    %c0_i32_124 = arith.constant 0 : i32
    %170 = arith.addi %169, %c0_i32_124 : i32
    %c0_125 = arith.constant 0 : index
    %c0_126 = arith.constant 0 : index
    %171 = arith.index_cast %170 : i32 to index
    %c1_127 = arith.constant 1 : index
    %172 = vector.load %arg2[%c0_125, %c0_126, %171, %c1_127] : memref<1x5x18x18xf32, #tpu.memory_space<vmem>>, vector<1x5x1x16xf32>
    %173 = vector.shape_cast %172 : vector<1x5x1x16xf32> to vector<5x1x16xf32>
    %174 = vector.shape_cast %173 : vector<5x1x16xf32> to vector<5x16xf32>
    %c2_i32_128 = arith.constant 2 : i32
    %175 = arith.addi %0, %c2_i32_128 : i32
    %c0_i32_129 = arith.constant 0 : i32
    %176 = arith.addi %175, %c0_i32_129 : i32
    %c0_130 = arith.constant 0 : index
    %c0_131 = arith.constant 0 : index
    %177 = arith.index_cast %176 : i32 to index
    %c2_132 = arith.constant 2 : index
    %178 = vector.load %arg2[%c0_130, %c0_131, %177, %c2_132] : memref<1x5x18x18xf32, #tpu.memory_space<vmem>>, vector<1x5x1x16xf32>
    %179 = vector.shape_cast %178 : vector<1x5x1x16xf32> to vector<5x1x16xf32>
    %180 = vector.shape_cast %179 : vector<5x1x16xf32> to vector<5x16xf32>
    %c2_i32_133 = arith.constant 2 : i32
    %181 = arith.addi %0, %c2_i32_133 : i32
    %c1_i32_134 = arith.constant 1 : i32
    %182 = arith.addi %181, %c1_i32_134 : i32
    %c0_135 = arith.constant 0 : index
    %c0_136 = arith.constant 0 : index
    %183 = arith.index_cast %182 : i32 to index
    %c0_137 = arith.constant 0 : index
    %184 = vector.load %arg2[%c0_135, %c0_136, %183, %c0_137] : memref<1x5x18x18xf32, #tpu.memory_space<vmem>>, vector<1x5x1x16xf32>
    %185 = vector.shape_cast %184 : vector<1x5x1x16xf32> to vector<5x1x16xf32>
    %186 = vector.shape_cast %185 : vector<5x1x16xf32> to vector<5x16xf32>
    %c2_i32_138 = arith.constant 2 : i32
    %187 = arith.addi %0, %c2_i32_138 : i32
    %c1_i32_139 = arith.constant 1 : i32
    %188 = arith.addi %187, %c1_i32_139 : i32
    %c0_140 = arith.constant 0 : index
    %c0_141 = arith.constant 0 : index
    %189 = arith.index_cast %188 : i32 to index
    %c1_142 = arith.constant 1 : index
    %190 = vector.load %arg2[%c0_140, %c0_141, %189, %c1_142] : memref<1x5x18x18xf32, #tpu.memory_space<vmem>>, vector<1x5x1x16xf32>
    %191 = vector.shape_cast %190 : vector<1x5x1x16xf32> to vector<5x1x16xf32>
    %192 = vector.shape_cast %191 : vector<5x1x16xf32> to vector<5x16xf32>
    %c2_i32_143 = arith.constant 2 : i32
    %193 = arith.addi %0, %c2_i32_143 : i32
    %c1_i32_144 = arith.constant 1 : i32
    %194 = arith.addi %193, %c1_i32_144 : i32
    %c0_145 = arith.constant 0 : index
    %c0_146 = arith.constant 0 : index
    %195 = arith.index_cast %194 : i32 to index
    %c2_147 = arith.constant 2 : index
    %196 = vector.load %arg2[%c0_145, %c0_146, %195, %c2_147] : memref<1x5x18x18xf32, #tpu.memory_space<vmem>>, vector<1x5x1x16xf32>
    %197 = vector.shape_cast %196 : vector<1x5x1x16xf32> to vector<5x1x16xf32>
    %198 = vector.shape_cast %197 : vector<5x1x16xf32> to vector<5x16xf32>
    %c2_i32_148 = arith.constant 2 : i32
    %199 = arith.addi %0, %c2_i32_148 : i32
    %c2_i32_149 = arith.constant 2 : i32
    %200 = arith.addi %199, %c2_i32_149 : i32
    %c0_150 = arith.constant 0 : index
    %c0_151 = arith.constant 0 : index
    %201 = arith.index_cast %200 : i32 to index
    %c0_152 = arith.constant 0 : index
    %202 = vector.load %arg2[%c0_150, %c0_151, %201, %c0_152] : memref<1x5x18x18xf32, #tpu.memory_space<vmem>>, vector<1x5x1x16xf32>
    %203 = vector.shape_cast %202 : vector<1x5x1x16xf32> to vector<5x1x16xf32>
    %204 = vector.shape_cast %203 : vector<5x1x16xf32> to vector<5x16xf32>
    %c2_i32_153 = arith.constant 2 : i32
    %205 = arith.addi %0, %c2_i32_153 : i32
    %c2_i32_154 = arith.constant 2 : i32
    %206 = arith.addi %205, %c2_i32_154 : i32
    %c0_155 = arith.constant 0 : index
    %c0_156 = arith.constant 0 : index
    %207 = arith.index_cast %206 : i32 to index
    %c1_157 = arith.constant 1 : index
    %208 = vector.load %arg2[%c0_155, %c0_156, %207, %c1_157] : memref<1x5x18x18xf32, #tpu.memory_space<vmem>>, vector<1x5x1x16xf32>
    %209 = vector.shape_cast %208 : vector<1x5x1x16xf32> to vector<5x1x16xf32>
    %210 = vector.shape_cast %209 : vector<5x1x16xf32> to vector<5x16xf32>
    %c2_i32_158 = arith.constant 2 : i32
    %211 = arith.addi %0, %c2_i32_158 : i32
    %c2_i32_159 = arith.constant 2 : i32
    %212 = arith.addi %211, %c2_i32_159 : i32
    %c0_160 = arith.constant 0 : index
    %c0_161 = arith.constant 0 : index
    %213 = arith.index_cast %212 : i32 to index
    %c2_162 = arith.constant 2 : index
    %214 = vector.load %arg2[%c0_160, %c0_161, %213, %c2_162] : memref<1x5x18x18xf32, #tpu.memory_space<vmem>>, vector<1x5x1x16xf32>
    %215 = vector.shape_cast %214 : vector<1x5x1x16xf32> to vector<5x1x16xf32>
    %216 = vector.shape_cast %215 : vector<5x1x16xf32> to vector<5x16xf32>
    %217 = tpu.concatenate %168, %174, %180, %186, %192, %198, %204, %210, %216 in 0 : vector<5x16xf32>, vector<5x16xf32>, vector<5x16xf32>, vector<5x16xf32>, vector<5x16xf32>, vector<5x16xf32>, vector<5x16xf32>, vector<5x16xf32>, vector<5x16xf32> -> vector<45x16xf32>
    %cst_163 = arith.constant dense<0.000000e+00> : vector<64x16xf32>
    %218 = tpu.matmul %1, %217, %cst_163 {dimension_numbers = #tpu.dot_dimension_numbers<[1], [0], [0], [1], [0, 0, 1, 1], [], []>} : vector<64x45xf32>, vector<45x16xf32>, vector<64x16xf32> -> vector<64x16xf32>
    %219 = vector.extract_strided_slice %218 {offsets = [0, 0], sizes = [16, 16], strides = [1, 1]} : vector<64x16xf32> to vector<16x16xf32>
    %cst_164 = arith.constant dense<0.000000e+00> : vector<16x64xf32>
    %220 = tpu.matmul %219, %4, %cst_164 {dimension_numbers = #tpu.dot_dimension_numbers<[1], [0], [0], [1], [0, 0, 1, 1], [], []>} : vector<16x16xf32>, vector<16x64xf32>, vector<16x64xf32> -> vector<16x64xf32>
    %221 = vector.broadcast %2 : vector<16x1xf32> to vector<16x64xf32>
    %222 = arith.addf %221, %220 : vector<16x64xf32>
    %223 = vector.extract_strided_slice %218 {offsets = [16, 0], sizes = [16, 16], strides = [1, 1]} : vector<64x16xf32> to vector<16x16xf32>
    %cst_165 = arith.constant dense<0.000000e+00> : vector<16x64xf32>
    %224 = tpu.matmul %223, %6, %cst_165 {dimension_numbers = #tpu.dot_dimension_numbers<[1], [0], [0], [1], [0, 0, 1, 1], [], []>} : vector<16x16xf32>, vector<16x64xf32>, vector<16x64xf32> -> vector<16x64xf32>
    %225 = arith.addf %222, %224 : vector<16x64xf32>
    %226 = vector.extract_strided_slice %218 {offsets = [32, 0], sizes = [16, 16], strides = [1, 1]} : vector<64x16xf32> to vector<16x16xf32>
    %cst_166 = arith.constant dense<0.000000e+00> : vector<16x64xf32>
    %227 = tpu.matmul %226, %8, %cst_166 {dimension_numbers = #tpu.dot_dimension_numbers<[1], [0], [0], [1], [0, 0, 1, 1], [], []>} : vector<16x16xf32>, vector<16x64xf32>, vector<16x64xf32> -> vector<16x64xf32>
    %228 = arith.addf %225, %227 : vector<16x64xf32>
    %229 = vector.extract_strided_slice %218 {offsets = [48, 0], sizes = [16, 16], strides = [1, 1]} : vector<64x16xf32> to vector<16x16xf32>
    %cst_167 = arith.constant dense<0.000000e+00> : vector<16x64xf32>
    %230 = tpu.matmul %229, %10, %cst_167 {dimension_numbers = #tpu.dot_dimension_numbers<[1], [0], [0], [1], [0, 0, 1, 1], [], []>} : vector<16x16xf32>, vector<16x64xf32>, vector<16x64xf32> -> vector<16x64xf32>
    %231 = arith.addf %228, %230 : vector<16x64xf32>
    %c0_168 = arith.constant 0 : index
    %c2_169 = arith.constant 2 : index
    %c0_170 = arith.constant 0 : index
    %c0_171 = arith.constant 0 : index
    %232 = vector.load %arg6[%c0_168, %c2_169, %c0_170, %c0_171] : memref<1x16x16x64xf32, #tpu.memory_space<vmem>>, vector<1x1x16x64xf32>
    %233 = vector.shape_cast %232 : vector<1x1x16x64xf32> to vector<16x64xf32>
    %234 = vector.shape_cast %231 : vector<16x64xf32> to vector<1x1x16x64xf32>
    tpu.vector_store %arg6[%c0_168, %c2_169, %c0_170, %c0_171], %234 {strides = array<i32>} : memref<1x16x16x64xf32, #tpu.memory_space<vmem>>, vector<1x1x16x64xf32>,
    %235 = arith.addf %160, %231 : vector<16x64xf32>
    %236 = arith.mulf %231, %231 : vector<16x64xf32>
    %237 = arith.addf %162, %236 : vector<16x64xf32>
    %c3_i32 = arith.constant 3 : i32
    %238 = arith.addi %0, %c3_i32 : i32
    %c0_i32_172 = arith.constant 0 : i32
    %239 = arith.addi %238, %c0_i32_172 : i32
    %c0_173 = arith.constant 0 : index
    %c0_174 = arith.constant 0 : index
    %240 = arith.index_cast %239 : i32 to index
    %c0_175 = arith.constant 0 : index
    %241 = vector.load %arg2[%c0_173, %c0_174, %240, %c0_175] : memref<1x5x18x18xf32, #tpu.memory_space<vmem>>, vector<1x5x1x16xf32>
    %242 = vector.shape_cast %241 : vector<1x5x1x16xf32> to vector<5x1x16xf32>
    %243 = vector.shape_cast %242 : vector<5x1x16xf32> to vector<5x16xf32>
    %c3_i32_176 = arith.constant 3 : i32
    %244 = arith.addi %0, %c3_i32_176 : i32
    %c0_i32_177 = arith.constant 0 : i32
    %245 = arith.addi %244, %c0_i32_177 : i32
    %c0_178 = arith.constant 0 : index
    %c0_179 = arith.constant 0 : index
    %246 = arith.index_cast %245 : i32 to index
    %c1_180 = arith.constant 1 : index
    %247 = vector.load %arg2[%c0_178, %c0_179, %246, %c1_180] : memref<1x5x18x18xf32, #tpu.memory_space<vmem>>, vector<1x5x1x16xf32>
    %248 = vector.shape_cast %247 : vector<1x5x1x16xf32> to vector<5x1x16xf32>
    %249 = vector.shape_cast %248 : vector<5x1x16xf32> to vector<5x16xf32>
    %c3_i32_181 = arith.constant 3 : i32
    %250 = arith.addi %0, %c3_i32_181 : i32
    %c0_i32_182 = arith.constant 0 : i32
    %251 = arith.addi %250, %c0_i32_182 : i32
    %c0_183 = arith.constant 0 : index
    %c0_184 = arith.constant 0 : index
    %252 = arith.index_cast %251 : i32 to index
    %c2_185 = arith.constant 2 : index
    %253 = vector.load %arg2[%c0_183, %c0_184, %252, %c2_185] : memref<1x5x18x18xf32, #tpu.memory_space<vmem>>, vector<1x5x1x16xf32>
    %254 = vector.shape_cast %253 : vector<1x5x1x16xf32> to vector<5x1x16xf32>
    %255 = vector.shape_cast %254 : vector<5x1x16xf32> to vector<5x16xf32>
    %c3_i32_186 = arith.constant 3 : i32
    %256 = arith.addi %0, %c3_i32_186 : i32
    %c1_i32_187 = arith.constant 1 : i32
    %257 = arith.addi %256, %c1_i32_187 : i32
    %c0_188 = arith.constant 0 : index
    %c0_189 = arith.constant 0 : index
    %258 = arith.index_cast %257 : i32 to index
    %c0_190 = arith.constant 0 : index
    %259 = vector.load %arg2[%c0_188, %c0_189, %258, %c0_190] : memref<1x5x18x18xf32, #tpu.memory_space<vmem>>, vector<1x5x1x16xf32>
    %260 = vector.shape_cast %259 : vector<1x5x1x16xf32> to vector<5x1x16xf32>
    %261 = vector.shape_cast %260 : vector<5x1x16xf32> to vector<5x16xf32>
    %c3_i32_191 = arith.constant 3 : i32
    %262 = arith.addi %0, %c3_i32_191 : i32
    %c1_i32_192 = arith.constant 1 : i32
    %263 = arith.addi %262, %c1_i32_192 : i32
    %c0_193 = arith.constant 0 : index
    %c0_194 = arith.constant 0 : index
    %264 = arith.index_cast %263 : i32 to index
    %c1_195 = arith.constant 1 : index
    %265 = vector.load %arg2[%c0_193, %c0_194, %264, %c1_195] : memref<1x5x18x18xf32, #tpu.memory_space<vmem>>, vector<1x5x1x16xf32>
    %266 = vector.shape_cast %265 : vector<1x5x1x16xf32> to vector<5x1x16xf32>
    %267 = vector.shape_cast %266 : vector<5x1x16xf32> to vector<5x16xf32>
    %c3_i32_196 = arith.constant 3 : i32
    %268 = arith.addi %0, %c3_i32_196 : i32
    %c1_i32_197 = arith.constant 1 : i32
    %269 = arith.addi %268, %c1_i32_197 : i32
    %c0_198 = arith.constant 0 : index
    %c0_199 = arith.constant 0 : index
    %270 = arith.index_cast %269 : i32 to index
    %c2_200 = arith.constant 2 : index
    %271 = vector.load %arg2[%c0_198, %c0_199, %270, %c2_200] : memref<1x5x18x18xf32, #tpu.memory_space<vmem>>, vector<1x5x1x16xf32>
    %272 = vector.shape_cast %271 : vector<1x5x1x16xf32> to vector<5x1x16xf32>
    %273 = vector.shape_cast %272 : vector<5x1x16xf32> to vector<5x16xf32>
    %c3_i32_201 = arith.constant 3 : i32
    %274 = arith.addi %0, %c3_i32_201 : i32
    %c2_i32_202 = arith.constant 2 : i32
    %275 = arith.addi %274, %c2_i32_202 : i32
    %c0_203 = arith.constant 0 : index
    %c0_204 = arith.constant 0 : index
    %276 = arith.index_cast %275 : i32 to index
    %c0_205 = arith.constant 0 : index
    %277 = vector.load %arg2[%c0_203, %c0_204, %276, %c0_205] : memref<1x5x18x18xf32, #tpu.memory_space<vmem>>, vector<1x5x1x16xf32>
    %278 = vector.shape_cast %277 : vector<1x5x1x16xf32> to vector<5x1x16xf32>
    %279 = vector.shape_cast %278 : vector<5x1x16xf32> to vector<5x16xf32>
    %c3_i32_206 = arith.constant 3 : i32
    %280 = arith.addi %0, %c3_i32_206 : i32
    %c2_i32_207 = arith.constant 2 : i32
    %281 = arith.addi %280, %c2_i32_207 : i32
    %c0_208 = arith.constant 0 : index
    %c0_209 = arith.constant 0 : index
    %282 = arith.index_cast %281 : i32 to index
    %c1_210 = arith.constant 1 : index
    %283 = vector.load %arg2[%c0_208, %c0_209, %282, %c1_210] : memref<1x5x18x18xf32, #tpu.memory_space<vmem>>, vector<1x5x1x16xf32>
    %284 = vector.shape_cast %283 : vector<1x5x1x16xf32> to vector<5x1x16xf32>
    %285 = vector.shape_cast %284 : vector<5x1x16xf32> to vector<5x16xf32>
    %c3_i32_211 = arith.constant 3 : i32
    %286 = arith.addi %0, %c3_i32_211 : i32
    %c2_i32_212 = arith.constant 2 : i32
    %287 = arith.addi %286, %c2_i32_212 : i32
    %c0_213 = arith.constant 0 : index
    %c0_214 = arith.constant 0 : index
    %288 = arith.index_cast %287 : i32 to index
    %c2_215 = arith.constant 2 : index
    %289 = vector.load %arg2[%c0_213, %c0_214, %288, %c2_215] : memref<1x5x18x18xf32, #tpu.memory_space<vmem>>, vector<1x5x1x16xf32>
    %290 = vector.shape_cast %289 : vector<1x5x1x16xf32> to vector<5x1x16xf32>
    %291 = vector.shape_cast %290 : vector<5x1x16xf32> to vector<5x16xf32>
    %292 = tpu.concatenate %243, %249, %255, %261, %267, %273, %279, %285, %291 in 0 : vector<5x16xf32>, vector<5x16xf32>, vector<5x16xf32>, vector<5x16xf32>, vector<5x16xf32>, vector<5x16xf32>, vector<5x16xf32>, vector<5x16xf32>, vector<5x16xf32> -> vector<45x16xf32>
    %cst_216 = arith.constant dense<0.000000e+00> : vector<64x16xf32>
    %293 = tpu.matmul %1, %292, %cst_216 {dimension_numbers = #tpu.dot_dimension_numbers<[1], [0], [0], [1], [0, 0, 1, 1], [], []>} : vector<64x45xf32>, vector<45x16xf32>, vector<64x16xf32> -> vector<64x16xf32>
    %294 = vector.extract_strided_slice %293 {offsets = [0, 0], sizes = [16, 16], strides = [1, 1]} : vector<64x16xf32> to vector<16x16xf32>
    %cst_217 = arith.constant dense<0.000000e+00> : vector<16x64xf32>
    %295 = tpu.matmul %294, %4, %cst_217 {dimension_numbers = #tpu.dot_dimension_numbers<[1], [0], [0], [1], [0, 0, 1, 1], [], []>} : vector<16x16xf32>, vector<16x64xf32>, vector<16x64xf32> -> vector<16x64xf32>
    %296 = vector.broadcast %2 : vector<16x1xf32> to vector<16x64xf32>
    %297 = arith.addf %296, %295 : vector<16x64xf32>
    %298 = vector.extract_strided_slice %293 {offsets = [16, 0], sizes = [16, 16], strides = [1, 1]} : vector<64x16xf32> to vector<16x16xf32>
    %cst_218 = arith.constant dense<0.000000e+00> : vector<16x64xf32>
    %299 = tpu.matmul %298, %6, %cst_218 {dimension_numbers = #tpu.dot_dimension_numbers<[1], [0], [0], [1], [0, 0, 1, 1], [], []>} : vector<16x16xf32>, vector<16x64xf32>, vector<16x64xf32> -> vector<16x64xf32>
    %300 = arith.addf %297, %299 : vector<16x64xf32>
    %301 = vector.extract_strided_slice %293 {offsets = [32, 0], sizes = [16, 16], strides = [1, 1]} : vector<64x16xf32> to vector<16x16xf32>
    %cst_219 = arith.constant dense<0.000000e+00> : vector<16x64xf32>
    %302 = tpu.matmul %301, %8, %cst_219 {dimension_numbers = #tpu.dot_dimension_numbers<[1], [0], [0], [1], [0, 0, 1, 1], [], []>} : vector<16x16xf32>, vector<16x64xf32>, vector<16x64xf32> -> vector<16x64xf32>
    %303 = arith.addf %300, %302 : vector<16x64xf32>
    %304 = vector.extract_strided_slice %293 {offsets = [48, 0], sizes = [16, 16], strides = [1, 1]} : vector<64x16xf32> to vector<16x16xf32>
    %cst_220 = arith.constant dense<0.000000e+00> : vector<16x64xf32>
    %305 = tpu.matmul %304, %10, %cst_220 {dimension_numbers = #tpu.dot_dimension_numbers<[1], [0], [0], [1], [0, 0, 1, 1], [], []>} : vector<16x16xf32>, vector<16x64xf32>, vector<16x64xf32> -> vector<16x64xf32>
    %306 = arith.addf %303, %305 : vector<16x64xf32>
    %c0_221 = arith.constant 0 : index
    %c3_222 = arith.constant 3 : index
    %c0_223 = arith.constant 0 : index
    %c0_224 = arith.constant 0 : index
    %307 = vector.load %arg6[%c0_221, %c3_222, %c0_223, %c0_224] : memref<1x16x16x64xf32, #tpu.memory_space<vmem>>, vector<1x1x16x64xf32>
    %308 = vector.shape_cast %307 : vector<1x1x16x64xf32> to vector<16x64xf32>
    %309 = vector.shape_cast %306 : vector<16x64xf32> to vector<1x1x16x64xf32>
    tpu.vector_store %arg6[%c0_221, %c3_222, %c0_223, %c0_224], %309 {strides = array<i32>} : memref<1x16x16x64xf32, #tpu.memory_space<vmem>>, vector<1x1x16x64xf32>,
    %310 = arith.addf %235, %306 : vector<16x64xf32>
    %311 = arith.mulf %306, %306 : vector<16x64xf32>
    %312 = arith.addf %237, %311 : vector<16x64xf32>
    %c4_i32 = arith.constant 4 : i32
    %313 = arith.addi %0, %c4_i32 : i32
    %c0_i32_225 = arith.constant 0 : i32
    %314 = arith.addi %313, %c0_i32_225 : i32
    %c0_226 = arith.constant 0 : index
    %c0_227 = arith.constant 0 : index
    %315 = arith.index_cast %314 : i32 to index
    %c0_228 = arith.constant 0 : index
    %316 = vector.load %arg2[%c0_226, %c0_227, %315, %c0_228] : memref<1x5x18x18xf32, #tpu.memory_space<vmem>>, vector<1x5x1x16xf32>
    %317 = vector.shape_cast %316 : vector<1x5x1x16xf32> to vector<5x1x16xf32>
    %318 = vector.shape_cast %317 : vector<5x1x16xf32> to vector<5x16xf32>
    %c4_i32_229 = arith.constant 4 : i32
    %319 = arith.addi %0, %c4_i32_229 : i32
    %c0_i32_230 = arith.constant 0 : i32
    %320 = arith.addi %319, %c0_i32_230 : i32
    %c0_231 = arith.constant 0 : index
    %c0_232 = arith.constant 0 : index
    %321 = arith.index_cast %320 : i32 to index
    %c1_233 = arith.constant 1 : index
    %322 = vector.load %arg2[%c0_231, %c0_232, %321, %c1_233] : memref<1x5x18x18xf32, #tpu.memory_space<vmem>>, vector<1x5x1x16xf32>
    %323 = vector.shape_cast %322 : vector<1x5x1x16xf32> to vector<5x1x16xf32>
    %324 = vector.shape_cast %323 : vector<5x1x16xf32> to vector<5x16xf32>
    %c4_i32_234 = arith.constant 4 : i32
    %325 = arith.addi %0, %c4_i32_234 : i32
    %c0_i32_235 = arith.constant 0 : i32
    %326 = arith.addi %325, %c0_i32_235 : i32
    %c0_236 = arith.constant 0 : index
    %c0_237 = arith.constant 0 : index
    %327 = arith.index_cast %326 : i32 to index
    %c2_238 = arith.constant 2 : index
    %328 = vector.load %arg2[%c0_236, %c0_237, %327, %c2_238] : memref<1x5x18x18xf32, #tpu.memory_space<vmem>>, vector<1x5x1x16xf32>
    %329 = vector.shape_cast %328 : vector<1x5x1x16xf32> to vector<5x1x16xf32>
    %330 = vector.shape_cast %329 : vector<5x1x16xf32> to vector<5x16xf32>
    %c4_i32_239 = arith.constant 4 : i32
    %331 = arith.addi %0, %c4_i32_239 : i32
    %c1_i32_240 = arith.constant 1 : i32
    %332 = arith.addi %331, %c1_i32_240 : i32
    %c0_241 = arith.constant 0 : index
    %c0_242 = arith.constant 0 : index
    %333 = arith.index_cast %332 : i32 to index
    %c0_243 = arith.constant 0 : index
    %334 = vector.load %arg2[%c0_241, %c0_242, %333, %c0_243] : memref<1x5x18x18xf32, #tpu.memory_space<vmem>>, vector<1x5x1x16xf32>
    %335 = vector.shape_cast %334 : vector<1x5x1x16xf32> to vector<5x1x16xf32>
    %336 = vector.shape_cast %335 : vector<5x1x16xf32> to vector<5x16xf32>
    %c4_i32_244 = arith.constant 4 : i32
    %337 = arith.addi %0, %c4_i32_244 : i32
    %c1_i32_245 = arith.constant 1 : i32
    %338 = arith.addi %337, %c1_i32_245 : i32
    %c0_246 = arith.constant 0 : index
    %c0_247 = arith.constant 0 : index
    %339 = arith.index_cast %338 : i32 to index
    %c1_248 = arith.constant 1 : index
    %340 = vector.load %arg2[%c0_246, %c0_247, %339, %c1_248] : memref<1x5x18x18xf32, #tpu.memory_space<vmem>>, vector<1x5x1x16xf32>
    %341 = vector.shape_cast %340 : vector<1x5x1x16xf32> to vector<5x1x16xf32>
    %342 = vector.shape_cast %341 : vector<5x1x16xf32> to vector<5x16xf32>
    %c4_i32_249 = arith.constant 4 : i32
    %343 = arith.addi %0, %c4_i32_249 : i32
    %c1_i32_250 = arith.constant 1 : i32
    %344 = arith.addi %343, %c1_i32_250 : i32
    %c0_251 = arith.constant 0 : index
    %c0_252 = arith.constant 0 : index
    %345 = arith.index_cast %344 : i32 to index
    %c2_253 = arith.constant 2 : index
    %346 = vector.load %arg2[%c0_251, %c0_252, %345, %c2_253] : memref<1x5x18x18xf32, #tpu.memory_space<vmem>>, vector<1x5x1x16xf32>
    %347 = vector.shape_cast %346 : vector<1x5x1x16xf32> to vector<5x1x16xf32>
    %348 = vector.shape_cast %347 : vector<5x1x16xf32> to vector<5x16xf32>
    %c4_i32_254 = arith.constant 4 : i32
    %349 = arith.addi %0, %c4_i32_254 : i32
    %c2_i32_255 = arith.constant 2 : i32
    %350 = arith.addi %349, %c2_i32_255 : i32
    %c0_256 = arith.constant 0 : index
    %c0_257 = arith.constant 0 : index
    %351 = arith.index_cast %350 : i32 to index
    %c0_258 = arith.constant 0 : index
    %352 = vector.load %arg2[%c0_256, %c0_257, %351, %c0_258] : memref<1x5x18x18xf32, #tpu.memory_space<vmem>>, vector<1x5x1x16xf32>
    %353 = vector.shape_cast %352 : vector<1x5x1x16xf32> to vector<5x1x16xf32>
    %354 = vector.shape_cast %353 : vector<5x1x16xf32> to vector<5x16xf32>
    %c4_i32_259 = arith.constant 4 : i32
    %355 = arith.addi %0, %c4_i32_259 : i32
    %c2_i32_260 = arith.constant 2 : i32
    %356 = arith.addi %355, %c2_i32_260 : i32
    %c0_261 = arith.constant 0 : index
    %c0_262 = arith.constant 0 : index
    %357 = arith.index_cast %356 : i32 to index
    %c1_263 = arith.constant 1 : index
    %358 = vector.load %arg2[%c0_261, %c0_262, %357, %c1_263] : memref<1x5x18x18xf32, #tpu.memory_space<vmem>>, vector<1x5x1x16xf32>
    %359 = vector.shape_cast %358 : vector<1x5x1x16xf32> to vector<5x1x16xf32>
    %360 = vector.shape_cast %359 : vector<5x1x16xf32> to vector<5x16xf32>
    %c4_i32_264 = arith.constant 4 : i32
    %361 = arith.addi %0, %c4_i32_264 : i32
    %c2_i32_265 = arith.constant 2 : i32
    %362 = arith.addi %361, %c2_i32_265 : i32
    %c0_266 = arith.constant 0 : index
    %c0_267 = arith.constant 0 : index
    %363 = arith.index_cast %362 : i32 to index
    %c2_268 = arith.constant 2 : index
    %364 = vector.load %arg2[%c0_266, %c0_267, %363, %c2_268] : memref<1x5x18x18xf32, #tpu.memory_space<vmem>>, vector<1x5x1x16xf32>
    %365 = vector.shape_cast %364 : vector<1x5x1x16xf32> to vector<5x1x16xf32>
    %366 = vector.shape_cast %365 : vector<5x1x16xf32> to vector<5x16xf32>
    %367 = tpu.concatenate %318, %324, %330, %336, %342, %348, %354, %360, %366 in 0 : vector<5x16xf32>, vector<5x16xf32>, vector<5x16xf32>, vector<5x16xf32>, vector<5x16xf32>, vector<5x16xf32>, vector<5x16xf32>, vector<5x16xf32>, vector<5x16xf32> -> vector<45x16xf32>
    %cst_269 = arith.constant dense<0.000000e+00> : vector<64x16xf32>
    %368 = tpu.matmul %1, %367, %cst_269 {dimension_numbers = #tpu.dot_dimension_numbers<[1], [0], [0], [1], [0, 0, 1, 1], [], []>} : vector<64x45xf32>, vector<45x16xf32>, vector<64x16xf32> -> vector<64x16xf32>
    %369 = vector.extract_strided_slice %368 {offsets = [0, 0], sizes = [16, 16], strides = [1, 1]} : vector<64x16xf32> to vector<16x16xf32>
    %cst_270 = arith.constant dense<0.000000e+00> : vector<16x64xf32>
    %370 = tpu.matmul %369, %4, %cst_270 {dimension_numbers = #tpu.dot_dimension_numbers<[1], [0], [0], [1], [0, 0, 1, 1], [], []>} : vector<16x16xf32>, vector<16x64xf32>, vector<16x64xf32> -> vector<16x64xf32>
    %371 = vector.broadcast %2 : vector<16x1xf32> to vector<16x64xf32>
    %372 = arith.addf %371, %370 : vector<16x64xf32>
    %373 = vector.extract_strided_slice %368 {offsets = [16, 0], sizes = [16, 16], strides = [1, 1]} : vector<64x16xf32> to vector<16x16xf32>
    %cst_271 = arith.constant dense<0.000000e+00> : vector<16x64xf32>
    %374 = tpu.matmul %373, %6, %cst_271 {dimension_numbers = #tpu.dot_dimension_numbers<[1], [0], [0], [1], [0, 0, 1, 1], [], []>} : vector<16x16xf32>, vector<16x64xf32>, vector<16x64xf32> -> vector<16x64xf32>
    %375 = arith.addf %372, %374 : vector<16x64xf32>
    %376 = vector.extract_strided_slice %368 {offsets = [32, 0], sizes = [16, 16], strides = [1, 1]} : vector<64x16xf32> to vector<16x16xf32>
    %cst_272 = arith.constant dense<0.000000e+00> : vector<16x64xf32>
    %377 = tpu.matmul %376, %8, %cst_272 {dimension_numbers = #tpu.dot_dimension_numbers<[1], [0], [0], [1], [0, 0, 1, 1], [], []>} : vector<16x16xf32>, vector<16x64xf32>, vector<16x64xf32> -> vector<16x64xf32>
    %378 = arith.addf %375, %377 : vector<16x64xf32>
    %379 = vector.extract_strided_slice %368 {offsets = [48, 0], sizes = [16, 16], strides = [1, 1]} : vector<64x16xf32> to vector<16x16xf32>
    %cst_273 = arith.constant dense<0.000000e+00> : vector<16x64xf32>
    %380 = tpu.matmul %379, %10, %cst_273 {dimension_numbers = #tpu.dot_dimension_numbers<[1], [0], [0], [1], [0, 0, 1, 1], [], []>} : vector<16x16xf32>, vector<16x64xf32>, vector<16x64xf32> -> vector<16x64xf32>
    %381 = arith.addf %378, %380 : vector<16x64xf32>
    %c0_274 = arith.constant 0 : index
    %c4 = arith.constant 4 : index
    %c0_275 = arith.constant 0 : index
    %c0_276 = arith.constant 0 : index
    %382 = vector.load %arg6[%c0_274, %c4, %c0_275, %c0_276] : memref<1x16x16x64xf32, #tpu.memory_space<vmem>>, vector<1x1x16x64xf32>
    %383 = vector.shape_cast %382 : vector<1x1x16x64xf32> to vector<16x64xf32>
    %384 = vector.shape_cast %381 : vector<16x64xf32> to vector<1x1x16x64xf32>
    tpu.vector_store %arg6[%c0_274, %c4, %c0_275, %c0_276], %384 {strides = array<i32>} : memref<1x16x16x64xf32, #tpu.memory_space<vmem>>, vector<1x1x16x64xf32>,
    %385 = arith.addf %310, %381 : vector<16x64xf32>
    %386 = arith.mulf %381, %381 : vector<16x64xf32>
    %387 = arith.addf %312, %386 : vector<16x64xf32>
    %c5_i32 = arith.constant 5 : i32
    %388 = arith.addi %0, %c5_i32 : i32
    %c0_i32_277 = arith.constant 0 : i32
    %389 = arith.addi %388, %c0_i32_277 : i32
    %c0_278 = arith.constant 0 : index
    %c0_279 = arith.constant 0 : index
    %390 = arith.index_cast %389 : i32 to index
    %c0_280 = arith.constant 0 : index
    %391 = vector.load %arg2[%c0_278, %c0_279, %390, %c0_280] : memref<1x5x18x18xf32, #tpu.memory_space<vmem>>, vector<1x5x1x16xf32>
    %392 = vector.shape_cast %391 : vector<1x5x1x16xf32> to vector<5x1x16xf32>
    %393 = vector.shape_cast %392 : vector<5x1x16xf32> to vector<5x16xf32>
    %c5_i32_281 = arith.constant 5 : i32
    %394 = arith.addi %0, %c5_i32_281 : i32
    %c0_i32_282 = arith.constant 0 : i32
    %395 = arith.addi %394, %c0_i32_282 : i32
    %c0_283 = arith.constant 0 : index
    %c0_284 = arith.constant 0 : index
    %396 = arith.index_cast %395 : i32 to index
    %c1_285 = arith.constant 1 : index
    %397 = vector.load %arg2[%c0_283, %c0_284, %396, %c1_285] : memref<1x5x18x18xf32, #tpu.memory_space<vmem>>, vector<1x5x1x16xf32>
    %398 = vector.shape_cast %397 : vector<1x5x1x16xf32> to vector<5x1x16xf32>
    %399 = vector.shape_cast %398 : vector<5x1x16xf32> to vector<5x16xf32>
    %c5_i32_286 = arith.constant 5 : i32
    %400 = arith.addi %0, %c5_i32_286 : i32
    %c0_i32_287 = arith.constant 0 : i32
    %401 = arith.addi %400, %c0_i32_287 : i32
    %c0_288 = arith.constant 0 : index
    %c0_289 = arith.constant 0 : index
    %402 = arith.index_cast %401 : i32 to index
    %c2_290 = arith.constant 2 : index
    %403 = vector.load %arg2[%c0_288, %c0_289, %402, %c2_290] : memref<1x5x18x18xf32, #tpu.memory_space<vmem>>, vector<1x5x1x16xf32>
    %404 = vector.shape_cast %403 : vector<1x5x1x16xf32> to vector<5x1x16xf32>
    %405 = vector.shape_cast %404 : vector<5x1x16xf32> to vector<5x16xf32>
    %c5_i32_291 = arith.constant 5 : i32
    %406 = arith.addi %0, %c5_i32_291 : i32
    %c1_i32_292 = arith.constant 1 : i32
    %407 = arith.addi %406, %c1_i32_292 : i32
    %c0_293 = arith.constant 0 : index
    %c0_294 = arith.constant 0 : index
    %408 = arith.index_cast %407 : i32 to index
    %c0_295 = arith.constant 0 : index
    %409 = vector.load %arg2[%c0_293, %c0_294, %408, %c0_295] : memref<1x5x18x18xf32, #tpu.memory_space<vmem>>, vector<1x5x1x16xf32>
    %410 = vector.shape_cast %409 : vector<1x5x1x16xf32> to vector<5x1x16xf32>
    %411 = vector.shape_cast %410 : vector<5x1x16xf32> to vector<5x16xf32>
    %c5_i32_296 = arith.constant 5 : i32
    %412 = arith.addi %0, %c5_i32_296 : i32
    %c1_i32_297 = arith.constant 1 : i32
    %413 = arith.addi %412, %c1_i32_297 : i32
    %c0_298 = arith.constant 0 : index
    %c0_299 = arith.constant 0 : index
    %414 = arith.index_cast %413 : i32 to index
    %c1_300 = arith.constant 1 : index
    %415 = vector.load %arg2[%c0_298, %c0_299, %414, %c1_300] : memref<1x5x18x18xf32, #tpu.memory_space<vmem>>, vector<1x5x1x16xf32>
    %416 = vector.shape_cast %415 : vector<1x5x1x16xf32> to vector<5x1x16xf32>
    %417 = vector.shape_cast %416 : vector<5x1x16xf32> to vector<5x16xf32>
    %c5_i32_301 = arith.constant 5 : i32
    %418 = arith.addi %0, %c5_i32_301 : i32
    %c1_i32_302 = arith.constant 1 : i32
    %419 = arith.addi %418, %c1_i32_302 : i32
    %c0_303 = arith.constant 0 : index
    %c0_304 = arith.constant 0 : index
    %420 = arith.index_cast %419 : i32 to index
    %c2_305 = arith.constant 2 : index
    %421 = vector.load %arg2[%c0_303, %c0_304, %420, %c2_305] : memref<1x5x18x18xf32, #tpu.memory_space<vmem>>, vector<1x5x1x16xf32>
    %422 = vector.shape_cast %421 : vector<1x5x1x16xf32> to vector<5x1x16xf32>
    %423 = vector.shape_cast %422 : vector<5x1x16xf32> to vector<5x16xf32>
    %c5_i32_306 = arith.constant 5 : i32
    %424 = arith.addi %0, %c5_i32_306 : i32
    %c2_i32_307 = arith.constant 2 : i32
    %425 = arith.addi %424, %c2_i32_307 : i32
    %c0_308 = arith.constant 0 : index
    %c0_309 = arith.constant 0 : index
    %426 = arith.index_cast %425 : i32 to index
    %c0_310 = arith.constant 0 : index
    %427 = vector.load %arg2[%c0_308, %c0_309, %426, %c0_310] : memref<1x5x18x18xf32, #tpu.memory_space<vmem>>, vector<1x5x1x16xf32>
    %428 = vector.shape_cast %427 : vector<1x5x1x16xf32> to vector<5x1x16xf32>
    %429 = vector.shape_cast %428 : vector<5x1x16xf32> to vector<5x16xf32>
    %c5_i32_311 = arith.constant 5 : i32
    %430 = arith.addi %0, %c5_i32_311 : i32
    %c2_i32_312 = arith.constant 2 : i32
    %431 = arith.addi %430, %c2_i32_312 : i32
    %c0_313 = arith.constant 0 : index
    %c0_314 = arith.constant 0 : index
    %432 = arith.index_cast %431 : i32 to index
    %c1_315 = arith.constant 1 : index
    %433 = vector.load %arg2[%c0_313, %c0_314, %432, %c1_315] : memref<1x5x18x18xf32, #tpu.memory_space<vmem>>, vector<1x5x1x16xf32>
    %434 = vector.shape_cast %433 : vector<1x5x1x16xf32> to vector<5x1x16xf32>
    %435 = vector.shape_cast %434 : vector<5x1x16xf32> to vector<5x16xf32>
    %c5_i32_316 = arith.constant 5 : i32
    %436 = arith.addi %0, %c5_i32_316 : i32
    %c2_i32_317 = arith.constant 2 : i32
    %437 = arith.addi %436, %c2_i32_317 : i32
    %c0_318 = arith.constant 0 : index
    %c0_319 = arith.constant 0 : index
    %438 = arith.index_cast %437 : i32 to index
    %c2_320 = arith.constant 2 : index
    %439 = vector.load %arg2[%c0_318, %c0_319, %438, %c2_320] : memref<1x5x18x18xf32, #tpu.memory_space<vmem>>, vector<1x5x1x16xf32>
    %440 = vector.shape_cast %439 : vector<1x5x1x16xf32> to vector<5x1x16xf32>
    %441 = vector.shape_cast %440 : vector<5x1x16xf32> to vector<5x16xf32>
    %442 = tpu.concatenate %393, %399, %405, %411, %417, %423, %429, %435, %441 in 0 : vector<5x16xf32>, vector<5x16xf32>, vector<5x16xf32>, vector<5x16xf32>, vector<5x16xf32>, vector<5x16xf32>, vector<5x16xf32>, vector<5x16xf32>, vector<5x16xf32> -> vector<45x16xf32>
    %cst_321 = arith.constant dense<0.000000e+00> : vector<64x16xf32>
    %443 = tpu.matmul %1, %442, %cst_321 {dimension_numbers = #tpu.dot_dimension_numbers<[1], [0], [0], [1], [0, 0, 1, 1], [], []>} : vector<64x45xf32>, vector<45x16xf32>, vector<64x16xf32> -> vector<64x16xf32>
    %444 = vector.extract_strided_slice %443 {offsets = [0, 0], sizes = [16, 16], strides = [1, 1]} : vector<64x16xf32> to vector<16x16xf32>
    %cst_322 = arith.constant dense<0.000000e+00> : vector<16x64xf32>
    %445 = tpu.matmul %444, %4, %cst_322 {dimension_numbers = #tpu.dot_dimension_numbers<[1], [0], [0], [1], [0, 0, 1, 1], [], []>} : vector<16x16xf32>, vector<16x64xf32>, vector<16x64xf32> -> vector<16x64xf32>
    %446 = vector.broadcast %2 : vector<16x1xf32> to vector<16x64xf32>
    %447 = arith.addf %446, %445 : vector<16x64xf32>
    %448 = vector.extract_strided_slice %443 {offsets = [16, 0], sizes = [16, 16], strides = [1, 1]} : vector<64x16xf32> to vector<16x16xf32>
    %cst_323 = arith.constant dense<0.000000e+00> : vector<16x64xf32>
    %449 = tpu.matmul %448, %6, %cst_323 {dimension_numbers = #tpu.dot_dimension_numbers<[1], [0], [0], [1], [0, 0, 1, 1], [], []>} : vector<16x16xf32>, vector<16x64xf32>, vector<16x64xf32> -> vector<16x64xf32>
    %450 = arith.addf %447, %449 : vector<16x64xf32>
    %451 = vector.extract_strided_slice %443 {offsets = [32, 0], sizes = [16, 16], strides = [1, 1]} : vector<64x16xf32> to vector<16x16xf32>
    %cst_324 = arith.constant dense<0.000000e+00> : vector<16x64xf32>
    %452 = tpu.matmul %451, %8, %cst_324 {dimension_numbers = #tpu.dot_dimension_numbers<[1], [0], [0], [1], [0, 0, 1, 1], [], []>} : vector<16x16xf32>, vector<16x64xf32>, vector<16x64xf32> -> vector<16x64xf32>
    %453 = arith.addf %450, %452 : vector<16x64xf32>
    %454 = vector.extract_strided_slice %443 {offsets = [48, 0], sizes = [16, 16], strides = [1, 1]} : vector<64x16xf32> to vector<16x16xf32>
    %cst_325 = arith.constant dense<0.000000e+00> : vector<16x64xf32>
    %455 = tpu.matmul %454, %10, %cst_325 {dimension_numbers = #tpu.dot_dimension_numbers<[1], [0], [0], [1], [0, 0, 1, 1], [], []>} : vector<16x16xf32>, vector<16x64xf32>, vector<16x64xf32> -> vector<16x64xf32>
    %456 = arith.addf %453, %455 : vector<16x64xf32>
    %c0_326 = arith.constant 0 : index
    %c5 = arith.constant 5 : index
    %c0_327 = arith.constant 0 : index
    %c0_328 = arith.constant 0 : index
    %457 = vector.load %arg6[%c0_326, %c5, %c0_327, %c0_328] : memref<1x16x16x64xf32, #tpu.memory_space<vmem>>, vector<1x1x16x64xf32>
    %458 = vector.shape_cast %457 : vector<1x1x16x64xf32> to vector<16x64xf32>
    %459 = vector.shape_cast %456 : vector<16x64xf32> to vector<1x1x16x64xf32>
    tpu.vector_store %arg6[%c0_326, %c5, %c0_327, %c0_328], %459 {strides = array<i32>} : memref<1x16x16x64xf32, #tpu.memory_space<vmem>>, vector<1x1x16x64xf32>,
    %460 = arith.addf %385, %456 : vector<16x64xf32>
    %461 = arith.mulf %456, %456 : vector<16x64xf32>
    %462 = arith.addf %387, %461 : vector<16x64xf32>
    %c6_i32 = arith.constant 6 : i32
    %463 = arith.addi %0, %c6_i32 : i32
    %c0_i32_329 = arith.constant 0 : i32
    %464 = arith.addi %463, %c0_i32_329 : i32
    %c0_330 = arith.constant 0 : index
    %c0_331 = arith.constant 0 : index
    %465 = arith.index_cast %464 : i32 to index
    %c0_332 = arith.constant 0 : index
    %466 = vector.load %arg2[%c0_330, %c0_331, %465, %c0_332] : memref<1x5x18x18xf32, #tpu.memory_space<vmem>>, vector<1x5x1x16xf32>
    %467 = vector.shape_cast %466 : vector<1x5x1x16xf32> to vector<5x1x16xf32>
    %468 = vector.shape_cast %467 : vector<5x1x16xf32> to vector<5x16xf32>
    %c6_i32_333 = arith.constant 6 : i32
    %469 = arith.addi %0, %c6_i32_333 : i32
    %c0_i32_334 = arith.constant 0 : i32
    %470 = arith.addi %469, %c0_i32_334 : i32
    %c0_335 = arith.constant 0 : index
    %c0_336 = arith.constant 0 : index
    %471 = arith.index_cast %470 : i32 to index
    %c1_337 = arith.constant 1 : index
    %472 = vector.load %arg2[%c0_335, %c0_336, %471, %c1_337] : memref<1x5x18x18xf32, #tpu.memory_space<vmem>>, vector<1x5x1x16xf32>
    %473 = vector.shape_cast %472 : vector<1x5x1x16xf32> to vector<5x1x16xf32>
    %474 = vector.shape_cast %473 : vector<5x1x16xf32> to vector<5x16xf32>
    %c6_i32_338 = arith.constant 6 : i32
    %475 = arith.addi %0, %c6_i32_338 : i32
    %c0_i32_339 = arith.constant 0 : i32
    %476 = arith.addi %475, %c0_i32_339 : i32
    %c0_340 = arith.constant 0 : index
    %c0_341 = arith.constant 0 : index
    %477 = arith.index_cast %476 : i32 to index
    %c2_342 = arith.constant 2 : index
    %478 = vector.load %arg2[%c0_340, %c0_341, %477, %c2_342] : memref<1x5x18x18xf32, #tpu.memory_space<vmem>>, vector<1x5x1x16xf32>
    %479 = vector.shape_cast %478 : vector<1x5x1x16xf32> to vector<5x1x16xf32>
    %480 = vector.shape_cast %479 : vector<5x1x16xf32> to vector<5x16xf32>
    %c6_i32_343 = arith.constant 6 : i32
    %481 = arith.addi %0, %c6_i32_343 : i32
    %c1_i32_344 = arith.constant 1 : i32
    %482 = arith.addi %481, %c1_i32_344 : i32
    %c0_345 = arith.constant 0 : index
    %c0_346 = arith.constant 0 : index
    %483 = arith.index_cast %482 : i32 to index
    %c0_347 = arith.constant 0 : index
    %484 = vector.load %arg2[%c0_345, %c0_346, %483, %c0_347] : memref<1x5x18x18xf32, #tpu.memory_space<vmem>>, vector<1x5x1x16xf32>
    %485 = vector.shape_cast %484 : vector<1x5x1x16xf32> to vector<5x1x16xf32>
    %486 = vector.shape_cast %485 : vector<5x1x16xf32> to vector<5x16xf32>
    %c6_i32_348 = arith.constant 6 : i32
    %487 = arith.addi %0, %c6_i32_348 : i32
    %c1_i32_349 = arith.constant 1 : i32
    %488 = arith.addi %487, %c1_i32_349 : i32
    %c0_350 = arith.constant 0 : index
    %c0_351 = arith.constant 0 : index
    %489 = arith.index_cast %488 : i32 to index
    %c1_352 = arith.constant 1 : index
    %490 = vector.load %arg2[%c0_350, %c0_351, %489, %c1_352] : memref<1x5x18x18xf32, #tpu.memory_space<vmem>>, vector<1x5x1x16xf32>
    %491 = vector.shape_cast %490 : vector<1x5x1x16xf32> to vector<5x1x16xf32>
    %492 = vector.shape_cast %491 : vector<5x1x16xf32> to vector<5x16xf32>
    %c6_i32_353 = arith.constant 6 : i32
    %493 = arith.addi %0, %c6_i32_353 : i32
    %c1_i32_354 = arith.constant 1 : i32
    %494 = arith.addi %493, %c1_i32_354 : i32
    %c0_355 = arith.constant 0 : index
    %c0_356 = arith.constant 0 : index
    %495 = arith.index_cast %494 : i32 to index
    %c2_357 = arith.constant 2 : index
    %496 = vector.load %arg2[%c0_355, %c0_356, %495, %c2_357] : memref<1x5x18x18xf32, #tpu.memory_space<vmem>>, vector<1x5x1x16xf32>
    %497 = vector.shape_cast %496 : vector<1x5x1x16xf32> to vector<5x1x16xf32>
    %498 = vector.shape_cast %497 : vector<5x1x16xf32> to vector<5x16xf32>
    %c6_i32_358 = arith.constant 6 : i32
    %499 = arith.addi %0, %c6_i32_358 : i32
    %c2_i32_359 = arith.constant 2 : i32
    %500 = arith.addi %499, %c2_i32_359 : i32
    %c0_360 = arith.constant 0 : index
    %c0_361 = arith.constant 0 : index
    %501 = arith.index_cast %500 : i32 to index
    %c0_362 = arith.constant 0 : index
    %502 = vector.load %arg2[%c0_360, %c0_361, %501, %c0_362] : memref<1x5x18x18xf32, #tpu.memory_space<vmem>>, vector<1x5x1x16xf32>
    %503 = vector.shape_cast %502 : vector<1x5x1x16xf32> to vector<5x1x16xf32>
    %504 = vector.shape_cast %503 : vector<5x1x16xf32> to vector<5x16xf32>
    %c6_i32_363 = arith.constant 6 : i32
    %505 = arith.addi %0, %c6_i32_363 : i32
    %c2_i32_364 = arith.constant 2 : i32
    %506 = arith.addi %505, %c2_i32_364 : i32
    %c0_365 = arith.constant 0 : index
    %c0_366 = arith.constant 0 : index
    %507 = arith.index_cast %506 : i32 to index
    %c1_367 = arith.constant 1 : index
    %508 = vector.load %arg2[%c0_365, %c0_366, %507, %c1_367] : memref<1x5x18x18xf32, #tpu.memory_space<vmem>>, vector<1x5x1x16xf32>
    %509 = vector.shape_cast %508 : vector<1x5x1x16xf32> to vector<5x1x16xf32>
    %510 = vector.shape_cast %509 : vector<5x1x16xf32> to vector<5x16xf32>
    %c6_i32_368 = arith.constant 6 : i32
    %511 = arith.addi %0, %c6_i32_368 : i32
    %c2_i32_369 = arith.constant 2 : i32
    %512 = arith.addi %511, %c2_i32_369 : i32
    %c0_370 = arith.constant 0 : index
    %c0_371 = arith.constant 0 : index
    %513 = arith.index_cast %512 : i32 to index
    %c2_372 = arith.constant 2 : index
    %514 = vector.load %arg2[%c0_370, %c0_371, %513, %c2_372] : memref<1x5x18x18xf32, #tpu.memory_space<vmem>>, vector<1x5x1x16xf32>
    %515 = vector.shape_cast %514 : vector<1x5x1x16xf32> to vector<5x1x16xf32>
    %516 = vector.shape_cast %515 : vector<5x1x16xf32> to vector<5x16xf32>
    %517 = tpu.concatenate %468, %474, %480, %486, %492, %498, %504, %510, %516 in 0 : vector<5x16xf32>, vector<5x16xf32>, vector<5x16xf32>, vector<5x16xf32>, vector<5x16xf32>, vector<5x16xf32>, vector<5x16xf32>, vector<5x16xf32>, vector<5x16xf32> -> vector<45x16xf32>
    %cst_373 = arith.constant dense<0.000000e+00> : vector<64x16xf32>
    %518 = tpu.matmul %1, %517, %cst_373 {dimension_numbers = #tpu.dot_dimension_numbers<[1], [0], [0], [1], [0, 0, 1, 1], [], []>} : vector<64x45xf32>, vector<45x16xf32>, vector<64x16xf32> -> vector<64x16xf32>
    %519 = vector.extract_strided_slice %518 {offsets = [0, 0], sizes = [16, 16], strides = [1, 1]} : vector<64x16xf32> to vector<16x16xf32>
    %cst_374 = arith.constant dense<0.000000e+00> : vector<16x64xf32>
    %520 = tpu.matmul %519, %4, %cst_374 {dimension_numbers = #tpu.dot_dimension_numbers<[1], [0], [0], [1], [0, 0, 1, 1], [], []>} : vector<16x16xf32>, vector<16x64xf32>, vector<16x64xf32> -> vector<16x64xf32>
    %521 = vector.broadcast %2 : vector<16x1xf32> to vector<16x64xf32>
    %522 = arith.addf %521, %520 : vector<16x64xf32>
    %523 = vector.extract_strided_slice %518 {offsets = [16, 0], sizes = [16, 16], strides = [1, 1]} : vector<64x16xf32> to vector<16x16xf32>
    %cst_375 = arith.constant dense<0.000000e+00> : vector<16x64xf32>
    %524 = tpu.matmul %523, %6, %cst_375 {dimension_numbers = #tpu.dot_dimension_numbers<[1], [0], [0], [1], [0, 0, 1, 1], [], []>} : vector<16x16xf32>, vector<16x64xf32>, vector<16x64xf32> -> vector<16x64xf32>
    %525 = arith.addf %522, %524 : vector<16x64xf32>
    %526 = vector.extract_strided_slice %518 {offsets = [32, 0], sizes = [16, 16], strides = [1, 1]} : vector<64x16xf32> to vector<16x16xf32>
    %cst_376 = arith.constant dense<0.000000e+00> : vector<16x64xf32>
    %527 = tpu.matmul %526, %8, %cst_376 {dimension_numbers = #tpu.dot_dimension_numbers<[1], [0], [0], [1], [0, 0, 1, 1], [], []>} : vector<16x16xf32>, vector<16x64xf32>, vector<16x64xf32> -> vector<16x64xf32>
    %528 = arith.addf %525, %527 : vector<16x64xf32>
    %529 = vector.extract_strided_slice %518 {offsets = [48, 0], sizes = [16, 16], strides = [1, 1]} : vector<64x16xf32> to vector<16x16xf32>
    %cst_377 = arith.constant dense<0.000000e+00> : vector<16x64xf32>
    %530 = tpu.matmul %529, %10, %cst_377 {dimension_numbers = #tpu.dot_dimension_numbers<[1], [0], [0], [1], [0, 0, 1, 1], [], []>} : vector<16x16xf32>, vector<16x64xf32>, vector<16x64xf32> -> vector<16x64xf32>
    %531 = arith.addf %528, %530 : vector<16x64xf32>
    %c0_378 = arith.constant 0 : index
    %c6 = arith.constant 6 : index
    %c0_379 = arith.constant 0 : index
    %c0_380 = arith.constant 0 : index
    %532 = vector.load %arg6[%c0_378, %c6, %c0_379, %c0_380] : memref<1x16x16x64xf32, #tpu.memory_space<vmem>>, vector<1x1x16x64xf32>
    %533 = vector.shape_cast %532 : vector<1x1x16x64xf32> to vector<16x64xf32>
    %534 = vector.shape_cast %531 : vector<16x64xf32> to vector<1x1x16x64xf32>
    tpu.vector_store %arg6[%c0_378, %c6, %c0_379, %c0_380], %534 {strides = array<i32>} : memref<1x16x16x64xf32, #tpu.memory_space<vmem>>, vector<1x1x16x64xf32>,
    %535 = arith.addf %460, %531 : vector<16x64xf32>
    %536 = arith.mulf %531, %531 : vector<16x64xf32>
    %537 = arith.addf %462, %536 : vector<16x64xf32>
    %c7_i32 = arith.constant 7 : i32
    %538 = arith.addi %0, %c7_i32 : i32
    %c0_i32_381 = arith.constant 0 : i32
    %539 = arith.addi %538, %c0_i32_381 : i32
    %c0_382 = arith.constant 0 : index
    %c0_383 = arith.constant 0 : index
    %540 = arith.index_cast %539 : i32 to index
    %c0_384 = arith.constant 0 : index
    %541 = vector.load %arg2[%c0_382, %c0_383, %540, %c0_384] : memref<1x5x18x18xf32, #tpu.memory_space<vmem>>, vector<1x5x1x16xf32>
    %542 = vector.shape_cast %541 : vector<1x5x1x16xf32> to vector<5x1x16xf32>
    %543 = vector.shape_cast %542 : vector<5x1x16xf32> to vector<5x16xf32>
    %c7_i32_385 = arith.constant 7 : i32
    %544 = arith.addi %0, %c7_i32_385 : i32
    %c0_i32_386 = arith.constant 0 : i32
    %545 = arith.addi %544, %c0_i32_386 : i32
    %c0_387 = arith.constant 0 : index
    %c0_388 = arith.constant 0 : index
    %546 = arith.index_cast %545 : i32 to index
    %c1_389 = arith.constant 1 : index
    %547 = vector.load %arg2[%c0_387, %c0_388, %546, %c1_389] : memref<1x5x18x18xf32, #tpu.memory_space<vmem>>, vector<1x5x1x16xf32>
    %548 = vector.shape_cast %547 : vector<1x5x1x16xf32> to vector<5x1x16xf32>
    %549 = vector.shape_cast %548 : vector<5x1x16xf32> to vector<5x16xf32>
    %c7_i32_390 = arith.constant 7 : i32
    %550 = arith.addi %0, %c7_i32_390 : i32
    %c0_i32_391 = arith.constant 0 : i32
    %551 = arith.addi %550, %c0_i32_391 : i32
    %c0_392 = arith.constant 0 : index
    %c0_393 = arith.constant 0 : index
    %552 = arith.index_cast %551 : i32 to index
    %c2_394 = arith.constant 2 : index
    %553 = vector.load %arg2[%c0_392, %c0_393, %552, %c2_394] : memref<1x5x18x18xf32, #tpu.memory_space<vmem>>, vector<1x5x1x16xf32>
    %554 = vector.shape_cast %553 : vector<1x5x1x16xf32> to vector<5x1x16xf32>
    %555 = vector.shape_cast %554 : vector<5x1x16xf32> to vector<5x16xf32>
    %c7_i32_395 = arith.constant 7 : i32
    %556 = arith.addi %0, %c7_i32_395 : i32
    %c1_i32_396 = arith.constant 1 : i32
    %557 = arith.addi %556, %c1_i32_396 : i32
    %c0_397 = arith.constant 0 : index
    %c0_398 = arith.constant 0 : index
    %558 = arith.index_cast %557 : i32 to index
    %c0_399 = arith.constant 0 : index
    %559 = vector.load %arg2[%c0_397, %c0_398, %558, %c0_399] : memref<1x5x18x18xf32, #tpu.memory_space<vmem>>, vector<1x5x1x16xf32>
    %560 = vector.shape_cast %559 : vector<1x5x1x16xf32> to vector<5x1x16xf32>
    %561 = vector.shape_cast %560 : vector<5x1x16xf32> to vector<5x16xf32>
    %c7_i32_400 = arith.constant 7 : i32
    %562 = arith.addi %0, %c7_i32_400 : i32
    %c1_i32_401 = arith.constant 1 : i32
    %563 = arith.addi %562, %c1_i32_401 : i32
    %c0_402 = arith.constant 0 : index
    %c0_403 = arith.constant 0 : index
    %564 = arith.index_cast %563 : i32 to index
    %c1_404 = arith.constant 1 : index
    %565 = vector.load %arg2[%c0_402, %c0_403, %564, %c1_404] : memref<1x5x18x18xf32, #tpu.memory_space<vmem>>, vector<1x5x1x16xf32>
    %566 = vector.shape_cast %565 : vector<1x5x1x16xf32> to vector<5x1x16xf32>
    %567 = vector.shape_cast %566 : vector<5x1x16xf32> to vector<5x16xf32>
    %c7_i32_405 = arith.constant 7 : i32
    %568 = arith.addi %0, %c7_i32_405 : i32
    %c1_i32_406 = arith.constant 1 : i32
    %569 = arith.addi %568, %c1_i32_406 : i32
    %c0_407 = arith.constant 0 : index
    %c0_408 = arith.constant 0 : index
    %570 = arith.index_cast %569 : i32 to index
    %c2_409 = arith.constant 2 : index
    %571 = vector.load %arg2[%c0_407, %c0_408, %570, %c2_409] : memref<1x5x18x18xf32, #tpu.memory_space<vmem>>, vector<1x5x1x16xf32>
    %572 = vector.shape_cast %571 : vector<1x5x1x16xf32> to vector<5x1x16xf32>
    %573 = vector.shape_cast %572 : vector<5x1x16xf32> to vector<5x16xf32>
    %c7_i32_410 = arith.constant 7 : i32
    %574 = arith.addi %0, %c7_i32_410 : i32
    %c2_i32_411 = arith.constant 2 : i32
    %575 = arith.addi %574, %c2_i32_411 : i32
    %c0_412 = arith.constant 0 : index
    %c0_413 = arith.constant 0 : index
    %576 = arith.index_cast %575 : i32 to index
    %c0_414 = arith.constant 0 : index
    %577 = vector.load %arg2[%c0_412, %c0_413, %576, %c0_414] : memref<1x5x18x18xf32, #tpu.memory_space<vmem>>, vector<1x5x1x16xf32>
    %578 = vector.shape_cast %577 : vector<1x5x1x16xf32> to vector<5x1x16xf32>
    %579 = vector.shape_cast %578 : vector<5x1x16xf32> to vector<5x16xf32>
    %c7_i32_415 = arith.constant 7 : i32
    %580 = arith.addi %0, %c7_i32_415 : i32
    %c2_i32_416 = arith.constant 2 : i32
    %581 = arith.addi %580, %c2_i32_416 : i32
    %c0_417 = arith.constant 0 : index
    %c0_418 = arith.constant 0 : index
    %582 = arith.index_cast %581 : i32 to index
    %c1_419 = arith.constant 1 : index
    %583 = vector.load %arg2[%c0_417, %c0_418, %582, %c1_419] : memref<1x5x18x18xf32, #tpu.memory_space<vmem>>, vector<1x5x1x16xf32>
    %584 = vector.shape_cast %583 : vector<1x5x1x16xf32> to vector<5x1x16xf32>
    %585 = vector.shape_cast %584 : vector<5x1x16xf32> to vector<5x16xf32>
    %c7_i32_420 = arith.constant 7 : i32
    %586 = arith.addi %0, %c7_i32_420 : i32
    %c2_i32_421 = arith.constant 2 : i32
    %587 = arith.addi %586, %c2_i32_421 : i32
    %c0_422 = arith.constant 0 : index
    %c0_423 = arith.constant 0 : index
    %588 = arith.index_cast %587 : i32 to index
    %c2_424 = arith.constant 2 : index
    %589 = vector.load %arg2[%c0_422, %c0_423, %588, %c2_424] : memref<1x5x18x18xf32, #tpu.memory_space<vmem>>, vector<1x5x1x16xf32>
    %590 = vector.shape_cast %589 : vector<1x5x1x16xf32> to vector<5x1x16xf32>
    %591 = vector.shape_cast %590 : vector<5x1x16xf32> to vector<5x16xf32>
    %592 = tpu.concatenate %543, %549, %555, %561, %567, %573, %579, %585, %591 in 0 : vector<5x16xf32>, vector<5x16xf32>, vector<5x16xf32>, vector<5x16xf32>, vector<5x16xf32>, vector<5x16xf32>, vector<5x16xf32>, vector<5x16xf32>, vector<5x16xf32> -> vector<45x16xf32>
    %cst_425 = arith.constant dense<0.000000e+00> : vector<64x16xf32>
    %593 = tpu.matmul %1, %592, %cst_425 {dimension_numbers = #tpu.dot_dimension_numbers<[1], [0], [0], [1], [0, 0, 1, 1], [], []>} : vector<64x45xf32>, vector<45x16xf32>, vector<64x16xf32> -> vector<64x16xf32>
    %594 = vector.extract_strided_slice %593 {offsets = [0, 0], sizes = [16, 16], strides = [1, 1]} : vector<64x16xf32> to vector<16x16xf32>
    %cst_426 = arith.constant dense<0.000000e+00> : vector<16x64xf32>
    %595 = tpu.matmul %594, %4, %cst_426 {dimension_numbers = #tpu.dot_dimension_numbers<[1], [0], [0], [1], [0, 0, 1, 1], [], []>} : vector<16x16xf32>, vector<16x64xf32>, vector<16x64xf32> -> vector<16x64xf32>
    %596 = vector.broadcast %2 : vector<16x1xf32> to vector<16x64xf32>
    %597 = arith.addf %596, %595 : vector<16x64xf32>
    %598 = vector.extract_strided_slice %593 {offsets = [16, 0], sizes = [16, 16], strides = [1, 1]} : vector<64x16xf32> to vector<16x16xf32>
    %cst_427 = arith.constant dense<0.000000e+00> : vector<16x64xf32>
    %599 = tpu.matmul %598, %6, %cst_427 {dimension_numbers = #tpu.dot_dimension_numbers<[1], [0], [0], [1], [0, 0, 1, 1], [], []>} : vector<16x16xf32>, vector<16x64xf32>, vector<16x64xf32> -> vector<16x64xf32>
    %600 = arith.addf %597, %599 : vector<16x64xf32>
    %601 = vector.extract_strided_slice %593 {offsets = [32, 0], sizes = [16, 16], strides = [1, 1]} : vector<64x16xf32> to vector<16x16xf32>
    %cst_428 = arith.constant dense<0.000000e+00> : vector<16x64xf32>
    %602 = tpu.matmul %601, %8, %cst_428 {dimension_numbers = #tpu.dot_dimension_numbers<[1], [0], [0], [1], [0, 0, 1, 1], [], []>} : vector<16x16xf32>, vector<16x64xf32>, vector<16x64xf32> -> vector<16x64xf32>
    %603 = arith.addf %600, %602 : vector<16x64xf32>
    %604 = vector.extract_strided_slice %593 {offsets = [48, 0], sizes = [16, 16], strides = [1, 1]} : vector<64x16xf32> to vector<16x16xf32>
    %cst_429 = arith.constant dense<0.000000e+00> : vector<16x64xf32>
    %605 = tpu.matmul %604, %10, %cst_429 {dimension_numbers = #tpu.dot_dimension_numbers<[1], [0], [0], [1], [0, 0, 1, 1], [], []>} : vector<16x16xf32>, vector<16x64xf32>, vector<16x64xf32> -> vector<16x64xf32>
    %606 = arith.addf %603, %605 : vector<16x64xf32>
    %c0_430 = arith.constant 0 : index
    %c7 = arith.constant 7 : index
    %c0_431 = arith.constant 0 : index
    %c0_432 = arith.constant 0 : index
    %607 = vector.load %arg6[%c0_430, %c7, %c0_431, %c0_432] : memref<1x16x16x64xf32, #tpu.memory_space<vmem>>, vector<1x1x16x64xf32>
    %608 = vector.shape_cast %607 : vector<1x1x16x64xf32> to vector<16x64xf32>
    %609 = vector.shape_cast %606 : vector<16x64xf32> to vector<1x1x16x64xf32>
    tpu.vector_store %arg6[%c0_430, %c7, %c0_431, %c0_432], %609 {strides = array<i32>} : memref<1x16x16x64xf32, #tpu.memory_space<vmem>>, vector<1x1x16x64xf32>,
    %610 = arith.addf %535, %606 : vector<16x64xf32>
    %611 = arith.mulf %606, %606 : vector<16x64xf32>
    %612 = arith.addf %537, %611 : vector<16x64xf32>
    %c8_i32 = arith.constant 8 : i32
    %613 = arith.addi %0, %c8_i32 : i32
    %c0_i32_433 = arith.constant 0 : i32
    %614 = arith.addi %613, %c0_i32_433 : i32
    %c0_434 = arith.constant 0 : index
    %c0_435 = arith.constant 0 : index
    %615 = arith.index_cast %614 : i32 to index
    %c0_436 = arith.constant 0 : index
    %616 = vector.load %arg2[%c0_434, %c0_435, %615, %c0_436] : memref<1x5x18x18xf32, #tpu.memory_space<vmem>>, vector<1x5x1x16xf32>
    %617 = vector.shape_cast %616 : vector<1x5x1x16xf32> to vector<5x1x16xf32>
    %618 = vector.shape_cast %617 : vector<5x1x16xf32> to vector<5x16xf32>
    %c8_i32_437 = arith.constant 8 : i32
    %619 = arith.addi %0, %c8_i32_437 : i32
    %c0_i32_438 = arith.constant 0 : i32
    %620 = arith.addi %619, %c0_i32_438 : i32
    %c0_439 = arith.constant 0 : index
    %c0_440 = arith.constant 0 : index
    %621 = arith.index_cast %620 : i32 to index
    %c1_441 = arith.constant 1 : index
    %622 = vector.load %arg2[%c0_439, %c0_440, %621, %c1_441] : memref<1x5x18x18xf32, #tpu.memory_space<vmem>>, vector<1x5x1x16xf32>
    %623 = vector.shape_cast %622 : vector<1x5x1x16xf32> to vector<5x1x16xf32>
    %624 = vector.shape_cast %623 : vector<5x1x16xf32> to vector<5x16xf32>
    %c8_i32_442 = arith.constant 8 : i32
    %625 = arith.addi %0, %c8_i32_442 : i32
    %c0_i32_443 = arith.constant 0 : i32
    %626 = arith.addi %625, %c0_i32_443 : i32
    %c0_444 = arith.constant 0 : index
    %c0_445 = arith.constant 0 : index
    %627 = arith.index_cast %626 : i32 to index
    %c2_446 = arith.constant 2 : index
    %628 = vector.load %arg2[%c0_444, %c0_445, %627, %c2_446] : memref<1x5x18x18xf32, #tpu.memory_space<vmem>>, vector<1x5x1x16xf32>
    %629 = vector.shape_cast %628 : vector<1x5x1x16xf32> to vector<5x1x16xf32>
    %630 = vector.shape_cast %629 : vector<5x1x16xf32> to vector<5x16xf32>
    %c8_i32_447 = arith.constant 8 : i32
    %631 = arith.addi %0, %c8_i32_447 : i32
    %c1_i32_448 = arith.constant 1 : i32
    %632 = arith.addi %631, %c1_i32_448 : i32
    %c0_449 = arith.constant 0 : index
    %c0_450 = arith.constant 0 : index
    %633 = arith.index_cast %632 : i32 to index
    %c0_451 = arith.constant 0 : index
    %634 = vector.load %arg2[%c0_449, %c0_450, %633, %c0_451] : memref<1x5x18x18xf32, #tpu.memory_space<vmem>>, vector<1x5x1x16xf32>
    %635 = vector.shape_cast %634 : vector<1x5x1x16xf32> to vector<5x1x16xf32>
    %636 = vector.shape_cast %635 : vector<5x1x16xf32> to vector<5x16xf32>
    %c8_i32_452 = arith.constant 8 : i32
    %637 = arith.addi %0, %c8_i32_452 : i32
    %c1_i32_453 = arith.constant 1 : i32
    %638 = arith.addi %637, %c1_i32_453 : i32
    %c0_454 = arith.constant 0 : index
    %c0_455 = arith.constant 0 : index
    %639 = arith.index_cast %638 : i32 to index
    %c1_456 = arith.constant 1 : index
    %640 = vector.load %arg2[%c0_454, %c0_455, %639, %c1_456] : memref<1x5x18x18xf32, #tpu.memory_space<vmem>>, vector<1x5x1x16xf32>
    %641 = vector.shape_cast %640 : vector<1x5x1x16xf32> to vector<5x1x16xf32>
    %642 = vector.shape_cast %641 : vector<5x1x16xf32> to vector<5x16xf32>
    %c8_i32_457 = arith.constant 8 : i32
    %643 = arith.addi %0, %c8_i32_457 : i32
    %c1_i32_458 = arith.constant 1 : i32
    %644 = arith.addi %643, %c1_i32_458 : i32
    %c0_459 = arith.constant 0 : index
    %c0_460 = arith.constant 0 : index
    %645 = arith.index_cast %644 : i32 to index
    %c2_461 = arith.constant 2 : index
    %646 = vector.load %arg2[%c0_459, %c0_460, %645, %c2_461] : memref<1x5x18x18xf32, #tpu.memory_space<vmem>>, vector<1x5x1x16xf32>
    %647 = vector.shape_cast %646 : vector<1x5x1x16xf32> to vector<5x1x16xf32>
    %648 = vector.shape_cast %647 : vector<5x1x16xf32> to vector<5x16xf32>
    %c8_i32_462 = arith.constant 8 : i32
    %649 = arith.addi %0, %c8_i32_462 : i32
    %c2_i32_463 = arith.constant 2 : i32
    %650 = arith.addi %649, %c2_i32_463 : i32
    %c0_464 = arith.constant 0 : index
    %c0_465 = arith.constant 0 : index
    %651 = arith.index_cast %650 : i32 to index
    %c0_466 = arith.constant 0 : index
    %652 = vector.load %arg2[%c0_464, %c0_465, %651, %c0_466] : memref<1x5x18x18xf32, #tpu.memory_space<vmem>>, vector<1x5x1x16xf32>
    %653 = vector.shape_cast %652 : vector<1x5x1x16xf32> to vector<5x1x16xf32>
    %654 = vector.shape_cast %653 : vector<5x1x16xf32> to vector<5x16xf32>
    %c8_i32_467 = arith.constant 8 : i32
    %655 = arith.addi %0, %c8_i32_467 : i32
    %c2_i32_468 = arith.constant 2 : i32
    %656 = arith.addi %655, %c2_i32_468 : i32
    %c0_469 = arith.constant 0 : index
    %c0_470 = arith.constant 0 : index
    %657 = arith.index_cast %656 : i32 to index
    %c1_471 = arith.constant 1 : index
    %658 = vector.load %arg2[%c0_469, %c0_470, %657, %c1_471] : memref<1x5x18x18xf32, #tpu.memory_space<vmem>>, vector<1x5x1x16xf32>
    %659 = vector.shape_cast %658 : vector<1x5x1x16xf32> to vector<5x1x16xf32>
    %660 = vector.shape_cast %659 : vector<5x1x16xf32> to vector<5x16xf32>
    %c8_i32_472 = arith.constant 8 : i32
    %661 = arith.addi %0, %c8_i32_472 : i32
    %c2_i32_473 = arith.constant 2 : i32
    %662 = arith.addi %661, %c2_i32_473 : i32
    %c0_474 = arith.constant 0 : index
    %c0_475 = arith.constant 0 : index
    %663 = arith.index_cast %662 : i32 to index
    %c2_476 = arith.constant 2 : index
    %664 = vector.load %arg2[%c0_474, %c0_475, %663, %c2_476] : memref<1x5x18x18xf32, #tpu.memory_space<vmem>>, vector<1x5x1x16xf32>
    %665 = vector.shape_cast %664 : vector<1x5x1x16xf32> to vector<5x1x16xf32>
    %666 = vector.shape_cast %665 : vector<5x1x16xf32> to vector<5x16xf32>
    %667 = tpu.concatenate %618, %624, %630, %636, %642, %648, %654, %660, %666 in 0 : vector<5x16xf32>, vector<5x16xf32>, vector<5x16xf32>, vector<5x16xf32>, vector<5x16xf32>, vector<5x16xf32>, vector<5x16xf32>, vector<5x16xf32>, vector<5x16xf32> -> vector<45x16xf32>
    %cst_477 = arith.constant dense<0.000000e+00> : vector<64x16xf32>
    %668 = tpu.matmul %1, %667, %cst_477 {dimension_numbers = #tpu.dot_dimension_numbers<[1], [0], [0], [1], [0, 0, 1, 1], [], []>} : vector<64x45xf32>, vector<45x16xf32>, vector<64x16xf32> -> vector<64x16xf32>
    %669 = vector.extract_strided_slice %668 {offsets = [0, 0], sizes = [16, 16], strides = [1, 1]} : vector<64x16xf32> to vector<16x16xf32>
    %cst_478 = arith.constant dense<0.000000e+00> : vector<16x64xf32>
    %670 = tpu.matmul %669, %4, %cst_478 {dimension_numbers = #tpu.dot_dimension_numbers<[1], [0], [0], [1], [0, 0, 1, 1], [], []>} : vector<16x16xf32>, vector<16x64xf32>, vector<16x64xf32> -> vector<16x64xf32>
    %671 = vector.broadcast %2 : vector<16x1xf32> to vector<16x64xf32>
    %672 = arith.addf %671, %670 : vector<16x64xf32>
    %673 = vector.extract_strided_slice %668 {offsets = [16, 0], sizes = [16, 16], strides = [1, 1]} : vector<64x16xf32> to vector<16x16xf32>
    %cst_479 = arith.constant dense<0.000000e+00> : vector<16x64xf32>
    %674 = tpu.matmul %673, %6, %cst_479 {dimension_numbers = #tpu.dot_dimension_numbers<[1], [0], [0], [1], [0, 0, 1, 1], [], []>} : vector<16x16xf32>, vector<16x64xf32>, vector<16x64xf32> -> vector<16x64xf32>
    %675 = arith.addf %672, %674 : vector<16x64xf32>
    %676 = vector.extract_strided_slice %668 {offsets = [32, 0], sizes = [16, 16], strides = [1, 1]} : vector<64x16xf32> to vector<16x16xf32>
    %cst_480 = arith.constant dense<0.000000e+00> : vector<16x64xf32>
    %677 = tpu.matmul %676, %8, %cst_480 {dimension_numbers = #tpu.dot_dimension_numbers<[1], [0], [0], [1], [0, 0, 1, 1], [], []>} : vector<16x16xf32>, vector<16x64xf32>, vector<16x64xf32> -> vector<16x64xf32>
    %678 = arith.addf %675, %677 : vector<16x64xf32>
    %679 = vector.extract_strided_slice %668 {offsets = [48, 0], sizes = [16, 16], strides = [1, 1]} : vector<64x16xf32> to vector<16x16xf32>
    %cst_481 = arith.constant dense<0.000000e+00> : vector<16x64xf32>
    %680 = tpu.matmul %679, %10, %cst_481 {dimension_numbers = #tpu.dot_dimension_numbers<[1], [0], [0], [1], [0, 0, 1, 1], [], []>} : vector<16x16xf32>, vector<16x64xf32>, vector<16x64xf32> -> vector<16x64xf32>
    %681 = arith.addf %678, %680 : vector<16x64xf32>
    %c0_482 = arith.constant 0 : index
    %c8 = arith.constant 8 : index
    %c0_483 = arith.constant 0 : index
    %c0_484 = arith.constant 0 : index
    %682 = vector.load %arg6[%c0_482, %c8, %c0_483, %c0_484] : memref<1x16x16x64xf32, #tpu.memory_space<vmem>>, vector<1x1x16x64xf32>
    %683 = vector.shape_cast %682 : vector<1x1x16x64xf32> to vector<16x64xf32>
    %684 = vector.shape_cast %681 : vector<16x64xf32> to vector<1x1x16x64xf32>
    tpu.vector_store %arg6[%c0_482, %c8, %c0_483, %c0_484], %684 {strides = array<i32>} : memref<1x16x16x64xf32, #tpu.memory_space<vmem>>, vector<1x1x16x64xf32>,
    %685 = arith.addf %610, %681 : vector<16x64xf32>
    %686 = arith.mulf %681, %681 : vector<16x64xf32>
    %687 = arith.addf %612, %686 : vector<16x64xf32>
    %c9_i32 = arith.constant 9 : i32
    %688 = arith.addi %0, %c9_i32 : i32
    %c0_i32_485 = arith.constant 0 : i32
    %689 = arith.addi %688, %c0_i32_485 : i32
    %c0_486 = arith.constant 0 : index
    %c0_487 = arith.constant 0 : index
    %690 = arith.index_cast %689 : i32 to index
    %c0_488 = arith.constant 0 : index
    %691 = vector.load %arg2[%c0_486, %c0_487, %690, %c0_488] : memref<1x5x18x18xf32, #tpu.memory_space<vmem>>, vector<1x5x1x16xf32>
    %692 = vector.shape_cast %691 : vector<1x5x1x16xf32> to vector<5x1x16xf32>
    %693 = vector.shape_cast %692 : vector<5x1x16xf32> to vector<5x16xf32>
    %c9_i32_489 = arith.constant 9 : i32
    %694 = arith.addi %0, %c9_i32_489 : i32
    %c0_i32_490 = arith.constant 0 : i32
    %695 = arith.addi %694, %c0_i32_490 : i32
    %c0_491 = arith.constant 0 : index
    %c0_492 = arith.constant 0 : index
    %696 = arith.index_cast %695 : i32 to index
    %c1_493 = arith.constant 1 : index
    %697 = vector.load %arg2[%c0_491, %c0_492, %696, %c1_493] : memref<1x5x18x18xf32, #tpu.memory_space<vmem>>, vector<1x5x1x16xf32>
    %698 = vector.shape_cast %697 : vector<1x5x1x16xf32> to vector<5x1x16xf32>
    %699 = vector.shape_cast %698 : vector<5x1x16xf32> to vector<5x16xf32>
    %c9_i32_494 = arith.constant 9 : i32
    %700 = arith.addi %0, %c9_i32_494 : i32
    %c0_i32_495 = arith.constant 0 : i32
    %701 = arith.addi %700, %c0_i32_495 : i32
    %c0_496 = arith.constant 0 : index
    %c0_497 = arith.constant 0 : index
    %702 = arith.index_cast %701 : i32 to index
    %c2_498 = arith.constant 2 : index
    %703 = vector.load %arg2[%c0_496, %c0_497, %702, %c2_498] : memref<1x5x18x18xf32, #tpu.memory_space<vmem>>, vector<1x5x1x16xf32>
    %704 = vector.shape_cast %703 : vector<1x5x1x16xf32> to vector<5x1x16xf32>
    %705 = vector.shape_cast %704 : vector<5x1x16xf32> to vector<5x16xf32>
    %c9_i32_499 = arith.constant 9 : i32
    %706 = arith.addi %0, %c9_i32_499 : i32
    %c1_i32_500 = arith.constant 1 : i32
    %707 = arith.addi %706, %c1_i32_500 : i32
    %c0_501 = arith.constant 0 : index
    %c0_502 = arith.constant 0 : index
    %708 = arith.index_cast %707 : i32 to index
    %c0_503 = arith.constant 0 : index
    %709 = vector.load %arg2[%c0_501, %c0_502, %708, %c0_503] : memref<1x5x18x18xf32, #tpu.memory_space<vmem>>, vector<1x5x1x16xf32>
    %710 = vector.shape_cast %709 : vector<1x5x1x16xf32> to vector<5x1x16xf32>
    %711 = vector.shape_cast %710 : vector<5x1x16xf32> to vector<5x16xf32>
    %c9_i32_504 = arith.constant 9 : i32
    %712 = arith.addi %0, %c9_i32_504 : i32
    %c1_i32_505 = arith.constant 1 : i32
    %713 = arith.addi %712, %c1_i32_505 : i32
    %c0_506 = arith.constant 0 : index
    %c0_507 = arith.constant 0 : index
    %714 = arith.index_cast %713 : i32 to index
    %c1_508 = arith.constant 1 : index
    %715 = vector.load %arg2[%c0_506, %c0_507, %714, %c1_508] : memref<1x5x18x18xf32, #tpu.memory_space<vmem>>, vector<1x5x1x16xf32>
    %716 = vector.shape_cast %715 : vector<1x5x1x16xf32> to vector<5x1x16xf32>
    %717 = vector.shape_cast %716 : vector<5x1x16xf32> to vector<5x16xf32>
    %c9_i32_509 = arith.constant 9 : i32
    %718 = arith.addi %0, %c9_i32_509 : i32
    %c1_i32_510 = arith.constant 1 : i32
    %719 = arith.addi %718, %c1_i32_510 : i32
    %c0_511 = arith.constant 0 : index
    %c0_512 = arith.constant 0 : index
    %720 = arith.index_cast %719 : i32 to index
    %c2_513 = arith.constant 2 : index
    %721 = vector.load %arg2[%c0_511, %c0_512, %720, %c2_513] : memref<1x5x18x18xf32, #tpu.memory_space<vmem>>, vector<1x5x1x16xf32>
    %722 = vector.shape_cast %721 : vector<1x5x1x16xf32> to vector<5x1x16xf32>
    %723 = vector.shape_cast %722 : vector<5x1x16xf32> to vector<5x16xf32>
    %c9_i32_514 = arith.constant 9 : i32
    %724 = arith.addi %0, %c9_i32_514 : i32
    %c2_i32_515 = arith.constant 2 : i32
    %725 = arith.addi %724, %c2_i32_515 : i32
    %c0_516 = arith.constant 0 : index
    %c0_517 = arith.constant 0 : index
    %726 = arith.index_cast %725 : i32 to index
    %c0_518 = arith.constant 0 : index
    %727 = vector.load %arg2[%c0_516, %c0_517, %726, %c0_518] : memref<1x5x18x18xf32, #tpu.memory_space<vmem>>, vector<1x5x1x16xf32>
    %728 = vector.shape_cast %727 : vector<1x5x1x16xf32> to vector<5x1x16xf32>
    %729 = vector.shape_cast %728 : vector<5x1x16xf32> to vector<5x16xf32>
    %c9_i32_519 = arith.constant 9 : i32
    %730 = arith.addi %0, %c9_i32_519 : i32
    %c2_i32_520 = arith.constant 2 : i32
    %731 = arith.addi %730, %c2_i32_520 : i32
    %c0_521 = arith.constant 0 : index
    %c0_522 = arith.constant 0 : index
    %732 = arith.index_cast %731 : i32 to index
    %c1_523 = arith.constant 1 : index
    %733 = vector.load %arg2[%c0_521, %c0_522, %732, %c1_523] : memref<1x5x18x18xf32, #tpu.memory_space<vmem>>, vector<1x5x1x16xf32>
    %734 = vector.shape_cast %733 : vector<1x5x1x16xf32> to vector<5x1x16xf32>
    %735 = vector.shape_cast %734 : vector<5x1x16xf32> to vector<5x16xf32>
    %c9_i32_524 = arith.constant 9 : i32
    %736 = arith.addi %0, %c9_i32_524 : i32
    %c2_i32_525 = arith.constant 2 : i32
    %737 = arith.addi %736, %c2_i32_525 : i32
    %c0_526 = arith.constant 0 : index
    %c0_527 = arith.constant 0 : index
    %738 = arith.index_cast %737 : i32 to index
    %c2_528 = arith.constant 2 : index
    %739 = vector.load %arg2[%c0_526, %c0_527, %738, %c2_528] : memref<1x5x18x18xf32, #tpu.memory_space<vmem>>, vector<1x5x1x16xf32>
    %740 = vector.shape_cast %739 : vector<1x5x1x16xf32> to vector<5x1x16xf32>
    %741 = vector.shape_cast %740 : vector<5x1x16xf32> to vector<5x16xf32>
    %742 = tpu.concatenate %693, %699, %705, %711, %717, %723, %729, %735, %741 in 0 : vector<5x16xf32>, vector<5x16xf32>, vector<5x16xf32>, vector<5x16xf32>, vector<5x16xf32>, vector<5x16xf32>, vector<5x16xf32>, vector<5x16xf32>, vector<5x16xf32> -> vector<45x16xf32>
    %cst_529 = arith.constant dense<0.000000e+00> : vector<64x16xf32>
    %743 = tpu.matmul %1, %742, %cst_529 {dimension_numbers = #tpu.dot_dimension_numbers<[1], [0], [0], [1], [0, 0, 1, 1], [], []>} : vector<64x45xf32>, vector<45x16xf32>, vector<64x16xf32> -> vector<64x16xf32>
    %744 = vector.extract_strided_slice %743 {offsets = [0, 0], sizes = [16, 16], strides = [1, 1]} : vector<64x16xf32> to vector<16x16xf32>
    %cst_530 = arith.constant dense<0.000000e+00> : vector<16x64xf32>
    %745 = tpu.matmul %744, %4, %cst_530 {dimension_numbers = #tpu.dot_dimension_numbers<[1], [0], [0], [1], [0, 0, 1, 1], [], []>} : vector<16x16xf32>, vector<16x64xf32>, vector<16x64xf32> -> vector<16x64xf32>
    %746 = vector.broadcast %2 : vector<16x1xf32> to vector<16x64xf32>
    %747 = arith.addf %746, %745 : vector<16x64xf32>
    %748 = vector.extract_strided_slice %743 {offsets = [16, 0], sizes = [16, 16], strides = [1, 1]} : vector<64x16xf32> to vector<16x16xf32>
    %cst_531 = arith.constant dense<0.000000e+00> : vector<16x64xf32>
    %749 = tpu.matmul %748, %6, %cst_531 {dimension_numbers = #tpu.dot_dimension_numbers<[1], [0], [0], [1], [0, 0, 1, 1], [], []>} : vector<16x16xf32>, vector<16x64xf32>, vector<16x64xf32> -> vector<16x64xf32>
    %750 = arith.addf %747, %749 : vector<16x64xf32>
    %751 = vector.extract_strided_slice %743 {offsets = [32, 0], sizes = [16, 16], strides = [1, 1]} : vector<64x16xf32> to vector<16x16xf32>
    %cst_532 = arith.constant dense<0.000000e+00> : vector<16x64xf32>
    %752 = tpu.matmul %751, %8, %cst_532 {dimension_numbers = #tpu.dot_dimension_numbers<[1], [0], [0], [1], [0, 0, 1, 1], [], []>} : vector<16x16xf32>, vector<16x64xf32>, vector<16x64xf32> -> vector<16x64xf32>
    %753 = arith.addf %750, %752 : vector<16x64xf32>
    %754 = vector.extract_strided_slice %743 {offsets = [48, 0], sizes = [16, 16], strides = [1, 1]} : vector<64x16xf32> to vector<16x16xf32>
    %cst_533 = arith.constant dense<0.000000e+00> : vector<16x64xf32>
    %755 = tpu.matmul %754, %10, %cst_533 {dimension_numbers = #tpu.dot_dimension_numbers<[1], [0], [0], [1], [0, 0, 1, 1], [], []>} : vector<16x16xf32>, vector<16x64xf32>, vector<16x64xf32> -> vector<16x64xf32>
    %756 = arith.addf %753, %755 : vector<16x64xf32>
    %c0_534 = arith.constant 0 : index
    %c9 = arith.constant 9 : index
    %c0_535 = arith.constant 0 : index
    %c0_536 = arith.constant 0 : index
    %757 = vector.load %arg6[%c0_534, %c9, %c0_535, %c0_536] : memref<1x16x16x64xf32, #tpu.memory_space<vmem>>, vector<1x1x16x64xf32>
    %758 = vector.shape_cast %757 : vector<1x1x16x64xf32> to vector<16x64xf32>
    %759 = vector.shape_cast %756 : vector<16x64xf32> to vector<1x1x16x64xf32>
    tpu.vector_store %arg6[%c0_534, %c9, %c0_535, %c0_536], %759 {strides = array<i32>} : memref<1x16x16x64xf32, #tpu.memory_space<vmem>>, vector<1x1x16x64xf32>,
    %760 = arith.addf %685, %756 : vector<16x64xf32>
    %761 = arith.mulf %756, %756 : vector<16x64xf32>
    %762 = arith.addf %687, %761 : vector<16x64xf32>
    %c10_i32 = arith.constant 10 : i32
    %763 = arith.addi %0, %c10_i32 : i32
    %c0_i32_537 = arith.constant 0 : i32
    %764 = arith.addi %763, %c0_i32_537 : i32
    %c0_538 = arith.constant 0 : index
    %c0_539 = arith.constant 0 : index
    %765 = arith.index_cast %764 : i32 to index
    %c0_540 = arith.constant 0 : index
    %766 = vector.load %arg2[%c0_538, %c0_539, %765, %c0_540] : memref<1x5x18x18xf32, #tpu.memory_space<vmem>>, vector<1x5x1x16xf32>
    %767 = vector.shape_cast %766 : vector<1x5x1x16xf32> to vector<5x1x16xf32>
    %768 = vector.shape_cast %767 : vector<5x1x16xf32> to vector<5x16xf32>
    %c10_i32_541 = arith.constant 10 : i32
    %769 = arith.addi %0, %c10_i32_541 : i32
    %c0_i32_542 = arith.constant 0 : i32
    %770 = arith.addi %769, %c0_i32_542 : i32
    %c0_543 = arith.constant 0 : index
    %c0_544 = arith.constant 0 : index
    %771 = arith.index_cast %770 : i32 to index
    %c1_545 = arith.constant 1 : index
    %772 = vector.load %arg2[%c0_543, %c0_544, %771, %c1_545] : memref<1x5x18x18xf32, #tpu.memory_space<vmem>>, vector<1x5x1x16xf32>
    %773 = vector.shape_cast %772 : vector<1x5x1x16xf32> to vector<5x1x16xf32>
    %774 = vector.shape_cast %773 : vector<5x1x16xf32> to vector<5x16xf32>
    %c10_i32_546 = arith.constant 10 : i32
    %775 = arith.addi %0, %c10_i32_546 : i32
    %c0_i32_547 = arith.constant 0 : i32
    %776 = arith.addi %775, %c0_i32_547 : i32
    %c0_548 = arith.constant 0 : index
    %c0_549 = arith.constant 0 : index
    %777 = arith.index_cast %776 : i32 to index
    %c2_550 = arith.constant 2 : index
    %778 = vector.load %arg2[%c0_548, %c0_549, %777, %c2_550] : memref<1x5x18x18xf32, #tpu.memory_space<vmem>>, vector<1x5x1x16xf32>
    %779 = vector.shape_cast %778 : vector<1x5x1x16xf32> to vector<5x1x16xf32>
    %780 = vector.shape_cast %779 : vector<5x1x16xf32> to vector<5x16xf32>
    %c10_i32_551 = arith.constant 10 : i32
    %781 = arith.addi %0, %c10_i32_551 : i32
    %c1_i32_552 = arith.constant 1 : i32
    %782 = arith.addi %781, %c1_i32_552 : i32
    %c0_553 = arith.constant 0 : index
    %c0_554 = arith.constant 0 : index
    %783 = arith.index_cast %782 : i32 to index
    %c0_555 = arith.constant 0 : index
    %784 = vector.load %arg2[%c0_553, %c0_554, %783, %c0_555] : memref<1x5x18x18xf32, #tpu.memory_space<vmem>>, vector<1x5x1x16xf32>
    %785 = vector.shape_cast %784 : vector<1x5x1x16xf32> to vector<5x1x16xf32>
    %786 = vector.shape_cast %785 : vector<5x1x16xf32> to vector<5x16xf32>
    %c10_i32_556 = arith.constant 10 : i32
    %787 = arith.addi %0, %c10_i32_556 : i32
    %c1_i32_557 = arith.constant 1 : i32
    %788 = arith.addi %787, %c1_i32_557 : i32
    %c0_558 = arith.constant 0 : index
    %c0_559 = arith.constant 0 : index
    %789 = arith.index_cast %788 : i32 to index
    %c1_560 = arith.constant 1 : index
    %790 = vector.load %arg2[%c0_558, %c0_559, %789, %c1_560] : memref<1x5x18x18xf32, #tpu.memory_space<vmem>>, vector<1x5x1x16xf32>
    %791 = vector.shape_cast %790 : vector<1x5x1x16xf32> to vector<5x1x16xf32>
    %792 = vector.shape_cast %791 : vector<5x1x16xf32> to vector<5x16xf32>
    %c10_i32_561 = arith.constant 10 : i32
    %793 = arith.addi %0, %c10_i32_561 : i32
    %c1_i32_562 = arith.constant 1 : i32
    %794 = arith.addi %793, %c1_i32_562 : i32
    %c0_563 = arith.constant 0 : index
    %c0_564 = arith.constant 0 : index
    %795 = arith.index_cast %794 : i32 to index
    %c2_565 = arith.constant 2 : index
    %796 = vector.load %arg2[%c0_563, %c0_564, %795, %c2_565] : memref<1x5x18x18xf32, #tpu.memory_space<vmem>>, vector<1x5x1x16xf32>
    %797 = vector.shape_cast %796 : vector<1x5x1x16xf32> to vector<5x1x16xf32>
    %798 = vector.shape_cast %797 : vector<5x1x16xf32> to vector<5x16xf32>
    %c10_i32_566 = arith.constant 10 : i32
    %799 = arith.addi %0, %c10_i32_566 : i32
    %c2_i32_567 = arith.constant 2 : i32
    %800 = arith.addi %799, %c2_i32_567 : i32
    %c0_568 = arith.constant 0 : index
    %c0_569 = arith.constant 0 : index
    %801 = arith.index_cast %800 : i32 to index
    %c0_570 = arith.constant 0 : index
    %802 = vector.load %arg2[%c0_568, %c0_569, %801, %c0_570] : memref<1x5x18x18xf32, #tpu.memory_space<vmem>>, vector<1x5x1x16xf32>
    %803 = vector.shape_cast %802 : vector<1x5x1x16xf32> to vector<5x1x16xf32>
    %804 = vector.shape_cast %803 : vector<5x1x16xf32> to vector<5x16xf32>
    %c10_i32_571 = arith.constant 10 : i32
    %805 = arith.addi %0, %c10_i32_571 : i32
    %c2_i32_572 = arith.constant 2 : i32
    %806 = arith.addi %805, %c2_i32_572 : i32
    %c0_573 = arith.constant 0 : index
    %c0_574 = arith.constant 0 : index
    %807 = arith.index_cast %806 : i32 to index
    %c1_575 = arith.constant 1 : index
    %808 = vector.load %arg2[%c0_573, %c0_574, %807, %c1_575] : memref<1x5x18x18xf32, #tpu.memory_space<vmem>>, vector<1x5x1x16xf32>
    %809 = vector.shape_cast %808 : vector<1x5x1x16xf32> to vector<5x1x16xf32>
    %810 = vector.shape_cast %809 : vector<5x1x16xf32> to vector<5x16xf32>
    %c10_i32_576 = arith.constant 10 : i32
    %811 = arith.addi %0, %c10_i32_576 : i32
    %c2_i32_577 = arith.constant 2 : i32
    %812 = arith.addi %811, %c2_i32_577 : i32
    %c0_578 = arith.constant 0 : index
    %c0_579 = arith.constant 0 : index
    %813 = arith.index_cast %812 : i32 to index
    %c2_580 = arith.constant 2 : index
    %814 = vector.load %arg2[%c0_578, %c0_579, %813, %c2_580] : memref<1x5x18x18xf32, #tpu.memory_space<vmem>>, vector<1x5x1x16xf32>
    %815 = vector.shape_cast %814 : vector<1x5x1x16xf32> to vector<5x1x16xf32>
    %816 = vector.shape_cast %815 : vector<5x1x16xf32> to vector<5x16xf32>
    %817 = tpu.concatenate %768, %774, %780, %786, %792, %798, %804, %810, %816 in 0 : vector<5x16xf32>, vector<5x16xf32>, vector<5x16xf32>, vector<5x16xf32>, vector<5x16xf32>, vector<5x16xf32>, vector<5x16xf32>, vector<5x16xf32>, vector<5x16xf32> -> vector<45x16xf32>
    %cst_581 = arith.constant dense<0.000000e+00> : vector<64x16xf32>
    %818 = tpu.matmul %1, %817, %cst_581 {dimension_numbers = #tpu.dot_dimension_numbers<[1], [0], [0], [1], [0, 0, 1, 1], [], []>} : vector<64x45xf32>, vector<45x16xf32>, vector<64x16xf32> -> vector<64x16xf32>
    %819 = vector.extract_strided_slice %818 {offsets = [0, 0], sizes = [16, 16], strides = [1, 1]} : vector<64x16xf32> to vector<16x16xf32>
    %cst_582 = arith.constant dense<0.000000e+00> : vector<16x64xf32>
    %820 = tpu.matmul %819, %4, %cst_582 {dimension_numbers = #tpu.dot_dimension_numbers<[1], [0], [0], [1], [0, 0, 1, 1], [], []>} : vector<16x16xf32>, vector<16x64xf32>, vector<16x64xf32> -> vector<16x64xf32>
    %821 = vector.broadcast %2 : vector<16x1xf32> to vector<16x64xf32>
    %822 = arith.addf %821, %820 : vector<16x64xf32>
    %823 = vector.extract_strided_slice %818 {offsets = [16, 0], sizes = [16, 16], strides = [1, 1]} : vector<64x16xf32> to vector<16x16xf32>
    %cst_583 = arith.constant dense<0.000000e+00> : vector<16x64xf32>
    %824 = tpu.matmul %823, %6, %cst_583 {dimension_numbers = #tpu.dot_dimension_numbers<[1], [0], [0], [1], [0, 0, 1, 1], [], []>} : vector<16x16xf32>, vector<16x64xf32>, vector<16x64xf32> -> vector<16x64xf32>
    %825 = arith.addf %822, %824 : vector<16x64xf32>
    %826 = vector.extract_strided_slice %818 {offsets = [32, 0], sizes = [16, 16], strides = [1, 1]} : vector<64x16xf32> to vector<16x16xf32>
    %cst_584 = arith.constant dense<0.000000e+00> : vector<16x64xf32>
    %827 = tpu.matmul %826, %8, %cst_584 {dimension_numbers = #tpu.dot_dimension_numbers<[1], [0], [0], [1], [0, 0, 1, 1], [], []>} : vector<16x16xf32>, vector<16x64xf32>, vector<16x64xf32> -> vector<16x64xf32>
    %828 = arith.addf %825, %827 : vector<16x64xf32>
    %829 = vector.extract_strided_slice %818 {offsets = [48, 0], sizes = [16, 16], strides = [1, 1]} : vector<64x16xf32> to vector<16x16xf32>
    %cst_585 = arith.constant dense<0.000000e+00> : vector<16x64xf32>
    %830 = tpu.matmul %829, %10, %cst_585 {dimension_numbers = #tpu.dot_dimension_numbers<[1], [0], [0], [1], [0, 0, 1, 1], [], []>} : vector<16x16xf32>, vector<16x64xf32>, vector<16x64xf32> -> vector<16x64xf32>
    %831 = arith.addf %828, %830 : vector<16x64xf32>
    %c0_586 = arith.constant 0 : index
    %c10 = arith.constant 10 : index
    %c0_587 = arith.constant 0 : index
    %c0_588 = arith.constant 0 : index
    %832 = vector.load %arg6[%c0_586, %c10, %c0_587, %c0_588] : memref<1x16x16x64xf32, #tpu.memory_space<vmem>>, vector<1x1x16x64xf32>
    %833 = vector.shape_cast %832 : vector<1x1x16x64xf32> to vector<16x64xf32>
    %834 = vector.shape_cast %831 : vector<16x64xf32> to vector<1x1x16x64xf32>
    tpu.vector_store %arg6[%c0_586, %c10, %c0_587, %c0_588], %834 {strides = array<i32>} : memref<1x16x16x64xf32, #tpu.memory_space<vmem>>, vector<1x1x16x64xf32>,
    %835 = arith.addf %760, %831 : vector<16x64xf32>
    %836 = arith.mulf %831, %831 : vector<16x64xf32>
    %837 = arith.addf %762, %836 : vector<16x64xf32>
    %c11_i32 = arith.constant 11 : i32
    %838 = arith.addi %0, %c11_i32 : i32
    %c0_i32_589 = arith.constant 0 : i32
    %839 = arith.addi %838, %c0_i32_589 : i32
    %c0_590 = arith.constant 0 : index
    %c0_591 = arith.constant 0 : index
    %840 = arith.index_cast %839 : i32 to index
    %c0_592 = arith.constant 0 : index
    %841 = vector.load %arg2[%c0_590, %c0_591, %840, %c0_592] : memref<1x5x18x18xf32, #tpu.memory_space<vmem>>, vector<1x5x1x16xf32>
    %842 = vector.shape_cast %841 : vector<1x5x1x16xf32> to vector<5x1x16xf32>
    %843 = vector.shape_cast %842 : vector<5x1x16xf32> to vector<5x16xf32>
    %c11_i32_593 = arith.constant 11 : i32
    %844 = arith.addi %0, %c11_i32_593 : i32
    %c0_i32_594 = arith.constant 0 : i32
    %845 = arith.addi %844, %c0_i32_594 : i32
    %c0_595 = arith.constant 0 : index
    %c0_596 = arith.constant 0 : index
    %846 = arith.index_cast %845 : i32 to index
    %c1_597 = arith.constant 1 : index
    %847 = vector.load %arg2[%c0_595, %c0_596, %846, %c1_597] : memref<1x5x18x18xf32, #tpu.memory_space<vmem>>, vector<1x5x1x16xf32>
    %848 = vector.shape_cast %847 : vector<1x5x1x16xf32> to vector<5x1x16xf32>
    %849 = vector.shape_cast %848 : vector<5x1x16xf32> to vector<5x16xf32>
    %c11_i32_598 = arith.constant 11 : i32
    %850 = arith.addi %0, %c11_i32_598 : i32
    %c0_i32_599 = arith.constant 0 : i32
    %851 = arith.addi %850, %c0_i32_599 : i32
    %c0_600 = arith.constant 0 : index
    %c0_601 = arith.constant 0 : index
    %852 = arith.index_cast %851 : i32 to index
    %c2_602 = arith.constant 2 : index
    %853 = vector.load %arg2[%c0_600, %c0_601, %852, %c2_602] : memref<1x5x18x18xf32, #tpu.memory_space<vmem>>, vector<1x5x1x16xf32>
    %854 = vector.shape_cast %853 : vector<1x5x1x16xf32> to vector<5x1x16xf32>
    %855 = vector.shape_cast %854 : vector<5x1x16xf32> to vector<5x16xf32>
    %c11_i32_603 = arith.constant 11 : i32
    %856 = arith.addi %0, %c11_i32_603 : i32
    %c1_i32_604 = arith.constant 1 : i32
    %857 = arith.addi %856, %c1_i32_604 : i32
    %c0_605 = arith.constant 0 : index
    %c0_606 = arith.constant 0 : index
    %858 = arith.index_cast %857 : i32 to index
    %c0_607 = arith.constant 0 : index
    %859 = vector.load %arg2[%c0_605, %c0_606, %858, %c0_607] : memref<1x5x18x18xf32, #tpu.memory_space<vmem>>, vector<1x5x1x16xf32>
    %860 = vector.shape_cast %859 : vector<1x5x1x16xf32> to vector<5x1x16xf32>
    %861 = vector.shape_cast %860 : vector<5x1x16xf32> to vector<5x16xf32>
    %c11_i32_608 = arith.constant 11 : i32
    %862 = arith.addi %0, %c11_i32_608 : i32
    %c1_i32_609 = arith.constant 1 : i32
    %863 = arith.addi %862, %c1_i32_609 : i32
    %c0_610 = arith.constant 0 : index
    %c0_611 = arith.constant 0 : index
    %864 = arith.index_cast %863 : i32 to index
    %c1_612 = arith.constant 1 : index
    %865 = vector.load %arg2[%c0_610, %c0_611, %864, %c1_612] : memref<1x5x18x18xf32, #tpu.memory_space<vmem>>, vector<1x5x1x16xf32>
    %866 = vector.shape_cast %865 : vector<1x5x1x16xf32> to vector<5x1x16xf32>
    %867 = vector.shape_cast %866 : vector<5x1x16xf32> to vector<5x16xf32>
    %c11_i32_613 = arith.constant 11 : i32
    %868 = arith.addi %0, %c11_i32_613 : i32
    %c1_i32_614 = arith.constant 1 : i32
    %869 = arith.addi %868, %c1_i32_614 : i32
    %c0_615 = arith.constant 0 : index
    %c0_616 = arith.constant 0 : index
    %870 = arith.index_cast %869 : i32 to index
    %c2_617 = arith.constant 2 : index
    %871 = vector.load %arg2[%c0_615, %c0_616, %870, %c2_617] : memref<1x5x18x18xf32, #tpu.memory_space<vmem>>, vector<1x5x1x16xf32>
    %872 = vector.shape_cast %871 : vector<1x5x1x16xf32> to vector<5x1x16xf32>
    %873 = vector.shape_cast %872 : vector<5x1x16xf32> to vector<5x16xf32>
    %c11_i32_618 = arith.constant 11 : i32
    %874 = arith.addi %0, %c11_i32_618 : i32
    %c2_i32_619 = arith.constant 2 : i32
    %875 = arith.addi %874, %c2_i32_619 : i32
    %c0_620 = arith.constant 0 : index
    %c0_621 = arith.constant 0 : index
    %876 = arith.index_cast %875 : i32 to index
    %c0_622 = arith.constant 0 : index
    %877 = vector.load %arg2[%c0_620, %c0_621, %876, %c0_622] : memref<1x5x18x18xf32, #tpu.memory_space<vmem>>, vector<1x5x1x16xf32>
    %878 = vector.shape_cast %877 : vector<1x5x1x16xf32> to vector<5x1x16xf32>
    %879 = vector.shape_cast %878 : vector<5x1x16xf32> to vector<5x16xf32>
    %c11_i32_623 = arith.constant 11 : i32
    %880 = arith.addi %0, %c11_i32_623 : i32
    %c2_i32_624 = arith.constant 2 : i32
    %881 = arith.addi %880, %c2_i32_624 : i32
    %c0_625 = arith.constant 0 : index
    %c0_626 = arith.constant 0 : index
    %882 = arith.index_cast %881 : i32 to index
    %c1_627 = arith.constant 1 : index
    %883 = vector.load %arg2[%c0_625, %c0_626, %882, %c1_627] : memref<1x5x18x18xf32, #tpu.memory_space<vmem>>, vector<1x5x1x16xf32>
    %884 = vector.shape_cast %883 : vector<1x5x1x16xf32> to vector<5x1x16xf32>
    %885 = vector.shape_cast %884 : vector<5x1x16xf32> to vector<5x16xf32>
    %c11_i32_628 = arith.constant 11 : i32
    %886 = arith.addi %0, %c11_i32_628 : i32
    %c2_i32_629 = arith.constant 2 : i32
    %887 = arith.addi %886, %c2_i32_629 : i32
    %c0_630 = arith.constant 0 : index
    %c0_631 = arith.constant 0 : index
    %888 = arith.index_cast %887 : i32 to index
    %c2_632 = arith.constant 2 : index
    %889 = vector.load %arg2[%c0_630, %c0_631, %888, %c2_632] : memref<1x5x18x18xf32, #tpu.memory_space<vmem>>, vector<1x5x1x16xf32>
    %890 = vector.shape_cast %889 : vector<1x5x1x16xf32> to vector<5x1x16xf32>
    %891 = vector.shape_cast %890 : vector<5x1x16xf32> to vector<5x16xf32>
    %892 = tpu.concatenate %843, %849, %855, %861, %867, %873, %879, %885, %891 in 0 : vector<5x16xf32>, vector<5x16xf32>, vector<5x16xf32>, vector<5x16xf32>, vector<5x16xf32>, vector<5x16xf32>, vector<5x16xf32>, vector<5x16xf32>, vector<5x16xf32> -> vector<45x16xf32>
    %cst_633 = arith.constant dense<0.000000e+00> : vector<64x16xf32>
    %893 = tpu.matmul %1, %892, %cst_633 {dimension_numbers = #tpu.dot_dimension_numbers<[1], [0], [0], [1], [0, 0, 1, 1], [], []>} : vector<64x45xf32>, vector<45x16xf32>, vector<64x16xf32> -> vector<64x16xf32>
    %894 = vector.extract_strided_slice %893 {offsets = [0, 0], sizes = [16, 16], strides = [1, 1]} : vector<64x16xf32> to vector<16x16xf32>
    %cst_634 = arith.constant dense<0.000000e+00> : vector<16x64xf32>
    %895 = tpu.matmul %894, %4, %cst_634 {dimension_numbers = #tpu.dot_dimension_numbers<[1], [0], [0], [1], [0, 0, 1, 1], [], []>} : vector<16x16xf32>, vector<16x64xf32>, vector<16x64xf32> -> vector<16x64xf32>
    %896 = vector.broadcast %2 : vector<16x1xf32> to vector<16x64xf32>
    %897 = arith.addf %896, %895 : vector<16x64xf32>
    %898 = vector.extract_strided_slice %893 {offsets = [16, 0], sizes = [16, 16], strides = [1, 1]} : vector<64x16xf32> to vector<16x16xf32>
    %cst_635 = arith.constant dense<0.000000e+00> : vector<16x64xf32>
    %899 = tpu.matmul %898, %6, %cst_635 {dimension_numbers = #tpu.dot_dimension_numbers<[1], [0], [0], [1], [0, 0, 1, 1], [], []>} : vector<16x16xf32>, vector<16x64xf32>, vector<16x64xf32> -> vector<16x64xf32>
    %900 = arith.addf %897, %899 : vector<16x64xf32>
    %901 = vector.extract_strided_slice %893 {offsets = [32, 0], sizes = [16, 16], strides = [1, 1]} : vector<64x16xf32> to vector<16x16xf32>
    %cst_636 = arith.constant dense<0.000000e+00> : vector<16x64xf32>
    %902 = tpu.matmul %901, %8, %cst_636 {dimension_numbers = #tpu.dot_dimension_numbers<[1], [0], [0], [1], [0, 0, 1, 1], [], []>} : vector<16x16xf32>, vector<16x64xf32>, vector<16x64xf32> -> vector<16x64xf32>
    %903 = arith.addf %900, %902 : vector<16x64xf32>
    %904 = vector.extract_strided_slice %893 {offsets = [48, 0], sizes = [16, 16], strides = [1, 1]} : vector<64x16xf32> to vector<16x16xf32>
    %cst_637 = arith.constant dense<0.000000e+00> : vector<16x64xf32>
    %905 = tpu.matmul %904, %10, %cst_637 {dimension_numbers = #tpu.dot_dimension_numbers<[1], [0], [0], [1], [0, 0, 1, 1], [], []>} : vector<16x16xf32>, vector<16x64xf32>, vector<16x64xf32> -> vector<16x64xf32>
    %906 = arith.addf %903, %905 : vector<16x64xf32>
    %c0_638 = arith.constant 0 : index
    %c11 = arith.constant 11 : index
    %c0_639 = arith.constant 0 : index
    %c0_640 = arith.constant 0 : index
    %907 = vector.load %arg6[%c0_638, %c11, %c0_639, %c0_640] : memref<1x16x16x64xf32, #tpu.memory_space<vmem>>, vector<1x1x16x64xf32>
    %908 = vector.shape_cast %907 : vector<1x1x16x64xf32> to vector<16x64xf32>
    %909 = vector.shape_cast %906 : vector<16x64xf32> to vector<1x1x16x64xf32>
    tpu.vector_store %arg6[%c0_638, %c11, %c0_639, %c0_640], %909 {strides = array<i32>} : memref<1x16x16x64xf32, #tpu.memory_space<vmem>>, vector<1x1x16x64xf32>,
    %910 = arith.addf %835, %906 : vector<16x64xf32>
    %911 = arith.mulf %906, %906 : vector<16x64xf32>
    %912 = arith.addf %837, %911 : vector<16x64xf32>
    %c12_i32 = arith.constant 12 : i32
    %913 = arith.addi %0, %c12_i32 : i32
    %c0_i32_641 = arith.constant 0 : i32
    %914 = arith.addi %913, %c0_i32_641 : i32
    %c0_642 = arith.constant 0 : index
    %c0_643 = arith.constant 0 : index
    %915 = arith.index_cast %914 : i32 to index
    %c0_644 = arith.constant 0 : index
    %916 = vector.load %arg2[%c0_642, %c0_643, %915, %c0_644] : memref<1x5x18x18xf32, #tpu.memory_space<vmem>>, vector<1x5x1x16xf32>
    %917 = vector.shape_cast %916 : vector<1x5x1x16xf32> to vector<5x1x16xf32>
    %918 = vector.shape_cast %917 : vector<5x1x16xf32> to vector<5x16xf32>
    %c12_i32_645 = arith.constant 12 : i32
    %919 = arith.addi %0, %c12_i32_645 : i32
    %c0_i32_646 = arith.constant 0 : i32
    %920 = arith.addi %919, %c0_i32_646 : i32
    %c0_647 = arith.constant 0 : index
    %c0_648 = arith.constant 0 : index
    %921 = arith.index_cast %920 : i32 to index
    %c1_649 = arith.constant 1 : index
    %922 = vector.load %arg2[%c0_647, %c0_648, %921, %c1_649] : memref<1x5x18x18xf32, #tpu.memory_space<vmem>>, vector<1x5x1x16xf32>
    %923 = vector.shape_cast %922 : vector<1x5x1x16xf32> to vector<5x1x16xf32>
    %924 = vector.shape_cast %923 : vector<5x1x16xf32> to vector<5x16xf32>
    %c12_i32_650 = arith.constant 12 : i32
    %925 = arith.addi %0, %c12_i32_650 : i32
    %c0_i32_651 = arith.constant 0 : i32
    %926 = arith.addi %925, %c0_i32_651 : i32
    %c0_652 = arith.constant 0 : index
    %c0_653 = arith.constant 0 : index
    %927 = arith.index_cast %926 : i32 to index
    %c2_654 = arith.constant 2 : index
    %928 = vector.load %arg2[%c0_652, %c0_653, %927, %c2_654] : memref<1x5x18x18xf32, #tpu.memory_space<vmem>>, vector<1x5x1x16xf32>
    %929 = vector.shape_cast %928 : vector<1x5x1x16xf32> to vector<5x1x16xf32>
    %930 = vector.shape_cast %929 : vector<5x1x16xf32> to vector<5x16xf32>
    %c12_i32_655 = arith.constant 12 : i32
    %931 = arith.addi %0, %c12_i32_655 : i32
    %c1_i32_656 = arith.constant 1 : i32
    %932 = arith.addi %931, %c1_i32_656 : i32
    %c0_657 = arith.constant 0 : index
    %c0_658 = arith.constant 0 : index
    %933 = arith.index_cast %932 : i32 to index
    %c0_659 = arith.constant 0 : index
    %934 = vector.load %arg2[%c0_657, %c0_658, %933, %c0_659] : memref<1x5x18x18xf32, #tpu.memory_space<vmem>>, vector<1x5x1x16xf32>
    %935 = vector.shape_cast %934 : vector<1x5x1x16xf32> to vector<5x1x16xf32>
    %936 = vector.shape_cast %935 : vector<5x1x16xf32> to vector<5x16xf32>
    %c12_i32_660 = arith.constant 12 : i32
    %937 = arith.addi %0, %c12_i32_660 : i32
    %c1_i32_661 = arith.constant 1 : i32
    %938 = arith.addi %937, %c1_i32_661 : i32
    %c0_662 = arith.constant 0 : index
    %c0_663 = arith.constant 0 : index
    %939 = arith.index_cast %938 : i32 to index
    %c1_664 = arith.constant 1 : index
    %940 = vector.load %arg2[%c0_662, %c0_663, %939, %c1_664] : memref<1x5x18x18xf32, #tpu.memory_space<vmem>>, vector<1x5x1x16xf32>
    %941 = vector.shape_cast %940 : vector<1x5x1x16xf32> to vector<5x1x16xf32>
    %942 = vector.shape_cast %941 : vector<5x1x16xf32> to vector<5x16xf32>
    %c12_i32_665 = arith.constant 12 : i32
    %943 = arith.addi %0, %c12_i32_665 : i32
    %c1_i32_666 = arith.constant 1 : i32
    %944 = arith.addi %943, %c1_i32_666 : i32
    %c0_667 = arith.constant 0 : index
    %c0_668 = arith.constant 0 : index
    %945 = arith.index_cast %944 : i32 to index
    %c2_669 = arith.constant 2 : index
    %946 = vector.load %arg2[%c0_667, %c0_668, %945, %c2_669] : memref<1x5x18x18xf32, #tpu.memory_space<vmem>>, vector<1x5x1x16xf32>
    %947 = vector.shape_cast %946 : vector<1x5x1x16xf32> to vector<5x1x16xf32>
    %948 = vector.shape_cast %947 : vector<5x1x16xf32> to vector<5x16xf32>
    %c12_i32_670 = arith.constant 12 : i32
    %949 = arith.addi %0, %c12_i32_670 : i32
    %c2_i32_671 = arith.constant 2 : i32
    %950 = arith.addi %949, %c2_i32_671 : i32
    %c0_672 = arith.constant 0 : index
    %c0_673 = arith.constant 0 : index
    %951 = arith.index_cast %950 : i32 to index
    %c0_674 = arith.constant 0 : index
    %952 = vector.load %arg2[%c0_672, %c0_673, %951, %c0_674] : memref<1x5x18x18xf32, #tpu.memory_space<vmem>>, vector<1x5x1x16xf32>
    %953 = vector.shape_cast %952 : vector<1x5x1x16xf32> to vector<5x1x16xf32>
    %954 = vector.shape_cast %953 : vector<5x1x16xf32> to vector<5x16xf32>
    %c12_i32_675 = arith.constant 12 : i32
    %955 = arith.addi %0, %c12_i32_675 : i32
    %c2_i32_676 = arith.constant 2 : i32
    %956 = arith.addi %955, %c2_i32_676 : i32
    %c0_677 = arith.constant 0 : index
    %c0_678 = arith.constant 0 : index
    %957 = arith.index_cast %956 : i32 to index
    %c1_679 = arith.constant 1 : index
    %958 = vector.load %arg2[%c0_677, %c0_678, %957, %c1_679] : memref<1x5x18x18xf32, #tpu.memory_space<vmem>>, vector<1x5x1x16xf32>
    %959 = vector.shape_cast %958 : vector<1x5x1x16xf32> to vector<5x1x16xf32>
    %960 = vector.shape_cast %959 : vector<5x1x16xf32> to vector<5x16xf32>
    %c12_i32_680 = arith.constant 12 : i32
    %961 = arith.addi %0, %c12_i32_680 : i32
    %c2_i32_681 = arith.constant 2 : i32
    %962 = arith.addi %961, %c2_i32_681 : i32
    %c0_682 = arith.constant 0 : index
    %c0_683 = arith.constant 0 : index
    %963 = arith.index_cast %962 : i32 to index
    %c2_684 = arith.constant 2 : index
    %964 = vector.load %arg2[%c0_682, %c0_683, %963, %c2_684] : memref<1x5x18x18xf32, #tpu.memory_space<vmem>>, vector<1x5x1x16xf32>
    %965 = vector.shape_cast %964 : vector<1x5x1x16xf32> to vector<5x1x16xf32>
    %966 = vector.shape_cast %965 : vector<5x1x16xf32> to vector<5x16xf32>
    %967 = tpu.concatenate %918, %924, %930, %936, %942, %948, %954, %960, %966 in 0 : vector<5x16xf32>, vector<5x16xf32>, vector<5x16xf32>, vector<5x16xf32>, vector<5x16xf32>, vector<5x16xf32>, vector<5x16xf32>, vector<5x16xf32>, vector<5x16xf32> -> vector<45x16xf32>
    %cst_685 = arith.constant dense<0.000000e+00> : vector<64x16xf32>
    %968 = tpu.matmul %1, %967, %cst_685 {dimension_numbers = #tpu.dot_dimension_numbers<[1], [0], [0], [1], [0, 0, 1, 1], [], []>} : vector<64x45xf32>, vector<45x16xf32>, vector<64x16xf32> -> vector<64x16xf32>
    %969 = vector.extract_strided_slice %968 {offsets = [0, 0], sizes = [16, 16], strides = [1, 1]} : vector<64x16xf32> to vector<16x16xf32>
    %cst_686 = arith.constant dense<0.000000e+00> : vector<16x64xf32>
    %970 = tpu.matmul %969, %4, %cst_686 {dimension_numbers = #tpu.dot_dimension_numbers<[1], [0], [0], [1], [0, 0, 1, 1], [], []>} : vector<16x16xf32>, vector<16x64xf32>, vector<16x64xf32> -> vector<16x64xf32>
    %971 = vector.broadcast %2 : vector<16x1xf32> to vector<16x64xf32>
    %972 = arith.addf %971, %970 : vector<16x64xf32>
    %973 = vector.extract_strided_slice %968 {offsets = [16, 0], sizes = [16, 16], strides = [1, 1]} : vector<64x16xf32> to vector<16x16xf32>
    %cst_687 = arith.constant dense<0.000000e+00> : vector<16x64xf32>
    %974 = tpu.matmul %973, %6, %cst_687 {dimension_numbers = #tpu.dot_dimension_numbers<[1], [0], [0], [1], [0, 0, 1, 1], [], []>} : vector<16x16xf32>, vector<16x64xf32>, vector<16x64xf32> -> vector<16x64xf32>
    %975 = arith.addf %972, %974 : vector<16x64xf32>
    %976 = vector.extract_strided_slice %968 {offsets = [32, 0], sizes = [16, 16], strides = [1, 1]} : vector<64x16xf32> to vector<16x16xf32>
    %cst_688 = arith.constant dense<0.000000e+00> : vector<16x64xf32>
    %977 = tpu.matmul %976, %8, %cst_688 {dimension_numbers = #tpu.dot_dimension_numbers<[1], [0], [0], [1], [0, 0, 1, 1], [], []>} : vector<16x16xf32>, vector<16x64xf32>, vector<16x64xf32> -> vector<16x64xf32>
    %978 = arith.addf %975, %977 : vector<16x64xf32>
    %979 = vector.extract_strided_slice %968 {offsets = [48, 0], sizes = [16, 16], strides = [1, 1]} : vector<64x16xf32> to vector<16x16xf32>
    %cst_689 = arith.constant dense<0.000000e+00> : vector<16x64xf32>
    %980 = tpu.matmul %979, %10, %cst_689 {dimension_numbers = #tpu.dot_dimension_numbers<[1], [0], [0], [1], [0, 0, 1, 1], [], []>} : vector<16x16xf32>, vector<16x64xf32>, vector<16x64xf32> -> vector<16x64xf32>
    %981 = arith.addf %978, %980 : vector<16x64xf32>
    %c0_690 = arith.constant 0 : index
    %c12 = arith.constant 12 : index
    %c0_691 = arith.constant 0 : index
    %c0_692 = arith.constant 0 : index
    %982 = vector.load %arg6[%c0_690, %c12, %c0_691, %c0_692] : memref<1x16x16x64xf32, #tpu.memory_space<vmem>>, vector<1x1x16x64xf32>
    %983 = vector.shape_cast %982 : vector<1x1x16x64xf32> to vector<16x64xf32>
    %984 = vector.shape_cast %981 : vector<16x64xf32> to vector<1x1x16x64xf32>
    tpu.vector_store %arg6[%c0_690, %c12, %c0_691, %c0_692], %984 {strides = array<i32>} : memref<1x16x16x64xf32, #tpu.memory_space<vmem>>, vector<1x1x16x64xf32>,
    %985 = arith.addf %910, %981 : vector<16x64xf32>
    %986 = arith.mulf %981, %981 : vector<16x64xf32>
    %987 = arith.addf %912, %986 : vector<16x64xf32>
    %c13_i32 = arith.constant 13 : i32
    %988 = arith.addi %0, %c13_i32 : i32
    %c0_i32_693 = arith.constant 0 : i32
    %989 = arith.addi %988, %c0_i32_693 : i32
    %c0_694 = arith.constant 0 : index
    %c0_695 = arith.constant 0 : index
    %990 = arith.index_cast %989 : i32 to index
    %c0_696 = arith.constant 0 : index
    %991 = vector.load %arg2[%c0_694, %c0_695, %990, %c0_696] : memref<1x5x18x18xf32, #tpu.memory_space<vmem>>, vector<1x5x1x16xf32>
    %992 = vector.shape_cast %991 : vector<1x5x1x16xf32> to vector<5x1x16xf32>
    %993 = vector.shape_cast %992 : vector<5x1x16xf32> to vector<5x16xf32>
    %c13_i32_697 = arith.constant 13 : i32
    %994 = arith.addi %0, %c13_i32_697 : i32
    %c0_i32_698 = arith.constant 0 : i32
    %995 = arith.addi %994, %c0_i32_698 : i32
    %c0_699 = arith.constant 0 : index
    %c0_700 = arith.constant 0 : index
    %996 = arith.index_cast %995 : i32 to index
    %c1_701 = arith.constant 1 : index
    %997 = vector.load %arg2[%c0_699, %c0_700, %996, %c1_701] : memref<1x5x18x18xf32, #tpu.memory_space<vmem>>, vector<1x5x1x16xf32>
    %998 = vector.shape_cast %997 : vector<1x5x1x16xf32> to vector<5x1x16xf32>
    %999 = vector.shape_cast %998 : vector<5x1x16xf32> to vector<5x16xf32>
    %c13_i32_702 = arith.constant 13 : i32
    %1000 = arith.addi %0, %c13_i32_702 : i32
    %c0_i32_703 = arith.constant 0 : i32
    %1001 = arith.addi %1000, %c0_i32_703 : i32
    %c0_704 = arith.constant 0 : index
    %c0_705 = arith.constant 0 : index
    %1002 = arith.index_cast %1001 : i32 to index
    %c2_706 = arith.constant 2 : index
    %1003 = vector.load %arg2[%c0_704, %c0_705, %1002, %c2_706] : memref<1x5x18x18xf32, #tpu.memory_space<vmem>>, vector<1x5x1x16xf32>
    %1004 = vector.shape_cast %1003 : vector<1x5x1x16xf32> to vector<5x1x16xf32>
    %1005 = vector.shape_cast %1004 : vector<5x1x16xf32> to vector<5x16xf32>
    %c13_i32_707 = arith.constant 13 : i32
    %1006 = arith.addi %0, %c13_i32_707 : i32
    %c1_i32_708 = arith.constant 1 : i32
    %1007 = arith.addi %1006, %c1_i32_708 : i32
    %c0_709 = arith.constant 0 : index
    %c0_710 = arith.constant 0 : index
    %1008 = arith.index_cast %1007 : i32 to index
    %c0_711 = arith.constant 0 : index
    %1009 = vector.load %arg2[%c0_709, %c0_710, %1008, %c0_711] : memref<1x5x18x18xf32, #tpu.memory_space<vmem>>, vector<1x5x1x16xf32>
    %1010 = vector.shape_cast %1009 : vector<1x5x1x16xf32> to vector<5x1x16xf32>
    %1011 = vector.shape_cast %1010 : vector<5x1x16xf32> to vector<5x16xf32>
    %c13_i32_712 = arith.constant 13 : i32
    %1012 = arith.addi %0, %c13_i32_712 : i32
    %c1_i32_713 = arith.constant 1 : i32
    %1013 = arith.addi %1012, %c1_i32_713 : i32
    %c0_714 = arith.constant 0 : index
    %c0_715 = arith.constant 0 : index
    %1014 = arith.index_cast %1013 : i32 to index
    %c1_716 = arith.constant 1 : index
    %1015 = vector.load %arg2[%c0_714, %c0_715, %1014, %c1_716] : memref<1x5x18x18xf32, #tpu.memory_space<vmem>>, vector<1x5x1x16xf32>
    %1016 = vector.shape_cast %1015 : vector<1x5x1x16xf32> to vector<5x1x16xf32>
    %1017 = vector.shape_cast %1016 : vector<5x1x16xf32> to vector<5x16xf32>
    %c13_i32_717 = arith.constant 13 : i32
    %1018 = arith.addi %0, %c13_i32_717 : i32
    %c1_i32_718 = arith.constant 1 : i32
    %1019 = arith.addi %1018, %c1_i32_718 : i32
    %c0_719 = arith.constant 0 : index
    %c0_720 = arith.constant 0 : index
    %1020 = arith.index_cast %1019 : i32 to index
    %c2_721 = arith.constant 2 : index
    %1021 = vector.load %arg2[%c0_719, %c0_720, %1020, %c2_721] : memref<1x5x18x18xf32, #tpu.memory_space<vmem>>, vector<1x5x1x16xf32>
    %1022 = vector.shape_cast %1021 : vector<1x5x1x16xf32> to vector<5x1x16xf32>
    %1023 = vector.shape_cast %1022 : vector<5x1x16xf32> to vector<5x16xf32>
    %c13_i32_722 = arith.constant 13 : i32
    %1024 = arith.addi %0, %c13_i32_722 : i32
    %c2_i32_723 = arith.constant 2 : i32
    %1025 = arith.addi %1024, %c2_i32_723 : i32
    %c0_724 = arith.constant 0 : index
    %c0_725 = arith.constant 0 : index
    %1026 = arith.index_cast %1025 : i32 to index
    %c0_726 = arith.constant 0 : index
    %1027 = vector.load %arg2[%c0_724, %c0_725, %1026, %c0_726] : memref<1x5x18x18xf32, #tpu.memory_space<vmem>>, vector<1x5x1x16xf32>
    %1028 = vector.shape_cast %1027 : vector<1x5x1x16xf32> to vector<5x1x16xf32>
    %1029 = vector.shape_cast %1028 : vector<5x1x16xf32> to vector<5x16xf32>
    %c13_i32_727 = arith.constant 13 : i32
    %1030 = arith.addi %0, %c13_i32_727 : i32
    %c2_i32_728 = arith.constant 2 : i32
    %1031 = arith.addi %1030, %c2_i32_728 : i32
    %c0_729 = arith.constant 0 : index
    %c0_730 = arith.constant 0 : index
    %1032 = arith.index_cast %1031 : i32 to index
    %c1_731 = arith.constant 1 : index
    %1033 = vector.load %arg2[%c0_729, %c0_730, %1032, %c1_731] : memref<1x5x18x18xf32, #tpu.memory_space<vmem>>, vector<1x5x1x16xf32>
    %1034 = vector.shape_cast %1033 : vector<1x5x1x16xf32> to vector<5x1x16xf32>
    %1035 = vector.shape_cast %1034 : vector<5x1x16xf32> to vector<5x16xf32>
    %c13_i32_732 = arith.constant 13 : i32
    %1036 = arith.addi %0, %c13_i32_732 : i32
    %c2_i32_733 = arith.constant 2 : i32
    %1037 = arith.addi %1036, %c2_i32_733 : i32
    %c0_734 = arith.constant 0 : index
    %c0_735 = arith.constant 0 : index
    %1038 = arith.index_cast %1037 : i32 to index
    %c2_736 = arith.constant 2 : index
    %1039 = vector.load %arg2[%c0_734, %c0_735, %1038, %c2_736] : memref<1x5x18x18xf32, #tpu.memory_space<vmem>>, vector<1x5x1x16xf32>
    %1040 = vector.shape_cast %1039 : vector<1x5x1x16xf32> to vector<5x1x16xf32>
    %1041 = vector.shape_cast %1040 : vector<5x1x16xf32> to vector<5x16xf32>
    %1042 = tpu.concatenate %993, %999, %1005, %1011, %1017, %1023, %1029, %1035, %1041 in 0 : vector<5x16xf32>, vector<5x16xf32>, vector<5x16xf32>, vector<5x16xf32>, vector<5x16xf32>, vector<5x16xf32>, vector<5x16xf32>, vector<5x16xf32>, vector<5x16xf32> -> vector<45x16xf32>
    %cst_737 = arith.constant dense<0.000000e+00> : vector<64x16xf32>
    %1043 = tpu.matmul %1, %1042, %cst_737 {dimension_numbers = #tpu.dot_dimension_numbers<[1], [0], [0], [1], [0, 0, 1, 1], [], []>} : vector<64x45xf32>, vector<45x16xf32>, vector<64x16xf32> -> vector<64x16xf32>
    %1044 = vector.extract_strided_slice %1043 {offsets = [0, 0], sizes = [16, 16], strides = [1, 1]} : vector<64x16xf32> to vector<16x16xf32>
    %cst_738 = arith.constant dense<0.000000e+00> : vector<16x64xf32>
    %1045 = tpu.matmul %1044, %4, %cst_738 {dimension_numbers = #tpu.dot_dimension_numbers<[1], [0], [0], [1], [0, 0, 1, 1], [], []>} : vector<16x16xf32>, vector<16x64xf32>, vector<16x64xf32> -> vector<16x64xf32>
    %1046 = vector.broadcast %2 : vector<16x1xf32> to vector<16x64xf32>
    %1047 = arith.addf %1046, %1045 : vector<16x64xf32>
    %1048 = vector.extract_strided_slice %1043 {offsets = [16, 0], sizes = [16, 16], strides = [1, 1]} : vector<64x16xf32> to vector<16x16xf32>
    %cst_739 = arith.constant dense<0.000000e+00> : vector<16x64xf32>
    %1049 = tpu.matmul %1048, %6, %cst_739 {dimension_numbers = #tpu.dot_dimension_numbers<[1], [0], [0], [1], [0, 0, 1, 1], [], []>} : vector<16x16xf32>, vector<16x64xf32>, vector<16x64xf32> -> vector<16x64xf32>
    %1050 = arith.addf %1047, %1049 : vector<16x64xf32>
    %1051 = vector.extract_strided_slice %1043 {offsets = [32, 0], sizes = [16, 16], strides = [1, 1]} : vector<64x16xf32> to vector<16x16xf32>
    %cst_740 = arith.constant dense<0.000000e+00> : vector<16x64xf32>
    %1052 = tpu.matmul %1051, %8, %cst_740 {dimension_numbers = #tpu.dot_dimension_numbers<[1], [0], [0], [1], [0, 0, 1, 1], [], []>} : vector<16x16xf32>, vector<16x64xf32>, vector<16x64xf32> -> vector<16x64xf32>
    %1053 = arith.addf %1050, %1052 : vector<16x64xf32>
    %1054 = vector.extract_strided_slice %1043 {offsets = [48, 0], sizes = [16, 16], strides = [1, 1]} : vector<64x16xf32> to vector<16x16xf32>
    %cst_741 = arith.constant dense<0.000000e+00> : vector<16x64xf32>
    %1055 = tpu.matmul %1054, %10, %cst_741 {dimension_numbers = #tpu.dot_dimension_numbers<[1], [0], [0], [1], [0, 0, 1, 1], [], []>} : vector<16x16xf32>, vector<16x64xf32>, vector<16x64xf32> -> vector<16x64xf32>
    %1056 = arith.addf %1053, %1055 : vector<16x64xf32>
    %c0_742 = arith.constant 0 : index
    %c13 = arith.constant 13 : index
    %c0_743 = arith.constant 0 : index
    %c0_744 = arith.constant 0 : index
    %1057 = vector.load %arg6[%c0_742, %c13, %c0_743, %c0_744] : memref<1x16x16x64xf32, #tpu.memory_space<vmem>>, vector<1x1x16x64xf32>
    %1058 = vector.shape_cast %1057 : vector<1x1x16x64xf32> to vector<16x64xf32>
    %1059 = vector.shape_cast %1056 : vector<16x64xf32> to vector<1x1x16x64xf32>
    tpu.vector_store %arg6[%c0_742, %c13, %c0_743, %c0_744], %1059 {strides = array<i32>} : memref<1x16x16x64xf32, #tpu.memory_space<vmem>>, vector<1x1x16x64xf32>,
    %1060 = arith.addf %985, %1056 : vector<16x64xf32>
    %1061 = arith.mulf %1056, %1056 : vector<16x64xf32>
    %1062 = arith.addf %987, %1061 : vector<16x64xf32>
    %c14_i32 = arith.constant 14 : i32
    %1063 = arith.addi %0, %c14_i32 : i32
    %c0_i32_745 = arith.constant 0 : i32
    %1064 = arith.addi %1063, %c0_i32_745 : i32
    %c0_746 = arith.constant 0 : index
    %c0_747 = arith.constant 0 : index
    %1065 = arith.index_cast %1064 : i32 to index
    %c0_748 = arith.constant 0 : index
    %1066 = vector.load %arg2[%c0_746, %c0_747, %1065, %c0_748] : memref<1x5x18x18xf32, #tpu.memory_space<vmem>>, vector<1x5x1x16xf32>
    %1067 = vector.shape_cast %1066 : vector<1x5x1x16xf32> to vector<5x1x16xf32>
    %1068 = vector.shape_cast %1067 : vector<5x1x16xf32> to vector<5x16xf32>
    %c14_i32_749 = arith.constant 14 : i32
    %1069 = arith.addi %0, %c14_i32_749 : i32
    %c0_i32_750 = arith.constant 0 : i32
    %1070 = arith.addi %1069, %c0_i32_750 : i32
    %c0_751 = arith.constant 0 : index
    %c0_752 = arith.constant 0 : index
    %1071 = arith.index_cast %1070 : i32 to index
    %c1_753 = arith.constant 1 : index
    %1072 = vector.load %arg2[%c0_751, %c0_752, %1071, %c1_753] : memref<1x5x18x18xf32, #tpu.memory_space<vmem>>, vector<1x5x1x16xf32>
    %1073 = vector.shape_cast %1072 : vector<1x5x1x16xf32> to vector<5x1x16xf32>
    %1074 = vector.shape_cast %1073 : vector<5x1x16xf32> to vector<5x16xf32>
    %c14_i32_754 = arith.constant 14 : i32
    %1075 = arith.addi %0, %c14_i32_754 : i32
    %c0_i32_755 = arith.constant 0 : i32
    %1076 = arith.addi %1075, %c0_i32_755 : i32
    %c0_756 = arith.constant 0 : index
    %c0_757 = arith.constant 0 : index
    %1077 = arith.index_cast %1076 : i32 to index
    %c2_758 = arith.constant 2 : index
    %1078 = vector.load %arg2[%c0_756, %c0_757, %1077, %c2_758] : memref<1x5x18x18xf32, #tpu.memory_space<vmem>>, vector<1x5x1x16xf32>
    %1079 = vector.shape_cast %1078 : vector<1x5x1x16xf32> to vector<5x1x16xf32>
    %1080 = vector.shape_cast %1079 : vector<5x1x16xf32> to vector<5x16xf32>
    %c14_i32_759 = arith.constant 14 : i32
    %1081 = arith.addi %0, %c14_i32_759 : i32
    %c1_i32_760 = arith.constant 1 : i32
    %1082 = arith.addi %1081, %c1_i32_760 : i32
    %c0_761 = arith.constant 0 : index
    %c0_762 = arith.constant 0 : index
    %1083 = arith.index_cast %1082 : i32 to index
    %c0_763 = arith.constant 0 : index
    %1084 = vector.load %arg2[%c0_761, %c0_762, %1083, %c0_763] : memref<1x5x18x18xf32, #tpu.memory_space<vmem>>, vector<1x5x1x16xf32>
    %1085 = vector.shape_cast %1084 : vector<1x5x1x16xf32> to vector<5x1x16xf32>
    %1086 = vector.shape_cast %1085 : vector<5x1x16xf32> to vector<5x16xf32>
    %c14_i32_764 = arith.constant 14 : i32
    %1087 = arith.addi %0, %c14_i32_764 : i32
    %c1_i32_765 = arith.constant 1 : i32
    %1088 = arith.addi %1087, %c1_i32_765 : i32
    %c0_766 = arith.constant 0 : index
    %c0_767 = arith.constant 0 : index
    %1089 = arith.index_cast %1088 : i32 to index
    %c1_768 = arith.constant 1 : index
    %1090 = vector.load %arg2[%c0_766, %c0_767, %1089, %c1_768] : memref<1x5x18x18xf32, #tpu.memory_space<vmem>>, vector<1x5x1x16xf32>
    %1091 = vector.shape_cast %1090 : vector<1x5x1x16xf32> to vector<5x1x16xf32>
    %1092 = vector.shape_cast %1091 : vector<5x1x16xf32> to vector<5x16xf32>
    %c14_i32_769 = arith.constant 14 : i32
    %1093 = arith.addi %0, %c14_i32_769 : i32
    %c1_i32_770 = arith.constant 1 : i32
    %1094 = arith.addi %1093, %c1_i32_770 : i32
    %c0_771 = arith.constant 0 : index
    %c0_772 = arith.constant 0 : index
    %1095 = arith.index_cast %1094 : i32 to index
    %c2_773 = arith.constant 2 : index
    %1096 = vector.load %arg2[%c0_771, %c0_772, %1095, %c2_773] : memref<1x5x18x18xf32, #tpu.memory_space<vmem>>, vector<1x5x1x16xf32>
    %1097 = vector.shape_cast %1096 : vector<1x5x1x16xf32> to vector<5x1x16xf32>
    %1098 = vector.shape_cast %1097 : vector<5x1x16xf32> to vector<5x16xf32>
    %c14_i32_774 = arith.constant 14 : i32
    %1099 = arith.addi %0, %c14_i32_774 : i32
    %c2_i32_775 = arith.constant 2 : i32
    %1100 = arith.addi %1099, %c2_i32_775 : i32
    %c0_776 = arith.constant 0 : index
    %c0_777 = arith.constant 0 : index
    %1101 = arith.index_cast %1100 : i32 to index
    %c0_778 = arith.constant 0 : index
    %1102 = vector.load %arg2[%c0_776, %c0_777, %1101, %c0_778] : memref<1x5x18x18xf32, #tpu.memory_space<vmem>>, vector<1x5x1x16xf32>
    %1103 = vector.shape_cast %1102 : vector<1x5x1x16xf32> to vector<5x1x16xf32>
    %1104 = vector.shape_cast %1103 : vector<5x1x16xf32> to vector<5x16xf32>
    %c14_i32_779 = arith.constant 14 : i32
    %1105 = arith.addi %0, %c14_i32_779 : i32
    %c2_i32_780 = arith.constant 2 : i32
    %1106 = arith.addi %1105, %c2_i32_780 : i32
    %c0_781 = arith.constant 0 : index
    %c0_782 = arith.constant 0 : index
    %1107 = arith.index_cast %1106 : i32 to index
    %c1_783 = arith.constant 1 : index
    %1108 = vector.load %arg2[%c0_781, %c0_782, %1107, %c1_783] : memref<1x5x18x18xf32, #tpu.memory_space<vmem>>, vector<1x5x1x16xf32>
    %1109 = vector.shape_cast %1108 : vector<1x5x1x16xf32> to vector<5x1x16xf32>
    %1110 = vector.shape_cast %1109 : vector<5x1x16xf32> to vector<5x16xf32>
    %c14_i32_784 = arith.constant 14 : i32
    %1111 = arith.addi %0, %c14_i32_784 : i32
    %c2_i32_785 = arith.constant 2 : i32
    %1112 = arith.addi %1111, %c2_i32_785 : i32
    %c0_786 = arith.constant 0 : index
    %c0_787 = arith.constant 0 : index
    %1113 = arith.index_cast %1112 : i32 to index
    %c2_788 = arith.constant 2 : index
    %1114 = vector.load %arg2[%c0_786, %c0_787, %1113, %c2_788] : memref<1x5x18x18xf32, #tpu.memory_space<vmem>>, vector<1x5x1x16xf32>
    %1115 = vector.shape_cast %1114 : vector<1x5x1x16xf32> to vector<5x1x16xf32>
    %1116 = vector.shape_cast %1115 : vector<5x1x16xf32> to vector<5x16xf32>
    %1117 = tpu.concatenate %1068, %1074, %1080, %1086, %1092, %1098, %1104, %1110, %1116 in 0 : vector<5x16xf32>, vector<5x16xf32>, vector<5x16xf32>, vector<5x16xf32>, vector<5x16xf32>, vector<5x16xf32>, vector<5x16xf32>, vector<5x16xf32>, vector<5x16xf32> -> vector<45x16xf32>
    %cst_789 = arith.constant dense<0.000000e+00> : vector<64x16xf32>
    %1118 = tpu.matmul %1, %1117, %cst_789 {dimension_numbers = #tpu.dot_dimension_numbers<[1], [0], [0], [1], [0, 0, 1, 1], [], []>} : vector<64x45xf32>, vector<45x16xf32>, vector<64x16xf32> -> vector<64x16xf32>
    %1119 = vector.extract_strided_slice %1118 {offsets = [0, 0], sizes = [16, 16], strides = [1, 1]} : vector<64x16xf32> to vector<16x16xf32>
    %cst_790 = arith.constant dense<0.000000e+00> : vector<16x64xf32>
    %1120 = tpu.matmul %1119, %4, %cst_790 {dimension_numbers = #tpu.dot_dimension_numbers<[1], [0], [0], [1], [0, 0, 1, 1], [], []>} : vector<16x16xf32>, vector<16x64xf32>, vector<16x64xf32> -> vector<16x64xf32>
    %1121 = vector.broadcast %2 : vector<16x1xf32> to vector<16x64xf32>
    %1122 = arith.addf %1121, %1120 : vector<16x64xf32>
    %1123 = vector.extract_strided_slice %1118 {offsets = [16, 0], sizes = [16, 16], strides = [1, 1]} : vector<64x16xf32> to vector<16x16xf32>
    %cst_791 = arith.constant dense<0.000000e+00> : vector<16x64xf32>
    %1124 = tpu.matmul %1123, %6, %cst_791 {dimension_numbers = #tpu.dot_dimension_numbers<[1], [0], [0], [1], [0, 0, 1, 1], [], []>} : vector<16x16xf32>, vector<16x64xf32>, vector<16x64xf32> -> vector<16x64xf32>
    %1125 = arith.addf %1122, %1124 : vector<16x64xf32>
    %1126 = vector.extract_strided_slice %1118 {offsets = [32, 0], sizes = [16, 16], strides = [1, 1]} : vector<64x16xf32> to vector<16x16xf32>
    %cst_792 = arith.constant dense<0.000000e+00> : vector<16x64xf32>
    %1127 = tpu.matmul %1126, %8, %cst_792 {dimension_numbers = #tpu.dot_dimension_numbers<[1], [0], [0], [1], [0, 0, 1, 1], [], []>} : vector<16x16xf32>, vector<16x64xf32>, vector<16x64xf32> -> vector<16x64xf32>
    %1128 = arith.addf %1125, %1127 : vector<16x64xf32>
    %1129 = vector.extract_strided_slice %1118 {offsets = [48, 0], sizes = [16, 16], strides = [1, 1]} : vector<64x16xf32> to vector<16x16xf32>
    %cst_793 = arith.constant dense<0.000000e+00> : vector<16x64xf32>
    %1130 = tpu.matmul %1129, %10, %cst_793 {dimension_numbers = #tpu.dot_dimension_numbers<[1], [0], [0], [1], [0, 0, 1, 1], [], []>} : vector<16x16xf32>, vector<16x64xf32>, vector<16x64xf32> -> vector<16x64xf32>
    %1131 = arith.addf %1128, %1130 : vector<16x64xf32>
    %c0_794 = arith.constant 0 : index
    %c14 = arith.constant 14 : index
    %c0_795 = arith.constant 0 : index
    %c0_796 = arith.constant 0 : index
    %1132 = vector.load %arg6[%c0_794, %c14, %c0_795, %c0_796] : memref<1x16x16x64xf32, #tpu.memory_space<vmem>>, vector<1x1x16x64xf32>
    %1133 = vector.shape_cast %1132 : vector<1x1x16x64xf32> to vector<16x64xf32>
    %1134 = vector.shape_cast %1131 : vector<16x64xf32> to vector<1x1x16x64xf32>
    tpu.vector_store %arg6[%c0_794, %c14, %c0_795, %c0_796], %1134 {strides = array<i32>} : memref<1x16x16x64xf32, #tpu.memory_space<vmem>>, vector<1x1x16x64xf32>,
    %1135 = arith.addf %1060, %1131 : vector<16x64xf32>
    %1136 = arith.mulf %1131, %1131 : vector<16x64xf32>
    %1137 = arith.addf %1062, %1136 : vector<16x64xf32>
    %c15_i32 = arith.constant 15 : i32
    %1138 = arith.addi %0, %c15_i32 : i32
    %c0_i32_797 = arith.constant 0 : i32
    %1139 = arith.addi %1138, %c0_i32_797 : i32
    %c0_798 = arith.constant 0 : index
    %c0_799 = arith.constant 0 : index
    %1140 = arith.index_cast %1139 : i32 to index
    %c0_800 = arith.constant 0 : index
    %1141 = vector.load %arg2[%c0_798, %c0_799, %1140, %c0_800] : memref<1x5x18x18xf32, #tpu.memory_space<vmem>>, vector<1x5x1x16xf32>
    %1142 = vector.shape_cast %1141 : vector<1x5x1x16xf32> to vector<5x1x16xf32>
    %1143 = vector.shape_cast %1142 : vector<5x1x16xf32> to vector<5x16xf32>
    %c15_i32_801 = arith.constant 15 : i32
    %1144 = arith.addi %0, %c15_i32_801 : i32
    %c0_i32_802 = arith.constant 0 : i32
    %1145 = arith.addi %1144, %c0_i32_802 : i32
    %c0_803 = arith.constant 0 : index
    %c0_804 = arith.constant 0 : index
    %1146 = arith.index_cast %1145 : i32 to index
    %c1_805 = arith.constant 1 : index
    %1147 = vector.load %arg2[%c0_803, %c0_804, %1146, %c1_805] : memref<1x5x18x18xf32, #tpu.memory_space<vmem>>, vector<1x5x1x16xf32>
    %1148 = vector.shape_cast %1147 : vector<1x5x1x16xf32> to vector<5x1x16xf32>
    %1149 = vector.shape_cast %1148 : vector<5x1x16xf32> to vector<5x16xf32>
    %c15_i32_806 = arith.constant 15 : i32
    %1150 = arith.addi %0, %c15_i32_806 : i32
    %c0_i32_807 = arith.constant 0 : i32
    %1151 = arith.addi %1150, %c0_i32_807 : i32
    %c0_808 = arith.constant 0 : index
    %c0_809 = arith.constant 0 : index
    %1152 = arith.index_cast %1151 : i32 to index
    %c2_810 = arith.constant 2 : index
    %1153 = vector.load %arg2[%c0_808, %c0_809, %1152, %c2_810] : memref<1x5x18x18xf32, #tpu.memory_space<vmem>>, vector<1x5x1x16xf32>
    %1154 = vector.shape_cast %1153 : vector<1x5x1x16xf32> to vector<5x1x16xf32>
    %1155 = vector.shape_cast %1154 : vector<5x1x16xf32> to vector<5x16xf32>
    %c15_i32_811 = arith.constant 15 : i32
    %1156 = arith.addi %0, %c15_i32_811 : i32
    %c1_i32_812 = arith.constant 1 : i32
    %1157 = arith.addi %1156, %c1_i32_812 : i32
    %c0_813 = arith.constant 0 : index
    %c0_814 = arith.constant 0 : index
    %1158 = arith.index_cast %1157 : i32 to index
    %c0_815 = arith.constant 0 : index
    %1159 = vector.load %arg2[%c0_813, %c0_814, %1158, %c0_815] : memref<1x5x18x18xf32, #tpu.memory_space<vmem>>, vector<1x5x1x16xf32>
    %1160 = vector.shape_cast %1159 : vector<1x5x1x16xf32> to vector<5x1x16xf32>
    %1161 = vector.shape_cast %1160 : vector<5x1x16xf32> to vector<5x16xf32>
    %c15_i32_816 = arith.constant 15 : i32
    %1162 = arith.addi %0, %c15_i32_816 : i32
    %c1_i32_817 = arith.constant 1 : i32
    %1163 = arith.addi %1162, %c1_i32_817 : i32
    %c0_818 = arith.constant 0 : index
    %c0_819 = arith.constant 0 : index
    %1164 = arith.index_cast %1163 : i32 to index
    %c1_820 = arith.constant 1 : index
    %1165 = vector.load %arg2[%c0_818, %c0_819, %1164, %c1_820] : memref<1x5x18x18xf32, #tpu.memory_space<vmem>>, vector<1x5x1x16xf32>
    %1166 = vector.shape_cast %1165 : vector<1x5x1x16xf32> to vector<5x1x16xf32>
    %1167 = vector.shape_cast %1166 : vector<5x1x16xf32> to vector<5x16xf32>
    %c15_i32_821 = arith.constant 15 : i32
    %1168 = arith.addi %0, %c15_i32_821 : i32
    %c1_i32_822 = arith.constant 1 : i32
    %1169 = arith.addi %1168, %c1_i32_822 : i32
    %c0_823 = arith.constant 0 : index
    %c0_824 = arith.constant 0 : index
    %1170 = arith.index_cast %1169 : i32 to index
    %c2_825 = arith.constant 2 : index
    %1171 = vector.load %arg2[%c0_823, %c0_824, %1170, %c2_825] : memref<1x5x18x18xf32, #tpu.memory_space<vmem>>, vector<1x5x1x16xf32>
    %1172 = vector.shape_cast %1171 : vector<1x5x1x16xf32> to vector<5x1x16xf32>
    %1173 = vector.shape_cast %1172 : vector<5x1x16xf32> to vector<5x16xf32>
    %c15_i32_826 = arith.constant 15 : i32
    %1174 = arith.addi %0, %c15_i32_826 : i32
    %c2_i32_827 = arith.constant 2 : i32
    %1175 = arith.addi %1174, %c2_i32_827 : i32
    %c0_828 = arith.constant 0 : index
    %c0_829 = arith.constant 0 : index
    %1176 = arith.index_cast %1175 : i32 to index
    %c0_830 = arith.constant 0 : index
    %1177 = vector.load %arg2[%c0_828, %c0_829, %1176, %c0_830] : memref<1x5x18x18xf32, #tpu.memory_space<vmem>>, vector<1x5x1x16xf32>
    %1178 = vector.shape_cast %1177 : vector<1x5x1x16xf32> to vector<5x1x16xf32>
    %1179 = vector.shape_cast %1178 : vector<5x1x16xf32> to vector<5x16xf32>
    %c15_i32_831 = arith.constant 15 : i32
    %1180 = arith.addi %0, %c15_i32_831 : i32
    %c2_i32_832 = arith.constant 2 : i32
    %1181 = arith.addi %1180, %c2_i32_832 : i32
    %c0_833 = arith.constant 0 : index
    %c0_834 = arith.constant 0 : index
    %1182 = arith.index_cast %1181 : i32 to index
    %c1_835 = arith.constant 1 : index
    %1183 = vector.load %arg2[%c0_833, %c0_834, %1182, %c1_835] : memref<1x5x18x18xf32, #tpu.memory_space<vmem>>, vector<1x5x1x16xf32>
    %1184 = vector.shape_cast %1183 : vector<1x5x1x16xf32> to vector<5x1x16xf32>
    %1185 = vector.shape_cast %1184 : vector<5x1x16xf32> to vector<5x16xf32>
    %c15_i32_836 = arith.constant 15 : i32
    %1186 = arith.addi %0, %c15_i32_836 : i32
    %c2_i32_837 = arith.constant 2 : i32
    %1187 = arith.addi %1186, %c2_i32_837 : i32
    %c0_838 = arith.constant 0 : index
    %c0_839 = arith.constant 0 : index
    %1188 = arith.index_cast %1187 : i32 to index
    %c2_840 = arith.constant 2 : index
    %1189 = vector.load %arg2[%c0_838, %c0_839, %1188, %c2_840] : memref<1x5x18x18xf32, #tpu.memory_space<vmem>>, vector<1x5x1x16xf32>
    %1190 = vector.shape_cast %1189 : vector<1x5x1x16xf32> to vector<5x1x16xf32>
    %1191 = vector.shape_cast %1190 : vector<5x1x16xf32> to vector<5x16xf32>
    %1192 = tpu.concatenate %1143, %1149, %1155, %1161, %1167, %1173, %1179, %1185, %1191 in 0 : vector<5x16xf32>, vector<5x16xf32>, vector<5x16xf32>, vector<5x16xf32>, vector<5x16xf32>, vector<5x16xf32>, vector<5x16xf32>, vector<5x16xf32>, vector<5x16xf32> -> vector<45x16xf32>
    %cst_841 = arith.constant dense<0.000000e+00> : vector<64x16xf32>
    %1193 = tpu.matmul %1, %1192, %cst_841 {dimension_numbers = #tpu.dot_dimension_numbers<[1], [0], [0], [1], [0, 0, 1, 1], [], []>} : vector<64x45xf32>, vector<45x16xf32>, vector<64x16xf32> -> vector<64x16xf32>
    %1194 = vector.extract_strided_slice %1193 {offsets = [0, 0], sizes = [16, 16], strides = [1, 1]} : vector<64x16xf32> to vector<16x16xf32>
    %cst_842 = arith.constant dense<0.000000e+00> : vector<16x64xf32>
    %1195 = tpu.matmul %1194, %4, %cst_842 {dimension_numbers = #tpu.dot_dimension_numbers<[1], [0], [0], [1], [0, 0, 1, 1], [], []>} : vector<16x16xf32>, vector<16x64xf32>, vector<16x64xf32> -> vector<16x64xf32>
    %1196 = vector.broadcast %2 : vector<16x1xf32> to vector<16x64xf32>
    %1197 = arith.addf %1196, %1195 : vector<16x64xf32>
    %1198 = vector.extract_strided_slice %1193 {offsets = [16, 0], sizes = [16, 16], strides = [1, 1]} : vector<64x16xf32> to vector<16x16xf32>
    %cst_843 = arith.constant dense<0.000000e+00> : vector<16x64xf32>
    %1199 = tpu.matmul %1198, %6, %cst_843 {dimension_numbers = #tpu.dot_dimension_numbers<[1], [0], [0], [1], [0, 0, 1, 1], [], []>} : vector<16x16xf32>, vector<16x64xf32>, vector<16x64xf32> -> vector<16x64xf32>
    %1200 = arith.addf %1197, %1199 : vector<16x64xf32>
    %1201 = vector.extract_strided_slice %1193 {offsets = [32, 0], sizes = [16, 16], strides = [1, 1]} : vector<64x16xf32> to vector<16x16xf32>
    %cst_844 = arith.constant dense<0.000000e+00> : vector<16x64xf32>
    %1202 = tpu.matmul %1201, %8, %cst_844 {dimension_numbers = #tpu.dot_dimension_numbers<[1], [0], [0], [1], [0, 0, 1, 1], [], []>} : vector<16x16xf32>, vector<16x64xf32>, vector<16x64xf32> -> vector<16x64xf32>
    %1203 = arith.addf %1200, %1202 : vector<16x64xf32>
    %1204 = vector.extract_strided_slice %1193 {offsets = [48, 0], sizes = [16, 16], strides = [1, 1]} : vector<64x16xf32> to vector<16x16xf32>
    %cst_845 = arith.constant dense<0.000000e+00> : vector<16x64xf32>
    %1205 = tpu.matmul %1204, %10, %cst_845 {dimension_numbers = #tpu.dot_dimension_numbers<[1], [0], [0], [1], [0, 0, 1, 1], [], []>} : vector<16x16xf32>, vector<16x64xf32>, vector<16x64xf32> -> vector<16x64xf32>
    %1206 = arith.addf %1203, %1205 : vector<16x64xf32>
    %c0_846 = arith.constant 0 : index
    %c15 = arith.constant 15 : index
    %c0_847 = arith.constant 0 : index
    %c0_848 = arith.constant 0 : index
    %1207 = vector.load %arg6[%c0_846, %c15, %c0_847, %c0_848] : memref<1x16x16x64xf32, #tpu.memory_space<vmem>>, vector<1x1x16x64xf32>
    %1208 = vector.shape_cast %1207 : vector<1x1x16x64xf32> to vector<16x64xf32>
    %1209 = vector.shape_cast %1206 : vector<16x64xf32> to vector<1x1x16x64xf32>
    tpu.vector_store %arg6[%c0_846, %c15, %c0_847, %c0_848], %1209 {strides = array<i32>} : memref<1x16x16x64xf32, #tpu.memory_space<vmem>>, vector<1x1x16x64xf32>,
    %1210 = arith.addf %1135, %1206 : vector<16x64xf32>
    %1211 = arith.mulf %1206, %1206 : vector<16x64xf32>
    %1212 = arith.addf %1137, %1211 : vector<16x64xf32>
    %cst_849 = arith.constant dense<0.000000e+00> : vector<16xf32>
    %1213 = vector.multi_reduction <add>, %1210, %cst_849 [1] : vector<16x64xf32> to vector<16xf32>
    %1214 = vector.shape_cast %1213 : vector<16xf32> to vector<16x1xf32>
    %cst_850 = arith.constant dense<0.000000e+00> : vector<16xf32>
    %1215 = vector.multi_reduction <add>, %1212, %cst_850 [1] : vector<16x64xf32> to vector<16xf32>
    %1216 = vector.shape_cast %1215 : vector<16xf32> to vector<16x1xf32>
    %1217 = tpu.concatenate %1214, %1216 in 1 : vector<16x1xf32>, vector<16x1xf32> -> vector<16x2xf32>
    %c0_851 = arith.constant 0 : index
    %c0_852 = arith.constant 0 : index
    %c0_853 = arith.constant 0 : index
    %c0_854 = arith.constant 0 : index
    %1218 = vector.load %arg7[%c0_851, %c0_852, %c0_853, %c0_854] : memref<1x1x16x2xf32, #tpu.memory_space<vmem>>, vector<1x1x16x2xf32>
    %1219 = vector.shape_cast %1218 : vector<1x1x16x2xf32> to vector<16x2xf32>
    %1220 = vector.shape_cast %1217 : vector<16x2xf32> to vector<1x1x16x2xf32>
    tpu.vector_store %arg7[%c0_851, %c0_852, %c0_853, %c0_854], %1220 {strides = array<i32>} : memref<1x1x16x2xf32, #tpu.memory_space<vmem>>, vector<1x1x16x2xf32>,
    return
  }
  func.func @transform_0(%arg0: i32, %arg1: i32) -> (i32, i32, i32, i32) {
    %c0_i32 = arith.constant 0 : i32
    %c0_i32_0 = arith.constant 0 : i32
    %c0_i32_1 = arith.constant 0 : i32
    %c0_i32_2 = arith.constant 0 : i32
    return %arg0, %c0_i32, %c0_i32_0, %c0_i32_1 : i32, i32, i32, i32
  }
  func.func @transform_1(%arg0: i32, %arg1: i32) -> (i32, i32) {
    %c0_i32 = arith.constant 0 : i32
    %c0_i32_0 = arith.constant 0 : i32
    %c0_i32_1 = arith.constant 0 : i32
    return %c0_i32, %c0_i32_0 : i32, i32
  }
  func.func @transform_2(%arg0: i32, %arg1: i32) -> (i32, i32, i32) {
    %c0_i32 = arith.constant 0 : i32
    %c0_i32_0 = arith.constant 0 : i32
    %c0_i32_1 = arith.constant 0 : i32
    %c0_i32_2 = arith.constant 0 : i32
    return %c0_i32, %c0_i32_0, %c0_i32_1 : i32, i32, i32
  }
  func.func @transform_3(%arg0: i32, %arg1: i32) -> (i32, i32) {
    %c0_i32 = arith.constant 0 : i32
    %c0_i32_0 = arith.constant 0 : i32
    %c0_i32_1 = arith.constant 0 : i32
    return %c0_i32, %c0_i32_0 : i32, i32
  }
  func.func @transform_4(%arg0: i32, %arg1: i32) -> (i32, i32, i32, i32) {
    %c0_i32 = arith.constant 0 : i32
    %c0_i32_0 = arith.constant 0 : i32
    %c0_i32_1 = arith.constant 0 : i32
    return %arg0, %arg1, %c0_i32, %c0_i32_0 : i32, i32, i32, i32
  }
  func.func @transform_5(%arg0: i32, %arg1: i32) -> (i32, i32, i32, i32) {
    %c0_i32 = arith.constant 0 : i32
    %c0_i32_0 = arith.constant 0 : i32
    %c0_i32_1 = arith.constant 0 : i32
    return %arg0, %arg1, %c0_i32, %c0_i32_0 : i32, i32, i32, i32
  }
}

</mosaic_0001>

<bundles_post_ra>
// kernel: output_transition.3
= control target key start
LH: loop header
LB: loop body
LE: loop exit
PB: predicated region body
PF: predicated region fallthrough
CT: control target
= control target key end

     0   :  { %10 = vsyncpa [#allocation3], 0  ;;  %s3658_s0 = inlined_call_operand.vmem [shape: f32[2,16,16,64], index: 0, kind: input, shape index: {}]   ;;  %s3659_s1 = inlined_call_operand.vmem [shape: f32[16,1], index: 1, kind: input, shape index: {}]   ;;  %s3660_s2 = inlined_call_operand.vmem [shape: f32[16,1], index: 2, kind: input, shape index: {}]   ;;  %s3661_s3 = inlined_call_operand.vmem [shape: f32[12,16], index: 3, kind: input, shape index: {}]   ;;  %s3662_s4 = inlined_call_operand.vmem [shape: f32[12,1], index: 4, kind: input, shape index: {}]   ;;  %s3663_s5 = inlined_call_operand.hbm [shape: f32[2,3,64,64], index: 5, kind: output, shape index: {}]  }
   0x1   :  { %12 = vsyncpa [#allocation3 + $0x1], 0  ;;  %s2908_s18 = smov 0   ;;  %s2910_s19 = smov 0  }
   0x2   :  { %s2912_s20 = smov 0   ;;  %s2914_s21 = smov 0  }
   0x3   :  { %s2916_s22 = smov 0   ;;  %s2918_s23 = smov 0  }
   0x4 LB: > { %s2259_s24 = sadd.s32 4294967295, %s2872_s23   ;;  %s2260_s25 = sadd.s32 4294967294, %s2872_s23   ;;  %s2872_s23 = sphi %s2918_s23, %s18_s23   ;;  %s2868_s22 = sphi %s2916_s22, %s3670_s22   ;;  %s2864_s21 = sphi %s2914_s21, %s3669_s21   ;;  %s2860_s20 = sphi %s2912_s20, %s3668_s20   ;;  %s2856_s19 = sphi %s2910_s19, %s3667_s19   ;;  %s2852_s18 = sphi %s2908_s18, %s3666_s18  }
   0x5   : > { %s30_s26 = sadd.s32 1, %s2868_s22  ;;  %s151_s27 = sadd.s32 1, %s2860_s20 }
   0x6   : > { %p32_p0 = scmp.ge.s32.totalorder %s30_s26, 2  ;;  %p161_p1 = scmp.ne.s32.totalorder %s2860_s20, %s2856_s19 }
   0x7   : > { %p162_p2 = scmp.eq.s32.totalorder %s2259_s24, 1  ;;  %p167_p3 = scmp.ne.s32.totalorder %s2856_s19, %s2852_s18 }
   0x8   : > { %s3672_s26 = smov (%p32_p0, %s30_s26), 0  ;;  %p168_p5 = scmp.eq.s32.totalorder %s2260_s25, 1 }
   0x9   : > { %p2948_p4 = por %p162_p2, %p161_p1  ;;  %s146_s29 = ssub.s32 %s2868_s22, %s3672_s26 }
   0xa   : > { %p2263_p6 = scmp.ge.s32.totalorder %s2872_s23, 1  ;;  %p149_p7 = scmp.eq.s32.totalorder %s146_s29, 0 }
   0xb   : > { %p2955_p8 = por %p168_p5, %p167_p3  ;;  %p212_p9 = scmp.lt.s32.totalorder %s2872_s23, 3 }
   0xc   : > { %s2961_s6 = scalar_select %p149_p7, %s2860_s20, %s151_s27  }
   0xd   : > { %p213_p10 = pnand %p2263_p6, %p212_p9 }
   0xe   : > { %v259_v0 = vld [vmem:[%s3660_s2] sm:$0xff] (!%p213_p10)  ;;  %v2874_v2 = vmov (!%p213_p10), 0   ;;  %v260_v3 = vld [vmem:[%s3660_s2 + $0x8] sm:$0xff] (!%p213_p10)  ;;  %vm303_vm0 = vcmask (!%p213_p10), 130048   ;;  %p246_p11 = scmp.lt.s32.totalorder (!%p213_p10), %s2864_s21, 1  ;;  %vm409_vm1 = vcmask (!%p213_p10), 519168  }
   0xf   : > { %216 = sbr.rel (%p213_p10) target bundleno = 511 (0x1ff), region = 40  ;;  %v257_v1 = vld [vmem:[%s3659_s1] sm:$0xff] (!%p213_p10)  ;;  %2665 = vset.pattern.permute.xlu1 (!%p213_p10), %v2874_v2  ;;  %2664 = vset.pattern.permute.xlu0 (!%p213_p10), %v2874_v2  ;;  %v258_v4 = vld [vmem:[%s3659_s1 + $0x8] sm:$0xff] (!%p213_p10)  ;;  %s242_s13 = sand.u32 (!%p213_p10), 1, %s2856_s19   ;;  %vm416_vm2 = vcmask (!%p213_p10), 523268  }
  0x10   : > { %281 = vperm.xlu1 (!%p213_p10), %2665, %v259_v0   ;;  %269 = vperm.xlu0 (!%p213_p10), %2664, %v257_v1   ;;  %v264_v5 = vld [vmem:[%s3662_s4 + $0x8] sm:$0xf] (!%p213_p10)  ;;  %v263_v6 = vld [vmem:[%s3662_s4] sm:$0xff] (!%p213_p10)  ;;  %s3312_s14 = smul.u32 (!%p213_p10), 192, %s242_s13 }
  0x11   : > { %v2984_v7 = vld [vmem:[%s3661_s3] sm:$0xff] (!%p213_p10)  ;;  %s2605_s16 = smul.u32 (!%p213_p10), 3072, %s2864_s21 }
  0x12   : > { %2432 = vmatprep.mubr.msk.f32.mxu0 (!%p213_p10), %vm303_vm0, %v2984_v7  ;;  %2439 = vmatprep.mubr.msk.f32.mxu1 (!%p213_p10), %vm303_vm0, %v2984_v7  ;;  %s3342_s15 = scalar_lea.vmem (!%p213_p10), [#allocation2], %s3312_s14 }
  0x13   : > { %s2177_s17 = sshll.u32 (!%p213_p10), %s3342_s15, 4  ;;  %s3600_s27 = scalar_lea.hbm (!%p213_p10), %s3663_s5, %s2605_s16  ;;  %s3606_s17 = int_to_ptr.vmem [resolvable:$true] %s2177_s17 }
  0x14   : > { %286 = vperm.xlu1 (!%p213_p10), %2665, %v260_v3   ;;  %274 = vperm.xlu0 (!%p213_p10), %2664, %v258_v4  }
  0x16   : > { %s247_s29 = scalar_select %p246_p11, %s2864_s21, 1 }
  0x17   : > { %s3612_s21 = scalar_lea.sflag [#allocation3], %s242_s13 }
  0x18   : > { %300 = vperm.xlu1 %2665, %v264_v5   ;;  %295 = vperm.xlu0 %2664, %v263_v6   ;;  %s2363_s7 = sshll.u32 %s247_s29, 8  ;;  %s2794_s29 = scalar_lea.vmem %s3606_s17, 3072 }
  0x19   : > { %s2995_s10 = scalar_lea.vmem %s3658_s0, %s2363_s7  ;;  %p2795_p12 = scmp.ne.s32.totalorder %s3606_s17, %s2794_s29 }
  0x1a   : > { %v265_v8 = vld [vmem:[%s2995_s10] sm:$0xff]  ;;  %v2270_v9 = vld [vmem:[%s2995_s10 + $0x10] sm:$0xff]  ;;  %v266_v22 = vld [vmem:[%s2995_s10 + $0x8] sm:$0xff]  ;;  %s2875_s7 = smov [#allocation2]  }
  0x1b   : > { %v2276_v10 = vld [vmem:[%s2995_s10 + $0x20] sm:$0xff]  ;;  %v2282_v11 = vld [vmem:[%s2995_s10 + $0x30] sm:$0xff]  ;;  %v2271_v23 = vld [vmem:[%s2995_s10 + $0x18] sm:$0xff]  ;;  %p2796_p13 = pnand %p2795_p12, %p2948_p4  ;;  %s2798_s8 = sshll.u32 %s2875_s7, 4  ;;  %s2799_s8 = int_to_ptr.vmem [resolvable:$false] %s2798_s8 }
  0x1c   : > { %v2288_v12 = vld [vmem:[%s2995_s10 + $0x40] sm:$0xff]  ;;  %v2294_v13 = vld [vmem:[%s2995_s10 + $0x50] sm:$0xff]  ;;  %v2277_v27 = vld [vmem:[%s2995_s10 + $0x28] sm:$0xff]  ;;  %s2800_s9 = scalar_lea.vmem %s2799_s8, 6144  ;;  %p2801_p1 = scmp.lt.s32.totalorder %s3606_s17, %s2799_s8 }
  0x1d   : > { %v2300_v20 = vld [vmem:[%s2995_s10 + $0x60] sm:$0xff]  ;;  %v2306_v21 = vld [vmem:[%s2995_s10 + $0x70] sm:$0xff]  ;;  %v2283_v28 = vld [vmem:[%s2995_s10 + $0x38] sm:$0xff]  ;;  %p2797_p0 = pneg %p2796_p13  ;;  %p2802_p2 = scmp.lt.s32.totalorder %s2800_s9, %s2794_s29 }
  0x1e   : > { %v2289_v31 = vld [vmem:[%s2995_s10 + $0x48] sm:$0xff]  ;;  %v2295_v38 = vld [vmem:[%s2995_s10 + $0x58] sm:$0xff]  ;;  %v2312_v62 = vld [vmem:[%s2995_s10 + $0x80] sm:$0xff] }
  0x1f   : > { %v2301_v44 = vld [vmem:[%s2995_s10 + $0x68] sm:$0xff]  ;;  %v2307_v57 = vld [vmem:[%s2995_s10 + $0x78] sm:$0xff]  ;;  %p2803_p3 = por %p2802_p2, %p2801_p1 }
  0x20   : > { %v2313_v3 = vld [vmem:[%s2995_s10 + $0x88] sm:$0xff] }
  0x21   : > { %p2804_p5 = pnand %p2803_p3, %p2797_p0 }
  0x8f   : > { %v3003_v14 = vpop.permute.xlu1 %281  ;;  %v3005_v15 = vpop.permute.xlu0 %269 }
  0x90   : > { %v277_v16 = vmul.f32 %v3005_v15, %v265_v8  ;;  %v424_v17 = vmul.f32 %v2270_v9, %v3005_v15  ;;  %v540_v18 = vmul.f32 %v2276_v10, %v3005_v15  ;;  %v656_v19 = vmul.f32 %v2282_v11, %v3005_v15  ;;  %v2318_v8 = vld [vmem:[%s2995_s10 + $0x90] sm:$0xff] }
  0x91   : > { %v772_v24 = vmul.f32 %v2288_v12, %v3005_v15  ;;  %v888_v25 = vmul.f32 %v2294_v13, %v3005_v15  ;;  %v1004_v32 = vmul.f32 %v2300_v20, %v3005_v15  ;;  %v1120_v33 = vmul.f32 %v2306_v21, %v3005_v15  ;;  %v2319_v13 = vld [vmem:[%s2995_s10 + $0x98] sm:$0xff]  ;;  %v2324_v21 = vld [vmem:[%s2995_s10 + $0xa0] sm:$0xff] }
  0x92   : > { %v289_v26 = vadd.f32 %v3003_v14, %v277_v16  ;;  %v426_v30 = vadd.f32 %v424_v17, %v3003_v14  ;;  %v542_v36 = vadd.f32 %v540_v18, %v3003_v14  ;;  %v658_v37 = vadd.f32 %v656_v19, %v3003_v14  ;;  %v3058_v16 = vld [vmem:[%s3661_s3 + $0x8] sm:$0xf] }
  0x93   : > { %v3020_v29 = vpop.permute.xlu0 %274  ;;  %v3031_v39 = vpop.permute.xlu1 %286  ;;  %v774_v42 = vadd.f32 %v772_v24, %v3003_v14  ;;  %v890_v43 = vadd.f32 %v888_v25, %v3003_v14  ;;  %v1236_v12 = vmul.f32 %v2312_v62, %v3005_v15  ;;  %v1006_v18 = vadd.f32 %v1004_v32, %v3003_v14  ;;  %v2331_v32 = vld [vmem:[%s2995_s10 + $0xb8] sm:$0xff] }
  0x94   : > { %v278_v34 = vmul.f32 %v3020_v29, %v266_v22  ;;  %v425_v35 = vmul.f32 %v2271_v23, %v3020_v29  ;;  %v541_v40 = vmul.f32 %v2277_v27, %v3020_v29  ;;  %v657_v41 = vmul.f32 %v2283_v28, %v3020_v29  ;;  %v2325_v22 = vld [vmem:[%s2995_s10 + $0xa8] sm:$0xff] }
  0x95   : > { %v291_v46 = vmax.f32 %v289_v26, 0.0  ;;  %v773_v48 = vmul.f32 %v2289_v31, %v3020_v29  ;;  %v428_v49 = vmax.f32 %v426_v30, 0.0  ;;  %v889_v52 = vmul.f32 %v2295_v38, %v3020_v29  ;;  %v2330_v26 = vld [vmem:[%s2995_s10 + $0xb0] sm:$0xff] }
  0x96   : > { %v290_v45 = vadd.f32 %v3031_v39, %v278_v34  ;;  %v427_v47 = vadd.f32 %v425_v35, %v3031_v39  ;;  %v543_v50 = vadd.f32 %v541_v40, %v3031_v39  ;;  %v659_v51 = vadd.f32 %v657_v41, %v3031_v39 }
  0x97   : > { %v775_v55 = vadd.f32 %v773_v48, %v3031_v39  ;;  %v1005_v56 = vmul.f32 %v2301_v44, %v3020_v29  ;;  %v544_v58 = vmax.f32 %v542_v36, 0.0  ;;  %v891_v61 = vadd.f32 %v889_v52, %v3031_v39 }
  0x98   : > { %v292_v53 = vmax.f32 %v290_v45, 0.0  ;;  %v429_v54 = vmax.f32 %v427_v47, 0.0  ;;  %v545_v59 = vmax.f32 %v543_v50, 0.0  ;;  %v661_v60 = vmax.f32 %v659_v51, 0.0  ;;  %v2336_v45 = vld [vmem:[%s2995_s10 + $0xc0] sm:$0xff]  ;;  %v2342_v50 = vld [vmem:[%s2995_s10 + $0xd0] sm:$0xff] }
  0x99   : > { %v660_v1 = vmax.f32 %v658_v37, 0.0  ;;  %v777_v2 = vmax.f32 %v775_v55, 0.0  ;;  %v893_v4 = vmax.f32 %v891_v61, 0.0  ;;  %v1007_v5 = vadd.f32 %v1005_v56, %v3031_v39  ;;  %v2343_v51 = vld [vmem:[%s2995_s10 + $0xd8] sm:$0xff] }
  0x9a   : > { %v2540_v63 = vpack.c.bf16 %v292_v53, %v291_v46  ;;  %v2544_v0 = vpack.c.bf16 %v429_v54, %v428_v49  ;;  %v1121_v6 = vmul.f32 %v2307_v57, %v3020_v29  ;;  %v2548_v9 = vpack.c.bf16 %v545_v59, %v544_v58 }
  0x9b   : > { %v2552_v10 = vpack.c.bf16 %v661_v60, %v660_v1  ;;  %v776_v11 = vmax.f32 %v774_v42, 0.0  ;;  %v892_v17 = vmax.f32 %v890_v43, 0.0  ;;  %v1237_v20 = vmul.f32 %v2313_v3, %v3020_v29  ;;  %v2337_v42 = vld [vmem:[%s2995_s10 + $0xc8] sm:$0xff] }
  0x9c   : > { %2541 = vmatprep.subr.bf16.mxu0 %v2540_v63  ;;  %2545 = vmatprep.subr.bf16.mxu1 %v2544_v0  ;;  %v1123_v19 = vadd.f32 %v1121_v6, %v3031_v39  ;;  %v1122_v24 = vadd.f32 %v1120_v33, %v3003_v14  ;;  %v1352_v25 = vmul.f32 %v2318_v8, %v3005_v15  ;;  %v1009_v28 = vmax.f32 %v1007_v5, 0.0  ;;  %v2349_v60 = vld [vmem:[%s2995_s10 + $0xe8] sm:$0xff]  ;;  %v2354_v5 = vld [vmem:[%s2995_s10 + $0xf0] sm:$0xff] }
  0x9d   : > { %2543 = vmatpush3.bf16.msra.mxu0 %v2540_v63  ;;  %2547 = vmatpush3.bf16.msra.mxu1 %v2544_v0  ;;  %v2556_v23 = vpack.c.bf16 %v777_v2, %v776_v11  ;;  %v2560_v27 = vpack.c.bf16 %v893_v4, %v892_v17  ;;  %v1239_v30 = vadd.f32 %v1237_v20, %v3031_v39  ;;  %v1008_v37 = vmax.f32 %v1006_v18, 0.0  ;;  %v2355_v63 = vld [vmem:[%s2995_s10 + $0xf8] sm:$0xff]  ;;  %v2348_v4 = vld [vmem:[%s2995_s10 + $0xe0] sm:$0xff] }
  0x9e   : > { %2549 = vmatprep.subr.bf16.mxu0 %v2548_v9  ;;  %2553 = vmatprep.subr.bf16.mxu1 %v2552_v10  ;;  %v1353_v31 = vmul.f32 %v2319_v13, %v3020_v29  ;;  %v1125_v34 = vmax.f32 %v1123_v19, 0.0  ;;  %v1238_v33 = vadd.f32 %v1236_v12, %v3003_v14  ;;  %v1468_v35 = vmul.f32 %v2324_v21, %v3005_v15 }
  0x9f   : > { %v1469_v36 = vmul.f32 %v2325_v22, %v3020_v29  ;;  %v1354_v38 = vadd.f32 %v1352_v25, %v3003_v14  ;;  %v1584_v41 = vmul.f32 %v2330_v26, %v3005_v15  ;;  %v1124_v43 = vmax.f32 %v1122_v24, 0.0 }
  0xa0   : > { %2433 = vmatmul.mubr.msk.f32.vlgmr.msra.gmra.mrb[0].mxu0 %vm303_vm0, %v3058_v16  ;;  %2440 = vmatmul.mubr.msk.f32.vlgmr.msra.gmra.mrb[0].mxu1 %vm303_vm0, %v3058_v16  ;;  %v1355_v40 = vadd.f32 %v1353_v31, %v3031_v39  ;;  %v1585_v44 = vmul.f32 %v2331_v32, %v3020_v29  ;;  %v2564_v46 = vpack.c.bf16 %v1009_v28, %v1008_v37  ;;  %v1241_v47 = vmax.f32 %v1239_v30, 0.0 }
  0xa1   : > { %2551 = vmatpush3.bf16.msra.mxu0 %v2548_v9  ;;  %2555 = vmatpush3.bf16.msra.mxu1 %v2552_v10  ;;  %v1471_v49 = vadd.f32 %v1469_v36, %v3031_v39  ;;  %v2568_v52 = vpack.c.bf16 %v1125_v34, %v1124_v43  ;;  %v1240_v53 = vmax.f32 %v1238_v33, 0.0  ;;  %v1701_v55 = vmul.f32 %v2337_v42, %v3020_v29  ;;  %v3170_v43 = vpop.permute.xlu1 %300 }
  0xa2   : > { %2557 = vmatprep.subr.bf16.mxu0 %v2556_v23  ;;  %2561 = vmatprep.subr.bf16.mxu1 %v2560_v27  ;;  %v1357_v48 = vmax.f32 %v1355_v40, 0.0  ;;  %v1587_v54 = vadd.f32 %v1585_v44, %v3031_v39  ;;  %v1356_v56 = vmax.f32 %v1354_v38, 0.0  ;;  %v1470_v57 = vadd.f32 %v1468_v35, %v3003_v14  ;;  %v3166_v35 = vpop.permute.xlu0 %295 }
  0xa3   : > { %2446 = vmatprep.mubr.msk.f32.mxu0 %vm303_vm0, %v2984_v7  ;;  %2453 = vmatprep.mubr.msk.f32.mxu1 %vm303_vm0, %v2984_v7  ;;  %v1586_v58 = vadd.f32 %v1584_v41, %v3003_v14  ;;  %v1700_v59 = vmul.f32 %v2336_v45, %v3005_v15  ;;  %v1816_v61 = vmul.f32 %v2342_v50, %v3005_v15  ;;  %v1473_v2 = vmax.f32 %v1471_v49, 0.0 }
  0xa4   : > { %2447 = vmatmul.mubr.msk.f32.vlgmr.msra.gmra.mrb[2].mxu0 %vm303_vm0, %v3058_v16  ;;  %2454 = vmatmul.mubr.msk.f32.vlgmr.msra.gmra.mrb[2].mxu1 %vm303_vm0, %v3058_v16  ;;  %v1817_v62 = vmul.f32 %v2343_v51, %v3020_v29  ;;  %v2572_v0 = vpack.c.bf16 %v1241_v47, %v1240_v53  ;;  %v2576_v1 = vpack.c.bf16 %v1357_v48, %v1356_v56  ;;  %v1589_v3 = vmax.f32 %v1587_v54, 0.0 }
  0xa5   : > { %2559 = vmatpush3.bf16.msra.mxu0 %v2556_v23  ;;  %2563 = vmatpush3.bf16.msra.mxu1 %v2560_v27  ;;  %v1703_v6 = vadd.f32 %v1701_v55, %v3031_v39  ;;  %v1933_v9 = vmul.f32 %v2349_v60, %v3020_v29  ;;  %v1472_v10 = vmax.f32 %v1470_v57, 0.0  ;;  %v1588_v11 = vmax.f32 %v1586_v58, 0.0 }
  0xa6   : > { %2565 = vmatprep.subr.bf16.mxu0 %v2564_v46  ;;  %2569 = vmatprep.subr.bf16.mxu1 %v2568_v52  ;;  %v1819_v8 = vadd.f32 %v1817_v62, %v3031_v39  ;;  %v1702_v12 = vadd.f32 %v1700_v59, %v3003_v14  ;;  %v2049_v13 = vmul.f32 %v2355_v63, %v3020_v29 }
  0xa7   : > { %2460 = vmatprep.mubr.msk.f32.mxu0 %vm303_vm0, %v2984_v7  ;;  %2467 = vmatprep.mubr.msk.f32.mxu1 %vm303_vm0, %v2984_v7  ;;  %v1818_v17 = vadd.f32 %v1816_v61, %v3003_v14  ;;  %v1932_v18 = vmul.f32 %v2348_v4, %v3005_v15  ;;  %v2048_v19 = vmul.f32 %v2354_v5, %v3005_v15  ;;  %v1705_v29 = vmax.f32 %v1703_v6, 0.0 }
  0xa8   : > { %2461 = vmatmul.mubr.msk.f32.vlgmr.msra.gmra.mrb[4].mxu0 %vm303_vm0, %v3058_v16  ;;  %2468 = vmatmul.mubr.msk.f32.vlgmr.msra.gmra.mrb[4].mxu1 %vm303_vm0, %v3058_v16  ;;  %v2580_v20 = vpack.c.bf16 %v1473_v2, %v1472_v10  ;;  %v2584_v21 = vpack.c.bf16 %v1589_v3, %v1588_v11  ;;  %v1821_v22 = vmax.f32 %v1819_v8, 0.0  ;;  %v1935_v23 = vadd.f32 %v1933_v9, %v3031_v39 }
  0xa9   : > { %2567 = vmatpush3.bf16.msra.mxu0 %v2564_v46  ;;  %2571 = vmatpush3.bf16.msra.mxu1 %v2568_v52  ;;  %v2051_v15 = vadd.f32 %v2049_v13, %v3031_v39  ;;  %v1704_v24 = vmax.f32 %v1702_v12, 0.0  ;;  %v1820_v25 = vmax.f32 %v1818_v17, 0.0  ;;  %v1934_v26 = vadd.f32 %v1932_v18, %v3003_v14 }
  0xaa   : > { %2573 = vmatprep.subr.bf16.mxu0 %v2572_v0  ;;  %2577 = vmatprep.subr.bf16.mxu1 %v2576_v1  ;;  %v2050_v27 = vadd.f32 %v2048_v19, %v3003_v14  ;;  %v1937_v30 = vmax.f32 %v1935_v23, 0.0 }
  0xab   : > { %2474 = vmatprep.mubr.msk.f32.mxu0 %vm303_vm0, %v2984_v7  ;;  %2481 = vmatprep.mubr.msk.f32.mxu1 %vm303_vm0, %v2984_v7  ;;  %v2588_v39 = vpack.c.bf16 %v1705_v29, %v1704_v24  ;;  %v2592_v28 = vpack.c.bf16 %v1821_v22, %v1820_v25  ;;  %v2053_v31 = vmax.f32 %v2051_v15, 0.0  ;;  %v1936_v14 = vmax.f32 %v1934_v26, 0.0 }
  0xac   : > { %2475 = vmatmul.mubr.msk.f32.vlgmr.msra.gmra.mrb[6].mxu0 %vm303_vm0, %v3058_v16  ;;  %2482 = vmatmul.mubr.msk.f32.vlgmr.msra.gmra.mrb[6].mxu1 %vm303_vm0, %v3058_v16  ;;  %v2052_v32 = vmax.f32 %v2050_v27, 0.0 }
  0xad   : > { %2575 = vmatpush3.bf16.msra.mxu0 %v2572_v0  ;;  %2579 = vmatpush3.bf16.msra.mxu1 %v2576_v1  ;;  %v2596_v34 = vpack.c.bf16 %v1937_v30, %v1936_v14 }
  0xae   : > { %2581 = vmatprep.subr.bf16.mxu0 %v2580_v20  ;;  %2585 = vmatprep.subr.bf16.mxu1 %v2584_v21  ;;  %v2600_v33 = vpack.c.bf16 %v2053_v31, %v2052_v32 }
  0xaf   : > { %2488 = vmatprep.mubr.msk.f32.mxu0 %vm303_vm0, %v2984_v7  ;;  %2495 = vmatprep.mubr.msk.f32.mxu1 %vm303_vm0, %v2984_v7 }
  0xb0   : > { %2489 = vmatmul.mubr.msk.f32.vlgmr.msra.gmra.mrb[8].mxu0 %vm303_vm0, %v3058_v16  ;;  %2496 = vmatmul.mubr.msk.f32.vlgmr.msra.gmra.mrb[8].mxu1 %vm303_vm0, %v3058_v16 }
  0xb1   : > { %2583 = vmatpush3.bf16.msra.mxu0 %v2580_v20  ;;  %2587 = vmatpush3.bf16.msra.mxu1 %v2584_v21 }
  0xb2   : > { %2589 = vmatprep.subr.bf16.mxu0 %v2588_v39  ;;  %2593 = vmatprep.subr.bf16.mxu1 %v2592_v28 }
  0xb3   : > { %2502 = vmatprep.mubr.msk.f32.mxu0 %vm303_vm0, %v2984_v7  ;;  %2509 = vmatprep.mubr.msk.f32.mxu1 %vm303_vm0, %v2984_v7 }
  0xb4   : > { %2503 = vmatmul.mubr.msk.f32.vlgmr.msra.gmra.mrb[10].mxu0 %vm303_vm0, %v3058_v16  ;;  %2510 = vmatmul.mubr.msk.f32.vlgmr.msra.gmra.mrb[10].mxu1 %vm303_vm0, %v3058_v16 }
  0xb5   : > { %2591 = vmatpush3.bf16.msra.mxu0 %v2588_v39  ;;  %2595 = vmatpush3.bf16.msra.mxu1 %v2592_v28 }
  0xb6   : > { %2597 = vmatprep.subr.bf16.mxu0 %v2596_v34  ;;  %2601 = vmatprep.subr.bf16.mxu1 %v2600_v33 }
  0xb7   : > { %2516 = vmatprep.mubr.msk.f32.mxu0 %vm303_vm0, %v2984_v7  ;;  %2523 = vmatprep.mubr.msk.f32.mxu1 %vm303_vm0, %v2984_v7 }
  0xb8   : > { %2517 = vmatmul.mubr.msk.f32.vlgmr.msra.gmra.mrb[12].mxu0 %vm303_vm0, %v3058_v16  ;;  %2524 = vmatmul.mubr.msk.f32.vlgmr.msra.gmra.mrb[12].mxu1 %vm303_vm0, %v3058_v16 }
  0xb9   : > { %2599 = vmatpush3.bf16.msra.mxu0 %v2596_v34  ;;  %2603 = vmatpush3.bf16.msra.mxu1 %v2600_v33 }
  0xba   : > { %2530 = vmatprep.mubr.msk.f32.mxu0 %vm303_vm0, %v2984_v7  ;;  %2537 = vmatprep.mubr.msk.f32.mxu1 %vm303_vm0, %v2984_v7 }
  0xbc   : > { %2531 = vmatmul.mubr.msk.f32.vlgmr.msra.gmra.mrb[14].mxu0 %vm303_vm0, %v3058_v16  ;;  %2538 = vmatmul.mubr.msk.f32.vlgmr.msra.gmra.mrb[14].mxu1 %vm303_vm0, %v3058_v16 }
 0x173   : > { %v2434_v36 = vpop.f32.mrb[0].mxu0  ;;  %v2441_v37 = vpop.f32.mrb[0].mxu1 }
 0x174   : > { %v376_v38 = vpop.f32.mrb[1].mxu0  ;;  %v496_v40 = vpop.f32.mrb[1].mxu1  ;;  %v382_v47 = vadd.f32 %v2434_v36, %v3170_v43  ;;  %v502_v16 = vadd.f32 %v2441_v37, %v3170_v43 }
 0x175   : > { %v377_v41 = vadd.f32 %v376_v38, %v3166_v35  ;;  %v497_v42 = vadd.f32 %v496_v40, %v3166_v35 }
 0x177   : > { %v386_v44 = vrot.slane %v377_v41, 4  ;;  %v506_v7 = vrot.slane %v497_v42, 4  ;;  %v2448_v45 = vpop.f32.mrb[2].mxu0  ;;  %v2455_v46 = vpop.f32.mrb[2].mxu1 }
 0x178   : > { %v612_v48 = vpop.f32.mrb[3].mxu0  ;;  %v728_v49 = vpop.f32.mrb[3].mxu1  ;;  %v618_v60 = vadd.f32 %v2448_v45, %v3170_v43  ;;  %v734_v61 = vadd.f32 %v2455_v46, %v3170_v43 }
 0x179   : > { %v388_v50 = vmax.f32 %v377_v41, %v386_v44  ;;  %v508_v51 = vmax.f32 %v497_v42, %v506_v7  ;;  %v613_v52 = vadd.f32 %v612_v48, %v3166_v35  ;;  %v729_v53 = vadd.f32 %v728_v49, %v3166_v35 }
 0x17b   : > { %v389_v54 = vmax.f32 %v388_v50, %v382_v47  ;;  %v509_v55 = vmax.f32 %v508_v51, %v502_v16  ;;  %v622_v56 = vrot.slane %v613_v52, 4  ;;  %v738_v57 = vrot.slane %v729_v53, 4  ;;  %v2462_v58 = vpop.f32.mrb[4].mxu0  ;;  %v2469_v59 = vpop.f32.mrb[4].mxu1 }
 0x17c   : > { %v3179_v62 = vadd.f32 %v2462_v58, %v3170_v43  ;;  %v3182_v63 = vadd.f32 %v2469_v59, %v3170_v43  ;;  %v844_v0 = vpop.f32.mrb[5].mxu0  ;;  %v960_v1 = vpop.f32.mrb[5].mxu1 }
 0x17d   : > { %v390_v2 = vsub.f32 %v377_v41, %v389_v54  ;;  %v394_v3 = vrot.slane %v389_v54, 4  ;;  %v399_v4 = vsub.f32 %v382_v47, %v389_v54  ;;  %v510_v5 = vsub.f32 %v497_v42, %v509_v55 }
 0x17e   : > { %v514_v6 = vrot.slane %v509_v55, 4  ;;  %v519_v8 = vsub.f32 %v502_v16, %v509_v55  ;;  %v624_v9 = vmax.f32 %v613_v52, %v622_v56  ;;  %v740_v10 = vmax.f32 %v729_v53, %v738_v57 }
 0x17f   : > { %v391_v11 = vmul.f32 1.442695, %v390_v2  ;;  %v396_v12 = vsub.f32 %v377_v41, %v394_v3  ;;  %v400_v13 = vmul.f32 1.442695, %v399_v4  ;;  %v511_v17 = vmul.f32 1.442695, %v510_v5 }
 0x180   : > { %v516_v18 = vsub.f32 %v497_v42, %v514_v6  ;;  %v520_v19 = vmul.f32 1.442695, %v519_v8  ;;  %v625_v20 = vmax.f32 %v624_v9, %v618_v60  ;;  %v741_v21 = vmax.f32 %v740_v10, %v734_v61  ;;  %v2476_v29 = vpop.f32.mrb[6].mxu0  ;;  %v2483_v22 = vpop.f32.mrb[6].mxu1 }
 0x181   : > { %2666 = vpow2.f32 %v391_v11  ;;  %v397_v23 = vmul.f32 1.442695, %v396_v12  ;;  %v3185_v15 = vadd.f32 %v844_v0, %v3166_v35  ;;  %v3188_v24 = vadd.f32 %v960_v1, %v3166_v35  ;;  %v1076_v25 = vpop.f32.mrb[7].mxu0  ;;  %v1192_v26 = vpop.f32.mrb[7].mxu1 }
 0x182   : > { %2668 = vpow2.f32 %v400_v13  ;;  %v517_v27 = vmul.f32 1.442695, %v516_v18  ;;  %v626_v39 = vsub.f32 %v613_v52, %v625_v20  ;;  %v630_v28 = vrot.slane %v625_v20, 4 }
 0x183   : > { %2670 = vpow2.f32 %v397_v23  ;;  %v635_v30 = vsub.f32 %v618_v60, %v625_v20  ;;  %v742_v31 = vsub.f32 %v729_v53, %v741_v21  ;;  %v746_v14 = vrot.slane %v741_v21, 4  ;;  %v2490_v32 = vpop.f32.mrb[8].mxu0  ;;  %v2497_v34 = vpop.f32.mrb[8].mxu1 }
 0x184   : > { %2672 = vpow2.f32 %v511_v17  ;;  %v627_v33 = vmul.f32 1.442695, %v626_v39  ;;  %v632_v36 = vsub.f32 %v613_v52, %v630_v28  ;;  %v751_v37 = vsub.f32 %v734_v61, %v741_v21  ;;  %v1308_v38 = vpop.f32.mrb[9].mxu0  ;;  %v3190_v40 = vpop.f32.mrb[9].mxu1 }
 0x185   : > { %2674 = vpow2.f32 %v517_v27  ;;  %v636_v41 = vmul.f32 1.442695, %v635_v30  ;;  %v743_v42 = vmul.f32 1.442695, %v742_v31  ;;  %v748_v44 = vsub.f32 %v729_v53, %v746_v14 }
 0x186   : > { %2676 = vpow2.f32 %v520_v19  ;;  %v633_v7 = vmul.f32 1.442695, %v632_v36  ;;  %v752_v45 = vmul.f32 1.442695, %v751_v37  ;;  %v854_v46 = vrot.slane %v3185_v15, 4 }
 0x187   : > { %2678 = vpow2.f32 %v627_v33  ;;  %v749_v47 = vmul.f32 1.442695, %v748_v44  ;;  %v970_v16 = vrot.slane %v3188_v24, 4  ;;  %v3195_v48 = vadd.f32 %v2476_v29, %v3170_v43  ;;  %v3197_v49 = vpop.f32.mrb[10].mxu0  ;;  %v3199_v50 = vpop.f32.mrb[10].mxu1 }
 0x188   : > { %2680 = vpow2.f32 %v633_v7  ;;  %v856_v51 = vmax.f32 %v3185_v15, %v854_v46  ;;  %v3203_v52 = vadd.f32 %v2483_v22, %v3170_v43  ;;  %v3206_v53 = vadd.f32 %v1076_v25, %v3166_v35  ;;  %v3208_v54 = vpop.f32.mrb[11].mxu0  ;;  %v3210_v55 = vpop.f32.mrb[11].mxu1 }
 0x189   : > { %2682 = vpow2.f32 %v636_v41  ;;  %v972_v56 = vmax.f32 %v3188_v24, %v970_v16  ;;  %v3214_v57 = vadd.f32 %v1192_v26, %v3166_v35  ;;  %v3217_v58 = vadd.f32 %v2490_v32, %v3170_v43 }
 0x18a   : > { %2684 = vpow2.f32 %v743_v42  ;;  %v857_v59 = vmax.f32 %v856_v51, %v3179_v62  ;;  %v1086_v60 = vrot.slane %v3206_v53, 4  ;;  %v3222_v61 = vadd.f32 %v2497_v34, %v3170_v43 }
 0x18b   : > { %v3224_v0 = vpop.eup %2666  ;;  %2686 = vpow2.f32 %v749_v47  ;;  %v973_v1 = vmax.f32 %v972_v56, %v3182_v63  ;;  %v1202_v2 = vrot.slane %v3214_v57, 4  ;;  %v3229_v3 = vadd.f32 %v1308_v38, %v3166_v35  ;;  %v3231_v4 = vpop.f32.mrb[12].mxu0 }
 0x18c   : > { %v3233_v5 = vpop.f32.mrb[12].mxu1  ;;  %v3235_v6 = vpop.eup %2668  ;;  %2688 = vpow2.f32 %v752_v45  ;;  %v858_v8 = vsub.f32 %v3185_v15, %v857_v59  ;;  %v862_v9 = vrot.slane %v857_v59, 4  ;;  %v867_v10 = vsub.f32 %v3179_v62, %v857_v59 }
 0x18d   : > { %v3239_v11 = vpop.f32.mrb[13].mxu0  ;;  %v3241_v12 = vpop.f32.mrb[13].mxu1  ;;  %v974_v17 = vsub.f32 %v3188_v24, %v973_v1  ;;  %v978_v18 = vrot.slane %v973_v1, 4  ;;  %v983_v19 = vsub.f32 %v3182_v63, %v973_v1  ;;  %v1088_v20 = vmax.f32 %v3206_v53, %v1086_v60 }
 0x18e   : > { %v3243_v13 = vpop.eup %2670  ;;  %v859_v22 = vmul.f32 1.442695, %v858_v8  ;;  %v864_v62 = vsub.f32 %v3185_v15, %v862_v9  ;;  %v868_v23 = vmul.f32 1.442695, %v867_v10  ;;  %v1204_v60 = vmax.f32 %v3214_v57, %v1202_v2 }
 0x18f   : > { %v3248_v21 = vpop.eup %2672  ;;  %v403_v29 = vrot.slane %v3243_v13, 4  ;;  %v975_v26 = vmul.f32 1.442695, %v974_v17  ;;  %v980_v27 = vsub.f32 %v3188_v24, %v978_v18  ;;  %v984_v39 = vmul.f32 1.442695, %v983_v19  ;;  %v3256_v30 = vpop.f32.mrb[14].mxu0 }
 0x190   : > { %v3252_v25 = vpop.eup %2674  ;;  %v1089_v28 = vmax.f32 %v1088_v20, %v3195_v48  ;;  %v3258_v63 = vpop.f32.mrb[14].mxu1  ;;  %2690 = vpow2.f32 %v859_v22  ;;  %v865_v15 = vmul.f32 1.442695, %v864_v62  ;;  %v1318_v9 = vrot.slane %v3229_v3, 4 }
 0x191   : > { %v3260_v31 = vpop.eup %2676  ;;  %v405_v14 = vadd.f32 %v3224_v0, %v403_v29  ;;  %v523_v32 = vrot.slane %v3252_v25, 4  ;;  %v3264_v34 = vpop.f32.mrb[15].mxu0  ;;  %2692 = vpow2.f32 %v868_v23  ;;  %v981_v36 = vmul.f32 1.442695, %v980_v27 }
 0x192   : > { %v3266_v33 = vpop.f32.mrb[15].mxu1  ;;  %v3268_v24 = vpop.eup %2678  ;;  %v1090_v37 = vsub.f32 %v3206_v53, %v1089_v28  ;;  %v1094_v38 = vrot.slane %v1089_v28, 4  ;;  %2694 = vpow2.f32 %v865_v15  ;;  %v1099_v7 = vsub.f32 %v3195_v48, %v1089_v28 }
 0x193   : > { %v3271_v41 = vpop.eup %2680  ;;  %v406_v42 = vadd.f32 %v3235_v6, %v405_v14  ;;  %v525_v44 = vadd.f32 %v3248_v21, %v523_v32  ;;  %2696 = vpow2.f32 %v975_v26  ;;  %v1205_v17 = vmax.f32 %v1204_v60, %v3203_v52 }
 0x194   : > { %v3276_v45 = vpop.eup %2682  ;;  %v639_v46 = vrot.slane %v3271_v41, 4  ;;  %v1091_v47 = vmul.f32 1.442695, %v1090_v37  ;;  %v1096_v16 = vsub.f32 %v3206_v53, %v1094_v38  ;;  %v1100_v59 = vmul.f32 1.442695, %v1099_v7 }
 0x195   : > { %v3280_v51 = vpop.eup %2684  ;;  %2698 = vrcp.f32 %v406_v42  ;;  %v526_v56 = vadd.f32 %v3260_v31, %v525_v44  ;;  %v3294_v18 = vadd.f32 %v3190_v40, %v3166_v35  ;;  %v1320_v19 = vmax.f32 %v3229_v3, %v1318_v9 }
 0x196   : > { %v3284_v1 = vpop.eup %2686  ;;  %v641_v48 = vadd.f32 %v3268_v24, %v639_v46  ;;  %2700 = vpow2.f32 %v981_v36  ;;  %v1097_v8 = vmul.f32 1.442695, %v1096_v16  ;;  %v3301_v20 = vadd.f32 %v3197_v49, %v3170_v43 }
 0x197   : > { %v3288_v10 = vpop.eup %2688  ;;  %2702 = vrcp.f32 %v526_v56  ;;  %v755_v53 = vrot.slane %v3284_v1, 4  ;;  %v1206_v22 = vsub.f32 %v3214_v57, %v1205_v17  ;;  %v1210_v62 = vrot.slane %v1205_v17, 4 }
 0x198   : > { %v642_v2 = vadd.f32 %v3276_v45, %v641_v48  ;;  %2704 = vpow2.f32 %v984_v39  ;;  %v1215_v40 = vsub.f32 %v3203_v52, %v1205_v17  ;;  %v1321_v23 = vmax.f32 %v1320_v19, %v3217_v58 }
 0x199   : > { %v757_v29 = vadd.f32 %v3280_v51, %v755_v53  ;;  %2706 = vpow2.f32 %v1091_v47  ;;  %v1434_v26 = vrot.slane %v3294_v18, 4  ;;  %v1207_v39 = vmul.f32 1.442695, %v1206_v22 }
 0x19a   : > { %2708 = vrcp.f32 %v642_v2  ;;  %v3308_v27 = vpop.eup %2690  ;;  %v1212_v28 = vsub.f32 %v3214_v57, %v1210_v62  ;;  %v1216_v32 = vmul.f32 1.442695, %v1215_v40  ;;  %v1322_v52 = vsub.f32 %v3229_v3, %v1321_v23 }
 0x19b   : > { %v758_v49 = vadd.f32 %v3288_v10, %v757_v29  ;;  %2710 = vpow2.f32 %v1097_v8  ;;  %v3316_v14 = vpop.eup %2692  ;;  %v1326_v15 = vrot.slane %v1321_v23, 4  ;;  %v1331_v38 = vsub.f32 %v3217_v58, %v1321_v23 }
 0x19c   : > { %2712 = vpow2.f32 %v1100_v59  ;;  %v3319_v36 = vpop.eup %2694  ;;  %v1213_v37 = vmul.f32 1.442695, %v1212_v28  ;;  %v1436_v42 = vmax.f32 %v3294_v18, %v1434_v26  ;;  %v1323_v57 = vmul.f32 1.442695, %v1322_v52 }
 0x19d   : > { %2714 = vrcp.f32 %v758_v49  ;;  %v3323_v44 = vpop.eup %2696  ;;  %v871_v7 = vrot.slane %v3319_v36, 4  ;;  %v1328_v46 = vsub.f32 %v3229_v3, %v1326_v15  ;;  %v1332_v16 = vmul.f32 1.442695, %v1331_v38 }
 0x19e   : > { %2716 = vpow2.f32 %v1207_v39  ;;  %v1437_v56 = vmax.f32 %v1436_v42, %v3222_v61  ;;  %v3330_v59 = vadd.f32 %v3199_v50, %v3170_v43  ;;  %v1541_v38 = vadd.f32 %v3208_v54, %v3166_v35 }
 0x19f   : > { %v2699_v47 = vpop.eup %2698  ;;  %2718 = vpow2.f32 %v1213_v37  ;;  %v873_v9 = vadd.f32 %v3308_v27, %v871_v7  ;;  %v1329_v17 = vmul.f32 1.442695, %v1328_v46 }
 0x1a0   : > { %v3332_v58 = vpop.eup %2700  ;;  %v408_v60 = vmul.f32 %v2699_v47, %v3224_v0  ;;  %v412_v48 = vrot.slane %v2699_v47, 4  ;;  %v418_v8 = vmul.f32 %v2699_v47, %v3235_v6  ;;  %2720 = vpow2.f32 %v1216_v32 }
 0x1a1   : > { %v2703_v3 = vpop.eup %2702  ;;  %v987_v53 = vrot.slane %v3332_v58, 4  ;;  %v1438_v2 = vsub.f32 %v3294_v18, %v1437_v56  ;;  %v874_v62 = vadd.f32 %v3316_v14, %v873_v9  ;;  %2722 = vpow2.f32 %v1323_v57 }
 0x1a2   : > { %v3339_v19 = vpop.eup %2704  ;;  %410 = vst.msk [vmem:[%s3342_s15] sm:$0xf] %vm409_vm1, %v408_v60  ;;  %v414_v50 = vmul.f32 %v3243_v13, %v412_v48  ;;  %2269 = vst.msk [vmem:[%s3342_s15 + $0x80] sm:$0xf] %vm409_vm1, %v418_v8  ;;  %v528_v0 = vmul.f32 %v2703_v3, %v3248_v21  ;;  %v531_v6 = vrot.slane %v2703_v3, 4  ;;  %v535_v29 = vmul.f32 %v2703_v3, %v3260_v31 }
 0x1a3   : > { %v3351_v22 = vpop.eup %2706  ;;  %v989_v40 = vadd.f32 %v3323_v44, %v987_v53  ;;  %v1439_v23 = vmul.f32 1.442695, %v1438_v2  ;;  %2724 = vpow2.f32 %v1329_v17  ;;  %v1442_v21 = vrot.slane %v1437_v56, 4 }
 0x1a4   : > { %v2709_v26 = vpop.eup %2708  ;;  %2268 = vst.msk [vmem:[%s3342_s15 + $0x3c] sm:$0xf0] %vm416_vm2, %v414_v50  ;;  %v533_v13 = vmul.f32 %v3252_v25, %v531_v6  ;;  %v1447_v31 = vsub.f32 %v3222_v61, %v1437_v56  ;;  %2726 = vrcp.f32 %v874_v62  ;;  %v3402_v56 = vadd.f32 %v3231_v4, %v3170_v43 }
 0x1a5   : > { %529 = vst.msk [vmem:[%s3342_s15 + $0x4] sm:$0xf] %vm409_vm1, %v528_v0  ;;  %2275 = vst.msk [vmem:[%s3342_s15 + $0x84] sm:$0xf] %vm409_vm1, %v535_v29  ;;  %v3363_v49 = vpop.eup %2710  ;;  %v644_v39 = vmul.f32 %v2709_v26, %v3268_v24  ;;  %v647_v28 = vrot.slane %v2709_v26, 4  ;;  %v651_v32 = vmul.f32 %v2709_v26, %v3276_v45  ;;  %v990_v25 = vadd.f32 %v3339_v19, %v989_v40 }
 0x1a6   : > { %v3367_v52 = vpop.eup %2712  ;;  %2274 = vst.msk [vmem:[%s3342_s15 + $0x40] sm:$0xf0] %vm416_vm2, %v533_v13  ;;  %v1103_v15 = vrot.slane %v3363_v49, 4  ;;  %2728 = vpow2.f32 %v1332_v16  ;;  %v1444_v61 = vsub.f32 %v3294_v18, %v1442_v21  ;;  %v1448_v45 = vmul.f32 1.442695, %v1447_v31 }
 0x1a7   : > { %v2715_v37 = vpop.eup %2714  ;;  %645 = vst.msk [vmem:[%s3342_s15 + $0x8] sm:$0xf] %vm409_vm1, %v644_v39  ;;  %v649_v24 = vmul.f32 %v3271_v41, %v647_v28  ;;  %2281 = vst.msk [vmem:[%s3342_s15 + $0x88] sm:$0xf] %vm409_vm1, %v651_v32  ;;  %2730 = vpow2.f32 %v1439_v23  ;;  %v1550_v16 = vrot.slane %v1541_v38, 4  ;;  %v3417_v4 = vadd.f32 %v3239_v11, %v3166_v35 }
 0x1a8   : > { %v3381_v42 = vpop.eup %2716  ;;  %v760_v7 = vmul.f32 %v2715_v37, %v3280_v51  ;;  %v763_v57 = vrot.slane %v2715_v37, 4  ;;  %v767_v18 = vmul.f32 %v2715_v37, %v3288_v10  ;;  %2732 = vrcp.f32 %v990_v25 }
 0x1a9   : > { %v3385_v46 = vpop.eup %2718  ;;  %2280 = vst.msk [vmem:[%s3342_s15 + $0x44] sm:$0xf0] %vm416_vm2, %v649_v24  ;;  %v1105_v41 = vadd.f32 %v3351_v22, %v1103_v15  ;;  %v1445_v47 = vmul.f32 1.442695, %v1444_v61  ;;  %2734 = vpow2.f32 %v1448_v45  ;;  %v3398_v10 = vadd.f32 %v3210_v55, %v3166_v35 }
 0x1aa   : > { %761 = vst.msk [vmem:[%s3342_s15 + $0xc] sm:$0xf] %vm409_vm1, %v760_v7  ;;  %v765_v54 = vmul.f32 %v3284_v1, %v763_v57  ;;  %2287 = vst.msk [vmem:[%s3342_s15 + $0x8c] sm:$0xf] %vm409_vm1, %v767_v18  ;;  %v1219_v51 = vrot.slane %v3385_v46, 4  ;;  %v3404_v60 = vpop.eup %2720  ;;  %v1552_v8 = vmax.f32 %v1541_v38, %v1550_v16  ;;  %v3409_v1 = vadd.f32 %v3233_v5, %v3170_v43 }
 0x1ab   : > { %v1106_v48 = vadd.f32 %v3367_v52, %v1105_v41  ;;  %2736 = vpow2.f32 %v1445_v47  ;;  %v1666_v55 = vrot.slane %v3398_v10, 4  ;;  %v3421_v3 = vadd.f32 %v3241_v12, %v3166_v35  ;;  %v3423_v53 = vpop.eup %2722 }
 0x1ac   : > { %2286 = vst.msk [vmem:[%s3342_s15 + $0x48] sm:$0xf0] %vm416_vm2, %v765_v54  ;;  %v1221_v9 = vadd.f32 %v3381_v42, %v1219_v51  ;;  %v1553_v5 = vmax.f32 %v1552_v8, %v3301_v20  ;;  %v3428_v17 = vadd.f32 %v3256_v30, %v3170_v43  ;;  %v3432_v2 = vadd.f32 %v3258_v63, %v3170_v43 }
 0x1ad   : > { %2738 = vrcp.f32 %v1106_v48  ;;  %v3434_v50 = vpop.eup %2724  ;;  %v1668_v12 = vmax.f32 %v3398_v10, %v1666_v55  ;;  %v1782_v0 = vrot.slane %v3417_v4, 4  ;;  %v1898_v6 = vrot.slane %v3421_v3, 4 }
 0x1ae   : > { %v1222_v11 = vadd.f32 %v3404_v60, %v1221_v9  ;;  %v2727_v29 = vpop.eup %2726  ;;  %v1335_v62 = vrot.slane %v3434_v50, 4  ;;  %v1554_v30 = vsub.f32 %v1541_v38, %v1553_v5  ;;  %v1558_v40 = vrot.slane %v1553_v5, 4 }
 0x1af   : > { %v1563_v43 = vsub.f32 %v3301_v20, %v1553_v5  ;;  %v876_v23 = vmul.f32 %v2727_v29, %v3308_v27  ;;  %v879_v26 = vrot.slane %v2727_v29, 4  ;;  %v883_v13 = vmul.f32 %v2727_v29, %v3316_v14 }
 0x1b0   : > { %v3442_v63 = vpop.eup %2728  ;;  %2740 = vrcp.f32 %v1222_v11  ;;  %v1337_v31 = vadd.f32 %v3423_v53, %v1335_v62  ;;  %v1555_v39 = vmul.f32 1.442695, %v1554_v30  ;;  %v1560_v28 = vsub.f32 %v1541_v38, %v1558_v40 }
 0x1b1   : > { %v3446_v21 = vpop.eup %2730  ;;  %v1564_v32 = vmul.f32 1.442695, %v1563_v43  ;;  %877 = vst.msk [vmem:[%s3342_s15 + $0x10] sm:$0xf] %vm409_vm1, %v876_v23  ;;  %v881_v20 = vmul.f32 %v3319_v36, %v879_v26  ;;  %2293 = vst.msk [vmem:[%s3342_s15 + $0x90] sm:$0xf] %vm409_vm1, %v883_v13  ;;  %v1669_v27 = vmax.f32 %v1668_v12, %v3330_v59  ;;  %v1784_v14 = vmax.f32 %v3417_v4, %v1782_v0 }
 0x1b2   : > { %v2733_v25 = vpop.eup %2732  ;;  %v1900_v15 = vmax.f32 %v3421_v3, %v1898_v6  ;;  %v1338_v38 = vadd.f32 %v3442_v63, %v1337_v31  ;;  %2742 = vpow2.f32 %v1555_v39  ;;  %v1561_v36 = vmul.f32 1.442695, %v1560_v28 }
 0x1b3   : > { %v3457_v61 = vpop.eup %2734  ;;  %v992_v37 = vmul.f32 %v2733_v25, %v3323_v44  ;;  %v995_v24 = vrot.slane %v2733_v25, 4  ;;  %v999_v45 = vmul.f32 %v2733_v25, %v3339_v19  ;;  %2292 = vst.msk [vmem:[%s3342_s15 + $0x4c] sm:$0xf0] %vm416_vm2, %v881_v20  ;;  %v1670_v7 = vsub.f32 %v3398_v10, %v1669_v27 }
 0x1b4   : > { %v1674_v57 = vrot.slane %v1669_v27, 4  ;;  %2744 = vrcp.f32 %v1338_v38  ;;  %v1679_v44 = vsub.f32 %v3330_v59, %v1669_v27  ;;  %v1785_v19 = vmax.f32 %v1784_v14, %v3402_v56 }
 0x1b5   : > { %v3465_v18 = vpop.eup %2736  ;;  %993 = vst.msk [vmem:[%s3342_s15 + $0x14] sm:$0xf] %vm409_vm1, %v992_v37  ;;  %v997_v41 = vmul.f32 %v3332_v58, %v995_v24  ;;  %2299 = vst.msk [vmem:[%s3342_s15 + $0x94] sm:$0xf] %vm409_vm1, %v999_v45  ;;  %2746 = vpow2.f32 %v1561_v36  ;;  %v1671_v16 = vmul.f32 1.442695, %v1670_v7 }
 0x1b6   : > { %v1451_v47 = vrot.slane %v3465_v18, 4  ;;  %v1676_v54 = vsub.f32 %v3398_v10, %v1674_v57  ;;  %2748 = vpow2.f32 %v1564_v32  ;;  %v1680_v58 = vmul.f32 1.442695, %v1679_v44 }
 0x1b7   : > { %v2739_v51 = vpop.eup %2738  ;;  %2298 = vst.msk [vmem:[%s3342_s15 + $0x50] sm:$0xf0] %vm416_vm2, %v997_v41  ;;  %v1786_v48 = vsub.f32 %v3417_v4, %v1785_v19  ;;  %v1790_v8 = vrot.slane %v1785_v19, 4  ;;  %2750 = vpow2.f32 %v1671_v16 }
 0x1b8   : > { %v1108_v59 = vmul.f32 %v2739_v51, %v3351_v22  ;;  %v1111_v9 = vrot.slane %v2739_v51, 4  ;;  %v1115_v55 = vmul.f32 %v2739_v51, %v3367_v52  ;;  %v1453_v5 = vadd.f32 %v3446_v21, %v1451_v47 }
 0x1b9   : > { %v1677_v10 = vmul.f32 1.442695, %v1676_v54  ;;  %v1787_v11 = vmul.f32 1.442695, %v1786_v48  ;;  %v1792_v12 = vsub.f32 %v3417_v4, %v1790_v8  ;;  %2752 = vpow2.f32 %v1680_v58 }
 0x1ba   : > { %v2741_v0 = vpop.eup %2740  ;;  %1109 = vst.msk [vmem:[%s3342_s15 + $0x18] sm:$0xf] %vm409_vm1, %v1108_v59  ;;  %v1113_v6 = vmul.f32 %v3363_v49, %v1111_v9  ;;  %2305 = vst.msk [vmem:[%s3342_s15 + $0x98] sm:$0xf] %vm409_vm1, %v1115_v55  ;;  %v1454_v22 = vadd.f32 %v3457_v61, %v1453_v5  ;;  %v1795_v52 = vsub.f32 %v3402_v56, %v1785_v19 }
 0x1bb   : > { %v1224_v29 = vmul.f32 %v2741_v0, %v3381_v42  ;;  %v1227_v62 = vrot.slane %v2741_v0, 4  ;;  %v1231_v30 = vmul.f32 %v2741_v0, %v3404_v60  ;;  %2754 = vpow2.f32 %v1677_v10 }
 0x1bc   : > { %2304 = vst.msk [vmem:[%s3342_s15 + $0x54] sm:$0xf0] %vm416_vm2, %v1113_v6  ;;  %2756 = vrcp.f32 %v1454_v22  ;;  %v1793_v4 = vmul.f32 1.442695, %v1792_v12  ;;  %v1901_v49 = vmax.f32 %v1900_v15, %v3409_v1  ;;  %v1796_v56 = vmul.f32 1.442695, %v1795_v52  ;;  %v3506_v43 = vpop.eup %2742 }
 0x1bd   : > { %1225 = vst.msk [vmem:[%s3342_s15 + $0x1c] sm:$0xf] %vm409_vm1, %v1224_v29  ;;  %v1229_v40 = vmul.f32 %v3385_v46, %v1227_v62  ;;  %2311 = vst.msk [vmem:[%s3342_s15 + $0x9c] sm:$0xf] %vm409_vm1, %v1231_v30  ;;  %v2005_v42 = vadd.f32 %v3264_v34, %v3166_v35  ;;  %v3504_v60 = vadd.f32 %v3266_v33, %v3166_v35 }
 0x1be   : > { %2758 = vpow2.f32 %v1793_v4  ;;  %v1902_v23 = vsub.f32 %v3421_v3, %v1901_v49  ;;  %v1906_v26 = vrot.slane %v1901_v49, 4  ;;  %v1911_v13 = vsub.f32 %v3409_v1, %v1901_v49  ;;  %v2745_v46 = vpop.eup %2744 }
 0x1bf   : > { %2310 = vst.msk [vmem:[%s3342_s15 + $0x58] sm:$0xf0] %vm416_vm2, %v1229_v40  ;;  %2760 = vpow2.f32 %v1787_v11  ;;  %v2014_v31 = vrot.slane %v2005_v42, 4  ;;  %v2130_v34 = vrot.slane %v3504_v60, 4  ;;  %v3513_v39 = vpop.eup %2746  ;;  %v1340_v35 = vmul.f32 %v2745_v46, %v3423_v53 }
 0x1c0   : > { %v1343_v33 = vrot.slane %v2745_v46, 4  ;;  %v1347_v28 = vmul.f32 %v2745_v46, %v3442_v63  ;;  %v1903_v32 = vmul.f32 1.442695, %v1902_v23  ;;  %v3517_v25 = vpop.eup %2748  ;;  %v1567_v1 = vrot.slane %v3513_v39, 4 }
 0x1c1   : > { %v1908_v20 = vsub.f32 %v3421_v3, %v1906_v26  ;;  %v2016_v27 = vmax.f32 %v2005_v42, %v2014_v31  ;;  %1341 = vst.msk [vmem:[%s3342_s15 + $0x20] sm:$0xf] %vm409_vm1, %v1340_v35  ;;  %2762 = vpow2.f32 %v1796_v56  ;;  %v2132_v53 = vmax.f32 %v3504_v60, %v2130_v34  ;;  %v3527_v15 = vpop.eup %2750 }
 0x1c2   : > { %v1345_v14 = vmul.f32 %v3434_v50, %v1343_v33  ;;  %2317 = vst.msk [vmem:[%s3342_s15 + $0xa0] sm:$0xf] %vm409_vm1, %v1347_v28  ;;  %v1569_v63 = vadd.f32 %v3506_v43, %v1567_v1  ;;  %2764 = vpow2.f32 %v1903_v32  ;;  %v1912_v3 = vmul.f32 1.442695, %v1911_v13 }
 0x1c3   : > { %v1909_v37 = vmul.f32 1.442695, %v1908_v20  ;;  %v2017_v24 = vmax.f32 %v2016_v27, %v3428_v17  ;;  %v3531_v45 = vpop.eup %2752  ;;  %v2133_v50 = vmax.f32 %v2132_v53, %v3432_v2 }
 0x1c4   : > { %2316 = vst.msk [vmem:[%s3342_s15 + $0x5c] sm:$0xf0] %vm416_vm2, %v1345_v14  ;;  %v1570_v36 = vadd.f32 %v3517_v25, %v1569_v63 }
 0x1c5   : > { %v3536_v38 = vpop.eup %2754  ;;  %2766 = vpow2.f32 %v1909_v37  ;;  %v2018_v7 = vsub.f32 %v2005_v42, %v2017_v24  ;;  %v2022_v57 = vrot.slane %v2017_v24, 4  ;;  %v2027_v19 = vsub.f32 %v3428_v17, %v2017_v24 }
 0x1c6   : > { %v2757_v41 = vpop.eup %2756  ;;  %v1683_v44 = vrot.slane %v3536_v38, 4  ;;  %v2134_v47 = vsub.f32 %v3504_v60, %v2133_v50  ;;  %v2138_v16 = vrot.slane %v2133_v50, 4  ;;  %2768 = vrcp.f32 %v1570_v36 }
 0x1c7   : > { %v1456_v54 = vmul.f32 %v2757_v41, %v3446_v21  ;;  %v1459_v51 = vrot.slane %v2757_v41, 4  ;;  %v1463_v58 = vmul.f32 %v2757_v41, %v3457_v61  ;;  %v2019_v59 = vmul.f32 1.442695, %v2018_v7 }
 0x1c8   : > { %v3544_v48 = vpop.eup %2758  ;;  %v1685_v8 = vadd.f32 %v3527_v15, %v1683_v44  ;;  %v2024_v9 = vsub.f32 %v2005_v42, %v2022_v57  ;;  %2770 = vpow2.f32 %v1912_v3  ;;  %v2140_v61 = vsub.f32 %v3504_v60, %v2138_v16 }
 0x1c9   : > { %v2761_v55 = vpop.eup %2760  ;;  %1457 = vst.msk [vmem:[%s3342_s15 + $0x24] sm:$0xf] %vm409_vm1, %v1456_v54  ;;  %v1461_v17 = vmul.f32 %v3465_v18, %v1459_v51  ;;  %2323 = vst.msk [vmem:[%s3342_s15 + $0xa4] sm:$0xf] %vm409_vm1, %v1463_v58  ;;  %v1799_v21 = vrot.slane %v3544_v48, 4  ;;  %v2143_v12 = vsub.f32 %v3432_v2, %v2133_v50  ;;  %2772 = vpow2.f32 %v2019_v59 }
 0x1ca   : > { %v1686_v5 = vadd.f32 %v3531_v45, %v1685_v8  ;;  %v2025_v10 = vmul.f32 1.442695, %v2024_v9  ;;  %v2028_v11 = vmul.f32 1.442695, %v2027_v19  ;;  %v2141_v18 = vmul.f32 1.442695, %v2140_v61 }
 0x1cb   : > { %2322 = vst.msk [vmem:[%s3342_s15 + $0x60] sm:$0xf0] %vm416_vm2, %v1461_v17  ;;  %v1801_v0 = vadd.f32 %v2761_v55, %v1799_v21  ;;  %v2763_v6 = vpop.eup %2762  ;;  %v2135_v52 = vmul.f32 1.442695, %v2134_v47  ;;  %v2144_v2 = vmul.f32 1.442695, %v2143_v12 }
 0x1cc   : > { %2774 = vrcp.f32 %v1686_v5  ;;  %v2765_v29 = vpop.eup %2764 }
 0x1cd   : > { %v1802_v22 = vadd.f32 %v2763_v6, %v1801_v0  ;;  %2776 = vpow2.f32 %v2025_v10 }
 0x1ce   : > { %2778 = vpow2.f32 %v2028_v11 }
 0x1cf   : > { %v2767_v62 = vpop.eup %2766  ;;  %2780 = vrcp.f32 %v1802_v22 }
 0x1d0   : > { %v1915_v30 = vrot.slane %v2767_v62, 4  ;;  %2782 = vpow2.f32 %v2141_v18  ;;  %v2769_v4 = vpop.eup %2768 }
 0x1d1   : > { %2784 = vpow2.f32 %v2135_v52  ;;  %v1572_v49 = vmul.f32 %v2769_v4, %v3506_v43  ;;  %v1575_v40 = vrot.slane %v2769_v4, 4  ;;  %v1579_v56 = vmul.f32 %v2769_v4, %v3517_v25 }
 0x1d2   : > { %v1917_v42 = vadd.f32 %v2765_v29, %v1915_v30  ;;  %v2771_v60 = vpop.eup %2770  ;;  %2786 = vpow2.f32 %v2144_v2 }
 0x1d3   : > { %1573 = vst.msk [vmem:[%s3342_s15 + $0x28] sm:$0xf] %vm409_vm1, %v1572_v49  ;;  %v1577_v23 = vmul.f32 %v3513_v39, %v1575_v40  ;;  %2329 = vst.msk [vmem:[%s3342_s15 + $0xa8] sm:$0xf] %vm409_vm1, %v1579_v56  ;;  %v2773_v13 = vpop.eup %2772 }
 0x1d4   : > { %v1918_v26 = vadd.f32 %v2771_v60, %v1917_v42 }
 0x1d5   : > { %2328 = vst.msk [vmem:[%s3342_s15 + $0x64] sm:$0xf0] %vm416_vm2, %v1577_v23 }
 0x1d6   : > { %v2775_v46 = vpop.eup %2774  ;;  %2788 = vrcp.f32 %v1918_v26 }
 0x1d7   : > { %v2777_v43 = vpop.eup %2776  ;;  %v1688_v31 = vmul.f32 %v2775_v46, %v3527_v15  ;;  %v1691_v34 = vrot.slane %v2775_v46, 4  ;;  %v1695_v35 = vmul.f32 %v2775_v46, %v3531_v45 }
 0x1d8   : > { %v2779_v33 = vpop.eup %2778  ;;  %v2031_v39 = vrot.slane %v2777_v43, 4 }
 0x1d9   : > { %v2781_v28 = vpop.eup %2780  ;;  %1689 = vst.msk [vmem:[%s3342_s15 + $0x2c] sm:$0xf] %vm409_vm1, %v1688_v31  ;;  %v1693_v32 = vmul.f32 %v3536_v38, %v1691_v34  ;;  %2335 = vst.msk [vmem:[%s3342_s15 + $0xac] sm:$0xf] %vm409_vm1, %v1695_v35 }
 0x1da   : > { %v2783_v25 = vpop.eup %2782  ;;  %v1804_v1 = vmul.f32 %v2781_v28, %v2761_v55  ;;  %v1807_v20 = vrot.slane %v2781_v28, 4  ;;  %v1811_v27 = vmul.f32 %v2781_v28, %v2763_v6  ;;  %v2033_v14 = vadd.f32 %v2773_v13, %v2031_v39 }
 0x1db   : > { %v2785_v53 = vpop.eup %2784  ;;  %2334 = vst.msk [vmem:[%s3342_s15 + $0x68] sm:$0xf0] %vm416_vm2, %v1693_v32  ;;  %v2147_v15 = vrot.slane %v2783_v25, 4 }
 0x1dc   : > { %1805 = vst.msk [vmem:[%s3342_s15 + $0x30] sm:$0xf] %vm409_vm1, %v1804_v1  ;;  %v1809_v63 = vmul.f32 %v3544_v48, %v1807_v20  ;;  %2341 = vst.msk [vmem:[%s3342_s15 + $0xb0] sm:$0xf] %vm409_vm1, %v1811_v27  ;;  %v2034_v37 = vadd.f32 %v2779_v33, %v2033_v14  ;;  %v2787_v45 = vpop.eup %2786 }
 0x1dd   : > { %v2149_v24 = vadd.f32 %v2785_v53, %v2147_v15 }
 0x1de   : > { %2340 = vst.msk [vmem:[%s3342_s15 + $0x6c] sm:$0xf0] %vm416_vm2, %v1809_v63  ;;  %2790 = vrcp.f32 %v2034_v37 }
 0x1df   : > { %v2150_v3 = vadd.f32 %v2787_v45, %v2149_v24 }
 0x1e0   : > { %v2789_v50 = vpop.eup %2788 }
 0x1e1   : > { %v1920_v38 = vmul.f32 %v2789_v50, %v2765_v29  ;;  %v1923_v36 = vrot.slane %v2789_v50, 4  ;;  %v1927_v7 = vmul.f32 %v2789_v50, %v2771_v60  ;;  %2792 = vrcp.f32 %v2150_v3 }
 0x1e3   : > { %1921 = vst.msk [vmem:[%s3342_s15 + $0x34] sm:$0xf] %vm409_vm1, %v1920_v38  ;;  %v1925_v57 = vmul.f32 %v2767_v62, %v1923_v36  ;;  %2347 = vst.msk [vmem:[%s3342_s15 + $0xb4] sm:$0xf] %vm409_vm1, %v1927_v7 }
 0x1e5   : > { %2346 = vst.msk [vmem:[%s3342_s15 + $0x70] sm:$0xf0] %vm416_vm2, %v1925_v57 }
 0x1e8   : > { %v2791_v41 = vpop.eup %2790 }
 0x1e9   : > { %v2036_v44 = vmul.f32 %v2791_v41, %v2773_v13  ;;  %v2039_v19 = vrot.slane %v2791_v41, 4  ;;  %v2043_v47 = vmul.f32 %v2791_v41, %v2779_v33 }
 0x1eb   : > { %v2793_v16 = vpop.eup %2792  ;;  %2037 = vst.msk [vmem:[%s3342_s15 + $0x38] sm:$0xf] %vm409_vm1, %v2036_v44  ;;  %v2041_v54 = vmul.f32 %v2777_v43, %v2039_v19  ;;  %2353 = vst.msk [vmem:[%s3342_s15 + $0xb8] sm:$0xf] %vm409_vm1, %v2043_v47 }
 0x1ec   : > { %v2152_v51 = vmul.f32 %v2793_v16, %v2785_v53  ;;  %v2155_v58 = vrot.slane %v2793_v16, 4  ;;  %v2159_v48 = vmul.f32 %v2793_v16, %v2787_v45 }
 0x1ed   : > { %2352 = vst.msk [vmem:[%s3342_s15 + $0x74] sm:$0xf0] %vm416_vm2, %v2041_v54 }
 0x1ee   : > { %2153 = vst.msk [vmem:[%s3342_s15 + $0x3c] sm:$0xf] %vm409_vm1, %v2152_v51  ;;  %v2157_v8 = vmul.f32 %v2783_v25, %v2155_v58  ;;  %2359 = vst.msk [vmem:[%s3342_s15 + $0xbc] sm:$0xf] %vm409_vm1, %v2159_v48 }
 0x1f0   : > { %2358 = vst.msk [vmem:[%s3342_s15 + $0x78] sm:$0xf0] %vm416_vm2, %v2157_v8 }
 0x1f1   : > { %2807 = shalt.err (!%p2804_p5)
}
 0x1f2   : > { %s2808_s10 = scalar_lea.hbm %s3600_s27, 3072  ;;  %s2812_s13 = scalar_lea.hbm %s3663_s5, 6144 }
 0x1f3   : > { %p2809_p6 = scmp.ne.s32.totalorder %s3600_s27, %s2808_s10  ;;  %p2813_p10 = scmp.lt.u32.totalorder %s3600_s27, %s3663_s5 }
 0x1f4   : > { %p2814_p11 = scmp.lt.u32.totalorder %s2812_s13, %s2808_s10  ;;  %p2816_p13 = scmp.lt.u32.totalorder %s2808_s10, %s3600_s27 }
 0x1f5   : > { %p2810_p7 = pnand %p2809_p6, %p2948_p4 }
 0x1f6   : > { %p2815_p12 = por %p2814_p11, %p2813_p10 }
 0x1f7   : > { %p2811_p9 = pneg %p2810_p7 }
 0x1f8   : > { %p2817_p0 = por %p2816_p13, %p2815_p12 }
 0x1fa   : > { %p2818_p1 = pnand %p2817_p0, %p2811_p9 }
 0x1fc   : > { %2821 = shalt.err (!%p2818_p1)
}
 0x1fd   : > { %s2876_s16 = smov 128   ;;  %s2877_s24 = smov 8  }
 0x1fe   : > { %2606 = dma.vmem_to_hbm [thread:$0]  (%p2948_p4), %s3606_s17, 3072, %s3600_s27, %s3612_s21, %s2876_s16, %s2876_s16, %s2877_s24  }
 0x1ff PF: > { %p2612_p2 = scmp.ge.s32.totalorder %s2872_s23, 2  ;;  %s2192_s25 = sand.u32 1, %s2852_s18  }
 0x200   : > { %s2193_s29 = scalar_lea.sflag [#allocation3], %s2192_s25 }
 0x201   : > { %p2609_p3 = pnand %p2612_p2, %p2955_p8 }
 0x203   : > { %2847 = dma.done.wait (!%p2609_p3), %s2193_s29, 3072  }
 0x204   : > { %2849 = vsyncadd (!%p2609_p3), %s2193_s29, 4294964224  ;;  %s18_s23 = sadd.s32 1, %s2872_s23   ;;  %s3666_s18 = smov %s2856_s19 }
 0x205   : > { %p15_p5 = scmp.ge.s32.totalorder %s18_s23, 4   ;;  %s3667_s19 = smov %s2860_s20 }
 0x206   : > { %s3668_s20 = smov %s2961_s6  ;;  %s3669_s21 = smov %s2868_s22 }
 0x207   : > { %s3670_s22 = smov %s3672_s26  ;;  %17 = sbr.rel (!%p15_p5) target bundleno = 4 (0x4), region = 92 }
 0x20e   :  { %2198 = vsyncpa [#allocation3], 1 }
 0x20f   :  { %2200 = vsyncpa [#allocation3 + $0x1], 1 }

// kernel: output_transition.2
= control target key start
LH: loop header
LB: loop body
LE: loop exit
PB: predicated region body
PF: predicated region fallthrough
CT: control target
= control target key end

     0   :  { %s12806_s18 = smov 0   ;;  %s12808_s19 = smov 0   ;;  %s16084_s0 = inlined_call_operand.vmem [shape: f32[2,5,18,18], index: 0, kind: input, shape index: {}]   ;;  %s16085_s1 = inlined_call_operand.vmem [shape: f32[64,45], index: 1, kind: input, shape index: {}]   ;;  %s16086_s2 = inlined_call_operand.vmem [shape: f32[4,16,64], index: 2, kind: input, shape index: {}]   ;;  %s16087_s3 = inlined_call_operand.vmem [shape: f32[16,1], index: 3, kind: input, shape index: {}]   ;;  %s16088_s4 = inlined_call_operand.vmem [shape: f32[2,16,16,64], index: 4, kind: output, shape index: {0}]   ;;  %s16089_s5 = inlined_call_operand.vmem [shape: f32[2,1,16,2], index: 5, kind: output, shape index: {1}]  }
   0x1   :  { %s12810_s20 = smov 0  }
   0x2 LB: > { %s28_s21 = sadd.s32 1, %s12766_s19  ;;  %p9939_p0 = scmp.ge.s32.totalorder %s12770_s20, 1  ;;  %s12770_s20 = sphi %s12810_s20, %s16_s20   ;;  %s12766_s19 = sphi %s12808_s19, %s16211_s19   ;;  %s12762_s18 = sphi %s12806_s18, %s16210_s18  }
   0x3   : > { %p30_p1 = scmp.ge.s32.totalorder %s28_s21, 2  ;;  %p206_p2 = scmp.lt.s32.totalorder %s12770_s20, 3 }
   0x5   : > { %s16213_s21 = smov (%p30_p1, %s28_s21), 0  ;;  %p207_p3 = pnand %p9939_p0, %p206_p2 }
   0x7   : > { %210 = sbr.rel (%p207_p3) target bundleno = 1188 (0x4a4), region = 36 }
   0xe   : > { %p248_p4 = scmp.lt.s32.totalorder %s12762_s18, 1  ;;  %vm321_vm0 = vcmask 1041409   ;;  %vm335_vm1 = vcmask 1046534   ;;  %vm338_vm2 = vcmask 1047559   ;;  %vm354_vm3 = vcmask 1045509   ;;  %s12772_s26 = smov 127  }
   0xf   : > { %vm324_vm4 = vcmask 1042434   ;;  %vm327_vm5 = vcmask 1043459   ;;  %vm330_vm6 = vcmask 1044484   ;;  %s12773_s27 = smov 126   ;;  %vm450_vm7 = vcmask 367616  }
  0x10   : > { %s16215_s18 = smov (!%p248_p4, %s12762_s18), 1  ;;  %vm438_vm8 = vcmask 1041408   ;;  %vm436_vm9 = vcmask 1044480   ;;  %vm440_vm10 = vcmask 1046528   ;;  %vm442_vm11 = vcmask 1043456  }
  0x11   : > { %s12412_s22 = smul.u32 120, %s16215_s18  ;;  %vm444_vm12 = vcmask 1040384   ;;  %vm446_vm13 = vcmask 1045504   ;;  %vm16102_vm14 = vcmask 1042432   ;;  %vm12774_vm15 = vmmov 1   ;;  %s10490_s14 = sshll.u32 %s16215_s18, 8 }
  0x12   : > { %s15738_s17 = scalar_lea.vmem %s16088_s4, %s10490_s14 }
  0x13   : > { %s12830_s25 = scalar_lea.vmem %s16084_s0, %s12412_s22  ;;  %s10491_s22 = sshll.u32 %s16215_s18, 4 }
  0x14   : > { %v296_v0 = vld [vmem:[%s12830_s25] sm:$0x1]  ;;  %v297_v1 = vld [vmem:[%s12830_s25 + $0x18] sm:$0x1]  ;;  %v298_v2 = vld [vmem:[%s12830_s25 + $0x30] sm:$0x1]  ;;  %s272_s28 = scalar_lea.vmem %s16089_s5, %s10491_s22 }
  0x15   : > { %v12836_v3 = vld [vmem:[%s12830_s25 + $0x48] sm:$0x1]  ;;  %v12839_v4 = vld [vmem:[%s12830_s25 + $0x60] sm:$0x1]  ;;  %v320_v5 = vrot.slane %v297_v1, 7  ;;  %v323_v6 = vrot.slane %v298_v2, 6 }
  0x16   : > { %v333_v7 = vrot.slane %v296_v0, 3  ;;  %v334_v8 = vrot.slane %v297_v1, 2  ;;  %v337_v9 = vrot.slane %v298_v2, 1  ;;  %v12842_v10 = vld [vmem:[%s12830_s25 + $0x1] sm:$0x1]  ;;  %v340_v11 = vrot.slane %v12839_v4, 7 }
  0x17   : > { %v12846_v12 = vld [vmem:[%s12830_s25 + $0x19] sm:$0x1]  ;;  %v12849_v13 = vld [vmem:[%s12830_s25 + $0x31] sm:$0x1]  ;;  %v322_v14 = vsel %vm321_vm0, %v320_v5, %v296_v0  ;;  %v12854_v16 = vld [vmem:[%s12830_s25 + $0x49] sm:$0x1] }
  0x18   : > { %v336_v15 = vsel %vm335_vm1, %v334_v8, %v333_v7  ;;  %v375_v17 = vrot.slane %v12842_v10, 4  ;;  %v12858_v18 = vsel %vm324_vm4, %v323_v6, %v322_v14  ;;  %v341_v20 = vsel %vm321_vm0, %v340_v11, %v12836_v3  ;;  %v12865_v23 = vld [vmem:[%s12830_s25 + $0x61] sm:$0x1]  ;;  %v12872_v31 = vld [vmem:[%s12830_s25 + $0x2] sm:$0x1] }
  0x19   : > { %v339_v19 = vsel %vm338_vm2, %v337_v9, %v336_v15  ;;  %v353_v21 = vrot.slane %v12836_v3, 3  ;;  %v376_v24 = vrot.slane %v12846_v12, 3  ;;  %v378_v25 = vrot.slane %v12849_v13, 2  ;;  %v12880_v36 = vld [vmem:[%s12830_s25 + $0x1a] sm:$0x1] }
  0x1a   : > { %v12441_v22 = vpack.i.bf16 %v339_v19, %v341_v20  ;;  %v380_v26 = vrot.slane %v12854_v16, 1  ;;  %v395_v27 = vrot.slane %v12865_v23, 3  ;;  %v348_v28 = vrot.slane %v296_v0, 6  ;;  %v12887_v41 = vld [vmem:[%s12830_s25 + $0x32] sm:$0x1] }
  0x1b   : > { %v349_v29 = vrot.slane %v297_v1, 5  ;;  %v351_v30 = vrot.slane %v298_v2, 4  ;;  %v377_v32 = vsel %vm354_vm3, %v376_v24, %v375_v17  ;;  %v356_v33 = vrot.slane %v12839_v4, 2  ;;  %v12890_v42 = vld [vmem:[%s12830_s25 + $0x4a] sm:$0x1] }
  0x1c   : > { %12442 = vrot.lane.b32.xlu0 %v12441_v22, %s12772_s26  ;;  %v388_v34 = vrot.slane %v12842_v10, 7  ;;  %v389_v35 = vrot.slane %v12846_v12, 6  ;;  %v379_v37 = vsel %vm335_vm1, %v378_v25, %v377_v32  ;;  %v391_v39 = vrot.slane %v12849_v13, 5  ;;  %v12896_v46 = vld [vmem:[%s12830_s25 + $0x62] sm:$0x1] }
  0x1d   : > { %v350_v38 = vsel %vm327_vm5, %v349_v29, %v348_v28  ;;  %v393_v40 = vrot.slane %v12854_v16, 4  ;;  %v381_v43 = vsel %vm338_vm2, %v380_v26, %v379_v37  ;;  %v414_v47 = vrot.slane %v12872_v31, 5  ;;  %v12908_v56 = vld [vmem:[%s12830_s25 + $0x1] sm:$0x1]  ;;  %v12917_v61 = vld [vmem:[%s12830_s25 + $0x19] sm:$0x1] }
  0x1e   : > { %v352_v44 = vsel %vm330_vm6, %v351_v30, %v350_v38  ;;  %v390_v45 = vsel %vm324_vm4, %v389_v35, %v388_v34  ;;  %v12446_v48 = vpack.i.bf16 %v381_v43, %v12865_v23  ;;  %v415_v51 = vrot.slane %v12880_v36, 4  ;;  %v12920_v62 = vld [vmem:[%s12830_s25 + $0x31] sm:$0x1]  ;;  %v12927_v5 = vld [vmem:[%s12830_s25 + $0x61] sm:$0x1] }
  0x1f   : > { %v355_v49 = vsel %vm354_vm3, %v353_v21, %v352_v44  ;;  %v392_v50 = vsel %vm327_vm5, %v391_v39, %v390_v45  ;;  %v417_v54 = vrot.slane %v12887_v41, 3  ;;  %v419_v55 = vrot.slane %v12890_v42, 2  ;;  %v12935_v11 = vld [vmem:[%s12830_s25 + $0x49] sm:$0x1]  ;;  %v12939_v15 = vld [vmem:[%s12830_s25 + $0x2] sm:$0x1] }
  0x20   : > { %v357_v52 = vsel %vm335_vm1, %v356_v33, %v355_v49  ;;  %v394_v53 = vsel %vm330_vm6, %v393_v40, %v392_v50  ;;  %12447 = vrot.lane.b32.xlu1 %v12446_v48, %s12772_s26  ;;  %v416_v58 = vsel %vm330_vm6, %v415_v51, %v414_v47  ;;  %v421_v59 = vrot.slane %v12896_v46, 1  ;;  %v12948_v22 = vld [vmem:[%s12830_s25 + $0x1a] sm:$0x1]  ;;  %v12955_v28 = vld [vmem:[%s12830_s25 + $0x32] sm:$0x1] }
  0x21   : > { %358 = vrot.lane.b32.xlu0 %v357_v52, %s12773_s27  ;;  %v396_v57 = vsel %vm354_vm3, %v395_v27, %v394_v53  ;;  %v426_v60 = vrot.slane %v12880_v36, 7  ;;  %v418_v63 = vsel %vm354_vm3, %v417_v54, %v416_v58  ;;  %v428_v0 = vrot.slane %v12887_v41, 6  ;;  %v12963_v34 = vld [vmem:[%s12830_s25 + $0x4a] sm:$0x1]  ;;  %v12968_v38 = vld [vmem:[%s12830_s25 + $0x62] sm:$0x1] }
  0x22   : > { %v430_v1 = vrot.slane %v12890_v42, 5  ;;  %v432_v2 = vrot.slane %v12896_v46, 4  ;;  %v420_v6 = vsel %vm335_vm1, %v419_v55, %v418_v63  ;;  %v965_v14 = vrot.slane %v12908_v56, 3  ;;  %v12976_v47 = vld [vmem:[%s12830_s25 + $0x3] sm:$0x1] }
  0x23   : > { %v427_v7 = vsel %vm321_vm0, %v426_v60, %v12872_v31  ;;  %v422_v8 = vsel %vm338_vm2, %v421_v59, %v420_v6  ;;  %v966_v19 = vrot.slane %v12917_v61, 2  ;;  %v968_v20 = vrot.slane %v12920_v62, 1  ;;  %v12979_v48 = vld [vmem:[%s12830_s25 + $0x1b] sm:$0x1]  ;;  %v12986_v53 = vld [vmem:[%s12830_s25 + $0x33] sm:$0x1] }
  0x24   : > { %v429_v9 = vsel %vm324_vm4, %v428_v0, %v427_v7  ;;  %397 = vrot.lane.b32.xlu1 %v396_v57, %s12773_s27  ;;  %v970_v21 = vrot.slane %v12927_v5, 7  ;;  %v978_v25 = vrot.slane %v12908_v56, 6  ;;  %v979_v26 = vrot.slane %v12917_v61, 5  ;;  %v12994_v59 = vld [vmem:[%s12830_s25 + $0x4b] sm:$0x1] }
  0x25   : > { %423 = vrot.lane.b32.xlu0 %v422_v8, %s12772_s26  ;;  %v431_v17 = vsel %vm327_vm5, %v430_v1, %v429_v9  ;;  %v981_v27 = vrot.slane %v12920_v62, 4  ;;  %v967_v29 = vsel %vm335_vm1, %v966_v19, %v965_v14  ;;  %v983_v32 = vrot.slane %v12935_v11, 3  ;;  %v12997_v60 = vld [vmem:[%s12830_s25 + $0x63] sm:$0x1] }
  0x26   : > { %v433_v24 = vsel %vm330_vm6, %v432_v2, %v431_v17  ;;  %v971_v30 = vsel %vm321_vm0, %v970_v21, %v12935_v11  ;;  %v985_v33 = vrot.slane %v12927_v5, 2  ;;  %v969_v35 = vsel %vm338_vm2, %v968_v20, %v967_v29  ;;  %v13020_v29 = vld [vmem:[%s12830_s25 + $0x1a] sm:$0x1] }
  0x27   : > { %v980_v37 = vsel %vm327_vm5, %v979_v26, %v978_v25  ;;  %v1004_v39 = vrot.slane %v12939_v15, 4  ;;  %v12451_v40 = vpack.i.bf16 %v969_v35, %v971_v30  ;;  %v1005_v44 = vrot.slane %v12948_v22, 3  ;;  %v13027_v35 = vld [vmem:[%s12830_s25 + $0x32] sm:$0x1] }
  0x28   : > { %434 = vrot.lane.b32.xlu1 %v433_v24, %s12773_s27  ;;  %v982_v43 = vsel %vm330_vm6, %v981_v27, %v980_v37  ;;  %v1007_v45 = vrot.slane %v12955_v28, 2  ;;  %v1009_v50 = vrot.slane %v12963_v34, 1  ;;  %v1017_v51 = vrot.slane %v12939_v15, 7  ;;  %v13017_v27 = vld [vmem:[%s12830_s25 + $0x2] sm:$0x1] }
  0x29   : > { %v984_v49 = vsel %vm354_vm3, %v983_v32, %v982_v43  ;;  %v1018_v52 = vrot.slane %v12948_v22, 6  ;;  %12452 = vrot.lane.b32.xlu0 %v12451_v40, %s12772_s26  ;;  %v1006_v55 = vsel %vm354_vm3, %v1005_v44, %v1004_v39  ;;  %v1020_v57 = vrot.slane %v12955_v28, 5  ;;  %v13030_v37 = vld [vmem:[%s12830_s25 + $0x62] sm:$0x1] }
  0x2a   : > { %v986_v54 = vsel %vm335_vm1, %v985_v33, %v984_v49  ;;  %v1022_v58 = vrot.slane %v12963_v34, 4  ;;  %v1008_v63 = vsel %vm335_vm1, %v1007_v45, %v1006_v55  ;;  %v1024_v1 = vrot.slane %v12968_v38, 3  ;;  %16117 = vst [vmem:[#allocation2_spill] sm:$0xff] %v13030_v37  ;;  %v13039_v45 = vld [vmem:[%s12830_s25 + $0x4a] sm:$0x1] }
  0x2b   : > { %v1019_v0 = vsel %vm324_vm4, %v1018_v52, %v1017_v51  ;;  %v1043_v2 = vrot.slane %v12976_v47, 5  ;;  %v1010_v6 = vsel %vm338_vm2, %v1009_v50, %v1008_v63  ;;  %v1044_v8 = vrot.slane %v12979_v48, 4  ;;  %v13044_v51 = vld [vmem:[%s12830_s25 + $0x3] sm:$0x1] }
  0x2c   : > { %987 = vrot.lane.b32.xlu1 %v986_v54, %s12773_s27  ;;  %v1021_v7 = vsel %vm327_vm5, %v1020_v57, %v1019_v0  ;;  %v1046_v9 = vrot.slane %v12986_v53, 3  ;;  %v12456_v14 = vpack.i.bf16 %v1010_v6, %v12968_v38  ;;  %v1048_v19 = vrot.slane %v12994_v59, 2  ;;  %v13059_v6 = vld [vmem:[%s12830_s25 + $0x33] sm:$0x1] }
  0x2d   : > { %v1023_v17 = vsel %vm330_vm6, %v1022_v58, %v1021_v7  ;;  %v1050_v20 = vrot.slane %v12997_v60, 1  ;;  %v1045_v24 = vsel %vm330_vm6, %v1044_v8, %v1043_v2  ;;  %v1055_v25 = vrot.slane %v12979_v48, 7  ;;  %v13051_v58 = vld [vmem:[%s12830_s25 + $0x1b] sm:$0x1]  ;;  %16119 = vst [vmem:[#allocation4_spill] sm:$0xff] %v13059_v6 }
  0x2e   : > { %v1025_v21 = vsel %vm354_vm3, %v1024_v1, %v1023_v17  ;;  %v1057_v26 = vrot.slane %v12986_v53, 6  ;;  %12457 = vrot.lane.b32.xlu0 %v12456_v14, %s12772_s26  ;;  %v1047_v30 = vsel %vm354_vm3, %v1046_v9, %v1045_v24  ;;  %v1059_v32 = vrot.slane %v12994_v59, 5  ;;  %16118 = vst [vmem:[#allocation3_spill] sm:$0xff] %v13051_v58  ;;  %v13062_v7 = vld [vmem:[%s12830_s25 + $0x4b] sm:$0x1] }
  0x2f   : > { %v1061_v33 = vrot.slane %v12997_v60, 4  ;;  %v1049_v39 = vsel %vm335_vm1, %v1048_v19, %v1047_v30  ;;  %v1056_v40 = vsel %vm321_vm0, %v1055_v25, %v12976_v47  ;;  %v1551_v49 = vrot.slane %v13017_v27, 3  ;;  %16120 = vst [vmem:[#allocation5_spill] sm:$0xff] %v13062_v7  ;;  %v13071_v19 = vld [vmem:[%s12830_s25 + $0x63] sm:$0x1] }
  0x30   : > { %1026 = vrot.lane.b32.xlu1 %v1025_v21, %s12773_s27  ;;  %v1051_v43 = vsel %vm338_vm2, %v1050_v20, %v1049_v39  ;;  %v1058_v44 = vsel %vm324_vm4, %v1057_v26, %v1056_v40  ;;  %v1552_v50 = vrot.slane %v13020_v29, 2  ;;  %v1554_v54 = vrot.slane %v13027_v35, 1  ;;  %v13076_v25 = vld [vmem:[%s12830_s25 + $0x4] sm:$0x1]  ;;  %v13079_v26 = vld [vmem:[%s12830_s25 + $0x1c] sm:$0x1] }
  0x31   : > { %v1060_v52 = vsel %vm327_vm5, %v1059_v32, %v1058_v44  ;;  %v1556_v55 = vrot.slane %v13030_v37, 7  ;;  %v1564_v57 = vrot.slane %v13017_v27, 6  ;;  %v1565_v1 = vrot.slane %v13020_v29, 5  ;;  %16121 = vst [vmem:[#allocation6_spill] sm:$0xff] %v13076_v25  ;;  %16122 = vst [vmem:[#allocation7_spill] sm:$0xff] %v13079_v26 }
  0x32   : > { %1052 = vrot.lane.b32.xlu0 %v1051_v43, %s12772_s26  ;;  %v1062_v63 = vsel %vm330_vm6, %v1061_v33, %v1060_v52  ;;  %v1553_v0 = vsel %vm335_vm1, %v1552_v50, %v1551_v49  ;;  %v1567_v2 = vrot.slane %v13027_v35, 4  ;;  %v1569_v14 = vrot.slane %v13039_v45, 3  ;;  %v13086_v40 = vld [vmem:[%s12830_s25 + $0x34] sm:$0x1]  ;;  %v13094_v52 = vld [vmem:[%s12830_s25 + $0x4c] sm:$0x1] }
  0x33   : > { %v1555_v8 = vsel %vm338_vm2, %v1554_v54, %v1553_v0  ;;  %v1557_v9 = vsel %vm321_vm0, %v1556_v55, %v13039_v45  ;;  %v1571_v17 = vrot.slane %v13030_v37, 2  ;;  %v1566_v21 = vsel %vm327_vm5, %v1565_v1, %v1564_v57  ;;  %16123 = vst [vmem:[#allocation8_spill] sm:$0xff] %v13086_v40  ;;  %16124 = vst [vmem:[#allocation9_spill] sm:$0xff] %v13094_v52  ;;  %v13101_v0 = vld [vmem:[%s12830_s25 + $0x64] sm:$0x1] }
  0x34   : > { %1063 = vrot.lane.b32.xlu1 %v1062_v63, %s12773_s27  ;;  %v12461_v20 = vpack.i.bf16 %v1555_v8, %v1557_v9  ;;  %v1590_v24 = vrot.slane %v13044_v51, 4  ;;  %v1568_v30 = vsel %vm330_vm6, %v1567_v2, %v1566_v21  ;;  %v1591_v32 = vrot.slane %v13051_v58, 3  ;;  %16125 = vst [vmem:[#allocation10_spill] sm:$0xff] %v13101_v0 }
  0x35   : > { %v1593_v33 = vrot.slane %v13059_v6, 2  ;;  %v1595_v39 = vrot.slane %v13062_v7, 1  ;;  %v1570_v43 = vsel %vm354_vm3, %v1569_v14, %v1568_v30  ;;  %v1603_v44 = vrot.slane %v13044_v51, 7 }
  0x36   : > { %12462 = vrot.lane.b32.xlu0 %v12461_v20, %s12772_s26  ;;  %v1604_v49 = vrot.slane %v13051_v58, 6  ;;  %v1606_v50 = vrot.slane %v13059_v6, 5  ;;  %v1572_v54 = vsel %vm335_vm1, %v1571_v17, %v1570_v43  ;;  %v1592_v55 = vsel %vm354_vm3, %v1591_v32, %v1590_v24  ;;  %v13117_v43 = vld [vmem:[%s12830_s25 + $0x3] sm:$0x1] }
  0x37   : > { %v1608_v57 = vrot.slane %v13062_v7, 4  ;;  %v1610_v63 = vrot.slane %v13071_v19, 3  ;;  %v1594_v1 = vsel %vm335_vm1, %v1593_v33, %v1592_v55  ;;  %v1629_v8 = vrot.slane %v13076_v25, 5  ;;  %16126 = vst [vmem:[#allocation11_spill] sm:$0xff] %v13117_v43  ;;  %v13127_v55 = vld [vmem:[%s12830_s25 + $0x33] sm:$0x1] }
  0x38   : > { %1573 = vrot.lane.b32.xlu1 %v1572_v54, %s12773_s27  ;;  %v1605_v2 = vsel %vm324_vm4, %v1604_v49, %v1603_v44  ;;  %v1630_v9 = vrot.slane %v13079_v26, 4  ;;  %v1596_v14 = vsel %vm338_vm2, %v1595_v39, %v1594_v1  ;;  %v1632_v20 = vrot.slane %v13086_v40, 3  ;;  %v13124_v54 = vld [vmem:[%s12830_s25 + $0x1b] sm:$0x1]  ;;  %v10057_v7 = vld [vmem:[%s12830_s25 + $0x1d] sm:$0x1] }
  0x39   : > { %v1607_v17 = vsel %vm327_vm5, %v1606_v50, %v1605_v2  ;;  %v1634_v21 = vrot.slane %v13094_v52, 2  ;;  %v12466_v24 = vpack.i.bf16 %v1596_v14, %v13071_v19  ;;  %v1636_v33 = vrot.slane %v13101_v0, 1  ;;  %v10050_v2 = vld [vmem:[%s12830_s25 + $0x63] sm:$0x1]  ;;  %v13139_v14 = vld [vmem:[%s12830_s25 + $0x4b] sm:$0x1] }
  0x3a   : > { %v1609_v30 = vsel %vm330_vm6, %v1608_v57, %v1607_v17  ;;  %v1631_v32 = vsel %vm330_vm6, %v1630_v9, %v1629_v8  ;;  %v1641_v49 = vrot.slane %v13079_v26, 7  ;;  %v1643_v50 = vrot.slane %v13086_v40, 6  ;;  %v10054_v40 = vld [vmem:[%s12830_s25 + $0x4c] sm:$0x1] }
  0x3b   : > { %v1611_v39 = vsel %vm354_vm3, %v1610_v63, %v1609_v30  ;;  %v1633_v44 = vsel %vm354_vm3, %v1632_v20, %v1631_v32  ;;  %12467 = vrot.lane.b32.xlu0 %v12466_v24, %s12772_s26  ;;  %v1645_v63 = vrot.slane %v13094_v52, 5  ;;  %v1647_v1 = vrot.slane %v13101_v0, 4  ;;  %v10051_v30 = vld [vmem:[%s12830_s25 + $0x4] sm:$0x1] }
  0x3c   : > { %1612 = vrot.lane.b32.xlu1 %v1611_v39, %s12773_s27  ;;  %v1635_v57 = vsel %vm335_vm1, %v1634_v21, %v1633_v44  ;;  %v1642_v9 = vsel %vm321_vm0, %v1641_v49, %v13076_v25  ;;  %v2137_v20 = vrot.slane %v13117_v43, 3  ;;  %v2138_v21 = vrot.slane %v13124_v54, 2  ;;  %v10052_v49 = vld [vmem:[%s12830_s25 + $0x1c] sm:$0x1]  ;;  %v10058_v25 = vld [vmem:[%s12830_s25 + $0x35] sm:$0x1] }
  0x3d   : > { %v1637_v8 = vsel %vm338_vm2, %v1636_v33, %v1635_v57  ;;  %v1644_v17 = vsel %vm324_vm4, %v1643_v50, %v1642_v9  ;;  %v2140_v24 = vrot.slane %v13127_v55, 1  ;;  %v2142_v39 = vrot.slane %v10050_v2, 7 }
  0x3e   : > { %v1646_v32 = vsel %vm327_vm5, %v1645_v63, %v1644_v17  ;;  %v2150_v33 = vrot.slane %v13117_v43, 6  ;;  %v2151_v44 = vrot.slane %v13124_v54, 5  ;;  %v2139_v57 = vsel %vm335_vm1, %v2138_v21, %v2137_v20  ;;  %v13156_v17 = vld [vmem:[%s12830_s25 + $0x34] sm:$0x1]  ;;  %v13165_v20 = vld [vmem:[%s12830_s25 + $0x64] sm:$0x1] }
  0x3f   : > { %1638 = vrot.lane.b32.xlu0 %v1637_v8, %s12772_s26  ;;  %v1648_v50 = vsel %vm330_vm6, %v1647_v1, %v1646_v32  ;;  %v2153_v9 = vrot.slane %v13127_v55, 4  ;;  %v2155_v63 = vrot.slane %v13139_v14, 3  ;;  %16127 = vst [vmem:[#allocation12_spill] sm:$0xff] %v13156_v17  ;;  %v2141_v0 = vsel %vm338_vm2, %v2140_v24, %v2139_v57  ;;  %v10056_v21 = vld [vmem:[%s12830_s25 + $0x5] sm:$0x1] }
  0x40   : > { %1649 = vrot.lane.b32.xlu1 %v1648_v50, %s12773_s27  ;;  %v2143_v8 = vsel %vm321_vm0, %v2142_v39, %v13139_v14  ;;  %v2152_v1 = vsel %vm327_vm5, %v2151_v44, %v2150_v33  ;;  %v2157_v32 = vrot.slane %v10050_v2, 2  ;;  %v2176_v26 = vrot.slane %v10051_v30, 4  ;;  %v10059_v39 = vld [vmem:[%s12830_s25 + $0x4d] sm:$0x1] }
  0x41   : > { %v12471_v52 = vpack.i.bf16 %v2141_v0, %v2143_v8  ;;  %v2154_v58 = vsel %vm330_vm6, %v2153_v9, %v2152_v1  ;;  %v2177_v6 = vrot.slane %v10052_v49, 3  ;;  %v2179_v24 = vrot.slane %v13156_v17, 2  ;;  %v10060_v8 = vld [vmem:[%s12830_s25 + $0x65] sm:$0x1] }
  0x42   : > { %v2156_v50 = vsel %vm354_vm3, %v2155_v63, %v2154_v58  ;;  %v2181_v57 = vrot.slane %v10054_v40, 1  ;;  %v2189_v33 = vrot.slane %v10051_v30, 7  ;;  %v2190_v44 = vrot.slane %v10052_v49, 6 }
  0x43   : > { %12472 = vrot.lane.b32.xlu0 %v12471_v52, %s12772_s26  ;;  %v2158_v2 = vsel %vm335_vm1, %v2157_v32, %v2156_v50  ;;  %v2192_v0 = vrot.slane %v13156_v17, 5  ;;  %v2178_v9 = vsel %vm354_vm3, %v2177_v6, %v2176_v26  ;;  %v2194_v58 = vrot.slane %v10054_v40, 4 }
  0x44   : > { %2159 = vrot.lane.b32.xlu1 %v2158_v2, %s12773_s27  ;;  %v2196_v63 = vrot.slane %v13165_v20, 3  ;;  %v2215_v1 = vrot.slane %v10056_v21, 5  ;;  %v2180_v37 = vsel %vm335_vm1, %v2179_v24, %v2178_v9  ;;  %v2191_v52 = vsel %vm324_vm4, %v2190_v44, %v2189_v33  ;;  %v13189_v33 = vld [vmem:[%s12830_s25 + $0x4] sm:$0x1]  ;;  %v13194_v9 = vld [vmem:[%s12830_s25 + $0x1c] sm:$0x1] }
  0x45   : > { %v2216_v32 = vrot.slane %v10057_v7, 4  ;;  %v2218_v30 = vrot.slane %v10058_v25, 3  ;;  %v2182_v49 = vsel %vm338_vm2, %v2181_v57, %v2180_v37  ;;  %v2193_v50 = vsel %vm327_vm5, %v2192_v0, %v2191_v52  ;;  %16128 = vst [vmem:[#allocation13_spill] sm:$0xff] %v13189_v33  ;;  %v13197_v52 = vld [vmem:[%s12830_s25 + $0x34] sm:$0x1] }
  0x46   : > { %v2220_v2 = vrot.slane %v10059_v39, 2  ;;  %v2222_v17 = vrot.slane %v10060_v8, 1  ;;  %v12476_v6 = vpack.i.bf16 %v2182_v49, %v13165_v20  ;;  %v2195_v26 = vsel %vm330_vm6, %v2194_v58, %v2193_v50 }
  0x47   : > { %v2217_v40 = vsel %vm330_vm6, %v2216_v32, %v2215_v1  ;;  %v2227_v24 = vrot.slane %v10057_v7, 7  ;;  %v2197_v44 = vsel %vm354_vm3, %v2196_v63, %v2195_v26  ;;  %v2229_v57 = vrot.slane %v10058_v25, 6  ;;  %v10084_v63 = vld [vmem:[%s12830_s25 + $0x64] sm:$0x1] }
  0x48   : > { %v2219_v37 = vsel %vm354_vm3, %v2218_v30, %v2217_v40  ;;  %v2231_v0 = vrot.slane %v10059_v39, 5  ;;  %12477 = vrot.lane.b32.xlu0 %v12476_v6, %s12772_s26  ;;  %2198 = vrot.lane.b32.xlu1 %v2197_v44, %s12773_s27  ;;  %v2233_v1 = vrot.slane %v10060_v8, 4  ;;  %v13207_v39 = vld [vmem:[%s12830_s25 + $0x4c] sm:$0x1]  ;;  %v10085_v30 = vld [vmem:[%s12830_s25 + $0x5] sm:$0x1] }
  0x49   : > { %v2221_v7 = vsel %vm335_vm1, %v2220_v2, %v2219_v37  ;;  %v2228_v58 = vsel %vm321_vm0, %v2227_v24, %v10056_v21  ;;  %v2723_v50 = vrot.slane %v13189_v33, 3  ;;  %v2724_v6 = vrot.slane %v13194_v9, 2  ;;  %v10086_v21 = vld [vmem:[%s12830_s25 + $0x1d] sm:$0x1]  ;;  %v10087_v24 = vld [vmem:[%s12830_s25 + $0x35] sm:$0x1] }
  0x4a   : > { %v2223_v32 = vsel %vm338_vm2, %v2222_v17, %v2221_v7  ;;  %v2230_v25 = vsel %vm324_vm4, %v2229_v57, %v2228_v58  ;;  %v2726_v2 = vrot.slane %v13197_v52, 1  ;;  %v2728_v26 = vrot.slane %v10084_v63, 7  ;;  %v10088_v7 = vld [vmem:[%s12830_s25 + $0x4d] sm:$0x1] }
  0x4b   : > { %v2232_v49 = vsel %vm327_vm5, %v2231_v0, %v2230_v25  ;;  %v2736_v17 = vrot.slane %v13189_v33, 6  ;;  %v2737_v40 = vrot.slane %v13194_v9, 5  ;;  %v2725_v44 = vsel %vm335_vm1, %v2724_v6, %v2723_v50 }
  0x4c   : > { %v2234_v8 = vsel %vm330_vm6, %v2233_v1, %v2232_v49  ;;  %2224 = vrot.lane.b32.xlu0 %v2223_v32, %s12772_s26  ;;  %v2739_v37 = vrot.slane %v13197_v52, 4  ;;  %v2741_v57 = vrot.slane %v13207_v39, 3  ;;  %v2743_v0 = vrot.slane %v10084_v63, 2 }
  0x4d   : > { %2235 = vrot.lane.b32.xlu1 %v2234_v8, %s12773_s27  ;;  %v2727_v58 = vsel %vm338_vm2, %v2726_v2, %v2725_v44  ;;  %v2729_v1 = vsel %vm321_vm0, %v2728_v26, %v13207_v39  ;;  %v2738_v25 = vsel %vm327_vm5, %v2737_v40, %v2736_v17  ;;  %v13231_v8 = vld [vmem:[%s12830_s25 + $0x65] sm:$0x1]  ;;  %v2762_v50 = vrot.slane %v10085_v30, 4 }
  0x4e   : > { %v12481_v49 = vpack.i.bf16 %v2727_v58, %v2729_v1  ;;  %v2740_v32 = vsel %vm330_vm6, %v2739_v37, %v2738_v25  ;;  %v2763_v6 = vrot.slane %v10086_v21, 3  ;;  %v2765_v33 = vrot.slane %v10087_v24, 2  ;;  %v10090_v37 = vld [vmem:[%s12830_s25 + $0x6] sm:$0x1]  ;;  %v10091_v25 = vld [vmem:[%s12830_s25 + $0x1e] sm:$0x1] }
  0x4f   : > { %v2742_v63 = vsel %vm354_vm3, %v2741_v57, %v2740_v32  ;;  %v2767_v43 = vrot.slane %v10088_v7, 1  ;;  %v2775_v2 = vrot.slane %v10085_v30, 7  ;;  %v2776_v40 = vrot.slane %v10086_v21, 6  ;;  %v10092_v30 = vld [vmem:[%s12830_s25 + $0x36] sm:$0x1] }
  0x50   : > { %12482 = vrot.lane.b32.xlu0 %v12481_v49, %s12772_s26  ;;  %v2744_v26 = vsel %vm335_vm1, %v2743_v0, %v2742_v63  ;;  %v2764_v17 = vsel %vm354_vm3, %v2763_v6, %v2762_v50  ;;  %v2778_v44 = vrot.slane %v10087_v24, 5  ;;  %v2780_v1 = vrot.slane %v10088_v7, 4  ;;  %v10093_v21 = vld [vmem:[%s12830_s25 + $0x4e] sm:$0x1]  ;;  %v10094_v24 = vld [vmem:[%s12830_s25 + $0x66] sm:$0x1] }
  0x51   : > { %2745 = vrot.lane.b32.xlu1 %v2744_v26, %s12773_s27  ;;  %v2766_v58 = vsel %vm335_vm1, %v2765_v33, %v2764_v17  ;;  %v2782_v57 = vrot.slane %v13231_v8, 3  ;;  %v2777_v32 = vsel %vm324_vm4, %v2776_v40, %v2775_v2  ;;  %v405_v0 = vrot.slane %v12872_v31, 2 }
  0x52   : > { %v2768_v49 = vsel %vm338_vm2, %v2767_v43, %v2766_v58  ;;  %v406_v50 = vrot.slane %v12880_v36, 1  ;;  %v326_v6 = vrot.slane %v12836_v3, 5  ;;  %v367_v63 = vrot.slane %v12849_v13, 7 }
  0x53   : > { %v12486_v33 = vpack.i.bf16 %v2768_v49, %v13231_v8  ;;  %v2779_v7 = vsel %vm327_vm5, %v2778_v44, %v2777_v32  ;;  %v2801_v2 = vrot.slane %v10090_v37, 5  ;;  %v2802_v17 = vrot.slane %v10091_v25, 4 }
  0x54   : > { %v2781_v26 = vsel %vm330_vm6, %v2780_v1, %v2779_v7  ;;  %v13255_v43 = vsel %vm338_vm2, %v406_v50, %v405_v0  ;;  %v2804_v36 = vrot.slane %v10092_v30, 3  ;;  %v2806_v40 = vrot.slane %v10093_v21, 2 }
  0x55   : > { %12487 = vrot.lane.b32.xlu0 %v12486_v33, %s12772_s26  ;;  %v2783_v31 = vsel %vm354_vm3, %v2782_v57, %v2781_v26  ;;  %v2808_v3 = vrot.slane %v10094_v24, 1  ;;  %v2803_v13 = vsel %vm330_vm6, %v2802_v17, %v2801_v2  ;;  %v2813_v58 = vrot.slane %v10091_v25, 7 }
  0x56   : > { %2784 = vrot.lane.b32.xlu1 %v2783_v31, %s12773_s27  ;;  %v2815_v44 = vrot.slane %v10092_v30, 6  ;;  %v2817_v1 = vrot.slane %v10093_v21, 5  ;;  %v369_v49 = vrot.slane %v12854_v16, 6  ;;  %v2805_v32 = vsel %vm354_vm3, %v2804_v36, %v2803_v13  ;;  %v13291_v31 = vld [vmem:[%s12830_s25 + $0x35] sm:$0x1] }
  0x57   : > { %v2819_v0 = vrot.slane %v10094_v24, 4  ;;  %v13265_v57 = vsel %vm327_vm5, %v326_v6, %v12858_v18  ;;  %v371_v50 = vrot.slane %v12865_v23, 5  ;;  %v2807_v33 = vsel %vm335_vm1, %v2806_v40, %v2805_v32  ;;  %v13280_v23 = vld [vmem:[%s16085_s1] sm:$0xff]  ;;  %v13284_v6 = vld [vmem:[%s12830_s25 + $0x1d] sm:$0x1] }
  0x58   : > { %v2814_v25 = vsel %vm321_vm0, %v2813_v58, %v10090_v37  ;;  %v2809_v30 = vsel %vm338_vm2, %v2808_v3, %v2807_v33  ;;  %v368_v18 = vsel %vm321_vm0, %v367_v63, %v12846_v12  ;;  %v10114_v37 = vld [vmem:[%s12830_s25 + $0x5] sm:$0x1]  ;;  %v408_v2 = vrot.slane %v12890_v42, 7  ;;  %v13301_v3 = vld [vmem:[%s12830_s25 + $0x4d] sm:$0x1]  ;;  %10984 = vmatprep.mubr.msk.f32.mxu0 %vm450_vm7, %v13280_v23 }
  0x59   : > { %v2816_v21 = vsel %vm324_vm4, %v2815_v44, %v2814_v25  ;;  %2810 = vrot.lane.b32.xlu0 %v2809_v30, %s12772_s26  ;;  %v370_v26 = vsel %vm324_vm4, %v369_v49, %v368_v18  ;;  %v410_v17 = vrot.slane %v12896_v46, 6  ;;  %v10118_v12 = vld [vmem:[%s12830_s25 + $0x65] sm:$0x1]  ;;  %v958_v63 = vrot.slane %v12920_v62, 6  ;;  %v10120_v32 = vld [vmem:[%s12830_s25 + $0x1e] sm:$0x1] }
  0x5a   : > { %v2818_v24 = vsel %vm327_vm5, %v2817_v1, %v2816_v21  ;;  %v960_v36 = vrot.slane %v12935_v11, 5  ;;  %v13298_v40 = vsel %vm327_vm5, %v371_v50, %v370_v26  ;;  %v409_v13 = vsel %vm321_vm0, %v408_v2, %v12887_v41  ;;  %v10119_v11 = vld [vmem:[%s12830_s25 + $0x6] sm:$0x1]  ;;  %v10121_v25 = vld [vmem:[%s12830_s25 + $0x36] sm:$0x1] }
  0x5b   : > { %v2820_v7 = vsel %vm330_vm6, %v2819_v0, %v2818_v24  ;;  %v3309_v62 = vrot.slane %v10114_v37, 3  ;;  %v13311_v58 = vsel %vm324_vm4, %v410_v17, %v409_v13  ;;  %v3310_v44 = vrot.slane %v13284_v6, 2  ;;  %v13330_v46 = vld [vmem:[%s12830_s25 + $0x66] sm:$0x1] }
  0x5c   : > { %2821 = vrot.lane.b32.xlu1 %v2820_v7, %s12773_s27  ;;  %v3312_v1 = vrot.slane %v13291_v31, 1  ;;  %v3314_v49 = vrot.slane %v10118_v12, 7  ;;  %v3322_v0 = vrot.slane %v10114_v37, 6  ;;  %v3323_v50 = vrot.slane %v13284_v6, 5  ;;  %v10122_v7 = vld [vmem:[%s12830_s25 + $0x4e] sm:$0x1] }
  0x5d   : > { %v3325_v41 = vrot.slane %v13291_v31, 4  ;;  %v3327_v33 = vrot.slane %v13301_v3, 3  ;;  %v3311_v21 = vsel %vm335_vm1, %v3310_v44, %v3309_v62  ;;  %v3329_v18 = vrot.slane %v10118_v12, 2 }
  0x5e   : > { %v3315_v24 = vsel %vm321_vm0, %v3314_v49, %v13301_v3  ;;  %v1546_v26 = vrot.slane %v13039_v45, 5  ;;  %v3313_v37 = vsel %vm338_vm2, %v3312_v1, %v3311_v21  ;;  %v3324_v2 = vsel %vm327_vm5, %v3323_v50, %v3322_v0 }
  0x5f   : > { %v3348_v17 = vrot.slane %v10119_v11, 4  ;;  %v12491_v13 = vpack.i.bf16 %v3313_v37, %v3315_v24  ;;  %v3326_v42 = vsel %vm330_vm6, %v3325_v41, %v3324_v2  ;;  %v3349_v30 = vrot.slane %v10120_v32, 3  ;;  %v10124_v24 = vld [vmem:[%s12830_s25 + $0x7] sm:$0x1]  ;;  %v10126_v37 = vld [vmem:[%s12830_s25 + $0x37] sm:$0x1] }
  0x60   : > { %v3351_v62 = vrot.slane %v10121_v25, 2  ;;  %v3328_v44 = vsel %vm354_vm3, %v3327_v33, %v3326_v42  ;;  %v3353_v49 = vrot.slane %v10122_v7, 1  ;;  %v3361_v12 = vrot.slane %v10119_v11, 7  ;;  %v10127_v2 = vld [vmem:[%s12830_s25 + $0x4f] sm:$0x1] }
  0x61   : > { %v3362_v16 = vrot.slane %v10120_v32, 6  ;;  %12492 = vrot.lane.b32.xlu0 %v12491_v13, %s12772_s26  ;;  %v3330_v1 = vsel %vm335_vm1, %v3329_v18, %v3328_v44  ;;  %v3350_v0 = vsel %vm354_vm3, %v3349_v30, %v3348_v17  ;;  %v3364_v50 = vrot.slane %v10121_v25, 5 }
  0x62   : > { %v3366_v41 = vrot.slane %v10122_v7, 4  ;;  %3331 = vrot.lane.b32.xlu1 %v3330_v1, %s12773_s27  ;;  %v3352_v21 = vsel %vm335_vm1, %v3351_v62, %v3350_v0  ;;  %v3368_v11 = vrot.slane %v13330_v46, 3  ;;  %v16129_v32 = vrot.slane %v12917_v61, 7  ;;  %v10125_v7 = vld [vmem:[%s12830_s25 + $0x1f] sm:$0x1] }
  0x63   : > { %v3363_v42 = vsel %vm324_vm4, %v3362_v16, %v3361_v12  ;;  %v3354_v18 = vsel %vm338_vm2, %v3353_v49, %v3352_v21  ;;  %v1034_v61 = vrot.slane %v12976_v47, 2  ;;  %v1035_v49 = vrot.slane %v12979_v48, 1 }
  0x64   : > { %v957_v33 = vsel %vm321_vm0, %v16129_v32, %v12908_v56  ;;  %v3365_v25 = vsel %vm327_vm5, %v3364_v50, %v3363_v42  ;;  %v12496_v17 = vpack.i.bf16 %v3354_v18, %v13330_v46  ;;  %v10128_v56 = vld [vmem:[%s12830_s25 + $0x67] sm:$0x1]  ;;  %v2128_v12 = vrot.slane %v13124_v54, 7  ;;  %v10155_v18 = vld [vmem:[%s12830_s25 + $0x37] sm:$0x1] }
  0x65   : > { %v959_v30 = vsel %vm324_vm4, %v958_v63, %v957_v33  ;;  %v3367_v16 = vsel %vm330_vm6, %v3366_v41, %v3365_v25  ;;  %v3387_v63 = vrot.slane %v10124_v24, 5  ;;  %v3388_v1 = vrot.slane %v10125_v7, 4  ;;  %v16135_v54 = vld [vmem:[#allocation2_spill] sm:$0xff] }
  0x66   : > { %v13354_v13 = vsel %vm327_vm5, %v960_v36, %v959_v30  ;;  %v3369_v44 = vsel %vm354_vm3, %v3368_v11, %v3367_v16  ;;  %12497 = vrot.lane.b32.xlu0 %v12496_v17, %s12772_s26  ;;  %v3390_v0 = vrot.slane %v10126_v37, 3  ;;  %v3392_v36 = vrot.slane %v10127_v2, 2 }
  0x67   : > { %3370 = vrot.lane.b32.xlu1 %v3369_v44, %s12773_s27  ;;  %v13366_v50 = vsel %vm338_vm2, %v1035_v49, %v1034_v61  ;;  %v3394_v41 = vrot.slane %v10128_v56, 1  ;;  %v3399_v48 = vrot.slane %v10125_v7, 7  ;;  %v3389_v21 = vsel %vm330_vm6, %v3388_v1, %v3387_v63  ;;  %v10148_v7 = vld [vmem:[%s12830_s25 + $0x6] sm:$0x1]  ;;  %v13377_v61 = vld [vmem:[%s12830_s25 + $0x1e] sm:$0x1] }
  0x68   : > { %v3401_v42 = vrot.slane %v10126_v37, 6  ;;  %v3403_v11 = vrot.slane %v10127_v2, 5  ;;  %v3405_v32 = vrot.slane %v10128_v56, 4  ;;  %v3391_v25 = vsel %vm354_vm3, %v3390_v0, %v3389_v21  ;;  %v13380_v37 = vld [vmem:[%s12830_s25 + $0x36] sm:$0x1] }
  0x69   : > { %v3400_v30 = vsel %vm321_vm0, %v3399_v48, %v10124_v24  ;;  %v3393_v17 = vsel %vm335_vm1, %v3392_v36, %v3391_v25  ;;  %v329_v56 = vrot.slane %v12839_v4, 4  ;;  %v10152_v24 = vld [vmem:[%s12830_s25 + $0x66] sm:$0x1]  ;;  %v13393_v48 = vld [vmem:[%s12830_s25 + $0x4e] sm:$0x1]  ;;  %v3896_v21 = vrot.slane %v13377_v61, 2 }
  0x6a   : > { %v3402_v16 = vsel %vm324_vm4, %v3401_v42, %v3400_v30  ;;  %v3395_v44 = vsel %vm338_vm2, %v3394_v41, %v3393_v17  ;;  %v3895_v41 = vrot.slane %v10148_v7, 3  ;;  %v3898_v42 = vrot.slane %v13380_v37, 1  ;;  %v10156_v1 = vld [vmem:[%s12830_s25 + $0x4f] sm:$0x1] }
  0x6b   : > { %v3404_v49 = vsel %vm327_vm5, %v3403_v11, %v3402_v16  ;;  %3396 = vrot.lane.b32.xlu0 %v3395_v44, %s12772_s26  ;;  %v10153_v11 = vld [vmem:[%s12830_s25 + $0x7] sm:$0x1]  ;;  %v3900_v25 = vrot.slane %v10152_v24, 7  ;;  %v3908_v30 = vrot.slane %v10148_v7, 6  ;;  %v3909_v17 = vrot.slane %v13377_v61, 5 }
  0x6c   : > { %v3406_v36 = vsel %vm330_vm6, %v3405_v32, %v3404_v49  ;;  %v3911_v32 = vrot.slane %v13380_v37, 4  ;;  %v10154_v16 = vld [vmem:[%s12830_s25 + $0x1f] sm:$0x1]  ;;  %v13405_v44 = vsel %vm330_vm6, %v329_v56, %v13265_v57  ;;  %v3897_v49 = vsel %vm335_vm1, %v3896_v21, %v3895_v41  ;;  %v13418_v56 = vld [vmem:[%s12830_s25 + $0x67] sm:$0x1] }
  0x6d   : > { %3407 = vrot.lane.b32.xlu1 %v3406_v36, %s12773_s27  ;;  %v3913_v36 = vrot.slane %v13393_v48, 3  ;;  %v3915_v0 = vrot.slane %v10152_v24, 2  ;;  %v996_v63 = vrot.slane %v12955_v28, 7  ;;  %v3899_v7 = vsel %vm338_vm2, %v3898_v42, %v3897_v49  ;;  %v10158_v49 = vld [vmem:[%s12830_s25 + $0x8] sm:$0x1] }
  0x6e   : > { %v3901_v2 = vsel %vm321_vm0, %v3900_v25, %v13393_v48  ;;  %v3910_v62 = vsel %vm327_vm5, %v3909_v17, %v3908_v30  ;;  %v3934_v41 = vrot.slane %v10153_v11, 4  ;;  %v3935_v21 = vrot.slane %v10154_v16, 3 }
  0x6f   : > { %v12501_v4 = vpack.i.bf16 %v3899_v7, %v3901_v2  ;;  %v3912_v57 = vsel %vm330_vm6, %v3911_v32, %v3910_v62  ;;  %v3937_v33 = vrot.slane %v10155_v18, 2  ;;  %v3939_v28 = vrot.slane %v10156_v1, 1 }
  0x70   : > { %v3914_v24 = vsel %vm354_vm3, %v3913_v36, %v3912_v57  ;;  %v3947_v47 = vrot.slane %v10153_v11, 7  ;;  %v3936_v2 = vsel %vm354_vm3, %v3935_v21, %v3934_v41  ;;  %v3948_v62 = vrot.slane %v10154_v16, 6  ;;  %v10161_v57 = vld [vmem:[%s12830_s25 + $0x50] sm:$0x1] }
  0x71   : > { %12502 = vrot.lane.b32.xlu0 %v12501_v4, %s12772_s26  ;;  %v3916_v42 = vsel %vm335_vm1, %v3915_v0, %v3914_v24  ;;  %v3950_v25 = vrot.slane %v10155_v18, 5  ;;  %v3938_v30 = vsel %vm335_vm1, %v3937_v33, %v3936_v2  ;;  %v3952_v17 = vrot.slane %v10156_v1, 4  ;;  %v10159_v0 = vld [vmem:[%s12830_s25 + $0x20] sm:$0x1]  ;;  %v10160_v1 = vld [vmem:[%s12830_s25 + $0x38] sm:$0x1] }
  0x72   : > { %3917 = vrot.lane.b32.xlu1 %v3916_v42, %s12773_s27  ;;  %v3954_v32 = vrot.slane %v13418_v56, 3  ;;  %v16130_v11 = vrot.slane %v13020_v29, 7  ;;  %v3940_v16 = vsel %vm338_vm2, %v3939_v28, %v3938_v30  ;;  %v3949_v18 = vsel %vm324_vm4, %v3948_v62, %v3947_v47  ;;  %v10162_v24 = vld [vmem:[%s12830_s25 + $0x68] sm:$0x1] }
  0x73   : > { %v16131_v7 = vrot.slane %v13027_v35, 6  ;;  %v998_v41 = vrot.slane %v12963_v34, 6  ;;  %v12506_v29 = vpack.i.bf16 %v3940_v16, %v13418_v56  ;;  %v997_v47 = vsel %vm321_vm0, %v996_v63, %v12948_v22 }
  0x74   : > { %v1543_v4 = vsel %vm321_vm0, %v16130_v11, %v13017_v27  ;;  %v3951_v27 = vsel %vm327_vm5, %v3950_v25, %v3949_v18  ;;  %v1037_v35 = vrot.slane %v12994_v59, 7  ;;  %v3973_v42 = vrot.slane %v10158_v49, 5 }
  0x75   : > { %v1545_v33 = vsel %vm324_vm4, %v16131_v7, %v1543_v4  ;;  %v3953_v28 = vsel %vm330_vm6, %v3952_v17, %v3951_v27  ;;  %12507 = vrot.lane.b32.xlu0 %v12506_v29, %s12772_s26  ;;  %v3974_v2 = vrot.slane %v10159_v0, 4  ;;  %v3976_v62 = vrot.slane %v10160_v1, 3  ;;  %v13481_v27 = vld [vmem:[%s12830_s25 + $0x37] sm:$0x1] }
  0x76   : > { %v13447_v21 = vsel %vm327_vm5, %v1546_v26, %v1545_v33  ;;  %v3955_v34 = vsel %vm354_vm3, %v3954_v32, %v3953_v28  ;;  %v3978_v25 = vrot.slane %v10161_v57, 2  ;;  %v962_v26 = vrot.slane %v12927_v5, 4  ;;  %v10182_v33 = vld [vmem:[%s12830_s25 + $0x7] sm:$0x1] }
  0x77   : > { %v1039_v30 = vrot.slane %v12997_v60, 6  ;;  %3956 = vrot.lane.b32.xlu1 %v3955_v34, %s12773_s27  ;;  %v3980_v22 = vrot.slane %v10162_v24, 1  ;;  %v3975_v59 = vsel %vm330_vm6, %v3974_v2, %v3973_v42  ;;  %v3985_v63 = vrot.slane %v10159_v0, 7  ;;  %v13496_v42 = vld [vmem:[%s12830_s25 + $0x4f] sm:$0x1]  ;;  %v16137_v2 = vld [vmem:[#allocation6_spill] sm:$0xff] }
  0x78   : > { %v3987_v17 = vrot.slane %v10160_v1, 6  ;;  %v3989_v32 = vrot.slane %v10161_v57, 5  ;;  %v999_v11 = vsel %vm324_vm4, %v998_v41, %v997_v47  ;;  %v1038_v4 = vsel %vm321_vm0, %v1037_v35, %v12986_v53  ;;  %v13471_v1 = vld [vmem:[%s12830_s25 + $0x1f] sm:$0x1]  ;;  %v10187_v34 = vld [vmem:[%s12830_s25 + $0x8] sm:$0x1] }
  0x79   : > { %v3977_v5 = vsel %vm354_vm3, %v3976_v62, %v3975_v59  ;;  %v3991_v16 = vrot.slane %v10162_v24, 4  ;;  %v995_v18 = vrot.slane %v12939_v15, 1  ;;  %v3986_v0 = vsel %vm321_vm0, %v3985_v63, %v10158_v49  ;;  %v10186_v24 = vld [vmem:[%s12830_s25 + $0x67] sm:$0x1] }
  0x7a   : > { %v3979_v7 = vsel %vm335_vm1, %v3978_v25, %v3977_v5  ;;  %v13476_v53 = vsel %vm330_vm6, %v962_v26, %v13354_v13  ;;  %v3988_v29 = vsel %vm324_vm4, %v3987_v17, %v3986_v0  ;;  %v16132_v47 = vrot.slane %v12968_v38, 5  ;;  %v10188_v26 = vld [vmem:[%s12830_s25 + $0x20] sm:$0x1]  ;;  %v10189_v17 = vld [vmem:[%s12830_s25 + $0x38] sm:$0x1] }
  0x7b   : > { %v3981_v41 = vsel %vm338_vm2, %v3980_v22, %v3979_v7  ;;  %v13490_v35 = vsel %vm324_vm4, %v1039_v30, %v1038_v4  ;;  %v3990_v28 = vsel %vm327_vm5, %v3989_v32, %v3988_v29  ;;  %v4481_v62 = vrot.slane %v10182_v33, 3 }
  0x7c   : > { %v13487_v49 = vsel %vm327_vm5, %v16132_v47, %v999_v11  ;;  %3982 = vrot.lane.b32.xlu0 %v3981_v41, %s12772_s26  ;;  %v3992_v38 = vsel %vm330_vm6, %v3991_v16, %v3990_v28  ;;  %v4482_v25 = vrot.slane %v13471_v1, 2  ;;  %v4484_v30 = vrot.slane %v13481_v27, 1  ;;  %v10190_v16 = vld [vmem:[%s12830_s25 + $0x50] sm:$0x1] }
  0x7d   : > { %3993 = vrot.lane.b32.xlu1 %v3992_v38, %s12773_s27  ;;  %v4486_v22 = vrot.slane %v10186_v24, 7  ;;  %v4494_v59 = vrot.slane %v10182_v33, 6  ;;  %v4495_v63 = vrot.slane %v13471_v1, 5  ;;  %v4497_v11 = vrot.slane %v13481_v27, 4  ;;  %v10191_v38 = vld [vmem:[%s12830_s25 + $0x68] sm:$0x1] }
  0x7e   : > { %v4483_v32 = vsel %vm335_vm1, %v4482_v25, %v4481_v62  ;;  %v4499_v4 = vrot.slane %v13496_v42, 3  ;;  %v4501_v5 = vrot.slane %v10186_v24, 2  ;;  %v4520_v24 = vrot.slane %v10187_v34, 4 }
  0x7f   : > { %v4485_v0 = vsel %vm338_vm2, %v4484_v30, %v4483_v32  ;;  %v4487_v33 = vsel %vm321_vm0, %v4486_v22, %v13496_v42  ;;  %v4496_v41 = vsel %vm327_vm5, %v4495_v63, %v4494_v59  ;;  %v4521_v25 = vrot.slane %v10188_v26, 3 }
  0x80   : > { %v12511_v47 = vpack.i.bf16 %v4485_v0, %v4487_v33  ;;  %v4498_v28 = vsel %vm330_vm6, %v4497_v11, %v4496_v41  ;;  %v4523_v57 = vrot.slane %v10189_v17, 2  ;;  %v4525_v7 = vrot.slane %v10190_v16, 1  ;;  %v16133_v0 = vld [vmem:[#allocation11_spill] sm:$0xff] }
  0x81   : > { %v4500_v62 = vsel %vm354_vm3, %v4499_v4, %v4498_v28  ;;  %v4533_v22 = vrot.slane %v10187_v34, 7  ;;  %v4534_v59 = vrot.slane %v10188_v26, 6  ;;  %v4536_v63 = vrot.slane %v10189_v17, 5  ;;  %v10193_v28 = vld [vmem:[%s12830_s25 + $0x21] sm:$0x1] }
  0x82   : > { %12512 = vrot.lane.b32.xlu0 %v12511_v47, %s12772_s26  ;;  %v4502_v30 = vsel %vm335_vm1, %v4501_v5, %v4500_v62  ;;  %v4522_v32 = vsel %vm354_vm3, %v4521_v25, %v4520_v24  ;;  %v4538_v11 = vrot.slane %v10190_v16, 4  ;;  %v4540_v4 = vrot.slane %v10191_v38, 3  ;;  %v10192_v47 = vld [vmem:[%s12830_s25 + $0x9] sm:$0x1]  ;;  %v16136_v62 = vld [vmem:[#allocation4_spill] sm:$0xff] }
  0x83   : > { %4503 = vrot.lane.b32.xlu1 %v4502_v30, %s12773_s27  ;;  %v2129_v33 = vsel %vm321_vm0, %v2128_v12, %v16133_v0  ;;  %v4524_v26 = vsel %vm335_vm1, %v4523_v57, %v4522_v32  ;;  %v4535_v17 = vsel %vm324_vm4, %v4534_v59, %v4533_v22  ;;  %v16134_v16 = vrot.slane %v13127_v55, 6  ;;  %v10194_v0 = vld [vmem:[%s12830_s25 + $0x39] sm:$0x1]  ;;  %v10195_v34 = vld [vmem:[%s12830_s25 + $0x51] sm:$0x1] }
  0x84   : > { %v1548_v24 = vrot.slane %v16135_v54, 4  ;;  %v1582_v12 = vrot.slane %v16136_v62, 7  ;;  %v4526_v25 = vsel %vm338_vm2, %v4525_v7, %v4524_v26  ;;  %v4537_v30 = vsel %vm327_vm5, %v4536_v63, %v4535_v17  ;;  %v16139_v62 = vld [vmem:[#allocation5_spill] sm:$0xff]  ;;  %v16140_v17 = vld [vmem:[#allocation7_spill] sm:$0xff] }
  0x85   : > { %v2131_v41 = vsel %vm324_vm4, %v16134_v16, %v2129_v33  ;;  %v1620_v57 = vrot.slane %v16137_v2, 2  ;;  %v12516_v32 = vpack.i.bf16 %v4526_v25, %v10191_v38  ;;  %v4539_v22 = vsel %vm330_vm6, %v4538_v11, %v4537_v30  ;;  %v10196_v33 = vld [vmem:[%s12830_s25 + $0x69] sm:$0x1] }
  0x86   : > { %v16138_v55 = vrot.slane %v13139_v14, 5  ;;  %v1584_v13 = vrot.slane %v16139_v62, 6  ;;  %v4541_v7 = vsel %vm354_vm3, %v4540_v4, %v4539_v22  ;;  %v4559_v2 = vrot.slane %v10192_v47, 5  ;;  %v16141_v25 = vld [vmem:[#allocation3_spill] sm:$0xff] }
  0x87   : > { %12517 = vrot.lane.b32.xlu0 %v12516_v32, %s12772_s26  ;;  %4542 = vrot.lane.b32.xlu1 %v4541_v7, %s12773_s27  ;;  %v4560_v38 = vrot.slane %v10193_v28, 4  ;;  %v4562_v63 = vrot.slane %v10194_v0, 3  ;;  %v4564_v11 = vrot.slane %v10195_v34, 2  ;;  %v1583_v30 = vsel %vm321_vm0, %v1582_v12, %v16141_v25 }
  0x88   : > { %v13547_v59 = vsel %vm327_vm5, %v16138_v55, %v2131_v41  ;;  %v1621_v41 = vrot.slane %v16140_v17, 1  ;;  %v4566_v62 = vrot.slane %v10196_v33, 1  ;;  %v16143_v45 = vrot.slane %v12842_v10, 1 }
  0x89   : > { %v4561_v22 = vsel %vm330_vm6, %v4560_v38, %v4559_v2  ;;  %v4571_v29 = vrot.slane %v10193_v28, 7  ;;  %v1585_v25 = vsel %vm324_vm4, %v1584_v13, %v1583_v30  ;;  %v4573_v28 = vrot.slane %v10194_v0, 6  ;;  %v16145_v13 = vld [vmem:[#allocation8_spill] sm:$0xff]  ;;  %v10218_v30 = vld [vmem:[%s12830_s25 + $0x38] sm:$0x1] }
  0x8a   : > { %v4563_v17 = vsel %vm354_vm3, %v4562_v63, %v4561_v22  ;;  %v4575_v38 = vrot.slane %v10195_v34, 5  ;;  %v4577_v63 = vrot.slane %v10196_v33, 4  ;;  %v13590_v34 = vsel %vm338_vm2, %v1621_v41, %v1620_v57  ;;  %v10219_v41 = vld [vmem:[%s12830_s25 + $0x50] sm:$0x1] }
  0x8b   : > { %v16146_v33 = vrot.slane %v13071_v19, 5  ;;  %v4472_v57 = vrot.slane %v13471_v1, 7 }
  0x8e   : > { %v12443_v5 = vpop.permute.xlu0 %12442 }
  0x8f   : > { %v12445_v16 = vunpack.i.h.bf16 %v12443_v5  ;;  %v12444_v54 = vunpack.i.l.bf16 %v12443_v5  ;;  %v16142_v5 = vld [vmem:[#allocation9_spill] sm:$0xff] }
  0x90   : > { %v1623_v55 = vrot.slane %v16142_v5, 7  ;;  %v16144_v5 = vld [vmem:[#allocation10_spill] sm:$0xff] }
  0x91   : > { %v437_v7 = vsel %vm436_vm9, %v13405_v44, %v12445_v16 }
  0x92   : > { %v12448_v26 = vpop.permute.xlu1 %12447  ;;  %v1624_v16 = vsel %vm321_vm0, %v1623_v55, %v16145_v13 }
  0x93   : > { %v359_v14 = vpop.permute.xlu0 %358  ;;  %v12450_v60 = vunpack.i.h.bf16 %v12448_v26  ;;  %v12449_v4 = vunpack.i.l.bf16 %v12448_v26  ;;  %v1625_v26 = vrot.slane %v16144_v5, 6 }
  0x94   : > { %v439_v32 = vsel %vm438_vm8, %v12444_v54, %v359_v14  ;;  %v4565_v54 = vsel %vm335_vm1, %v4564_v11, %v4563_v17  ;;  %v10217_v11 = vld [vmem:[%s12830_s25 + $0x20] sm:$0x1] }
  0x95   : > { %v441_v36 = vsel %vm440_vm10, %v439_v32, %v16143_v45  ;;  %v443_v2 = vsel %vm442_vm11, %v13298_v40, %v12450_v60  ;;  %v4567_v10 = vsel %vm338_vm2, %v4566_v62, %v4565_v54  ;;  %v4572_v45 = vsel %vm321_vm0, %v4571_v29, %v10192_v47  ;;  %v10216_v40 = vld [vmem:[%s12830_s25 + $0x8] sm:$0x1] }
  0x96   : > { %v11804_v12 = vpack.c.bf16 %v441_v36, %v437_v7  ;;  %v398_v14 = vpop.permute.xlu1 %397  ;;  %4568 = vrot.lane.b32.xlu0 %v4567_v10, %s12772_s26  ;;  %v13584_v47 = vsel %vm330_vm6, %v1548_v24, %v13447_v21  ;;  %v4574_v0 = vsel %vm324_vm4, %v4573_v28, %v4572_v45  ;;  %v10220_v62 = vld [vmem:[%s12830_s25 + $0x68] sm:$0x1]  ;;  %v5067_v32 = vrot.slane %v10216_v40, 3 }
  0x97   : > { %v424_v44 = vpop.permute.xlu0 %423  ;;  %v445_v36 = vsel %vm444_vm12, %v12449_v4, %v398_v14  ;;  %v13605_v4 = vsel %vm324_vm4, %v1625_v26, %v1624_v16  ;;  %v4474_v7 = vrot.slane %v13481_v27, 6  ;;  %v5068_v17 = vrot.slane %v10217_v11, 2  ;;  %v10329_v27 = vld [vmem:[%s12830_s25 + $0x25] sm:$0x1] }
  0x98   : > { %11805 = vmatprep.subr.bf16.mxu0 %v11804_v12  ;;  %v447_v60 = vsel %vm446_vm13, %v445_v36, %v13255_v43  ;;  %v449_v29 = vsel %vm16102_vm14, %v13311_v58, %v424_v44  ;;  %v13595_v43 = vsel %vm327_vm5, %v16146_v33, %v1585_v25  ;;  %v4576_v58 = vsel %vm327_vm5, %v4575_v38, %v4574_v0  ;;  %vm13600_vm14 = vmpackc.low %vm436_vm9, %vm12774_vm15  ;;  %v13631_v33 = vld [vmem:[%s16085_s1 + $0x8] sm:$0xff] }
  0x99   : > { %11807 = vmatpush3.bf16.msra.mxu0 %v11804_v12  ;;  %v11808_v55 = vpack.c.bf16 %v447_v60, %v443_v2  ;;  %v4578_v19 = vsel %vm330_vm6, %v4577_v63, %v4576_v58  ;;  %v5070_v12 = vrot.slane %v10218_v30, 1  ;;  %v5072_v5 = vrot.slane %v10220_v62, 7  ;;  %v10221_v63 = vld [vmem:[%s12830_s25 + $0x9] sm:$0x1] }
  0x9a   : > { %v435_v24 = vpop.permute.xlu1 %434  ;;  %4579 = vrot.lane.b32.xlu1 %v4578_v19, %s12773_s27  ;;  %v5080_v26 = vrot.slane %v10216_v40, 6  ;;  %v5081_v54 = vrot.slane %v10217_v11, 5  ;;  %v5083_v14 = vrot.slane %v10218_v30, 4  ;;  %v5069_v10 = vsel %vm335_vm1, %v5068_v17, %v5067_v32  ;;  %v10222_v40 = vld [vmem:[%s12830_s25 + $0x21] sm:$0x1] }
  0x9b   : > { %11809 = vmatprep.subr.bf16.mxu0 %v11808_v55  ;;  %v11812_v22 = vpack.c.bf16 %v435_v24, %v449_v29  ;;  %v12453_v25 = vpop.permute.xlu0 %12452  ;;  %v5085_v45 = vrot.slane %v10219_v41, 3  ;;  %v5071_v36 = vsel %vm338_vm2, %v5070_v12, %v5069_v10  ;;  %v5073_v13 = vsel %vm321_vm0, %v5072_v5, %v10219_v41  ;;  %v10223_v30 = vld [vmem:[%s12830_s25 + $0x39] sm:$0x1]  ;;  %v13642_v41 = vld [vmem:[%s16085_s1 + $0x10] sm:$0xff] }
  0x9c   : > { %v12455_v2 = vunpack.i.h.bf16 %v12453_v25  ;;  %v12454_v44 = vunpack.i.l.bf16 %v12453_v25  ;;  %v5082_v16 = vsel %vm327_vm5, %v5081_v54, %v5080_v26  ;;  %v5087_v38 = vrot.slane %v10220_v62, 2  ;;  %v16149_v62 = vld [vmem:[#allocation12_spill] sm:$0xff]  ;;  %v10225_v26 = vld [vmem:[%s12830_s25 + $0x69] sm:$0x1] }
  0x9d   : > { %11811 = vmatpush3.bf16.msra.mxu0 %v11808_v55  ;;  %v12521_v0 = vpack.i.bf16 %v5071_v36, %v5073_v13  ;;  %v5084_v11 = vsel %vm330_vm6, %v5083_v14, %v5082_v16  ;;  %v10224_v55 = vld [vmem:[%s12830_s25 + $0x51] sm:$0x1]  ;;  %v2168_v24 = vrot.slane %v16149_v62, 7  ;;  %v5106_v17 = vrot.slane %v10221_v63, 4  ;;  %v13675_v62 = vld [vmem:[%s12830_s25 + $0xa] sm:$0x1] }
  0x9e   : > { %11814 = vmatprep.subr.msk.bf16.mxu0 %vm13600_vm14, %v11812_v22  ;;  %v988_v28 = vpop.permute.xlu1 %987  ;;  %v1065_v29 = vsel %vm436_vm9, %v13476_v53, %v12455_v2  ;;  %v4476_v53 = vrot.slane %v13496_v42, 5  ;;  %v5086_v19 = vsel %vm354_vm3, %v5085_v45, %v5084_v11  ;;  %v5107_v12 = vrot.slane %v10222_v40, 3 }
  0x9f   : > { %v1066_v60 = vsel %vm438_vm8, %v12454_v44, %v988_v28  ;;  %12522 = vrot.lane.b32.xlu0 %v12521_v0, %s12772_s26  ;;  %v5088_v15 = vsel %vm335_vm1, %v5087_v38, %v5086_v19  ;;  %v5109_v54 = vrot.slane %v10223_v30, 2  ;;  %v5111_v14 = vrot.slane %v10224_v55, 1  ;;  %v13656_v28 = vld [vmem:[%s16085_s1 + $0x18] sm:$0xff]  ;;  %v13678_v19 = vld [vmem:[%s12830_s25 + $0x22] sm:$0x1] }
  0xa0   : > { %v1067_v58 = vsel %vm440_vm10, %v1066_v60, %v995_v18  ;;  %v12458_v32 = vpop.permute.xlu0 %12457  ;;  %5089 = vrot.lane.b32.xlu1 %v5088_v15, %s12773_s27  ;;  %v5108_v2 = vsel %vm354_vm3, %v5107_v12, %v5106_v17  ;;  %v5119_v44 = vrot.slane %v10221_v63, 7  ;;  %v5120_v10 = vrot.slane %v10222_v40, 6  ;;  %v13667_v40 = vld [vmem:[%s16085_s1 + $0x20] sm:$0xff]  ;;  %v16151_v12 = vld [vmem:[#allocation13_spill] sm:$0xff] }
  0xa1   : > { %11817 = vmatpush3.bf16.msk.msra.mxu0 %vm13600_vm14, %v11812_v22  ;;  %v11834_v22 = vpack.c.bf16 %v1067_v58, %v1065_v29  ;;  %v12460_v18 = vunpack.i.h.bf16 %v12458_v32  ;;  %v12459_v25 = vunpack.i.l.bf16 %v12458_v32  ;;  %v5122_v45 = vrot.slane %v10223_v30, 5  ;;  %v13681_v32 = vld [vmem:[%s12830_s25 + $0x3a] sm:$0x1]  ;;  %v13686_v15 = vld [vmem:[%s12830_s25 + $0x63] sm:$0x1] }
  0xa2   : > { %v1027_v5 = vpop.permute.xlu1 %1026  ;;  %v5110_v16 = vsel %vm335_vm1, %v5109_v54, %v5108_v2  ;;  %v5124_v38 = vrot.slane %v10224_v55, 4  ;;  %v5121_v0 = vsel %vm324_vm4, %v5120_v10, %v5119_v44  ;;  %v5126_v11 = vrot.slane %v10225_v26, 3 }
  0xa3   : > { %11835 = vmatprep.subr.bf16.mxu0 %v11834_v22  ;;  %v1069_v36 = vsel %vm444_vm12, %v12459_v25, %v1027_v5  ;;  %v1068_v13 = vsel %vm442_vm11, %v13487_v49, %v12460_v18  ;;  %v5112_v29 = vsel %vm338_vm2, %v5111_v14, %v5110_v16  ;;  %vm16150_vm15 = vcmask 1042432   ;;  %v13699_v5 = vld [vmem:[%s16085_s1 + $0x28] sm:$0xff] }
  0xa4   : > { %10985 = vmatmul.mubr.msk.f32.vlgmr.msra.gmra.mrb[0].mxu0 %vm450_vm7, %v13631_v33  ;;  %v1070_v63 = vsel %vm446_vm13, %v1069_v36, %v13366_v50  ;;  %v1053_v60 = vpop.permute.xlu0 %1052  ;;  %v12526_v58 = vpack.i.bf16 %v5112_v29, %v10225_v26  ;;  %v5123_v50 = vsel %vm327_vm5, %v5122_v45, %v5121_v0  ;;  %v16152_v18 = vrot.slane %v13194_v9, 7  ;;  %v12604_v26 = vld [vmem:[%s12830_s25 + $0x1c] sm:$0x1]  ;;  %v12605_v14 = vld [vmem:[%s12830_s25 + $0x4c] sm:$0x1] }
  0xa5   : > { %10987 = vmatprep.mubr.msk.f32.mxu0 %vm450_vm7, %v13642_v41  ;;  %11837 = vmatpush3.bf16.msra.mxu0 %v11834_v22  ;;  %v11838_v49 = vpack.c.bf16 %v1070_v63, %v1068_v13  ;;  %v1071_v55 = vsel %vm16150_vm15, %v13490_v35, %v1053_v60  ;;  %v2134_v35 = vrot.slane %v13686_v15, 4  ;;  %v5125_v17 = vsel %vm330_vm6, %v5124_v38, %v5123_v50  ;;  %v13709_v45 = vld [vmem:[%s12830_s25 + $0x52] sm:$0x1]  ;;  %v13712_v36 = vld [vmem:[%s12830_s25 + $0x6a] sm:$0x1] }
  0xa6   : > { %v1064_v30 = vpop.permute.xlu1 %1063  ;;  %v2715_v25 = vsel %vm321_vm0, %v16152_v18, %v16151_v12  ;;  %v2169_v54 = vsel %vm321_vm0, %v2168_v24, %v12604_v26  ;;  %v2170_v2 = vrot.slane %v12605_v14, 6  ;;  %v5127_v44 = vsel %vm354_vm3, %v5126_v11, %v5125_v17  ;;  %v13717_v13 = vld [vmem:[%s16085_s1 + $0x30] sm:$0xff]  ;;  %12527 = vrot.lane.b32.xlu0 %v12526_v58, %s12772_s26  ;;  %v12606_v11 = vld [vmem:[%s12830_s25 + $0x5] sm:$0x1]  ;;  %v12608_v58 = vld [vmem:[%s12830_s25 + $0x1d] sm:$0x1] }
  0xa7   : > { %v11842_v22 = vpack.c.bf16 %v1064_v30, %v1071_v55  ;;  %11839 = vmatprep.subr.bf16.mxu0 %v11838_v49  ;;  %v16153_v9 = vrot.slane %v13197_v52, 6  ;;  %v16154_v16 = vrot.slane %v13207_v39, 5  ;;  %v5145_v38 = vrot.slane %v13675_v62, 5  ;;  %v12607_v30 = vld [vmem:[%s12830_s25 + $0x4d] sm:$0x1]  ;;  %5128 = vrot.lane.b32.xlu1 %v5127_v44, %s12773_s27 }
  0xa8   : > { %10988 = vmatmul.mubr.msk.f32.gmra.mrb[2].mxu0 %vm450_vm7, %v13656_v28  ;;  %v12463_v24 = vpop.permute.xlu0 %12462  ;;  %v5146_v63 = vrot.slane %v13678_v19, 4  ;;  %v5148_v60 = vrot.slane %v13681_v32, 3  ;;  %v2209_v55 = vrot.slane %v12607_v30, 7  ;;  %v2207_v50 = vrot.slane %v12608_v58, 1 }
  0xa9   : > { %10990 = vmatprep.mubr.msk.f32.mxu0 %vm450_vm7, %v13667_v40  ;;  %v2717_v10 = vsel %vm324_vm4, %v16153_v9, %v2715_v25  ;;  %11841 = vmatpush3.bf16.msra.mxu0 %v11838_v49  ;;  %v12465_v29 = vunpack.i.h.bf16 %v12463_v24  ;;  %v12464_v0 = vunpack.i.l.bf16 %v12463_v24  ;;  %v2206_v49 = vrot.slane %v12606_v11, 2  ;;  %v13744_v25 = vld [vmem:[%s16085_s1 + $0x38] sm:$0xff] }
  0xaa   : > { %v13723_v52 = vsel %vm327_vm5, %v16154_v16, %v2717_v10  ;;  %11844 = vmatprep.subr.msk.bf16.mxu0 %vm13600_vm14, %v11842_v22  ;;  %v1574_v39 = vpop.permute.xlu1 %1573  ;;  %v5147_v17 = vsel %vm330_vm6, %v5146_v63, %v5145_v38  ;;  %v5150_v12 = vrot.slane %v13709_v45, 2  ;;  %v5152_v18 = vrot.slane %v13712_v36, 1  ;;  %v12609_v16 = vld [vmem:[%s12830_s25 + $0x65] sm:$0x1] }
  0xab   : > { %v1652_v26 = vsel %vm438_vm8, %v12464_v0, %v1574_v39  ;;  %v1651_v14 = vsel %vm436_vm9, %v13584_v47, %v12465_v29  ;;  %v2171_v44 = vsel %vm324_vm4, %v2170_v2, %v2169_v54  ;;  %v5149_v9 = vsel %vm354_vm3, %v5148_v60, %v5147_v17  ;;  %v12610_v47 = vld [vmem:[%s12830_s25 + $0x35] sm:$0x1]  ;;  %v13766_v29 = vld [vmem:[%s12830_s25 + $0x4] sm:$0x1] }
  0xac   : > { %10991 = vmatmul.mubr.msk.f32.gmra.mrb[4].mxu0 %vm450_vm7, %v13699_v5  ;;  %v16155_v10 = vrot.slane %v13044_v51, 1  ;;  %v2211_v38 = vrot.slane %v12609_v16, 6  ;;  %v5151_v63 = vsel %vm335_vm1, %v5150_v12, %v5149_v9  ;;  %v5157_v0 = vrot.slane %v13678_v19, 7  ;;  %v10250_v12 = vld [vmem:[%s12830_s25 + $0x9] sm:$0x1] }
  0xad   : > { %10993 = vmatprep.mubr.msk.f32.mxu0 %vm450_vm7, %v13717_v13  ;;  %11847 = vmatpush3.bf16.msk.msra.mxu0 %vm13600_vm14, %v11842_v22  ;;  %v2210_v54 = vsel %vm321_vm0, %v2209_v55, %v12610_v47  ;;  %v5153_v2 = vsel %vm338_vm2, %v5152_v18, %v5151_v63  ;;  %v5159_v60 = vrot.slane %v13681_v32, 6  ;;  %v12468_v51 = vpop.permute.xlu0 %12467  ;;  %v2167_v30 = vrot.slane %v13766_v29, 1  ;;  %v10253_v63 = vld [vmem:[%s12830_s25 + $0x51] sm:$0x1] }
  0xae   : > { %v1653_v24 = vsel %vm440_vm10, %v1652_v26, %v16155_v10  ;;  %v1613_v22 = vpop.permute.xlu1 %1612  ;;  %5154 = vrot.lane.b32.xlu0 %v5153_v2, %s12772_s26  ;;  %v5158_v19 = vsel %vm321_vm0, %v5157_v0, %v13675_v62  ;;  %v5161_v55 = vrot.slane %v13709_v45, 5  ;;  %v5163_v32 = vrot.slane %v13712_v36, 4 }
  0xaf   : > { %v11864_v11 = vpack.c.bf16 %v1653_v24, %v1651_v14  ;;  %v12470_v39 = vunpack.i.h.bf16 %v12468_v51  ;;  %v12469_v58 = vunpack.i.l.bf16 %v12468_v51  ;;  %v13780_v17 = vsel %vm330_vm6, %v2134_v35, %v13547_v59  ;;  %v10251_v59 = vld [vmem:[%s12830_s25 + $0x21] sm:$0x1]  ;;  %v10252_v35 = vld [vmem:[%s12830_s25 + $0x39] sm:$0x1]  ;;  %v13812_v24 = vld [vmem:[%s12830_s25 + $0x64] sm:$0x1] }
  0xb0   : > { %10994 = vmatmul.mubr.msk.f32.gmra.mrb[6].mxu0 %vm450_vm7, %v13744_v25  ;;  %v5160_v62 = vsel %vm324_vm4, %v5159_v60, %v5158_v19  ;;  %v13785_v45 = vsel %vm338_vm2, %v2207_v50, %v2206_v49  ;;  %v16156_v36 = vrot.slane %v13165_v20, 5  ;;  %v13793_v18 = vsel %vm324_vm4, %v2211_v38, %v2210_v54  ;;  %v13802_v50 = vld [vmem:[%s12830_s25 + $0x5] sm:$0x1]  ;;  %v13816_v38 = vld [vmem:[%s12830_s25 + $0x6] sm:$0x1] }
  0xb1   : > { %11036 = vmatprep.mubr.msk.f32.mxu0 %vm450_vm7, %v13280_v23  ;;  %11865 = vmatprep.subr.bf16.mxu0 %v11864_v11  ;;  %v5162_v15 = vsel %vm327_vm5, %v5161_v55, %v5160_v62  ;;  %v1655_v26 = vsel %vm444_vm12, %v12469_v58, %v1613_v22  ;;  %v1654_v49 = vsel %vm442_vm11, %v13595_v43, %v12470_v39  ;;  %v2753_v20 = vrot.slane %v13802_v50, 1  ;;  %v1639_v10 = vpop.permute.xlu0 %1638  ;;  %v13971_v50 = vld [vmem:[%s12830_s25 + $0x7] sm:$0x1] }
  0xb2   : > { %v13790_v23 = vsel %vm327_vm5, %v16156_v36, %v2171_v44  ;;  %v5164_v14 = vsel %vm330_vm6, %v5163_v32, %v5162_v15  ;;  %v10254_v44 = vld [vmem:[%s12830_s25 + $0x69] sm:$0x1]  ;;  %v1656_v9 = vsel %vm446_vm13, %v1655_v26, %v13590_v34  ;;  %v2720_v16 = vrot.slane %v13812_v24, 4  ;;  %v1650_v47 = vpop.permute.xlu1 %1649  ;;  %v10255_v32 = vld [vmem:[%s12830_s25 + $0xa] sm:$0x1] }
  0xb3   : > { %v2792_v43 = vrot.slane %v13816_v38, 2  ;;  %5165 = vrot.lane.b32.xlu1 %v5164_v14, %s12773_s27  ;;  %v5653_v0 = vrot.slane %v10250_v12, 3  ;;  %v11868_v34 = vpack.c.bf16 %v1656_v9, %v1654_v49  ;;  %v1657_v54 = vsel %vm16150_vm15, %v13605_v4, %v1639_v10  ;;  %v10256_v36 = vld [vmem:[%s12830_s25 + $0x22] sm:$0x1]  ;;  %v12615_v15 = vld [vmem:[%s12830_s25 + $0x35] sm:$0x1] }
  0xb4   : > { %11037 = vmatmul.mubr.msk.f32.vlgmr.msra.gmra.mrb[8].mxu0 %vm450_vm7, %v13631_v33  ;;  %v5654_v2 = vrot.slane %v10251_v59, 2  ;;  %v5656_v60 = vrot.slane %v10252_v35, 1  ;;  %v11872_v51 = vpack.c.bf16 %v1650_v47, %v1657_v54  ;;  %v5658_v22 = vrot.slane %v10254_v44, 7  ;;  %v10257_v14 = vld [vmem:[%s12830_s25 + $0x3a] sm:$0x1] }
  0xb5   : > { %11039 = vmatprep.mubr.msk.f32.mxu0 %vm450_vm7, %v13642_v41  ;;  %11867 = vmatpush3.bf16.msra.mxu0 %v11864_v11  ;;  %v5666_v19 = vrot.slane %v10250_v12, 6  ;;  %v5667_v55 = vrot.slane %v10251_v59, 5  ;;  %v5669_v58 = vrot.slane %v10252_v35, 4  ;;  %v5671_v11 = vrot.slane %v10253_v63, 3  ;;  %v12473_v4 = vpop.permute.xlu0 %12472  ;;  %v10258_v47 = vld [vmem:[%s12830_s25 + $0x52] sm:$0x1] }
  0xb6   : > { %11869 = vmatprep.subr.bf16.mxu0 %v11868_v34  ;;  %v5655_v39 = vsel %vm335_vm1, %v5654_v2, %v5653_v0  ;;  %v5673_v62 = vrot.slane %v10254_v44, 2  ;;  %v2754_v26 = vrot.slane %v12615_v15, 7  ;;  %v5659_v59 = vsel %vm321_vm0, %v5658_v22, %v10253_v63  ;;  %v2160_v9 = vpop.permute.xlu1 %2159  ;;  %v13842_v54 = vld [vmem:[%s12830_s25 + $0x4d] sm:$0x1]  ;;  %v12623_v24 = vld [vmem:[%s12830_s25 + $0x36] sm:$0x1] }
  0xb7   : > { %v5657_v12 = vsel %vm338_vm2, %v5656_v60, %v5655_v39  ;;  %v5668_v49 = vsel %vm327_vm5, %v5667_v55, %v5666_v19  ;;  %v12475_v35 = vunpack.i.h.bf16 %v12473_v4  ;;  %v12474_v44 = vunpack.i.l.bf16 %v12473_v4  ;;  %v10259_v39 = vld [vmem:[%s12830_s25 + $0x6a] sm:$0x1] }
  0xb8   : > { %11040 = vmatmul.mubr.msk.f32.gmra.mrb[10].mxu0 %vm450_vm7, %v13656_v28  ;;  %v12531_v10 = vpack.i.bf16 %v5657_v12, %v5659_v59  ;;  %v5670_v0 = vsel %vm330_vm6, %v5669_v58, %v5668_v49  ;;  %v2756_v63 = vrot.slane %v13842_v54, 6  ;;  %v5692_v60 = vrot.slane %v10255_v32, 4 }
  0xb9   : > { %11042 = vmatprep.mubr.msk.f32.mxu0 %vm450_vm7, %v13667_v40  ;;  %11871 = vmatpush3.bf16.msra.mxu0 %v11868_v34  ;;  %v5672_v2 = vsel %vm354_vm3, %v5671_v11, %v5670_v0  ;;  %v5693_v22 = vrot.slane %v10256_v36, 3  ;;  %v2238_v34 = vsel %vm438_vm8, %v12474_v44, %v2160_v9  ;;  %v2237_v19 = vsel %vm436_vm9, %v13780_v17, %v12475_v35  ;;  %v12617_v9 = vld [vmem:[%s12830_s25 + $0x5] sm:$0x1] }
  0xba   : > { %11874 = vmatprep.subr.msk.bf16.mxu0 %vm13600_vm14, %v11872_v51  ;;  %12532 = vrot.lane.b32.xlu0 %v12531_v10, %s12772_s26  ;;  %v5674_v55 = vsel %vm335_vm1, %v5673_v62, %v5672_v2  ;;  %v5695_v58 = vrot.slane %v10257_v14, 2  ;;  %v2239_v11 = vsel %vm440_vm10, %v2238_v34, %v2167_v30  ;;  %v5697_v15 = vrot.slane %v10258_v47, 1  ;;  %v12478_v59 = vpop.permute.xlu0 %12477  ;;  %v2199_v49 = vpop.permute.xlu1 %2198  ;;  %v12619_v34 = vld [vmem:[%s12830_s25 + $0x1d] sm:$0x1] }
  0xbb   : > { %5675 = vrot.lane.b32.xlu1 %v5674_v55, %s12773_s27  ;;  %v5694_v4 = vsel %vm354_vm3, %v5693_v22, %v5692_v60  ;;  %v5705_v17 = vrot.slane %v10255_v32, 7  ;;  %v11894_v62 = vpack.c.bf16 %v2239_v11, %v2237_v19  ;;  %v5706_v29 = vrot.slane %v10256_v36, 6  ;;  %v10260_v60 = vld [vmem:[%s12830_s25 + $0xb] sm:$0x1]  ;;  %v13884_v11 = vld [vmem:[%s16085_s1] sm:$0xff] }
  0xbc   : > { %11043 = vmatmul.mubr.msk.f32.gmra.mrb[12].mxu0 %vm450_vm7, %v13699_v5  ;;  %v5696_v12 = vsel %vm335_vm1, %v5695_v58, %v5694_v4  ;;  %v5708_v30 = vrot.slane %v10257_v14, 5  ;;  %v5710_v44 = vrot.slane %v10258_v47, 4  ;;  %v5712_v32 = vrot.slane %v10259_v39, 3  ;;  %v12618_v47 = vld [vmem:[%s12830_s25 + $0x1e] sm:$0x1] }
  0xbd   : > { %11045 = vmatprep.mubr.msk.f32.mxu0 %vm450_vm7, %v13717_v13  ;;  %11877 = vmatpush3.bf16.msk.msra.mxu0 %vm13600_vm14, %v11872_v51  ;;  %v5698_v35 = vsel %vm338_vm2, %v5697_v15, %v5696_v12  ;;  %v16157_v10 = vrot.slane %v13284_v6, 7  ;;  %v12480_v0 = vunpack.i.h.bf16 %v12478_v59  ;;  %v12479_v2 = vunpack.i.l.bf16 %v12478_v59  ;;  %v12621_v15 = vld [vmem:[%s12830_s25 + $0x4e] sm:$0x1]  ;;  %v10262_v12 = vld [vmem:[%s12830_s25 + $0x3b] sm:$0x1] }
  0xbe   : > { %11895 = vmatprep.subr.bf16.mxu0 %v11894_v62  ;;  %v12536_v36 = vpack.i.bf16 %v5698_v35, %v10259_v39  ;;  %v5707_v14 = vsel %vm324_vm4, %v5706_v29, %v5705_v17  ;;  %v2793_v22 = vrot.slane %v12618_v47, 1  ;;  %v2755_v6 = vsel %vm321_vm0, %v2754_v26, %v12619_v34  ;;  %v10261_v39 = vld [vmem:[%s12830_s25 + $0x23] sm:$0x1]  ;;  %v13896_v29 = vld [vmem:[%s12830_s25 + $0x53] sm:$0x1]  ;;  %v2225_v59 = vpop.permute.xlu0 %2224 }
  0xbf   : > { %v3301_v51 = vsel %vm321_vm0, %v16157_v10, %v12617_v9  ;;  %v5709_v19 = vsel %vm327_vm5, %v5708_v30, %v5707_v14  ;;  %v16158_v55 = vrot.slane %v13291_v31, 6  ;;  %v2241_v4 = vsel %vm444_vm12, %v12479_v2, %v2199_v49  ;;  %v13907_v9 = vld [vmem:[%s12830_s25 + $0x6b] sm:$0x1] }
  0xc0   : > { %11046 = vmatmul.mubr.msk.f32.gmra.mrb[14].mxu0 %vm450_vm7, %v13744_v25  ;;  %v2240_v26 = vsel %vm442_vm11, %v13790_v23, %v12480_v0  ;;  %v2795_v17 = vrot.slane %v12621_v15, 7  ;;  %12537 = vrot.lane.b32.xlu0 %v12536_v36, %s12772_s26  ;;  %v5711_v31 = vsel %vm330_vm6, %v5710_v44, %v5709_v19  ;;  %v2242_v30 = vsel %vm446_vm13, %v2241_v4, %v13785_v45 }
  0xc1   : > { %v3303_v58 = vsel %vm324_vm4, %v16158_v55, %v3301_v51  ;;  %11088 = vmatprep.mubr.msk.f32.mxu0 %vm450_vm7, %v13884_v11  ;;  %v5713_v35 = vsel %vm354_vm3, %v5712_v32, %v5711_v31  ;;  %v16159_v49 = vrot.slane %v13301_v3, 5  ;;  %v5731_v10 = vrot.slane %v10260_v60, 5  ;;  %v2236_v51 = vpop.permute.xlu1 %2235  ;;  %v12622_v32 = vld [vmem:[%s12830_s25 + $0x66] sm:$0x1] }
  0xc2   : > { %v11898_v44 = vpack.c.bf16 %v2242_v30, %v2240_v26  ;;  %v2243_v0 = vsel %vm16150_vm15, %v13793_v18, %v2225_v59  ;;  %v2721_v45 = vsel %vm330_vm6, %v2720_v16, %v13723_v52  ;;  %v2757_v3 = vsel %vm324_vm4, %v2756_v63, %v2755_v6  ;;  %5714 = vrot.lane.b32.xlu1 %v5713_v35, %s12773_s27  ;;  %v12483_v34 = vpop.permute.xlu0 %12482  ;;  %v10284_v59 = vld [vmem:[%s12830_s25 + $0xa] sm:$0x1]  ;;  %v13960_v35 = vld [vmem:[%s12830_s25 + $0x6] sm:$0x1] }
  0xc3   : > { %v13904_v23 = vsel %vm327_vm5, %v16159_v49, %v3303_v58  ;;  %v2797_v2 = vrot.slane %v12622_v32, 6  ;;  %v5732_v36 = vrot.slane %v10261_v39, 4  ;;  %v5734_v14 = vrot.slane %v10262_v12, 3  ;;  %v13975_v32 = vld [vmem:[%s12830_s25 + $0x1f] sm:$0x1] }
  0xc4   : > { %11089 = vmatmul.mubr.msk.f32.vlgmr.msra.gmra.mrb[16].mxu0 %vm450_vm7, %v13631_v33  ;;  %v5736_v18 = vrot.slane %v13896_v29, 2  ;;  %v13928_v52 = vsel %vm338_vm2, %v2793_v22, %v2792_v43  ;;  %v2796_v16 = vsel %vm321_vm0, %v2795_v17, %v12623_v24  ;;  %v5738_v54 = vrot.slane %v13907_v9, 1 }
  0xc5   : > { %11091 = vmatprep.mubr.msk.f32.mxu0 %vm450_vm7, %v13642_v41  ;;  %11897 = vmatpush3.bf16.msra.mxu0 %v11894_v62  ;;  %v5743_v63 = vrot.slane %v10261_v39, 7  ;;  %v11902_v47 = vpack.c.bf16 %v2236_v51, %v2243_v0  ;;  %v16160_v6 = vrot.slane %v13231_v8, 5  ;;  %v5733_v62 = vsel %vm330_vm6, %v5732_v36, %v5731_v10  ;;  %v2746_v22 = vpop.permute.xlu1 %2745  ;;  %v10285_v51 = vld [vmem:[%s12830_s25 + $0x22] sm:$0x1]  ;;  %v10286_v0 = vld [vmem:[%s12830_s25 + $0x3a] sm:$0x1] }
  0xc6   : > { %11899 = vmatprep.subr.bf16.mxu0 %v11898_v44  ;;  %v5745_v55 = vrot.slane %v10262_v12, 6  ;;  %v12485_v38 = vunpack.i.h.bf16 %v12483_v34  ;;  %v12484_v43 = vunpack.i.l.bf16 %v12483_v34  ;;  %v5735_v58 = vsel %vm354_vm3, %v5734_v14, %v5733_v62  ;;  %v10288_v14 = vld [vmem:[%s12830_s25 + $0x6a] sm:$0x1] }
  0xc7   : > { %v2759_v19 = vsel %vm327_vm5, %v16160_v6, %v2757_v3  ;;  %v5747_v4 = vrot.slane %v13896_v29, 5  ;;  %v13942_v8 = vsel %vm324_vm4, %v2797_v2, %v2796_v16  ;;  %v5737_v39 = vsel %vm335_vm1, %v5736_v18, %v5735_v58  ;;  %v12624_v29 = vld [vmem:[%s12830_s25 + $0x36] sm:$0x1]  ;;  %v12630_v6 = vld [vmem:[%s12830_s25 + $0x1e] sm:$0x1] }
  0xc8   : > { %11092 = vmatmul.mubr.msk.f32.gmra.mrb[18].mxu0 %vm450_vm7, %v13656_v28  ;;  %v5744_v26 = vsel %vm321_vm0, %v5743_v63, %v10260_v60  ;;  %v5749_v15 = vrot.slane %v13907_v9, 4  ;;  %v2824_v17 = vsel %vm438_vm8, %v12484_v43, %v2746_v22  ;;  %v2823_v31 = vsel %vm436_vm9, %v2721_v45, %v12485_v38  ;;  %v12626_v9 = vld [vmem:[%s12830_s25 + $0x65] sm:$0x1]  ;;  %v12488_v45 = vpop.permute.xlu0 %12487 }
  0xc9   : > { %11094 = vmatprep.mubr.msk.f32.mxu0 %vm450_vm7, %v13667_v40  ;;  %11901 = vmatpush3.bf16.msra.mxu0 %v11898_v44  ;;  %v5739_v12 = vsel %vm338_vm2, %v5738_v54, %v5737_v39  ;;  %v3340_v30 = vrot.slane %v12624_v29, 7  ;;  %v2825_v60 = vsel %vm440_vm10, %v2824_v17, %v2753_v20  ;;  %v3339_v49 = vrot.slane %v13960_v35, 1  ;;  %v2785_v16 = vpop.permute.xlu1 %2784  ;;  %v12629_v54 = vld [vmem:[%s12830_s25 + $0x4e] sm:$0x1] }
  0xca   : > { %11904 = vmatprep.subr.msk.bf16.mxu0 %vm13600_vm14, %v11902_v47  ;;  %v3306_v10 = vrot.slane %v12626_v9, 4  ;;  %5740 = vrot.lane.b32.xlu0 %v5739_v12, %s12772_s26  ;;  %v5746_v44 = vsel %vm324_vm4, %v5745_v55, %v5744_v26  ;;  %v13968_v3 = vpack.c.bf16 %v2825_v60, %v2823_v31  ;;  %v3378_v20 = vrot.slane %v13971_v50, 2  ;;  %v10287_v55 = vld [vmem:[%s12830_s25 + $0x52] sm:$0x1]  ;;  %v10289_v12 = vld [vmem:[%s12830_s25 + $0xb] sm:$0x1] }
  0xcb   : > { %v3379_v2 = vrot.slane %v13975_v32, 1  ;;  %v5748_v36 = vsel %vm327_vm5, %v5747_v4, %v5746_v44  ;;  %v12490_v18 = vunpack.i.h.bf16 %v12488_v45  ;;  %v12489_v24 = vunpack.i.l.bf16 %v12488_v45  ;;  %v10290_v60 = vld [vmem:[%s12830_s25 + $0x23] sm:$0x1]  ;;  %v10291_v9 = vld [vmem:[%s12830_s25 + $0x3b] sm:$0x1] }
  0xcc   : > { %11095 = vmatmul.mubr.msk.f32.gmra.mrb[20].mxu0 %vm450_vm7, %v13699_v5  ;;  %v3342_v63 = vrot.slane %v12629_v54, 6  ;;  %v5750_v34 = vsel %vm330_vm6, %v5749_v15, %v5748_v36  ;;  %v3341_v62 = vsel %vm321_vm0, %v3340_v30, %v12630_v6  ;;  %v6239_v38 = vrot.slane %v10284_v59, 3  ;;  %v2811_v29 = vpop.permute.xlu0 %2810  ;;  %v14059_v50 = vld [vmem:[%s12830_s25 + $0x67] sm:$0x1] }
  0xcd   : > { %11097 = vmatprep.mubr.msk.f32.mxu0 %vm450_vm7, %v13717_v13  ;;  %11907 = vmatpush3.bf16.msk.msra.mxu0 %vm13600_vm14, %v11902_v47  ;;  %v6240_v43 = vrot.slane %v10285_v51, 2  ;;  %v6242_v22 = vrot.slane %v10286_v0, 1  ;;  %v2827_v58 = vsel %vm444_vm12, %v12489_v24, %v2785_v16  ;;  %v2826_v4 = vsel %vm442_vm11, %v2759_v19, %v12490_v18  ;;  %v10293_v16 = vld [vmem:[%s12830_s25 + $0x6b] sm:$0x1] }
  0xce   : > { %11925 = vmatprep.subr.bf16.mxu0 %v13968_v3  ;;  %5751 = vrot.lane.b32.xlu1 %v5750_v34, %s12773_s27  ;;  %v6244_v39 = vrot.slane %v10288_v14, 7  ;;  %v6252_v47 = vrot.slane %v10284_v59, 6  ;;  %v2828_v26 = vsel %vm446_vm13, %v2827_v58, %v13928_v52  ;;  %v6253_v17 = vrot.slane %v10285_v51, 5  ;;  %v2822_v36 = vpop.permute.xlu1 %2821 }
  0xcf   : > { %v6241_v15 = vsel %vm335_vm1, %v6240_v43, %v6239_v38  ;;  %v6255_v31 = vrot.slane %v10286_v0, 4  ;;  %v14003_v19 = vsel %vm330_vm6, %v3306_v10, %v13904_v23  ;;  %v6257_v52 = vrot.slane %v10287_v55, 3  ;;  %v10292_v23 = vld [vmem:[%s12830_s25 + $0x53] sm:$0x1] }
  0xd0   : > { %11098 = vmatmul.mubr.msk.f32.gmra.mrb[22].mxu0 %vm450_vm7, %v13744_v25  ;;  %v6243_v30 = vsel %vm338_vm2, %v6242_v22, %v6241_v15  ;;  %v6245_v59 = vsel %vm321_vm0, %v6244_v39, %v10287_v55  ;;  %v2829_v44 = vsel %vm16150_vm15, %v13942_v8, %v2811_v29  ;;  %v6254_v0 = vsel %vm327_vm5, %v6253_v17, %v6252_v47  ;;  %v12631_v39 = vld [vmem:[%s12830_s25 + $0x4f] sm:$0x1]  ;;  %v12632_v17 = vld [vmem:[%s12830_s25 + $0x6] sm:$0x1]  ;;  %v10295_v29 = vld [vmem:[%s12830_s25 + $0x24] sm:$0x1] }
  0xd1   : > { %11140 = vmatprep.mubr.msk.f32.mxu0 %vm450_vm7, %v13884_v11  ;;  %v12541_v51 = vpack.i.bf16 %v6243_v30, %v6245_v59  ;;  %v6259_v45 = vrot.slane %v10288_v14, 2  ;;  %v11928_v10 = vpack.c.bf16 %v2828_v26, %v2826_v4  ;;  %v3343_v18 = vsel %vm324_vm4, %v3342_v63, %v3341_v62 }
  0xd2   : > { %v6256_v24 = vsel %vm330_vm6, %v6255_v31, %v6254_v0  ;;  %v6278_v54 = vrot.slane %v10289_v12, 4  ;;  %v14018_v34 = vpack.c.bf16 %v2822_v36, %v2829_v44  ;;  %v6279_v6 = vrot.slane %v10290_v60, 3  ;;  %v10297_v44 = vld [vmem:[%s12830_s25 + $0x54] sm:$0x1] }
  0xd3   : > { %12542 = vrot.lane.b32.xlu0 %v12541_v51, %s12772_s26  ;;  %v6258_v8 = vsel %vm354_vm3, %v6257_v52, %v6256_v24  ;;  %v6281_v55 = vrot.slane %v10291_v9, 2  ;;  %v6283_v63 = vrot.slane %v10292_v23, 1  ;;  %v6291_v62 = vrot.slane %v10289_v12, 7  ;;  %v10294_v12 = vld [vmem:[%s12830_s25 + $0xc] sm:$0x1] }
  0xd4   : > { %11141 = vmatmul.mubr.msk.f32.vlgmr.msra.gmra.mrb[24].mxu0 %vm450_vm7, %v13631_v33  ;;  %v6260_v14 = vsel %vm335_vm1, %v6259_v45, %v6258_v8  ;;  %v6292_v38 = vrot.slane %v10290_v60, 6  ;;  %v6280_v43 = vsel %vm354_vm3, %v6279_v6, %v6278_v54  ;;  %v6294_v22 = vrot.slane %v10291_v9, 5  ;;  %v14054_v51 = vld [vmem:[%s12830_s25 + $0x6c] sm:$0x1]  ;;  %v12634_v54 = vld [vmem:[%s12830_s25 + $0x37] sm:$0x1] }
  0xd5   : > { %11143 = vmatprep.mubr.msk.f32.mxu0 %vm450_vm7, %v13642_v41  ;;  %11927 = vmatpush3.bf16.msra.mxu0 %v13968_v3  ;;  %v6296_v58 = vrot.slane %v10292_v23, 4  ;;  %v6298_v4 = vrot.slane %v10293_v16, 3  ;;  %v3381_v47 = vrot.slane %v12631_v39, 7  ;;  %v6282_v26 = vsel %vm335_vm1, %v6281_v55, %v6280_v43 }
  0xd6   : > { %11929 = vmatprep.subr.bf16.mxu0 %v11928_v10  ;;  %6261 = vrot.lane.b32.xlu1 %v6260_v14, %s12773_s27  ;;  %v6293_v15 = vsel %vm324_vm4, %v6292_v38, %v6291_v62  ;;  %v16161_v3 = vrot.slane %v13377_v61, 7  ;;  %v14044_v30 = vsel %vm338_vm2, %v3379_v2, %v3378_v20  ;;  %v6284_v59 = vsel %vm338_vm2, %v6283_v63, %v6282_v26  ;;  %v10296_v61 = vld [vmem:[%s12830_s25 + $0x3c] sm:$0x1]  ;;  %v3332_v14 = vpop.permute.xlu1 %3331  ;;  %v12635_v63 = vld [vmem:[%s12830_s25 + $0x66] sm:$0x1] }
  0xd7   : > { %v6295_v52 = vsel %vm327_vm5, %v6294_v22, %v6293_v15  ;;  %v16162_v60 = vrot.slane %v13380_v37, 6  ;;  %v3383_v20 = vrot.slane %v14059_v50, 6  ;;  %v12546_v32 = vpack.i.bf16 %v6284_v59, %v10293_v16  ;;  %v12636_v22 = vld [vmem:[%s12830_s25 + $0x37] sm:$0x1] }
  0xd8   : > { %v3887_v31 = vsel %vm321_vm0, %v16161_v3, %v12632_v17  ;;  %11144 = vmatmul.mubr.msk.f32.gmra.mrb[26].mxu0 %vm450_vm7, %v13656_v28  ;;  %v6297_v2 = vsel %vm330_vm6, %v6296_v58, %v6295_v52  ;;  %v16163_v0 = vrot.slane %v13393_v48, 5  ;;  %v16164_v45 = vrot.slane %v13330_v46, 5  ;;  %v12493_v48 = vpop.permute.xlu0 %12492 }
  0xd9   : > { %v3889_v9 = vsel %vm324_vm4, %v16162_v60, %v3887_v31  ;;  %11146 = vmatprep.mubr.msk.f32.mxu0 %vm450_vm7, %v13667_v40  ;;  %11931 = vmatpush3.bf16.msra.mxu0 %v11928_v10  ;;  %v6299_v36 = vsel %vm354_vm3, %v6298_v4, %v6297_v2  ;;  %v6317_v24 = vrot.slane %v10294_v12, 5  ;;  %v6318_v16 = vrot.slane %v10295_v29, 4  ;;  %v12637_v31 = vld [vmem:[%s12830_s25 + $0x8] sm:$0x1] }
  0xda   : > { %v14066_v37 = vsel %vm327_vm5, %v16163_v0, %v3889_v9  ;;  %v14073_v23 = vsel %vm327_vm5, %v16164_v45, %v3343_v18  ;;  %11934 = vmatprep.subr.msk.bf16.mxu0 %vm13600_vm14, %v14018_v34  ;;  %v3382_v8 = vsel %vm321_vm0, %v3381_v47, %v12634_v54  ;;  %12547 = vrot.lane.b32.xlu0 %v12546_v32, %s12772_s26  ;;  %v6320_v46 = vrot.slane %v10296_v61, 3  ;;  %v12638_v9 = vld [vmem:[%s12830_s25 + $0x20] sm:$0x1]  ;;  %v12639_v32 = vld [vmem:[%s12830_s25 + $0x4f] sm:$0x1] }
  0xdb   : > { %v6322_v10 = vrot.slane %v10297_v44, 2  ;;  %v6324_v18 = vrot.slane %v14054_v51, 1  ;;  %v12495_v6 = vunpack.i.h.bf16 %v12493_v48  ;;  %v12494_v55 = vunpack.i.l.bf16 %v12493_v48  ;;  %6300 = vrot.lane.b32.xlu1 %v6299_v36, %s12773_s27  ;;  %v10318_v45 = vld [vmem:[%s12830_s25 + $0xb] sm:$0x1]  ;;  %v10319_v36 = vld [vmem:[%s12830_s25 + $0x23] sm:$0x1] }
  0xdc   : > { %v3892_v62 = vrot.slane %v12635_v63, 4  ;;  %v6319_v38 = vsel %vm330_vm6, %v6318_v16, %v6317_v24  ;;  %11147 = vmatmul.mubr.msk.f32.gmra.mrb[28].mxu0 %vm450_vm7, %v13699_v5  ;;  %v3926_v58 = vrot.slane %v12636_v22, 7  ;;  %v6329_v4 = vrot.slane %v10295_v29, 7  ;;  %v12498_v52 = vpop.permute.xlu0 %12497  ;;  %v14116_v24 = vld [vmem:[%s12830_s25 + $0x68] sm:$0x1] }
  0xdd   : > { %v6321_v43 = vsel %vm354_vm3, %v6320_v46, %v6319_v38  ;;  %v6331_v39 = vrot.slane %v10296_v61, 6  ;;  %11149 = vmatprep.mubr.msk.f32.mxu0 %vm450_vm7, %v13717_v13  ;;  %11937 = vmatpush3.bf16.msk.msra.mxu0 %vm13600_vm14, %v14018_v34  ;;  %v3410_v47 = vsel %vm438_vm8, %v12494_v55, %v3332_v14  ;;  %v3409_v26 = vsel %vm436_vm9, %v14003_v19, %v12495_v6  ;;  %v3371_v19 = vpop.permute.xlu1 %3370  ;;  %v12641_v48 = vld [vmem:[%s12830_s25 + $0x1f] sm:$0x1]  ;;  %v14133_v14 = vld [vmem:[%s12830_s25 + $0x7] sm:$0x1] }
  0xde   : > { %v6323_v15 = vsel %vm335_vm1, %v6322_v10, %v6321_v43  ;;  %v6333_v17 = vrot.slane %v10297_v44, 5  ;;  %v3411_v3 = vsel %vm440_vm10, %v3410_v47, %v3339_v49  ;;  %v3964_v29 = vrot.slane %v12637_v31, 2  ;;  %v10320_v10 = vld [vmem:[%s12830_s25 + $0x3b] sm:$0x1]  ;;  %v14147_v38 = vld [vmem:[%s12830_s25 + $0x53] sm:$0x1] }
  0xdf   : > { %v6325_v59 = vsel %vm338_vm2, %v6324_v18, %v6323_v15  ;;  %v6330_v34 = vsel %vm321_vm0, %v6329_v4, %v10294_v12  ;;  %v11954_v60 = vpack.c.bf16 %v3411_v3, %v3409_v26  ;;  %v3965_v61 = vrot.slane %v12638_v9, 1  ;;  %v10322_v18 = vld [vmem:[%s12830_s25 + $0x6b] sm:$0x1]  ;;  %v10323_v4 = vld [vmem:[%s12830_s25 + $0xc] sm:$0x1] }
  0xe0   : > { %6326 = vrot.lane.b32.xlu0 %v6325_v59, %s12772_s26  ;;  %v6332_v35 = vsel %vm324_vm4, %v6331_v39, %v6330_v34  ;;  %v6335_v49 = vrot.slane %v14054_v51, 4  ;;  %11150 = vmatmul.mubr.msk.f32.gmra.mrb[30].mxu0 %vm450_vm7, %v13744_v25  ;;  %v12500_v44 = vunpack.i.h.bf16 %v12498_v52  ;;  %v12499_v12 = vunpack.i.l.bf16 %v12498_v52  ;;  %v10324_v15 = vld [vmem:[%s12830_s25 + $0x24] sm:$0x1]  ;;  %v10325_v59 = vld [vmem:[%s12830_s25 + $0x3c] sm:$0x1] }
  0xe1   : > { %v3928_v2 = vrot.slane %v12639_v32, 6  ;;  %v6334_v0 = vsel %vm327_vm5, %v6333_v17, %v6332_v35  ;;  %v4516_v16 = vrot.slane %v14116_v24, 5  ;;  %11192 = vmatprep.mubr.msk.f32.mxu0 %vm450_vm7, %v13884_v11  ;;  %11955 = vmatprep.subr.bf16.mxu0 %v11954_v60  ;;  %v3384_v51 = vsel %vm324_vm4, %v3383_v20, %v3382_v8  ;;  %v3408_v17 = vpop.permute.xlu1 %3407  ;;  %v10326_v34 = vld [vmem:[%s12830_s25 + $0x54] sm:$0x1]  ;;  %v10327_v32 = vld [vmem:[%s12830_s25 + $0x6c] sm:$0x1] }
  0xe2   : > { %v3927_v54 = vsel %vm321_vm0, %v3926_v58, %v12641_v48  ;;  %v6336_v46 = vsel %vm330_vm6, %v6335_v49, %v6334_v0  ;;  %v3413_v6 = vsel %vm444_vm12, %v12499_v12, %v3371_v19  ;;  %v3412_v55 = vsel %vm442_vm11, %v14073_v23, %v12500_v44  ;;  %v12644_v49 = vld [vmem:[%s12830_s25 + $0x68] sm:$0x1] }
  0xe3   : > { %v3925_v63 = vrot.slane %v14133_v14, 1  ;;  %v14138_v50 = vsel %vm330_vm6, %v3892_v62, %v14066_v37  ;;  %6337 = vrot.lane.b32.xlu1 %v6336_v46, %s12773_s27  ;;  %v3414_v20 = vsel %vm446_vm13, %v3413_v6, %v14044_v30  ;;  %v14144_v8 = vsel %vm338_vm2, %v3965_v61, %v3964_v29  ;;  %v3397_v30 = vpop.permute.xlu0 %3396  ;;  %v12643_v61 = vld [vmem:[%s12830_s25 + $0x50] sm:$0x1]  ;;  %v12645_v6 = vld [vmem:[%s12830_s25 + $0x7] sm:$0x1] }
  0xe4   : > { %v6825_v23 = vrot.slane %v10318_v45, 3  ;;  %v6826_v43 = vrot.slane %v10319_v36, 2  ;;  %11193 = vmatmul.mubr.msk.f32.vlgmr.msra.gmra.mrb[32].mxu0 %vm450_vm7, %v13631_v33  ;;  %v11958_v22 = vpack.c.bf16 %v3414_v20, %v3412_v55  ;;  %v14152_v37 = vsel %vm324_vm4, %v3928_v2, %v3927_v54 }
  0xe5   : > { %v6828_v62 = vrot.slane %v10320_v10, 1  ;;  %v6830_v58 = vrot.slane %v10322_v18, 7  ;;  %11195 = vmatprep.mubr.msk.f32.mxu0 %vm450_vm7, %v13642_v41  ;;  %11957 = vmatpush3.bf16.msra.mxu0 %v11954_v60  ;;  %v6838_v47 = vrot.slane %v10318_v45, 6  ;;  %v6839_v26 = vrot.slane %v10319_v36, 5 }
  0xe6   : > { %v6827_v39 = vsel %vm335_vm1, %v6826_v43, %v6825_v23  ;;  %v6841_v33 = vrot.slane %v10320_v10, 4  ;;  %11959 = vmatprep.subr.bf16.mxu0 %v11958_v22  ;;  %v3415_v3 = vsel %vm16150_vm15, %v3384_v51, %v3397_v30  ;;  %v6843_v29 = vrot.slane %v14147_v38, 3  ;;  %v12646_v23 = vld [vmem:[%s12830_s25 + $0x38] sm:$0x1] }
  0xe7   : > { %v6829_v31 = vsel %vm338_vm2, %v6828_v62, %v6827_v39  ;;  %v6831_v41 = vsel %vm321_vm0, %v6830_v58, %v14147_v38  ;;  %v11962_v52 = vpack.c.bf16 %v3408_v17, %v3415_v3  ;;  %v6840_v19 = vsel %vm327_vm5, %v6839_v26, %v6838_v47  ;;  %v12503_v20 = vpop.permute.xlu0 %12502  ;;  %v3918_v58 = vpop.permute.xlu1 %3917  ;;  %v10328_v39 = vld [vmem:[%s12830_s25 + $0xd] sm:$0x1]  ;;  %v10330_v17 = vld [vmem:[%s12830_s25 + $0x3d] sm:$0x1]  ;;  %v14215_v3 = vld [vmem:[%s12830_s25 + $0x55] sm:$0x1] }
  0xe8   : > { %v12551_v60 = vpack.i.bf16 %v6829_v31, %v6831_v41  ;;  %v6845_v9 = vrot.slane %v10322_v18, 2  ;;  %11196 = vmatmul.mubr.msk.f32.gmra.mrb[34].mxu0 %vm450_vm7, %v13656_v28  ;;  %v3967_v35 = vrot.slane %v12643_v61, 7  ;;  %v3969_v44 = vrot.slane %v12644_v49, 6  ;;  %v14218_v31 = vld [vmem:[%s12830_s25 + $0x6d] sm:$0x1] }
  0xe9   : > { %v6842_v12 = vsel %vm330_vm6, %v6841_v33, %v6840_v19  ;;  %v6864_v2 = vrot.slane %v10323_v4, 4  ;;  %11198 = vmatprep.mubr.msk.f32.mxu0 %vm450_vm7, %v13667_v40  ;;  %11961 = vmatpush3.bf16.msra.mxu0 %v11958_v22  ;;  %v6865_v45 = vrot.slane %v10324_v15, 3  ;;  %v6867_v36 = vrot.slane %v10325_v59, 2  ;;  %v12648_v49 = vld [vmem:[%s12830_s25 + $0x9] sm:$0x1] }
  0xea   : > { %v6844_v0 = vsel %vm354_vm3, %v6843_v29, %v6842_v12  ;;  %v6869_v51 = vrot.slane %v10326_v34, 1  ;;  %11964 = vmatprep.subr.msk.bf16.mxu0 %vm13600_vm14, %v11962_v52  ;;  %12552 = vrot.lane.b32.xlu0 %v12551_v60, %s12772_s26  ;;  %v6877_v48 = vrot.slane %v10323_v4, 7  ;;  %v6878_v54 = vrot.slane %v10324_v15, 6 }
  0xeb   : > { %v6846_v28 = vsel %vm335_vm1, %v6845_v9, %v6844_v0  ;;  %v6880_v46 = vrot.slane %v10325_v59, 5  ;;  %v6866_v40 = vsel %vm354_vm3, %v6865_v45, %v6864_v2  ;;  %v6882_v10 = vrot.slane %v10326_v34, 4  ;;  %v12650_v45 = vld [vmem:[%s12830_s25 + $0x38] sm:$0x1] }
  0xec   : > { %6847 = vrot.lane.b32.xlu1 %v6846_v28, %s12773_s27  ;;  %v6884_v18 = vrot.slane %v10327_v32, 3  ;;  %v4473_v55 = vsel %vm321_vm0, %v4472_v57, %v12645_v6  ;;  %11199 = vmatmul.mubr.msk.f32.gmra.mrb[36].mxu0 %vm450_vm7, %v13699_v5  ;;  %v3968_v43 = vsel %vm321_vm0, %v3967_v35, %v12646_v23  ;;  %v6868_v22 = vsel %vm335_vm1, %v6867_v36, %v6866_v40  ;;  %v3957_v35 = vpop.permute.xlu1 %3956  ;;  %v14250_v28 = vld [vmem:[%s16085_s1 + $0x8] sm:$0xff] }
  0xed   : > { %v6879_v62 = vsel %vm324_vm4, %v6878_v54, %v6877_v48  ;;  %v4475_v1 = vsel %vm324_vm4, %v4474_v7, %v4473_v55  ;;  %11201 = vmatprep.mubr.msk.f32.mxu0 %vm450_vm7, %v13717_v13  ;;  %11967 = vmatpush3.bf16.msk.msra.mxu0 %vm13600_vm14, %v11962_v52  ;;  %v12505_v57 = vunpack.i.h.bf16 %v12503_v20  ;;  %v12504_v5 = vunpack.i.l.bf16 %v12503_v20  ;;  %v12508_v52 = vpop.permute.xlu0 %12507  ;;  %v12653_v55 = vld [vmem:[%s12830_s25 + $0x50] sm:$0x1] }
  0xee   : > { %v6870_v4 = vsel %vm338_vm2, %v6869_v51, %v6868_v22  ;;  %v6881_v30 = vsel %vm327_vm5, %v6880_v46, %v6879_v62  ;;  %v16165_v7 = vrot.slane %v13418_v56, 5  ;;  %v14211_v15 = vsel %vm327_vm5, %v4476_v53, %v4475_v1  ;;  %v14234_v53 = vld [vmem:[%s12830_s25 + $0x67] sm:$0x1]  ;;  %v12654_v22 = vld [vmem:[%s12830_s25 + $0x20] sm:$0x1] }
  0xef   : > { %v12556_v26 = vpack.i.bf16 %v6870_v4, %v10327_v32  ;;  %v6883_v33 = vsel %vm330_vm6, %v6882_v10, %v6881_v30  ;;  %v3996_v41 = vsel %vm438_vm8, %v12504_v5, %v3918_v58  ;;  %v3995_v56 = vsel %vm436_vm9, %v14138_v50, %v12505_v57  ;;  %v12649_v32 = vld [vmem:[%s12830_s25 + $0x21] sm:$0x1]  ;;  %v14260_v10 = vld [vmem:[%s16085_s1 + $0x10] sm:$0xff]  ;;  %v10352_v57 = vld [vmem:[%s12830_s25 + $0xc] sm:$0x1] }
  0xf0   : > { %v3931_v47 = vsel %vm327_vm5, %v16165_v7, %v14152_v37  ;;  %v14224_v37 = vsel %vm324_vm4, %v3969_v44, %v3968_v43  ;;  %v6885_v29 = vsel %vm354_vm3, %v6884_v18, %v6883_v33  ;;  %11202 = vmatmul.mubr.msk.f32.gmra.mrb[38].mxu0 %vm450_vm7, %v13744_v25  ;;  %v3997_v42 = vsel %vm440_vm10, %v3996_v41, %v3925_v63  ;;  %v14276_v5 = vld [vmem:[%s12830_s25 + $0x20] sm:$0x1]  ;;  %v14280_v4 = vld [vmem:[%s12830_s25 + $0x38] sm:$0x1]  ;;  %v14287_v33 = vld [vmem:[%s12830_s25 + $0x50] sm:$0x1] }
  0xf1   : > { %12557 = vrot.lane.b32.xlu0 %v12556_v26, %s12772_s26  ;;  %v4478_v59 = vrot.slane %v14234_v53, 4  ;;  %v6903_v50 = vrot.slane %v10328_v39, 5  ;;  %v6904_v34 = vrot.slane %v10329_v27, 4  ;;  %11244 = vmatprep.mubr.msk.f32.mxu0 %vm450_vm7, %v13884_v11  ;;  %v11984_v60 = vpack.c.bf16 %v3997_v42, %v3995_v56  ;;  %v10354_v26 = vld [vmem:[%s12830_s25 + $0x3c] sm:$0x1]  ;;  %v14308_v42 = vld [vmem:[%s16085_s1 + $0x20] sm:$0xff] }
  0xf2   : > { %6886 = vrot.lane.b32.xlu1 %v6885_v29, %s12773_s27  ;;  %v6906_v14 = vrot.slane %v10330_v17, 3  ;;  %v6908_v63 = vrot.slane %v14215_v3, 2  ;;  %v6910_v19 = vrot.slane %v14218_v31, 1  ;;  %v12510_v9 = vunpack.i.h.bf16 %v12508_v52  ;;  %v10356_v29 = vld [vmem:[%s12830_s25 + $0x6c] sm:$0x1] }
  0xf3   : > { %v12509_v61 = vunpack.i.l.bf16 %v12508_v52  ;;  %v4550_v44 = vrot.slane %v12648_v49, 2  ;;  %v6905_v12 = vsel %vm330_vm6, %v6904_v34, %v6903_v50  ;;  %11985 = vmatprep.subr.bf16.mxu0 %v11984_v60  ;;  %v4551_v2 = vrot.slane %v12649_v32, 1  ;;  %v3994_v50 = vpop.permute.xlu1 %3993  ;;  %v14328_v32 = vld [vmem:[%s16085_s1 + $0x28] sm:$0xff] }
  0xf4   : > { %v6907_v0 = vsel %vm354_vm3, %v6906_v14, %v6905_v12  ;;  %v4512_v36 = vrot.slane %v12650_v45, 7  ;;  %v6915_v51 = vrot.slane %v10329_v27, 7  ;;  %11245 = vmatmul.mubr.msk.f32.vlgmr.msra.gmra.mrb[40].mxu0 %vm450_vm7, %v14250_v28  ;;  %v3998_v54 = vsel %vm442_vm11, %v3931_v47, %v12510_v9  ;;  %v3983_v27 = vpop.permute.xlu0 %3982  ;;  %v10353_v47 = vld [vmem:[%s12830_s25 + $0x24] sm:$0x1]  ;;  %v10358_v12 = vld [vmem:[%s12830_s25 + $0x25] sm:$0x1] }
  0xf5   : > { %v3999_v48 = vsel %vm444_vm12, %v12509_v61, %v3957_v35  ;;  %v6909_v46 = vsel %vm335_vm1, %v6908_v63, %v6907_v0  ;;  %v6917_v40 = vrot.slane %v10330_v17, 6  ;;  %11247 = vmatprep.mubr.msk.f32.mxu0 %vm450_vm7, %v14260_v10  ;;  %11987 = vmatpush3.bf16.msra.mxu0 %v11984_v60  ;;  %v4514_v20 = vrot.slane %v12653_v55, 6  ;;  %v14293_v17 = vld [vmem:[%s16085_s1 + $0x18] sm:$0xff]  ;;  %v10355_v60 = vld [vmem:[%s12830_s25 + $0x54] sm:$0x1] }
  0xf6   : > { %v4000_v18 = vsel %vm446_vm13, %v3999_v48, %v14144_v8  ;;  %v6911_v6 = vsel %vm338_vm2, %v6910_v19, %v6909_v46  ;;  %v6919_v23 = vrot.slane %v14215_v3, 5  ;;  %v4513_v62 = vsel %vm321_vm0, %v4512_v36, %v12654_v22  ;;  %v10357_v35 = vld [vmem:[%s12830_s25 + $0xd] sm:$0x1]  ;;  %v10359_v36 = vld [vmem:[%s12830_s25 + $0x3d] sm:$0x1] }
  0xf7   : > { %v11988_v43 = vpack.c.bf16 %v4000_v18, %v3998_v54  ;;  %6912 = vrot.lane.b32.xlu0 %v6911_v6, %s12772_s26  ;;  %v6916_v1 = vsel %vm321_vm0, %v6915_v51, %v10328_v39  ;;  %v6921_v8 = vrot.slane %v14218_v31, 4  ;;  %v5058_v58 = vrot.slane %v14276_v5, 7  ;;  %v14300_v31 = vld [vmem:[%s12830_s25 + $0x8] sm:$0x1]  ;;  %v12662_v51 = vld [vmem:[%s12830_s25 + $0x51] sm:$0x1] }
  0xf8   : > { %v5060_v30 = vrot.slane %v14280_v4, 6  ;;  %v6918_v7 = vsel %vm324_vm4, %v6917_v40, %v6916_v1  ;;  %v5062_v39 = vrot.slane %v14287_v33, 5  ;;  %11248 = vmatmul.mubr.msk.f32.gmra.mrb[42].mxu0 %vm450_vm7, %v14293_v17  ;;  %v4001_v3 = vsel %vm16150_vm15, %v14224_v37, %v3983_v27  ;;  %v10360_v46 = vld [vmem:[%s12830_s25 + $0x55] sm:$0x1]  ;;  %v12513_v40 = vpop.permute.xlu0 %12512 }
  0xf9   : > { %11989 = vmatprep.subr.bf16.mxu0 %v11988_v43  ;;  %v4511_v41 = vrot.slane %v14300_v31, 1  ;;  %v6920_v56 = vsel %vm327_vm5, %v6919_v23, %v6918_v7  ;;  %11250 = vmatprep.mubr.msk.f32.mxu0 %vm450_vm7, %v14308_v42  ;;  %v4479_v37 = vsel %vm330_vm6, %v4478_v59, %v14211_v15  ;;  %v4515_v34 = vsel %vm324_vm4, %v4514_v20, %v4513_v62  ;;  %v285_v31 = vld [vmem:[%s16086_s2 + $0x8] sm:$0xff] }
  0xfa   : > { %11991 = vmatpush3.bf16.msra.mxu0 %v11988_v43  ;;  %v6922_v52 = vsel %vm330_vm6, %v6921_v8, %v6920_v56  ;;  %v7411_v14 = vrot.slane %v10352_v57, 3  ;;  %v11992_v63 = vpack.c.bf16 %v3994_v50, %v4001_v3  ;;  %v14320_v19 = vsel %vm338_vm2, %v4551_v2, %v4550_v44  ;;  %v4504_v43 = vpop.permute.xlu1 %4503  ;;  %v10361_v8 = vld [vmem:[%s12830_s25 + $0x6d] sm:$0x1] }
  0xfb   : > { %6923 = vrot.lane.b32.xlu1 %v6922_v52, %s12773_s27  ;;  %v7412_v9 = vrot.slane %v10353_v47, 2  ;;  %v7414_v61 = vrot.slane %v10354_v26, 1  ;;  %v7416_v53 = vrot.slane %v10356_v29, 7  ;;  %v7424_v49 = vrot.slane %v10352_v57, 6 }
  0xfc   : > { %v7425_v15 = vrot.slane %v10353_v47, 5  ;;  %v7427_v59 = vrot.slane %v10354_v26, 4  ;;  %11251 = vmatmul.mubr.msk.f32.gmra.mrb[44].mxu0 %vm450_vm7, %v14328_v32  ;;  %11994 = vmatprep.subr.msk.bf16.mxu0 %vm13600_vm14, %v11992_v63  ;;  %v14337_v44 = vsel %vm327_vm5, %v4516_v16, %v4515_v34  ;;  %v7429_v0 = vrot.slane %v10355_v60, 3 }
  0xfd   : > { %v7413_v2 = vsel %vm335_vm1, %v7412_v9, %v7411_v14  ;;  %v7431_v45 = vrot.slane %v10356_v29, 2  ;;  %11253 = vmatprep.mubr.msk.f32.mxu0 %vm450_vm7, %v13717_v13  ;;  %v4553_v48 = vrot.slane %v12662_v51, 7  ;;  %v7417_v24 = vsel %vm321_vm0, %v7416_v53, %v10355_v60  ;;  %v12664_v53 = vld [vmem:[%s12830_s25 + $0x69] sm:$0x1] }
  0xfe   : > { %11997 = vmatpush3.bf16.msk.msra.mxu0 %vm13600_vm14, %v11992_v63  ;;  %v7415_v54 = vsel %vm338_vm2, %v7414_v61, %v7413_v2  ;;  %v7426_v16 = vsel %vm327_vm5, %v7425_v15, %v7424_v49  ;;  %v7450_v55 = vrot.slane %v10357_v35, 4  ;;  %v7451_v20 = vrot.slane %v10358_v12, 3  ;;  %v284_v63 = vld [vmem:[%s16086_s2] sm:$0xff]  ;;  %v4543_v9 = vpop.permute.xlu1 %4542  ;;  %v12663_v61 = vld [vmem:[%s12830_s25 + $0x39] sm:$0x1] }
  0xff   : > { %v12561_v18 = vpack.i.bf16 %v7415_v54, %v7417_v24  ;;  %v7428_v6 = vsel %vm330_vm6, %v7427_v59, %v7426_v16  ;;  %v12515_v13 = vunpack.i.h.bf16 %v12513_v40  ;;  %v12514_v23 = vunpack.i.l.bf16 %v12513_v40  ;;  %v12665_v59 = vld [vmem:[%s12830_s25 + $0x8] sm:$0x1]  ;;  %v10362_v2 = vld [vmem:[%s12830_s25 + $0xe] sm:$0x1]  ;;  %v10364_v54 = vld [vmem:[%s12830_s25 + $0x3e] sm:$0x1] }
 0x100   : > { %v7430_v22 = vsel %vm354_vm3, %v7429_v0, %v7428_v6  ;;  %v7453_v62 = vrot.slane %v10359_v36, 2  ;;  %11254 = vmatmul.mubr.msk.f32.gmra.mrb[46].mxu0 %vm450_vm7, %v13744_v25  ;;  %v7452_v57 = vsel %vm354_vm3, %v7451_v20, %v7450_v55  ;;  %v7455_v27 = vrot.slane %v10360_v46, 1  ;;  %v10365_v16 = vld [vmem:[%s12830_s25 + $0x56] sm:$0x1] }
 0x101   : > { %12562 = vrot.lane.b32.xlu0 %v12561_v18, %s12772_s26  ;;  %v7432_v1 = vsel %vm335_vm1, %v7431_v45, %v7430_v22  ;;  %v7463_v7 = vrot.slane %v10357_v35, 7  ;;  %11296 = vmatprep.mubr.msk.f32.mxu0 %vm450_vm7, %v13884_v11  ;;  %v4582_v47 = vsel %vm438_vm8, %v12514_v23, %v4504_v43  ;;  %v4581_v26 = vsel %vm436_vm9, %v4479_v37, %v12515_v13  ;;  %v14419_v13 = vld [vmem:[%s12830_s25 + $0x69] sm:$0x1] }
 0x102   : > { %7433 = vrot.lane.b32.xlu1 %v7432_v1, %s12773_s27  ;;  %v7454_v25 = vsel %vm335_vm1, %v7453_v62, %v7452_v57  ;;  %v7464_v3 = vrot.slane %v10358_v12, 6  ;;  %v4583_v56 = vsel %vm440_vm10, %v4582_v47, %v4511_v41  ;;  %v7466_v50 = vrot.slane %v10359_v36, 5  ;;  %v12518_v41 = vpop.permute.xlu0 %12517  ;;  %v14424_v1 = vld [vmem:[%s12830_s25 + $0x21] sm:$0x1]  ;;  %v14428_v57 = vld [vmem:[%s12830_s25 + $0x39] sm:$0x1] }
 0x103   : > { %v7456_v29 = vsel %vm338_vm2, %v7455_v27, %v7454_v25  ;;  %v7468_v34 = vrot.slane %v10360_v46, 4  ;;  %v12014_v52 = vpack.c.bf16 %v4583_v56, %v4581_v26  ;;  %v7470_v14 = vrot.slane %v10361_v8, 3  ;;  %v10366_v46 = vld [vmem:[%s12830_s25 + $0x6e] sm:$0x1]  ;;  %v9945_v26 = vld [vmem:[%s16086_s2 + $0x10] sm:$0xff]  ;;  %v9946_v25 = vld [vmem:[%s16086_s2 + $0x18] sm:$0xff] }
 0x104   : > { %v12566_v60 = vpack.i.bf16 %v7456_v29, %v10361_v8  ;;  %v7465_v37 = vsel %vm324_vm4, %v7464_v3, %v7463_v7  ;;  %11297 = vmatmul.mubr.msk.f32.vlgmr.msra.gmra.mrb[48].mxu0 %vm450_vm7, %v14250_v28  ;;  %v4554_v35 = vsel %vm321_vm0, %v4553_v48, %v12663_v61  ;;  %v4555_v49 = vrot.slane %v12664_v53, 6  ;;  %v10363_v48 = vld [vmem:[%s12830_s25 + $0x26] sm:$0x1]  ;;  %v14465_v53 = vld [vmem:[%s12830_s25 + $0x25] sm:$0x1] }
 0x105   : > { %v7467_v15 = vsel %vm327_vm5, %v7466_v50, %v7465_v37  ;;  %v5059_v12 = vsel %vm321_vm0, %v5058_v58, %v12665_v59  ;;  %11299 = vmatprep.mubr.msk.f32.mxu0 %vm450_vm7, %v14260_v10  ;;  %v12520_v0 = vunpack.i.h.bf16 %v12518_v41  ;;  %v12519_v45 = vunpack.i.l.bf16 %v12518_v41  ;;  %12015 = vmatprep.subr.bf16.mxu0 %v12014_v52  ;;  %v14458_v41 = vld [vmem:[%s12830_s25 + $0xd] sm:$0x1] }
 0x106   : > { %v7469_v36 = vsel %vm330_vm6, %v7468_v34, %v7467_v15  ;;  %v5061_v51 = vsel %vm324_vm4, %v5060_v30, %v5059_v12  ;;  %12017 = vmatpush3.bf16.msra.mxu0 %v12014_v52  ;;  %12567 = vrot.lane.b32.xlu0 %v12566_v60, %s12772_s26  ;;  %v14401_v24 = vpack.c.bf16 %v285_v31, %v284_v63  ;;  %v7489_v40 = vrot.slane %v10362_v2, 5  ;;  %v14444_v34 = vld [vmem:[%s12830_s25 + $0x51] sm:$0x1]  ;;  %v10390_v15 = vld [vmem:[%s12830_s25 + $0x6d] sm:$0x1] }
 0x107   : > { %v7471_v5 = vsel %vm354_vm3, %v7470_v14, %v7469_v36  ;;  %v14399_v58 = vsel %vm327_vm5, %v5062_v39, %v5061_v51  ;;  %v4585_v4 = vsel %vm444_vm12, %v12519_v45, %v4543_v9  ;;  %v4584_v30 = vsel %vm442_vm11, %v14337_v44, %v12520_v0  ;;  %v14450_v60 = vld [vmem:[%s16085_s1 + $0x30] sm:$0xff]  ;;  %v12671_v14 = vld [vmem:[%s12830_s25 + $0x39] sm:$0x1]  ;;  %v12672_v12 = vld [vmem:[%s12830_s25 + $0x9] sm:$0x1] }
 0x108   : > { %7472 = vrot.lane.b32.xlu1 %v7471_v5, %s12773_s27  ;;  %11300 = vmatmul.mubr.msk.f32.gmra.mrb[50].mxu0 %vm450_vm7, %v14293_v17  ;;  %v4586_v33 = vsel %vm446_vm13, %v4585_v4, %v14320_v19  ;;  %v7490_v39 = vrot.slane %v10363_v48, 4  ;;  %v7492_v18 = vrot.slane %v10364_v54, 3  ;;  %v4556_v44 = vsel %vm324_vm4, %v4555_v49, %v4554_v35  ;;  %v4569_v23 = vpop.permute.xlu0 %4568  ;;  %v14468_v49 = vld [vmem:[%s12830_s25 + $0x3d] sm:$0x1]  ;;  %v12673_v0 = vld [vmem:[%s12830_s25 + $0x68] sm:$0x1] }
 0x109   : > { %11819 = vmatprep.subr.bf16.mxu1 %v14401_v24  ;;  %11302 = vmatprep.mubr.msk.f32.mxu0 %vm450_vm7, %v14308_v42  ;;  %v12018_v6 = vpack.c.bf16 %v4586_v33, %v4584_v30  ;;  %v7494_v55 = vrot.slane %v10365_v16, 2  ;;  %v7496_v20 = vrot.slane %v10366_v46, 1  ;;  %v5102_v19 = vrot.slane %v14419_v13, 5  ;;  %v14475_v51 = vld [vmem:[%s12830_s25 + $0x55] sm:$0x1] }
 0x10a   : > { %11821 = vmatpush3.bf16.msra.mxu1 %v14401_v24  ;;  %v7491_v43 = vsel %vm330_vm6, %v7490_v39, %v7489_v40  ;;  %v7501_v22 = vrot.slane %v10363_v48, 7  ;;  %v7503_v62 = vrot.slane %v10364_v54, 6  ;;  %v5644_v8 = vrot.slane %v14424_v1, 7  ;;  %v14480_v48 = vld [vmem:[%s16085_s1 + $0x38] sm:$0xff]  ;;  %v14485_v54 = vld [vmem:[%s12830_s25 + $0xa] sm:$0x1] }
 0x10b   : > { %v5646_v27 = vrot.slane %v14428_v57, 6  ;;  %12019 = vmatprep.subr.bf16.mxu0 %v12018_v6  ;;  %v7493_v7 = vsel %vm354_vm3, %v7492_v18, %v7491_v43  ;;  %v7505_v47 = vrot.slane %v10365_v16, 5  ;;  %v4587_v3 = vsel %vm16150_vm15, %v4556_v44, %v4569_v23  ;;  %v14489_v16 = vld [vmem:[%s12830_s25 + $0x22] sm:$0x1]  ;;  %v12677_v4 = vld [vmem:[%s12830_s25 + $0x51] sm:$0x1] }
 0x10c   : > { %11303 = vmatmul.mubr.msk.f32.gmra.mrb[52].mxu0 %vm450_vm7, %v14328_v32  ;;  %v7495_v56 = vsel %vm335_vm1, %v7494_v55, %v7493_v7  ;;  %v7502_v29 = vsel %vm321_vm0, %v7501_v22, %v10362_v2  ;;  %v7507_v50 = vrot.slane %v10366_v46, 4  ;;  %v5648_v52 = vrot.slane %v14444_v34, 5  ;;  %v4580_v9 = vpop.permute.xlu1 %4579  ;;  %v12678_v33 = vld [vmem:[%s12830_s25 + $0x21] sm:$0x1]  ;;  %v14511_v43 = vld [vmem:[%s12830_s25 + $0xe] sm:$0x1] }
 0x10d   : > { %12021 = vmatpush3.bf16.msra.mxu0 %v12018_v6  ;;  %11305 = vmatprep.mubr.msk.f32.mxu0 %vm450_vm7, %v14450_v60  ;;  %v7497_v37 = vsel %vm338_vm2, %v7496_v20, %v7495_v56  ;;  %v5098_v63 = vrot.slane %v12671_v14, 7  ;;  %v7504_v31 = vsel %vm324_vm4, %v7503_v62, %v7502_v29  ;;  %v14462_v35 = vpack.c.bf16 %v9946_v25, %v9945_v26  ;;  %v14519_v26 = vld [vmem:[%s12830_s25 + $0x26] sm:$0x1]  ;;  %v14522_v25 = vld [vmem:[%s12830_s25 + $0x3e] sm:$0x1] }
 0x10e   : > { %7498 = vrot.lane.b32.xlu0 %v7497_v37, %s12772_s26  ;;  %v7506_v61 = vsel %vm327_vm5, %v7505_v47, %v7504_v31  ;;  %v12022_v59 = vpack.c.bf16 %v4580_v9, %v4587_v3  ;;  %v5097_v2 = vrot.slane %v12672_v12, 1  ;;  %v5064_v45 = vrot.slane %v12673_v0, 4  ;;  %v12679_v29 = vld [vmem:[%s12830_s25 + $0x52] sm:$0x1]  ;;  %v14578_v1 = vld [vmem:[%s12830_s25 + $0xf] sm:$0x1] }
 0x10f   : > { %v7508_v36 = vsel %vm330_vm6, %v7507_v50, %v7506_v61  ;;  %v5136_v5 = vrot.slane %v14485_v54, 2  ;;  %v5137_v46 = vrot.slane %v14489_v16, 1  ;;  %v5100_v30 = vrot.slane %v12677_v4, 6  ;;  %11823 = vmatprep.subr.bf16.mxu1 %v14462_v35  ;;  %v12681_v16 = vld [vmem:[%s12830_s25 + $0x6a] sm:$0x1] }
 0x110   : > { %11306 = vmatmul.mubr.msk.f32.gmra.mrb[54].mxu0 %vm450_vm7, %v14480_v48  ;;  %7509 = vrot.lane.b32.xlu1 %v7508_v36, %s12773_s27  ;;  %v7997_v40 = vrot.slane %v14458_v41, 3  ;;  %v5099_v39 = vsel %vm321_vm0, %v5098_v63, %v12678_v33  ;;  %v7998_v18 = vrot.slane %v14465_v53, 2  ;;  %v8000_v6 = vrot.slane %v14468_v49, 1  ;;  %v12682_v13 = vld [vmem:[%s12830_s25 + $0x3a] sm:$0x1] }
 0x111   : > { %12024 = vmatprep.subr.msk.bf16.mxu0 %vm13600_vm14, %v12022_v59  ;;  %11348 = vmatprep.mubr.msk.f32.mxu0 %vm450_vm7, %v13884_v11  ;;  %v8002_v44 = vrot.slane %v10390_v15, 7  ;;  %v8010_v55 = vrot.slane %v14458_v41, 6  ;;  %v8011_v11 = vrot.slane %v14465_v53, 5  ;;  %v8013_v20 = vrot.slane %v14468_v49, 4  ;;  %v12523_v3 = vpop.permute.xlu0 %12522 }
 0x112   : > { %12027 = vmatpush3.bf16.msk.msra.mxu0 %vm13600_vm14, %v12022_v59  ;;  %v8015_v23 = vrot.slane %v14475_v51, 3  ;;  %v5065_v22 = vsel %vm330_vm6, %v5064_v45, %v14399_v58  ;;  %v7999_v62 = vsel %vm335_vm1, %v7998_v18, %v7997_v40  ;;  %v8017_v47 = vrot.slane %v10390_v15, 2  ;;  %v14529_v58 = vld [vmem:[%s12830_s25 + $0x56] sm:$0x1]  ;;  %v5090_v9 = vpop.permute.xlu1 %5089  ;;  %v14545_v40 = vld [vmem:[%s12830_s25 + $0x6e] sm:$0x1] }
 0x113   : > { %v8003_v7 = vsel %vm321_vm0, %v8002_v44, %v14475_v51  ;;  %v5101_v56 = vsel %vm324_vm4, %v5100_v30, %v5099_v39  ;;  %v5139_v50 = vrot.slane %v12679_v29, 7  ;;  %v8001_v37 = vsel %vm338_vm2, %v8000_v6, %v7999_v62 }
 0x114   : > { %v8012_v14 = vsel %vm327_vm5, %v8011_v11, %v8010_v55  ;;  %v12525_v63 = vunpack.i.h.bf16 %v12523_v3  ;;  %v12524_v31 = vunpack.i.l.bf16 %v12523_v3  ;;  %v12571_v61 = vpack.i.bf16 %v8001_v37, %v8003_v7  ;;  %v12680_v7 = vld [vmem:[%s12830_s25 + $0x9] sm:$0x1] }
 0x115   : > { %11349 = vmatmul.mubr.msk.f32.vlgmr.msra.gmra.mrb[56].mxu0 %vm450_vm7, %v14250_v28  ;;  %v8014_v15 = vsel %vm330_vm6, %v8013_v20, %v8012_v14  ;;  %v8036_v12 = vrot.slane %v14511_v43, 4  ;;  %v8037_v0 = vrot.slane %v14519_v26, 3  ;;  %v8039_v45 = vrot.slane %v14522_v25, 2 }
 0x116   : > { %11351 = vmatprep.mubr.msk.f32.mxu0 %vm450_vm7, %v14260_v10  ;;  %v8016_v59 = vsel %vm354_vm3, %v8015_v23, %v8014_v15  ;;  %v5168_v36 = vsel %vm438_vm8, %v12524_v31, %v5090_v9  ;;  %v5167_v4 = vsel %vm436_vm9, %v5065_v22, %v12525_v63  ;;  %12572 = vrot.lane.b32.xlu0 %v12571_v61, %s12772_s26  ;;  %v8041_v33 = vrot.slane %v14529_v58, 1  ;;  %v14584_v63 = vld [vmem:[%s12830_s25 + $0x3f] sm:$0x1]  ;;  %v14600_v9 = vld [vmem:[%s12830_s25 + $0x6f] sm:$0x1] }
 0x117   : > { %v8018_v30 = vsel %vm335_vm1, %v8017_v47, %v8016_v59  ;;  %v5169_v39 = vsel %vm440_vm10, %v5168_v36, %v5097_v2  ;;  %v8038_v18 = vsel %vm354_vm3, %v8037_v0, %v8036_v12  ;;  %v8049_v6 = vrot.slane %v14511_v43, 7 }
 0x118   : > { %8019 = vrot.lane.b32.xlu1 %v8018_v30, %s12773_s27  ;;  %v8050_v44 = vrot.slane %v14519_v26, 6  ;;  %v12044_v55 = vpack.c.bf16 %v5169_v39, %v5167_v4  ;;  %v8040_v11 = vsel %vm335_vm1, %v8039_v45, %v8038_v18  ;;  %v8052_v20 = vrot.slane %v14522_v25, 5  ;;  %v12528_v54 = vpop.permute.xlu0 %12527  ;;  %v14619_v4 = vld [vmem:[%s12830_s25 + $0x6a] sm:$0x1] }
 0x119   : > { %11352 = vmatmul.mubr.msk.f32.gmra.mrb[58].mxu0 %vm450_vm7, %v14293_v17  ;;  %v8054_v2 = vrot.slane %v14529_v58, 4  ;;  %v8042_v23 = vsel %vm338_vm2, %v8041_v33, %v8040_v11  ;;  %v8056_v62 = vrot.slane %v14545_v40, 3  ;;  %v5645_v47 = vsel %vm321_vm0, %v5644_v8, %v12680_v7  ;;  %v14581_v8 = vld [vmem:[%s12830_s25 + $0x27] sm:$0x1]  ;;  %v5129_v59 = vpop.permute.xlu1 %5128 }
 0x11a   : > { %11354 = vmatprep.mubr.msk.f32.mxu0 %vm450_vm7, %v14308_v42  ;;  %v8051_v22 = vsel %vm324_vm4, %v8050_v44, %v8049_v6  ;;  %12045 = vmatprep.subr.bf16.mxu0 %v12044_v55  ;;  %v5138_v3 = vsel %vm338_vm2, %v5137_v46, %v5136_v5  ;;  %v12576_v29 = vpack.i.bf16 %v8042_v23, %v14545_v40  ;;  %v5141_v46 = vrot.slane %v12681_v16, 6  ;;  %v14653_v16 = vld [vmem:[%s12830_s25 + $0xe] sm:$0x1] }
 0x11b   : > { %v8053_v37 = vsel %vm327_vm5, %v8052_v20, %v8051_v22  ;;  %v5647_v14 = vsel %vm324_vm4, %v5646_v27, %v5645_v47  ;;  %12047 = vmatpush3.bf16.msra.mxu0 %v12044_v55  ;;  %v5103_v5 = vsel %vm327_vm5, %v5102_v19, %v5101_v56  ;;  %v14597_v27 = vld [vmem:[%s12830_s25 + $0x57] sm:$0x1]  ;;  %v12530_v61 = vunpack.i.h.bf16 %v12528_v54  ;;  %v14631_v20 = vld [vmem:[%s12830_s25 + $0x22] sm:$0x1] }
 0x11c   : > { %v8055_v31 = vsel %vm330_vm6, %v8054_v2, %v8053_v37  ;;  %v14594_v57 = vsel %vm327_vm5, %v5648_v52, %v5647_v14  ;;  %v12529_v15 = vunpack.i.l.bf16 %v12528_v54  ;;  %v5140_v19 = vsel %vm321_vm0, %v5139_v50, %v12682_v13  ;;  %12577 = vrot.lane.b32.xlu0 %v12576_v29, %s12772_s26  ;;  %v14637_v22 = vld [vmem:[%s16085_s1] sm:$0xff]  ;;  %v12687_v14 = vld [vmem:[%s12830_s25 + $0x3a] sm:$0x1]  ;;  %v14733_v13 = vld [vmem:[%s12830_s25 + $0x6f] sm:$0x1] }
 0x11d   : > { %11355 = vmatmul.mubr.msk.f32.gmra.mrb[60].mxu0 %vm450_vm7, %v14328_v32  ;;  %v8057_v34 = vsel %vm354_vm3, %v8056_v62, %v8055_v31  ;;  %v8075_v52 = vrot.slane %v14578_v1, 5  ;;  %v8076_v56 = vrot.slane %v14581_v8, 4  ;;  %v8078_v12 = vrot.slane %v14584_v63, 3  ;;  %v14659_v31 = vld [vmem:[%s12830_s25 + $0x52] sm:$0x1]  ;;  %16171 = vst [vmem:[#allocation7_spill] sm:$0xff] %v14733_v13 }
 0x11e   : > { %11357 = vmatprep.mubr.msk.f32.mxu0 %vm450_vm7, %v14450_v60  ;;  %8058 = vrot.lane.b32.xlu1 %v8057_v34, %s12773_s27  ;;  %v5171_v0 = vsel %vm444_vm12, %v12529_v15, %v5129_v59  ;;  %v5170_v50 = vsel %vm442_vm11, %v5103_v5, %v12530_v61  ;;  %v8080_v45 = vrot.slane %v14597_v27, 2  ;;  %v8082_v36 = vrot.slane %v14600_v9, 1  ;;  %v14664_v59 = vld [vmem:[%s12830_s25 + $0xa] sm:$0x1]  ;;  %v14670_v34 = vld [vmem:[%s12830_s25 + $0x3e] sm:$0x1] }
 0x11f   : > { %v5172_v33 = vsel %vm446_vm13, %v5171_v0, %v5138_v3  ;;  %v5142_v39 = vsel %vm324_vm4, %v5141_v46, %v5140_v19  ;;  %v8077_v18 = vsel %vm330_vm6, %v8076_v56, %v8075_v52  ;;  %v8087_v55 = vrot.slane %v14581_v8, 7  ;;  %v14645_v3 = vld [vmem:[%s12830_s25 + $0x3a] sm:$0x1]  ;;  %v14656_v46 = vld [vmem:[%s12830_s25 + $0x26] sm:$0x1] }
 0x120   : > { %v12048_v6 = vpack.c.bf16 %v5172_v33, %v5170_v50  ;;  %v8079_v44 = vsel %vm354_vm3, %v8078_v12, %v8077_v18  ;;  %v8089_v11 = vrot.slane %v14584_v63, 6  ;;  %v6230_v2 = vrot.slane %v14631_v20, 7  ;;  %v5155_v23 = vpop.permute.xlu0 %5154  ;;  %v14673_v52 = vld [vmem:[%s12830_s25 + $0x6e] sm:$0x1]  ;;  %v12690_v56 = vld [vmem:[%s12830_s25 + $0x69] sm:$0x1] }
 0x121   : > { %11358 = vmatmul.mubr.msk.f32.gmra.mrb[62].mxu0 %vm450_vm7, %v14480_v48  ;;  %v8081_v62 = vsel %vm335_vm1, %v8080_v45, %v8079_v44  ;;  %v8091_v7 = vrot.slane %v14597_v27, 5  ;;  %v8093_v47 = vrot.slane %v14600_v9, 4  ;;  %v5684_v54 = vrot.slane %v12687_v14, 7  ;;  %16166 = vst [vmem:[#allocation11_spill] sm:$0xff] %v14673_v52  ;;  %v14677_v0 = vld [vmem:[%s12830_s25 + $0xb] sm:$0x1] }
 0x122   : > { %11400 = vmatprep.mubr.msk.f32.mxu0 %vm450_vm7, %v14637_v22  ;;  %12049 = vmatprep.subr.bf16.mxu0 %v12048_v6  ;;  %v8083_v37 = vsel %vm338_vm2, %v8082_v36, %v8081_v62  ;;  %v8088_v5 = vsel %vm321_vm0, %v8087_v55, %v14578_v1  ;;  %v5173_v15 = vsel %vm16150_vm15, %v5142_v39, %v5155_v23  ;;  %v5650_v12 = vrot.slane %v12690_v56, 4  ;;  %v14681_v45 = vld [vmem:[%s12830_s25 + $0x23] sm:$0x1]  ;;  %v12693_v18 = vld [vmem:[%s12830_s25 + $0x52] sm:$0x1] }
 0x123   : > { %12051 = vmatpush3.bf16.msra.mxu0 %v12048_v6  ;;  %8084 = vrot.lane.b32.xlu0 %v8083_v37, %s12772_s26  ;;  %v8090_v19 = vsel %vm324_vm4, %v8089_v11, %v8088_v5  ;;  %v5686_v6 = vrot.slane %v12693_v18, 6  ;;  %v14688_v55 = vld [vmem:[%s12830_s25 + $0x56] sm:$0x1]  ;;  %v8583_v11 = vrot.slane %v14653_v16, 3  ;;  %v8584_v23 = vrot.slane %v14656_v46, 2 }
 0x124   : > { %v8092_v33 = vsel %vm327_vm5, %v8091_v7, %v8090_v19  ;;  %v12694_v37 = vld [vmem:[%s12830_s25 + $0x22] sm:$0x1]  ;;  %v8586_v7 = vrot.slane %v14670_v34, 1  ;;  %v8588_v5 = vrot.slane %v14673_v52, 7  ;;  %v14698_v19 = vld [vmem:[%s12830_s25 + $0xf] sm:$0x1]  ;;  %v5651_v36 = vsel %vm330_vm6, %v5650_v12, %v14594_v57 }
 0x125   : > { %v5166_v39 = vpop.permute.xlu1 %5165  ;;  %v8094_v44 = vsel %vm330_vm6, %v8093_v47, %v8092_v33  ;;  %v5685_v14 = vsel %vm321_vm0, %v5684_v54, %v12694_v37  ;;  %16167 = vst [vmem:[#allocation2_spill] sm:$0xff] %v14698_v19  ;;  %v14701_v47 = vld [vmem:[%s12830_s25 + $0x27] sm:$0x1]  ;;  %v8585_v56 = vsel %vm335_vm1, %v8584_v23, %v8583_v11  ;;  %v8596_v33 = vrot.slane %v14653_v16, 6  ;;  %v14708_v54 = vld [vmem:[%s12830_s25 + $0x3f] sm:$0x1] }
 0x126   : > { %v12052_v62 = vpack.c.bf16 %v5166_v39, %v5173_v15  ;;  %8095 = vrot.lane.b32.xlu1 %v8094_v44, %s12773_s27  ;;  %16168 = vst [vmem:[#allocation4_spill] sm:$0xff] %v14701_v47  ;;  %v8597_v15 = vrot.slane %v14656_v46, 5  ;;  %v8599_v39 = vrot.slane %v14670_v34, 4  ;;  %16169 = vst [vmem:[#allocation6_spill] sm:$0xff] %v14708_v54  ;;  %v8587_v18 = vsel %vm338_vm2, %v8586_v7, %v8585_v56  ;;  %v14718_v23 = vld [vmem:[%s12830_s25 + $0x57] sm:$0x1] }
 0x127   : > { %v8589_v44 = vsel %vm321_vm0, %v8588_v5, %v14688_v55  ;;  %v8601_v37 = vrot.slane %v14688_v55, 3  ;;  %v8603_v11 = vrot.slane %v14673_v52, 2  ;;  %16170 = vst [vmem:[#allocation5_spill] sm:$0xff] %v14718_v23  ;;  %v5687_v50 = vsel %vm324_vm4, %v5686_v6, %v5685_v14 }
 0x128   : > { %12054 = vmatprep.subr.msk.bf16.mxu0 %vm13600_vm14, %v12052_v62  ;;  %v12581_v61 = vpack.i.bf16 %v8587_v18, %v8589_v44  ;;  %v8598_v7 = vsel %vm327_vm5, %v8597_v15, %v8596_v33  ;;  %v8622_v5 = vrot.slane %v14698_v19, 4  ;;  %v8623_v30 = vrot.slane %v14701_v47, 3 }
 0x129   : > { %12057 = vmatpush3.bf16.msk.msra.mxu0 %vm13600_vm14, %v12052_v62  ;;  %v8600_v56 = vsel %vm330_vm6, %v8599_v39, %v8598_v7  ;;  %v8625_v29 = vrot.slane %v14708_v54, 2  ;;  %v8627_v57 = vrot.slane %v14718_v23, 1  ;;  %v8635_v12 = vrot.slane %v14698_v19, 7 }
 0x12a   : > { %12582 = vrot.lane.b32.xlu0 %v12581_v61, %s12772_s26  ;;  %v8602_v62 = vsel %vm354_vm3, %v8601_v37, %v8600_v56  ;;  %v8636_v6 = vrot.slane %v14701_v47, 6  ;;  %v8624_v15 = vsel %vm354_vm3, %v8623_v30, %v8622_v5  ;;  %v8638_v61 = vrot.slane %v14708_v54, 5 }
 0x12b   : > { %v8604_v33 = vsel %vm335_vm1, %v8603_v11, %v8602_v62  ;;  %v8640_v39 = vrot.slane %v14718_v23, 4  ;;  %v8626_v7 = vsel %vm335_vm1, %v8625_v29, %v8624_v15  ;;  %v8642_v5 = vrot.slane %v14733_v13, 3  ;;  %v12695_v62 = vld [vmem:[%s12830_s25 + $0xa] sm:$0x1]  ;;  %v14767_v15 = vld [vmem:[%s12830_s25 + $0x40] sm:$0x1] }
 0x12c   : > { %11401 = vmatmul.mubr.msk.f32.vlgmr.msra.gmra.mrb[64].mxu0 %vm450_vm7, %v14250_v28  ;;  %v12533_v14 = vpop.permute.xlu0 %12532  ;;  %8605 = vrot.lane.b32.xlu1 %v8604_v33, %s12773_s27  ;;  %v8637_v11 = vsel %vm324_vm4, %v8636_v6, %v8635_v12  ;;  %v8628_v30 = vsel %vm338_vm2, %v8627_v57, %v8626_v7  ;;  %v14761_v57 = vld [vmem:[%s12830_s25 + $0x10] sm:$0x1]  ;;  %v14764_v6 = vld [vmem:[%s12830_s25 + $0x28] sm:$0x1]  ;;  %16174 = vst [vmem:[#allocation10_spill] sm:$0xff] %v14767_v15  ;;  %v16175_v20 = vrot.slane %v14664_v59, 1 }
 0x12d   : > { %v12535_v18 = vunpack.i.h.bf16 %v12533_v14  ;;  %v12534_v44 = vunpack.i.l.bf16 %v12533_v14  ;;  %v5676_v37 = vpop.permute.xlu1 %5675  ;;  %11403 = vmatprep.mubr.msk.f32.mxu0 %vm450_vm7, %v14260_v10  ;;  %v8639_v56 = vsel %vm327_vm5, %v8638_v61, %v8637_v11  ;;  %v6231_v14 = vsel %vm321_vm0, %v6230_v2, %v12695_v62  ;;  %16172 = vst [vmem:[#allocation3_spill] sm:$0xff] %v14761_v57  ;;  %16173 = vst [vmem:[#allocation9_spill] sm:$0xff] %v14764_v6 }
 0x12e   : > { %v12586_v29 = vpack.i.bf16 %v8628_v30, %v14733_v13  ;;  %v8641_v12 = vsel %vm330_vm6, %v8640_v39, %v8639_v56  ;;  %v16176_v61 = vrot.slane %v14645_v3, 6  ;;  %v14793_v3 = vld [vmem:[%s12830_s25 + $0x70] sm:$0x1]  ;;  %v12696_v30 = vld [vmem:[%s12830_s25 + $0x53] sm:$0x1] }
 0x12f   : > { %v5754_v47 = vsel %vm438_vm8, %v12534_v44, %v5676_v37  ;;  %v5753_v33 = vsel %vm436_vm9, %v5651_v36, %v12535_v18  ;;  %v8643_v36 = vsel %vm354_vm3, %v8642_v5, %v8641_v12  ;;  %v14779_v18 = vld [vmem:[%s12830_s25 + $0x58] sm:$0x1]  ;;  %v16178_v37 = vrot.slane %v14619_v4, 5  ;;  %16180 = vst [vmem:[#allocation12_spill] sm:$0xff] %v14793_v3 }
 0x130   : > { %v5755_v2 = vsel %vm440_vm10, %v5754_v47, %v16175_v20  ;;  %11404 = vmatmul.mubr.msk.f32.gmra.mrb[66].mxu0 %vm450_vm7, %v14293_v17  ;;  %v6233_v39 = vsel %vm324_vm4, %v16176_v61, %v6231_v14  ;;  %16177 = vst [vmem:[#allocation8_spill] sm:$0xff] %v14779_v18  ;;  %12587 = vrot.lane.b32.xlu0 %v12586_v29, %s12772_s26  ;;  %v16179_v47 = vrot.slane %v14659_v31, 5  ;;  %v5725_v56 = vrot.slane %v12696_v30, 7  ;;  %v14904_v13 = vld [vmem:[%s12830_s25 + $0x58] sm:$0x1] }
 0x131   : > { %v12074_v44 = vpack.c.bf16 %v5755_v2, %v5753_v33  ;;  %11406 = vmatprep.mubr.msk.f32.mxu0 %vm450_vm7, %v14308_v42  ;;  %v5689_v59 = vsel %vm327_vm5, %v16178_v37, %v5687_v50  ;;  %8644 = vrot.lane.b32.xlu1 %v8643_v36, %s12773_s27  ;;  %v8661_v5 = vrot.slane %v14761_v57, 5  ;;  %v8662_v4 = vrot.slane %v14764_v6, 4  ;;  %v12697_v2 = vld [vmem:[%s12830_s25 + $0x6b] sm:$0x1] }
 0x132   : > { %v14790_v7 = vsel %vm327_vm5, %v16179_v47, %v6233_v39  ;;  %v12538_v11 = vpop.permute.xlu0 %12537  ;;  %v8664_v50 = vrot.slane %v14767_v15, 3  ;;  %v16181_v31 = vrot.slane %v14677_v0, 2  ;;  %v16182_v33 = vrot.slane %v14681_v45, 1 }
 0x133   : > { %v12540_v62 = vunpack.i.h.bf16 %v12538_v11  ;;  %v12539_v14 = vunpack.i.l.bf16 %v12538_v11  ;;  %12075 = vmatprep.subr.bf16.mxu0 %v12074_v44  ;;  %v8666_v12 = vrot.slane %v14779_v18, 2  ;;  %v5727_v36 = vrot.slane %v12697_v2, 6  ;;  %v12698_v11 = vld [vmem:[%s12830_s25 + $0x3b] sm:$0x1] }
 0x134   : > { %v5724_v29 = vsel %vm338_vm2, %v16182_v33, %v16181_v31  ;;  %v5715_v20 = vpop.permute.xlu1 %5714  ;;  %12077 = vmatpush3.bf16.msra.mxu0 %v12074_v44  ;;  %v8663_v61 = vsel %vm330_vm6, %v8662_v4, %v8661_v5  ;;  %v8668_v39 = vrot.slane %v14793_v3, 1  ;;  %v8673_v47 = vrot.slane %v14764_v6, 7  ;;  %v12700_v33 = vld [vmem:[%s12830_s25 + $0x6a] sm:$0x1]  ;;  %v14835_v2 = vld [vmem:[%s12830_s25 + $0x3b] sm:$0x1] }
 0x135   : > { %v5757_v37 = vsel %vm444_vm12, %v12539_v14, %v5715_v20  ;;  %11407 = vmatmul.mubr.msk.f32.gmra.mrb[68].mxu0 %vm450_vm7, %v14328_v32  ;;  %v5756_v0 = vsel %vm442_vm11, %v5689_v59, %v12540_v62  ;;  %v8665_v45 = vsel %vm354_vm3, %v8664_v50, %v8663_v61  ;;  %v5726_v30 = vsel %vm321_vm0, %v5725_v56, %v12698_v11  ;;  %v14823_v14 = vld [vmem:[%s12830_s25 + $0x23] sm:$0x1]  ;;  %v14850_v11 = vld [vmem:[%s12830_s25 + $0x27] sm:$0x1] }
 0x136   : > { %v5758_v44 = vsel %vm446_vm13, %v5757_v37, %v5724_v29  ;;  %11409 = vmatprep.mubr.msk.f32.mxu0 %vm450_vm7, %v14450_v60  ;;  %v8667_v5 = vsel %vm335_vm1, %v8666_v12, %v8665_v45  ;;  %v8675_v4 = vrot.slane %v14767_v15, 6  ;;  %v8674_v31 = vsel %vm321_vm0, %v8673_v47, %v14761_v57  ;;  %16184 = vst [vmem:[#allocation14_spill] sm:$0xff] %v14850_v11  ;;  %v12706_v61 = vld [vmem:[%s12830_s25 + $0x23] sm:$0x1] }
 0x137   : > { %v12078_v50 = vpack.c.bf16 %v5758_v44, %v5756_v0  ;;  %v8669_v62 = vsel %vm338_vm2, %v8668_v39, %v8667_v5  ;;  %v6236_v56 = vrot.slane %v12700_v33, 4  ;;  %v8677_v12 = vrot.slane %v14779_v18, 5  ;;  %v12702_v0 = vld [vmem:[%s12830_s25 + $0x3b] sm:$0x1]  ;;  %v14847_v44 = vld [vmem:[%s12830_s25 + $0xf] sm:$0x1] }
 0x138   : > { %8670 = vrot.lane.b32.xlu0 %v8669_v62, %s12772_s26  ;;  %v8676_v29 = vsel %vm324_vm4, %v8675_v4, %v8674_v31  ;;  %v8679_v20 = vrot.slane %v14793_v3, 4  ;;  %v5728_v37 = vsel %vm324_vm4, %v5727_v36, %v5726_v30  ;;  %v6270_v45 = vrot.slane %v12702_v0, 7  ;;  %16183 = vst [vmem:[#allocation13_spill] sm:$0xff] %v14847_v44  ;;  %v14853_v36 = vld [vmem:[%s12830_s25 + $0x3f] sm:$0x1] }
 0x139   : > { %12079 = vmatprep.subr.bf16.mxu0 %v12078_v50  ;;  %11410 = vmatmul.mubr.msk.f32.gmra.mrb[70].mxu0 %vm450_vm7, %v14480_v48  ;;  %v8678_v47 = vsel %vm327_vm5, %v8677_v12, %v8676_v29  ;;  %16185 = vst [vmem:[#allocation15_spill] sm:$0xff] %v14853_v36  ;;  %v14856_v5 = vld [vmem:[%s12830_s25 + $0xb] sm:$0x1]  ;;  %v14860_v62 = vld [vmem:[%s12830_s25 + $0xc] sm:$0x1]  ;;  %v14873_v0 = vsel %vm330_vm6, %v6236_v56, %v14790_v7  ;;  %v9182_v7 = vrot.slane %v14847_v44, 6 }
 0x13a   : > { %12081 = vmatpush3.bf16.msra.mxu0 %v12078_v50  ;;  %11452 = vmatprep.mubr.msk.f32.mxu0 %vm450_vm7, %v14637_v22  ;;  %v8680_v31 = vsel %vm330_vm6, %v8679_v20, %v8678_v47  ;;  %v14865_v33 = vld [vmem:[%s12830_s25 + $0x57] sm:$0x1]  ;;  %v14868_v29 = vld [vmem:[%s12830_s25 + $0x6f] sm:$0x1]  ;;  %v14876_v4 = vld [vmem:[%s12830_s25 + $0x53] sm:$0x1]  ;;  %v6271_v39 = vsel %vm321_vm0, %v6270_v45, %v12706_v61 }
 0x13b   : > { %8681 = vrot.lane.b32.xlu1 %v8680_v31, %s12773_s27  ;;  %v9169_v50 = vrot.slane %v14847_v44, 3  ;;  %v14882_v20 = vld [vmem:[%s12830_s25 + $0x10] sm:$0x1]  ;;  %v9170_v47 = vrot.slane %v14850_v11, 2  ;;  %v14889_v56 = vld [vmem:[%s12830_s25 + $0x28] sm:$0x1] }
 0x13c   : > { %v5741_v30 = vpop.permute.xlu0 %5740  ;;  %v9183_v31 = vrot.slane %v14850_v11, 5  ;;  %v9185_v59 = vrot.slane %v14853_v36, 4  ;;  %v9187_v15 = vrot.slane %v14865_v33, 3  ;;  %v14897_v3 = vld [vmem:[%s12830_s25 + $0x40] sm:$0x1]  ;;  %v9189_v57 = vrot.slane %v14868_v29, 2 }
 0x13d   : > { %v5759_v12 = vsel %vm16150_vm15, %v5728_v37, %v5741_v30  ;;  %v9172_v37 = vrot.slane %v14853_v36, 1  ;;  %v9174_v30 = vrot.slane %v14868_v29, 7  ;;  %v9171_v6 = vsel %vm335_vm1, %v9170_v47, %v9169_v50  ;;  %v12707_v11 = vld [vmem:[%s12830_s25 + $0x54] sm:$0x1]  ;;  %v14912_v50 = vld [vmem:[%s12830_s25 + $0x70] sm:$0x1] }
 0x13e   : > { %v9208_v61 = vrot.slane %v14882_v20, 4  ;;  %v6311_v36 = vrot.slane %v12707_v11, 7  ;;  %v9184_v19 = vsel %vm327_vm5, %v9183_v31, %v9182_v7  ;;  %v9209_v47 = vrot.slane %v14889_v56, 3 }
 0x13f   : > { %v9175_v44 = vsel %vm321_vm0, %v9174_v30, %v14865_v33  ;;  %v9173_v23 = vsel %vm338_vm2, %v9172_v37, %v9171_v6  ;;  %v9186_v52 = vsel %vm330_vm6, %v9185_v59, %v9184_v19  ;;  %v9211_v30 = vrot.slane %v14897_v3, 2 }
 0x140   : > { %v5752_v18 = vpop.permute.xlu1 %5751  ;;  %v12591_v54 = vpack.i.bf16 %v9173_v23, %v9175_v44  ;;  %v9213_v11 = vrot.slane %v14904_v13, 1  ;;  %v9221_v6 = vrot.slane %v14882_v20, 7  ;;  %v9222_v23 = vrot.slane %v14889_v56, 6 }
 0x141   : > { %v12082_v45 = vpack.c.bf16 %v5752_v18, %v5759_v12  ;;  %v9188_v18 = vsel %vm354_vm3, %v9187_v15, %v9186_v52  ;;  %v9210_v59 = vsel %vm354_vm3, %v9209_v47, %v9208_v61  ;;  %v9224_v44 = vrot.slane %v14897_v3, 5 }
 0x142   : > { %12592 = vrot.lane.b32.xlu0 %v12591_v54, %s12772_s26  ;;  %v9190_v19 = vsel %vm335_vm1, %v9189_v57, %v9188_v18  ;;  %v9226_v52 = vrot.slane %v14904_v13, 4  ;;  %v9212_v12 = vsel %vm335_vm1, %v9211_v30, %v9210_v59  ;;  %v9223_v37 = vsel %vm324_vm4, %v9222_v23, %v9221_v6  ;;  %v12708_v54 = vld [vmem:[%s12830_s25 + $0xb] sm:$0x1]  ;;  %v12709_v30 = vld [vmem:[%s12830_s25 + $0x24] sm:$0x1] }
 0x143   : > { %12084 = vmatprep.subr.msk.bf16.mxu0 %vm13600_vm14, %v12082_v45  ;;  %9191 = vrot.lane.b32.xlu1 %v9190_v19, %s12773_s27  ;;  %v9228_v7 = vrot.slane %v14912_v50, 3  ;;  %v16186_v57 = vrot.slane %v14823_v14, 7  ;;  %v9214_v47 = vsel %vm338_vm2, %v9213_v11, %v9212_v12  ;;  %v9225_v18 = vsel %vm327_vm5, %v9224_v44, %v9223_v37 }
 0x144   : > { %12087 = vmatpush3.bf16.msk.msra.mxu0 %vm13600_vm14, %v12082_v45  ;;  %v6309_v19 = vrot.slane %v12709_v30, 1  ;;  %v12596_v6 = vpack.i.bf16 %v9214_v47, %v14912_v50  ;;  %v9227_v23 = vsel %vm330_vm6, %v9226_v52, %v9225_v18  ;;  %v16187_v14 = vrot.slane %v14835_v2, 6 }
 0x145   : > { %v12543_v15 = vpop.permute.xlu0 %12542  ;;  %v6817_v31 = vsel %vm321_vm0, %v16186_v57, %v12708_v54  ;;  %v9229_v12 = vsel %vm354_vm3, %v9228_v7, %v9227_v23  ;;  %v16188_v52 = vrot.slane %v14147_v38, 5  ;;  %v16189_v54 = vrot.slane %v14876_v4, 6  ;;  %v14969_v38 = vld [vmem:[%s12830_s25 + $0x29] sm:$0x1] }
 0x146   : > { %v12545_v61 = vunpack.i.h.bf16 %v12543_v15  ;;  %v12544_v45 = vunpack.i.l.bf16 %v12543_v15  ;;  %v6819_v59 = vsel %vm324_vm4, %v16187_v14, %v6817_v31  ;;  %v12710_v15 = vld [vmem:[%s12830_s25 + $0x6b] sm:$0x1]  ;;  %v12711_v31 = vld [vmem:[%s12830_s25 + $0x6c] sm:$0x1]  ;;  %12597 = vrot.lane.b32.xlu0 %v12596_v6, %s12772_s26  ;;  %v16190_v7 = vrot.slane %v14856_v5, 1 }
 0x147   : > { %11453 = vmatmul.mubr.msk.f32.vlgmr.msra.gmra.mrb[72].mxu0 %vm450_vm7, %v14250_v28  ;;  %v6274_v11 = vrot.slane %v12710_v15, 5  ;;  %v14956_v2 = vsel %vm327_vm5, %v16188_v52, %v6819_v59  ;;  %v6273_v57 = vsel %vm324_vm4, %v16189_v54, %v6271_v39  ;;  %9230 = vrot.lane.b32.xlu1 %v9229_v12, %s12773_s27  ;;  %v14977_v39 = vld [vmem:[%s12830_s25 + $0x41] sm:$0x1]  ;;  %v9248_v18 = vrot.slane %v14969_v38, 4  ;;  %v14987_v5 = vld [vmem:[%s12830_s25 + $0x59] sm:$0x1] }
 0x148   : > { %v6262_v44 = vpop.permute.xlu1 %6261  ;;  %11455 = vmatprep.mubr.msk.f32.mxu0 %vm450_vm7, %v14260_v10  ;;  %v6339_v28 = vsel %vm436_vm9, %v14873_v0, %v12545_v61  ;;  %v6313_v10 = vrot.slane %v12711_v31, 6  ;;  %v14966_v0 = vld [vmem:[%s12830_s25 + $0x11] sm:$0x1]  ;;  %v16191_v6 = vrot.slane %v14860_v62, 2 }
 0x149   : > { %v6340_v37 = vsel %vm438_vm8, %v12544_v45, %v6262_v44  ;;  %v12712_v45 = vld [vmem:[%s12830_s25 + $0x3c] sm:$0x1]  ;;  %v9247_v47 = vrot.slane %v14966_v0, 5  ;;  %v14990_v14 = vld [vmem:[%s12830_s25 + $0x71] sm:$0x1]  ;;  %v6275_v15 = vsel %vm327_vm5, %v6274_v11, %v6273_v57  ;;  %v9261_v11 = vrot.slane %v14977_v39, 6 }
 0x14a   : > { %v6341_v61 = vsel %vm440_vm10, %v6340_v37, %v16190_v7  ;;  %v6312_v4 = vsel %vm321_vm0, %v6311_v36, %v12712_v45  ;;  %v6310_v23 = vsel %vm338_vm2, %v6309_v19, %v16191_v6  ;;  %v9250_v36 = vrot.slane %v14977_v39, 3 }
 0x14b   : > { %11456 = vmatmul.mubr.msk.f32.gmra.mrb[74].mxu0 %vm450_vm7, %v14293_v17  ;;  %v12104_v30 = vpack.c.bf16 %v6341_v61, %v6339_v28  ;;  %v9249_v44 = vsel %vm330_vm6, %v9248_v18, %v9247_v47  ;;  %v9252_v17 = vrot.slane %v14987_v5, 2  ;;  %v9254_v62 = vrot.slane %v14990_v14, 1 }
 0x14c   : > { %v12548_v59 = vpop.permute.xlu0 %12547  ;;  %11458 = vmatprep.mubr.msk.f32.mxu0 %vm450_vm7, %v14308_v42  ;;  %v6314_v52 = vsel %vm324_vm4, %v6313_v10, %v6312_v4  ;;  %v9251_v37 = vsel %vm354_vm3, %v9250_v36, %v9249_v44  ;;  %v9259_v42 = vrot.slane %v14969_v38, 7  ;;  %v9263_v57 = vrot.slane %v14987_v5, 5 }
 0x14d   : > { %v12550_v28 = vunpack.i.h.bf16 %v12548_v59  ;;  %v12549_v19 = vunpack.i.l.bf16 %v12548_v59  ;;  %12105 = vmatprep.subr.bf16.mxu0 %v12104_v30  ;;  %v6301_v12 = vpop.permute.xlu1 %6300  ;;  %v9253_v54 = vsel %vm335_vm1, %v9252_v17, %v9251_v37  ;;  %v9265_v61 = vrot.slane %v14990_v14, 4  ;;  %vm16192_vm1 = vmmov %vm16150_vm15  ;;  %v12714_v17 = vld [vmem:[%s12830_s25 + $0x3c] sm:$0x1] }
 0x14e   : > { %12107 = vmatpush3.bf16.msra.mxu0 %v12104_v30  ;;  %v9255_v10 = vsel %vm338_vm2, %v9254_v62, %v9253_v54  ;;  %v9260_v4 = vsel %vm321_vm0, %v9259_v42, %v14966_v0  ;;  %v6856_v62 = vrot.slane %v12714_v17, 7  ;;  %v12718_v54 = vld [vmem:[%s12830_s25 + $0x3c] sm:$0x1]  ;;  %vm16193_vm3 = vmmov %vm16192_vm1  ;;  %vm582_vm15 = vcmask 130048  }
 0x14f   : > { %v6343_v31 = vsel %vm444_vm12, %v12549_v19, %v6301_v12  ;;  %11459 = vmatmul.mubr.msk.f32.gmra.mrb[76].mxu0 %vm450_vm7, %v14328_v32  ;;  %v6342_v7 = vsel %vm442_vm11, %v6275_v15, %v12550_v28  ;;  %9256 = vrot.lane.b32.xlu0 %v9255_v10, %s12772_s26  ;;  %v9262_v32 = vsel %vm324_vm4, %v9261_v11, %v9260_v4  ;;  %v12713_v15 = vld [vmem:[%s12830_s25 + $0x6b] sm:$0x1]  ;;  %v12715_v28 = vld [vmem:[%s12830_s25 + $0x24] sm:$0x1]  ;;  %v7404_v42 = vrot.slane %v12718_v54, 6 }
 0x150   : > { %v6344_v45 = vsel %vm446_vm13, %v6343_v31, %v6310_v23  ;;  %11461 = vmatprep.mubr.msk.f32.mxu0 %vm450_vm7, %v14450_v60  ;;  %v9264_v6 = vsel %vm327_vm5, %v9263_v57, %v9262_v32  ;;  %v6822_v44 = vrot.slane %v12713_v15, 4  ;;  %v7402_v19 = vrot.slane %v12715_v28, 7  ;;  %v15036_v12 = vld [vmem:[%s16085_s1 + $0x8] sm:$0xff]  ;;  %v12722_v4 = vld [vmem:[%s12830_s25 + $0x54] sm:$0x1] }
 0x151   : > { %v12108_v47 = vpack.c.bf16 %v6344_v45, %v6342_v7  ;;  %v9266_v23 = vsel %vm330_vm6, %v9265_v61, %v9264_v6  ;;  %v12719_v57 = vld [vmem:[%s12830_s25 + $0xc] sm:$0x1]  ;;  %v15046_v7 = vld [vmem:[%s16085_s1 + $0x10] sm:$0xff]  ;;  %v12721_v61 = vld [vmem:[%s12830_s25 + $0x24] sm:$0x1] }
 0x152   : > { %v6327_v18 = vpop.permute.xlu0 %6326  ;;  %9267 = vrot.lane.b32.xlu1 %v9266_v23, %s12773_s27  ;;  %v6855_v31 = vrot.slane %v12719_v57, 1  ;;  %v6823_v10 = vsel %vm330_vm6, %v6822_v44, %v14956_v2  ;;  %v6857_v45 = vsel %vm321_vm0, %v6856_v62, %v12721_v61  ;;  %v12723_v6 = vld [vmem:[%s12830_s25 + $0x6c] sm:$0x1]  ;;  %v12725_v15 = vld [vmem:[%s12830_s25 + $0x25] sm:$0x1]  ;;  %v15062_v2 = vld [vmem:[%s16085_s1 + $0x18] sm:$0xff] }
 0x153   : > { %v6345_v30 = vsel %vm16192_vm1, %v6314_v52, %v6327_v18  ;;  %12109 = vmatprep.subr.bf16.mxu0 %v12108_v47  ;;  %11462 = vmatmul.mubr.msk.f32.gmra.mrb[78].mxu0 %vm450_vm7, %v14480_v48  ;;  %v12717_v52 = vld [vmem:[%s12830_s25 + $0x54] sm:$0x1]  ;;  %v6860_v23 = vrot.slane %v12723_v6, 5  ;;  %v6895_v17 = vrot.slane %v12725_v15, 1  ;;  %v15074_v57 = vld [vmem:[%s16085_s1 + $0x20] sm:$0xff] }
 0x154   : > { %12111 = vmatpush3.bf16.msra.mxu0 %v12108_v47  ;;  %11504 = vmatprep.mubr.msk.f32.mxu0 %vm450_vm7, %v14637_v22  ;;  %v6858_v37 = vrot.slane %v12717_v52, 6  ;;  %v7406_v47 = vrot.slane %v12722_v4, 5  ;;  %v12727_v52 = vld [vmem:[%s12830_s25 + $0xc] sm:$0x1]  ;;  %v12729_v61 = vld [vmem:[%s12830_s25 + $0x55] sm:$0x1] }
 0x155   : > { %v6338_v36 = vpop.permute.xlu1 %6337  ;;  %v7403_v54 = vsel %vm321_vm0, %v7402_v19, %v12727_v52  ;;  %v6897_v4 = vrot.slane %v12729_v61, 7 }
 0x156   : > { %v12112_v59 = vpack.c.bf16 %v6338_v36, %v6345_v30  ;;  %v12724_v36 = vld [vmem:[%s12830_s25 + $0xd] sm:$0x1]  ;;  %v6859_v62 = vsel %vm324_vm4, %v6858_v37, %v6857_v45 }
 0x157   : > { %v6861_v19 = vsel %vm327_vm5, %v6860_v23, %v6859_v62  ;;  %v12731_v23 = vld [vmem:[%s12830_s25 + $0x6d] sm:$0x1] }
 0x158   : > { %12114 = vmatprep.subr.msk.bf16.mxu0 %vm13600_vm14, %v12112_v59  ;;  %v6899_v15 = vrot.slane %v12731_v23, 6 }
 0x159   : > { %12117 = vmatpush3.bf16.msk.msra.mxu0 %vm13600_vm14, %v12112_v59  ;;  %v6894_v59 = vrot.slane %v12724_v36, 2 }
 0x15c   : > { %11505 = vmatmul.mubr.msk.f32.vlgmr.msra.gmra.mrb[80].mxu0 %vm450_vm7, %v15036_v12  ;;  %v12553_v11 = vpop.permute.xlu0 %12552 }
 0x15d   : > { %11507 = vmatprep.mubr.msk.f32.mxu0 %vm450_vm7, %v15046_v7  ;;  %v12555_v18 = vunpack.i.h.bf16 %v12553_v11  ;;  %v12554_v32 = vunpack.i.l.bf16 %v12553_v11 }
 0x15e   : > { %v6848_v30 = vpop.permute.xlu1 %6847 }
 0x15f   : > { %v6926_v28 = vsel %vm438_vm8, %v12554_v32, %v6848_v30  ;;  %v6925_v44 = vsel %vm436_vm9, %v6823_v10, %v12555_v18  ;;  %v7405_v32 = vsel %vm324_vm4, %v7404_v42, %v7403_v54  ;;  %v283_v18 = vld [vmem:[%s16087_s3 + $0x8] sm:$0xff]  ;;  %v6896_v42 = vsel %vm338_vm2, %v6895_v17, %v6894_v59 }
 0x160   : > { %11508 = vmatmul.mubr.msk.f32.gmra.mrb[82].mxu0 %vm450_vm7, %v15062_v2  ;;  %v6927_v11 = vsel %vm440_vm10, %v6926_v28, %v6855_v31  ;;  %v7407_v37 = vsel %vm327_vm5, %v7406_v47, %v7405_v32  ;;  %v12775_v31 = vmov 0   ;;  %v15089_v47 = vld [vmem:[%s16085_s1 + $0x28] sm:$0xff]  ;;  %v12732_v28 = vld [vmem:[%s12830_s25 + $0x3d] sm:$0x1] }
 0x161   : > { %11510 = vmatprep.mubr.msk.f32.mxu0 %vm450_vm7, %v15074_v57  ;;  %v12134_v10 = vpack.c.bf16 %v6927_v11, %v6925_v44  ;;  %12602 = vset.pattern.permute.xlu1 %v12775_v31  ;;  %v6898_v44 = vsel %vm321_vm0, %v6897_v4, %v12732_v28  ;;  %v282_v11 = vld [vmem:[%s16087_s3] sm:$0xff] }
 0x162   : > { %12601 = vset.pattern.permute.xlu0 %v12775_v31  ;;  %671 = vperm.xlu1 %12602, %v283_v18   ;;  %v6900_v54 = vsel %vm324_vm4, %v6899_v15, %v6898_v44  ;;  %v12734_v31 = vld [vmem:[%s12830_s25 + $0x3d] sm:$0x1]  ;;  %v12737_v28 = vld [vmem:[%s12830_s25 + $0x25] sm:$0x1] }
 0x163   : > { %v12558_v45 = vpop.permute.xlu0 %12557  ;;  %12135 = vmatprep.subr.bf16.mxu0 %v12134_v10  ;;  %666 = vperm.xlu0 %12601, %v282_v11   ;;  %v7442_v18 = vrot.slane %v12734_v31, 7  ;;  %v12739_v11 = vld [vmem:[%s12830_s25 + $0xe] sm:$0x1] }
 0x164   : > { %v12560_v30 = vunpack.i.h.bf16 %v12558_v45  ;;  %v12559_v6 = vunpack.i.l.bf16 %v12558_v45  ;;  %v6887_v36 = vpop.permute.xlu1 %6886  ;;  %11511 = vmatmul.mubr.msk.f32.gmra.mrb[84].mxu0 %vm450_vm7, %v15089_v47  ;;  %v12733_v45 = vld [vmem:[%s12830_s25 + $0x6c] sm:$0x1] }
 0x165   : > { %12137 = vmatpush3.bf16.msra.mxu0 %v12134_v10  ;;  %11513 = vmatprep.mubr.msk.f32.mxu0 %vm450_vm7, %v14450_v60  ;;  %v7443_v44 = vsel %vm321_vm0, %v7442_v18, %v12737_v28  ;;  %v7988_v28 = vrot.slane %v14465_v53, 7  ;;  %v7992_v53 = vrot.slane %v14475_v51, 5 }
 0x166   : > { %v6929_v59 = vsel %vm444_vm12, %v12559_v6, %v6887_v36  ;;  %v6928_v17 = vsel %vm442_vm11, %v6861_v19, %v12560_v30  ;;  %v7408_v19 = vrot.slane %v12733_v45, 4  ;;  %v12735_v30 = vld [vmem:[%s12830_s25 + $0x55] sm:$0x1]  ;;  %v12736_v36 = vld [vmem:[%s12830_s25 + $0xd] sm:$0x1] }
 0x167   : > { %v6930_v62 = vsel %vm446_vm13, %v6929_v59, %v6896_v42  ;;  %v7444_v6 = vrot.slane %v12735_v30, 6  ;;  %v7441_v23 = vrot.slane %v12736_v36, 1  ;;  %v12740_v45 = vld [vmem:[%s12830_s25 + $0x26] sm:$0x1]  ;;  %v12741_v30 = vld [vmem:[%s12830_s25 + $0x56] sm:$0x1] }
 0x168   : > { %v12138_v52 = vpack.c.bf16 %v6930_v62, %v6928_v17  ;;  %11514 = vmatmul.mubr.msk.f32.gmra.mrb[86].mxu0 %vm450_vm7, %v14480_v48  ;;  %v7409_v15 = vsel %vm330_vm6, %v7408_v19, %v7407_v37  ;;  %v9947_v37 = vld [vmem:[%s16086_s2 + $0x20] sm:$0xff]  ;;  %v7481_v19 = vrot.slane %v12740_v45, 1 }
 0x169   : > { %v6913_v61 = vpop.permute.xlu0 %6912  ;;  %11556 = vmatprep.mubr.msk.f32.mxu0 %vm450_vm7, %v14637_v22  ;;  %v7445_v31 = vsel %vm324_vm4, %v7444_v6, %v7443_v44 }
 0x16a   : > { %12139 = vmatprep.subr.bf16.mxu0 %v12138_v52  ;;  %v6931_v4 = vsel %vm16193_vm3, %v6900_v54, %v6913_v61  ;;  %v7480_v61 = vrot.slane %v12739_v11, 2  ;;  %vm16194_vm3 = vmmov %vm16192_vm1 }
 0x16b   : > { %12141 = vmatpush3.bf16.msra.mxu0 %v12138_v52  ;;  %v12738_v52 = vld [vmem:[%s12830_s25 + $0x6d] sm:$0x1] }
 0x16c   : > { %v7446_v54 = vrot.slane %v12738_v52, 5  ;;  %v7482_v11 = vsel %vm338_vm2, %v7481_v19, %v7480_v61  ;;  %v7989_v61 = vsel %vm321_vm0, %v7988_v28, %v14458_v41  ;;  %v9950_v41 = vld [vmem:[%s16086_s2 + $0x38] sm:$0xff] }
 0x16d   : > { %v6924_v32 = vpop.permute.xlu1 %6923 }
 0x16e   : > { %v12142_v10 = vpack.c.bf16 %v6924_v32, %v6931_v4  ;;  %v9948_v4 = vld [vmem:[%s16086_s2 + $0x28] sm:$0xff] }
 0x170   : > { %12144 = vmatprep.subr.msk.bf16.mxu0 %vm13600_vm14, %v12142_v10 }
 0x171   : > { %12147 = vmatpush3.bf16.msk.msra.mxu0 %vm13600_vm14, %v12142_v10 }
 0x173   : > { %v12563_v42 = vpop.permute.xlu0 %12562 }
 0x174   : > { %11557 = vmatmul.mubr.msk.f32.vlgmr.msra.gmra.mrb[88].mxu0 %vm450_vm7, %v15036_v12  ;;  %v12565_v59 = vunpack.i.h.bf16 %v12563_v42  ;;  %v12564_v17 = vunpack.i.l.bf16 %v12563_v42  ;;  %v7434_v62 = vpop.permute.xlu1 %7433  ;;  %v7483_v42 = vrot.slane %v12741_v30, 7  ;;  %v9949_v30 = vld [vmem:[%s16086_s2 + $0x30] sm:$0xff] }
 0x175   : > { %11559 = vmatprep.mubr.msk.f32.mxu0 %vm450_vm7, %v15046_v7 }
 0x176   : > { %v7512_v32 = vsel %vm438_vm8, %v12564_v17, %v7434_v62  ;;  %v7511_v10 = vsel %vm436_vm9, %v7409_v15, %v12565_v59  ;;  %v15142_v62 = vpack.c.bf16 %v9948_v4, %v9947_v37  ;;  %v7990_v15 = vrot.slane %v14468_v49, 6  ;;  %v12742_v49 = vld [vmem:[%s12830_s25 + $0x3e] sm:$0x1] }
 0x177   : > { %v7513_v18 = vsel %vm440_vm10, %v7512_v32, %v7441_v23  ;;  %v10986_v36 = vpop.f32.mrb[0].mxu0  ;;  %v7447_v23 = vsel %vm327_vm5, %v7446_v54, %v7445_v31  ;;  %v7484_v4 = vsel %vm321_vm0, %v7483_v42, %v12742_v49  ;;  %v12743_v32 = vld [vmem:[%s12830_s25 + $0x6e] sm:$0x1] }
 0x178   : > { %11560 = vmatmul.mubr.msk.f32.gmra.mrb[90].mxu0 %vm450_vm7, %v15062_v2  ;;  %v12164_v52 = vpack.c.bf16 %v7513_v18, %v7511_v10  ;;  %v543_v17 = vpop.f32.mrb[1].mxu0  ;;  %v12568_v6 = vpop.permute.xlu0 %12567  ;;  %v7485_v10 = vrot.slane %v12743_v32, 6  ;;  %v7991_v18 = vsel %vm324_vm4, %v7990_v15, %v7989_v61  ;;  %v8030_v32 = vrot.slane %v14529_v58, 6 }
 0x179   : > { %11562 = vmatprep.mubr.msk.f32.mxu0 %vm450_vm7, %v15074_v57  ;;  %11000 = vmatprep.mubr.msk.f32.mxu1 %vm582_vm15, %v543_v17  ;;  %v12570_v44 = vunpack.i.h.bf16 %v12568_v6  ;;  %v12569_v59 = vunpack.i.l.bf16 %v12568_v6  ;;  %v15178_v17 = vpack.c.bf16 %v9950_v41, %v9949_v30  ;;  %v8032_v58 = vrot.slane %v14545_v40, 5 }
 0x17a   : > { %12165 = vmatprep.subr.bf16.mxu0 %v12164_v52  ;;  %v7473_v37 = vpop.permute.xlu1 %7472  ;;  %11001 = vmatmul.mubr.msk.f32.vlgmr.msra.gmra.mrb[0].mxu1 %vm582_vm15, %v10986_v36  ;;  %v7993_v36 = vsel %vm327_vm5, %v7992_v53, %v7991_v18  ;;  %v7486_v28 = vsel %vm324_vm4, %v7485_v10, %v7484_v4  ;;  %v8067_v41 = vrot.slane %v14581_v8, 1 }
 0x17b   : > { %12167 = vmatpush3.bf16.msra.mxu0 %v12164_v52  ;;  %11825 = vmatpush3.bf16.msra.mxu1 %v14462_v35  ;;  %v10989_v54 = vpop.f32.mrb[2].mxu0  ;;  %v7515_v45 = vsel %vm444_vm12, %v12569_v59, %v7473_v37  ;;  %v7514_v51 = vsel %vm442_vm11, %v7447_v23, %v12570_v44  ;;  %v12744_v59 = vld [vmem:[%s12830_s25 + $0x6d] sm:$0x1]  ;;  %v8028_v37 = vrot.slane %v14522_v25, 7 }
 0x17c   : > { %11563 = vmatmul.mubr.msk.f32.gmra.mrb[92].mxu0 %vm450_vm7, %v15089_v47  ;;  %v553_v19 = vpop.f32.mrb[3].mxu0  ;;  %11827 = vmatprep.subr.bf16.mxu1 %v15142_v62  ;;  %v7516_v31 = vsel %vm446_vm13, %v7515_v45, %v7482_v11  ;;  %v7994_v11 = vrot.slane %v12744_v59, 4 }
 0x17d   : > { %11565 = vmatprep.mubr.msk.f32.mxu0 %vm450_vm7, %v14450_v60  ;;  %11007 = vmatprep.mubr.msk.f32.mxu1 %vm582_vm15, %v553_v19  ;;  %v12168_v42 = vpack.c.bf16 %v7516_v31, %v7514_v51  ;;  %v8029_v51 = vsel %vm321_vm0, %v8028_v37, %v14519_v26  ;;  %v8066_v31 = vrot.slane %v14578_v1, 2  ;;  %v8574_v37 = vrot.slane %v14656_v46, 7 }
 0x17e   : > { %v7995_v45 = vsel %vm330_vm6, %v7994_v11, %v7993_v36  ;;  %v8069_v36 = vrot.slane %v14597_v27, 7  ;;  %v8578_v46 = vrot.slane %v14688_v55, 5 }
 0x17f   : > { %v10992_v52 = vpop.f32.mrb[4].mxu0  ;;  %12169 = vmatprep.subr.bf16.mxu0 %v12168_v42 }
 0x180   : > { %11566 = vmatmul.mubr.msk.f32.gmra.mrb[94].mxu0 %vm450_vm7, %v14480_v48  ;;  %v563_v60 = vpop.f32.mrb[5].mxu0  ;;  %v7499_v15 = vpop.permute.xlu0 %7498  ;;  %v8070_v27 = vsel %vm321_vm0, %v8069_v36, %v14584_v63  ;;  %v8576_v63 = vrot.slane %v14670_v34, 6  ;;  %v16197_v36 = vld [vmem:[#allocation2_spill] sm:$0xff] }
 0x181   : > { %12171 = vmatpush3.bf16.msra.mxu0 %v12168_v42  ;;  %11608 = vmatprep.mubr.msk.f32.mxu0 %vm450_vm7, %v14637_v22  ;;  %v7517_v6 = vsel %vm16192_vm1, %v7486_v28, %v7499_v15  ;;  %v8031_v42 = vsel %vm324_vm4, %v8030_v32, %v8029_v51 }
 0x182   : > { %11008 = vmatmul.mubr.msk.f32.vlgmr.msra.gmra.mrb[0].mxu1 %vm582_vm15, %v10989_v54  ;;  %v7510_v23 = vpop.permute.xlu1 %7509  ;;  %v8027_v54 = vrot.slane %v14511_v43, 1 }
 0x183   : > { %11829 = vmatpush3.bf16.msra.mxu1 %v15142_v62  ;;  %11014 = vmatprep.mubr.msk.f32.mxu1 %vm582_vm15, %v563_v60  ;;  %v10995_v53 = vpop.f32.mrb[6].mxu0  ;;  %v12172_v48 = vpack.c.bf16 %v7510_v23, %v7517_v6  ;;  %v8033_v60 = vsel %vm327_vm5, %v8032_v58, %v8031_v42  ;;  %v8068_v23 = vsel %vm338_vm2, %v8067_v41, %v8066_v31  ;;  %v16196_v41 = vld [vmem:[#allocation6_spill] sm:$0xff] }
 0x184   : > { %11831 = vmatprep.subr.bf16.mxu1 %v15178_v17  ;;  %v573_v44 = vpop.f32.mrb[7].mxu0  ;;  %v8614_v42 = vrot.slane %v16196_v41, 7 }
 0x185   : > { %12174 = vmatprep.subr.msk.bf16.mxu0 %vm13600_vm14, %v12172_v48 }
 0x186   : > { %12177 = vmatpush3.bf16.msk.msra.mxu0 %vm13600_vm14, %v12172_v48 }
 0x187   : > { %v11038_v49 = vpop.f32.mrb[8].mxu0 }
 0x188   : > { %v1140_v4 = vpop.f32.mrb[9].mxu0  ;;  %v12573_v10 = vpop.permute.xlu0 %12572 }
 0x189   : > { %11609 = vmatmul.mubr.msk.f32.vlgmr.msra.gmra.mrb[96].mxu0 %vm450_vm7, %v15036_v12  ;;  %v12575_v25 = vunpack.i.h.bf16 %v12573_v10  ;;  %v12574_v61 = vunpack.i.l.bf16 %v12573_v10 }
 0x18a   : > { %11015 = vmatmul.mubr.msk.f32.vlgmr.msra.gmra.mrb[0].mxu1 %vm582_vm15, %v10992_v52  ;;  %v8020_v19 = vpop.permute.xlu1 %8019  ;;  %11611 = vmatprep.mubr.msk.f32.mxu0 %vm450_vm7, %v15046_v7 }
 0x18b   : > { %11833 = vmatpush3.bf16.msra.mxu1 %v15178_v17  ;;  %11021 = vmatprep.mubr.msk.f32.mxu1 %vm582_vm15, %v573_v44  ;;  %v15206_v43 = vpop.f32.mrb[10].mxu0  ;;  %v8098_v18 = vsel %vm438_vm8, %v12574_v61, %v8020_v19  ;;  %v8097_v30 = vsel %vm436_vm9, %v7995_v45, %v12575_v25  ;;  %v8071_v44 = vrot.slane %v14600_v9, 6  ;;  %v15246_v45 = vld [vmem:[%s16085_s1 + $0x30] sm:$0xff]  ;;  %v8575_v25 = vsel %vm321_vm0, %v8574_v37, %v14653_v16  ;;  %v15266_v19 = vld [vmem:[%s16085_s1 + $0x38] sm:$0xff]  ;;  %v16195_v16 = vld [vmem:[#allocation11_spill] sm:$0xff] }
 0x18c   : > { %11849 = vmatprep.subr.bf16.mxu1 %v14401_v24  ;;  %v1150_v26 = vpop.f32.mrb[11].mxu0  ;;  %v8099_v40 = vsel %vm440_vm10, %v8098_v18, %v8027_v54  ;;  %v8577_v55 = vsel %vm324_vm4, %v8576_v63, %v8575_v25  ;;  %v16201_v37 = vld [vmem:[#allocation3_spill] sm:$0xff] }
 0x18d   : > { %11612 = vmatmul.mubr.msk.f32.gmra.mrb[98].mxu0 %vm450_vm7, %v15062_v2  ;;  %v12194_v28 = vpack.c.bf16 %v8099_v40, %v8097_v30  ;;  %v8072_v54 = vsel %vm324_vm4, %v8071_v44, %v8070_v27  ;;  %v8579_v58 = vsel %vm327_vm5, %v8578_v46, %v8577_v55  ;;  %v16203_v55 = vld [vmem:[#allocation8_spill] sm:$0xff] }
 0x18e   : > { %11614 = vmatprep.mubr.msk.f32.mxu0 %vm450_vm7, %v15074_v57  ;;  %v12578_v52 = vpop.permute.xlu0 %12577 }
 0x18f   : > { %v15220_v1 = vpop.f32.mrb[12].mxu0  ;;  %v12580_v8 = vunpack.i.h.bf16 %v12578_v52  ;;  %v12579_v6 = vunpack.i.l.bf16 %v12578_v52  ;;  %12195 = vmatprep.subr.bf16.mxu0 %v12194_v28  ;;  %v16198_v52 = vld [vmem:[#allocation5_spill] sm:$0xff] }
 0x190   : > { %v1160_v15 = vpop.f32.mrb[13].mxu0  ;;  %v8059_v48 = vpop.permute.xlu1 %8058  ;;  %12197 = vmatpush3.bf16.msra.mxu0 %v12194_v28 }
 0x191   : > { %v8101_v59 = vsel %vm444_vm12, %v12579_v6, %v8059_v48  ;;  %11615 = vmatmul.mubr.msk.f32.gmra.mrb[100].mxu0 %vm450_vm7, %v15089_v47  ;;  %v8100_v11 = vsel %vm442_vm11, %v8033_v60, %v12580_v8  ;;  %v8616_v60 = vrot.slane %v16198_v52, 6  ;;  %v16199_v48 = vld [vmem:[#allocation4_spill] sm:$0xff] }
 0x192   : > { %11022 = vmatmul.mubr.msk.f32.vlgmr.msra.gmra.mrb[0].mxu1 %vm582_vm15, %v10995_v53  ;;  %v8102_v32 = vsel %vm446_vm13, %v8101_v59, %v8068_v23  ;;  %11617 = vmatprep.mubr.msk.f32.mxu0 %vm450_vm7, %v15246_v45  ;;  %v8615_v44 = vsel %vm321_vm0, %v8614_v42, %v16199_v48 }
 0x193   : > { %11851 = vmatpush3.bf16.msra.mxu1 %v14401_v24  ;;  %11052 = vmatprep.mubr.msk.f32.mxu1 %vm582_vm15, %v1140_v4  ;;  %v15235_v9 = vpop.f32.mrb[14].mxu0  ;;  %v12198_v10 = vpack.c.bf16 %v8102_v32, %v8100_v11  ;;  %v8652_v32 = vrot.slane %v16201_v37, 2  ;;  %v8617_v46 = vsel %vm324_vm4, %v8616_v60, %v8615_v44 }
 0x194   : > { %11853 = vmatprep.subr.bf16.mxu1 %v14462_v35  ;;  %v15240_v53 = vpop.f32.mrb[15].mxu0 }
 0x195   : > { %12199 = vmatprep.subr.bf16.mxu0 %v12198_v10  ;;  %v8085_v4 = vpop.permute.xlu0 %8084  ;;  %11618 = vmatmul.mubr.msk.f32.gmra.mrb[102].mxu0 %vm450_vm7, %v15266_v19 }
 0x196   : > { %11053 = vmatmul.mubr.msk.f32.vlgmr.msra.gmra.mrb[2].mxu1 %vm582_vm15, %v11038_v49  ;;  %v8103_v51 = vsel %vm16194_vm3, %v8072_v54, %v8085_v4  ;;  %12201 = vmatpush3.bf16.msra.mxu0 %v12198_v10  ;;  %v16202_v10 = vld [vmem:[#allocation9_spill] sm:$0xff] }
 0x197   : > { %11855 = vmatpush3.bf16.msra.mxu1 %v14462_v35  ;;  %11059 = vmatprep.mubr.msk.f32.mxu1 %vm582_vm15, %v1150_v26  ;;  %v15254_v34 = vpop.f32.mrb[16].mxu0  ;;  %v8580_v26 = vrot.slane %v16195_v16, 4  ;;  %v8653_v54 = vrot.slane %v16202_v10, 1 }
 0x198   : > { %11857 = vmatprep.subr.bf16.mxu1 %v15142_v62  ;;  %v15260_v61 = vpop.f32.mrb[17].mxu0  ;;  %v8096_v49 = vpop.permute.xlu1 %8095  ;;  %11660 = vmatprep.mubr.msk.f32.mxu0 %vm450_vm7, %v14637_v22  ;;  %v8613_v22 = vrot.slane %v16197_v36, 1  ;;  %v16204_v36 = vld [vmem:[#allocation12_spill] sm:$0xff] }
 0x199   : > { %v12202_v31 = vpack.c.bf16 %v8096_v49, %v8103_v51  ;;  %v8581_v28 = vsel %vm330_vm6, %v8580_v26, %v8579_v58  ;;  %v8655_v49 = vrot.slane %v16203_v55, 7  ;;  %v8654_v42 = vsel %vm338_vm2, %v8653_v54, %v8652_v32  ;;  %v15352_v32 = vld [vmem:[%s16085_s1] sm:$0xff] }
 0x19a   : > { %v9164_v55 = vrot.slane %v14865_v33, 5 }
 0x19b   : > { %v15274_v18 = vpop.f32.mrb[18].mxu0  ;;  %12204 = vmatprep.subr.msk.bf16.mxu0 %vm13600_vm14, %v12202_v31 }
 0x19c   : > { %v15276_v30 = vpop.f32.mrb[19].mxu0  ;;  %12207 = vmatpush3.bf16.msk.msra.mxu0 %vm13600_vm14, %v12202_v31  ;;  %v12583_v40 = vpop.permute.xlu0 %12582 }
 0x19d   : > { %v12585_v6 = vunpack.i.h.bf16 %v12583_v40  ;;  %v12584_v23 = vunpack.i.l.bf16 %v12583_v40 }
 0x19e   : > { %11060 = vmatmul.mubr.msk.f32.vlgmr.msra.gmra.mrb[2].mxu1 %vm582_vm15, %v15206_v43  ;;  %v16200_v43 = vld [vmem:[#allocation7_spill] sm:$0xff]  ;;  %v8606_v11 = vpop.permute.xlu1 %8605 }
 0x19f   : > { %11859 = vmatpush3.bf16.msra.mxu1 %v15142_v62  ;;  %11066 = vmatprep.mubr.msk.f32.mxu1 %vm582_vm15, %v1160_v15  ;;  %v15290_v8 = vpop.f32.mrb[20].mxu0  ;;  %v8618_v27 = vrot.slane %v16200_v43, 5  ;;  %v8684_v15 = vsel %vm438_vm8, %v12584_v23, %v8606_v11  ;;  %v8683_v63 = vsel %vm436_vm9, %v8581_v28, %v12585_v6  ;;  %v16205_v6 = vld [vmem:[#allocation10_spill] sm:$0xff] }
 0x1a0   : > { %11861 = vmatprep.subr.bf16.mxu1 %v15178_v17  ;;  %v15296_v59 = vpop.f32.mrb[21].mxu0  ;;  %11661 = vmatmul.mubr.msk.f32.vlgmr.msra.gmra.mrb[104].mxu0 %vm450_vm7, %v15036_v12  ;;  %v8685_v4 = vsel %vm440_vm10, %v8684_v15, %v8613_v22  ;;  %v8657_v22 = vrot.slane %v16204_v36, 6  ;;  %v8656_v23 = vsel %vm321_vm0, %v8655_v49, %v16205_v6  ;;  %v16206_v15 = vld [vmem:[#allocation14_spill] sm:$0xff]  ;;  %v16208_v49 = vld [vmem:[#allocation13_spill] sm:$0xff] }
 0x1a1   : > { %11663 = vmatprep.mubr.msk.f32.mxu0 %vm450_vm7, %v15046_v7  ;;  %v12224_v25 = vpack.c.bf16 %v8685_v4, %v8683_v63  ;;  %v8619_v16 = vsel %vm327_vm5, %v8618_v27, %v8617_v46  ;;  %v9160_v63 = vrot.slane %v16206_v15, 7 }
 0x1a2   : > { %v12588_v31 = vpop.permute.xlu0 %12587 }
 0x1a3   : > { %v15308_v51 = vpop.f32.mrb[22].mxu0  ;;  %v12590_v26 = vunpack.i.h.bf16 %v12588_v31  ;;  %v12589_v41 = vunpack.i.l.bf16 %v12588_v31  ;;  %12225 = vmatprep.subr.bf16.mxu0 %v12224_v25  ;;  %v8645_v40 = vpop.permute.xlu1 %8644  ;;  %v9161_v31 = vsel %vm321_vm0, %v9160_v63, %v16208_v49 }
 0x1a4   : > { %v15311_v58 = vpop.f32.mrb[23].mxu0  ;;  %11664 = vmatmul.mubr.msk.f32.gmra.mrb[106].mxu0 %vm450_vm7, %v15062_v2 }
 0x1a5   : > { %11666 = vmatprep.mubr.msk.f32.mxu0 %vm450_vm7, %v15074_v57  ;;  %12227 = vmatpush3.bf16.msra.mxu0 %v12224_v25  ;;  %v8687_v52 = vsel %vm444_vm12, %v12589_v41, %v8645_v40  ;;  %v8686_v60 = vsel %vm442_vm11, %v8619_v16, %v12590_v26  ;;  %v9166_v16 = vrot.slane %v14868_v29, 4 }
 0x1a6   : > { %11067 = vmatmul.mubr.msk.f32.vlgmr.msra.gmra.mrb[2].mxu1 %vm582_vm15, %v15220_v1  ;;  %v8688_v48 = vsel %vm446_vm13, %v8687_v52, %v8654_v42  ;;  %v9238_v52 = vrot.slane %v14966_v0, 2 }
 0x1a7   : > { %11863 = vmatpush3.bf16.msra.mxu1 %v15178_v17  ;;  %11073 = vmatprep.mubr.msk.f32.mxu1 %vm582_vm15, %v15240_v53  ;;  %v15325_v28 = vpop.f32.mrb[24].mxu0  ;;  %v12228_v44 = vpack.c.bf16 %v8688_v48, %v8686_v60  ;;  %v8658_v53 = vsel %vm324_vm4, %v8657_v22, %v8656_v23  ;;  %v9239_v60 = vrot.slane %v14969_v38, 1  ;;  %v9202_v38 = vrot.slane %v14904_v13, 6 }
 0x1a8   : > { %11879 = vmatprep.subr.bf16.mxu1 %v14401_v24  ;;  %v15332_v1 = vpop.f32.mrb[25].mxu0  ;;  %11667 = vmatmul.mubr.msk.f32.gmra.mrb[108].mxu0 %vm450_vm7, %v15089_v47 }
 0x1a9   : > { %11669 = vmatprep.mubr.msk.f32.mxu0 %vm450_vm7, %v15246_v45  ;;  %12229 = vmatprep.subr.bf16.mxu0 %v12228_v44 }
 0x1aa   : > { %v8671_v27 = vpop.permute.xlu0 %8670  ;;  %12231 = vmatpush3.bf16.msra.mxu0 %v12228_v44  ;;  %v9200_v44 = vrot.slane %v14897_v3, 7 }
 0x1ab   : > { %v15340_v43 = vpop.f32.mrb[26].mxu0  ;;  %v8689_v37 = vsel %vm16192_vm1, %v8658_v53, %v8671_v27 }
 0x1ac   : > { %v15342_v11 = vpop.f32.mrb[27].mxu0  ;;  %11670 = vmatmul.mubr.msk.f32.gmra.mrb[110].mxu0 %vm450_vm7, %v15266_v19  ;;  %v9201_v3 = vsel %vm321_vm0, %v9200_v44, %v14889_v56 }
 0x1ad   : > { %11712 = vmatprep.mubr.msk.f32.mxu0 %vm450_vm7, %v15352_v32  ;;  %v8682_v54 = vpop.permute.xlu1 %8681 }
 0x1ae   : > { %11074 = vmatmul.mubr.msk.f32.vlgmr.msra.gmra.mrb[2].mxu1 %vm582_vm15, %v15235_v9  ;;  %v16207_v9 = vld [vmem:[#allocation15_spill] sm:$0xff]  ;;  %v12232_v25 = vpack.c.bf16 %v8682_v54, %v8689_v37  ;;  %v9240_v37 = vsel %vm338_vm2, %v9239_v60, %v9238_v52  ;;  %v9241_v54 = vrot.slane %v14987_v5, 7  ;;  %vm925_vm2 = vcmask 523264  }
 0x1af   : > { %11881 = vmatpush3.bf16.msra.mxu1 %v14401_v24  ;;  %11104 = vmatprep.mubr.msk.f32.mxu1 %vm582_vm15, %v15260_v61  ;;  %v15360_v10 = vpop.f32.mrb[28].mxu0  ;;  %v9162_v46 = vrot.slane %v16207_v9, 6 }
 0x1b0   : > { %11883 = vmatprep.subr.bf16.mxu1 %v14462_v35  ;;  %v15364_v4 = vpop.f32.mrb[29].mxu0  ;;  %12234 = vmatprep.subr.msk.bf16.mxu0 %vm13600_vm14, %v12232_v25  ;;  %v9242_v5 = vsel %vm321_vm0, %v9241_v54, %v14977_v39  ;;  %vm16209_vm0 = vmmov %vm16192_vm1 }
 0x1b1   : > { %12237 = vmatpush3.bf16.msk.msra.mxu0 %vm13600_vm14, %v12232_v25  ;;  %v9243_v25 = vrot.slane %v14990_v14, 6 }
 0x1b2   : > { %11105 = vmatmul.mubr.msk.f32.vlgmr.msra.gmra.mrb[4].mxu1 %vm582_vm15, %v15254_v34  ;;  %v9163_v34 = vsel %vm324_vm4, %v9162_v46, %v9161_v31 }
 0x1b3   : > { %11885 = vmatpush3.bf16.msra.mxu1 %v14462_v35  ;;  %11111 = vmatprep.mubr.msk.f32.mxu1 %vm582_vm15, %v15276_v30  ;;  %v15374_v61 = vpop.f32.mrb[30].mxu0  ;;  %v9165_v26 = vsel %vm327_vm5, %v9164_v55, %v9163_v34  ;;  %v9199_v30 = vrot.slane %v14882_v20, 1  ;;  %v9204_v20 = vrot.slane %v14912_v50, 5  ;;  %v9244_v34 = vsel %vm324_vm4, %v9243_v25, %v9242_v5 }
 0x1b4   : > { %11887 = vmatprep.subr.bf16.mxu1 %v15142_v62  ;;  %v15380_v33 = vpop.f32.mrb[31].mxu0  ;;  %v12593_v41 = vpop.permute.xlu0 %12592  ;;  %v9167_v42 = vsel %vm330_vm6, %v9166_v16, %v9165_v26  ;;  %11713 = vmatmul.mubr.msk.f32.vlgmr.msra.gmra.mrb[112].mxu0 %vm450_vm7, %v15036_v12 }
 0x1b5   : > { %v12595_v29 = vunpack.i.h.bf16 %v12593_v41  ;;  %v12594_v36 = vunpack.i.l.bf16 %v12593_v41  ;;  %v9192_v22 = vpop.permute.xlu1 %9191  ;;  %11715 = vmatprep.mubr.msk.f32.mxu0 %vm450_vm7, %v15046_v7 }
 0x1b7   : > { %v15388_v40 = vpop.f32.mrb[32].mxu0  ;;  %v9270_v23 = vsel %vm438_vm8, %v12594_v36, %v9192_v22  ;;  %v9269_v48 = vsel %vm436_vm9, %v9167_v42, %v12595_v29 }
 0x1b8   : > { %v15394_v6 = vpop.f32.mrb[33].mxu0  ;;  %v9271_v0 = vsel %vm440_vm10, %v9270_v23, %v9199_v30  ;;  %v12598_v50 = vpop.permute.xlu0 %12597  ;;  %11716 = vmatmul.mubr.msk.f32.gmra.mrb[114].mxu0 %vm450_vm7, %v15062_v2 }
 0x1b9   : > { %v12254_v27 = vpack.c.bf16 %v9271_v0, %v9269_v48  ;;  %v12600_v13 = vunpack.i.h.bf16 %v12598_v50  ;;  %v12599_v15 = vunpack.i.l.bf16 %v12598_v50  ;;  %v9231_v63 = vpop.permute.xlu1 %9230  ;;  %11718 = vmatprep.mubr.msk.f32.mxu0 %vm450_vm7, %v15074_v57 }
 0x1ba   : > { %11112 = vmatmul.mubr.msk.f32.vlgmr.msra.gmra.mrb[4].mxu1 %vm582_vm15, %v15274_v18 }
 0x1bb   : > { %11889 = vmatpush3.bf16.msra.mxu1 %v15142_v62  ;;  %11118 = vmatprep.mubr.msk.f32.mxu1 %vm582_vm15, %v15296_v59  ;;  %v15409_v53 = vpop.f32.mrb[34].mxu0  ;;  %v9203_v59 = vsel %vm324_vm4, %v9202_v38, %v9201_v3  ;;  %v9273_v9 = vsel %vm444_vm12, %v12599_v15, %v9231_v63  ;;  %vm9736_vm4 = vcmask 7168  }
 0x1bc   : > { %11891 = vmatprep.subr.bf16.mxu1 %v15178_v17  ;;  %v15415_v18 = vpop.f32.mrb[35].mxu0  ;;  %12255 = vmatprep.subr.bf16.mxu0 %v12254_v27  ;;  %v9205_v56 = vsel %vm327_vm5, %v9204_v20, %v9203_v59  ;;  %v9274_v49 = vsel %vm446_vm13, %v9273_v9, %v9240_v37  ;;  %vm9739_vm5 = vcmask 15360  }
 0x1bd   : > { %12257 = vmatpush3.bf16.msra.mxu0 %v12254_v27  ;;  %v9272_v46 = vsel %vm442_vm11, %v9205_v56, %v12600_v13 }
 0x1be   : > { %11719 = vmatmul.mubr.msk.f32.gmra.mrb[116].mxu0 %vm450_vm7, %v15089_v47  ;;  %v12258_v16 = vpack.c.bf16 %v9274_v49, %v9272_v46 }
 0x1bf   : > { %v15427_v55 = vpop.f32.mrb[36].mxu0  ;;  %11721 = vmatprep.mubr.msk.f32.mxu0 %vm450_vm7, %v15246_v45 }
 0x1c0   : > { %v15432_v31 = vpop.f32.mrb[37].mxu0  ;;  %12259 = vmatprep.subr.bf16.mxu0 %v12258_v16 }
 0x1c1   : > { %v9257_v14 = vpop.permute.xlu0 %9256  ;;  %12261 = vmatpush3.bf16.msra.mxu0 %v12258_v16 }
 0x1c2   : > { %11119 = vmatmul.mubr.msk.f32.vlgmr.msra.gmra.mrb[4].mxu1 %vm582_vm15, %v15290_v8  ;;  %v9275_v41 = vsel %vm16209_vm0, %v9244_v34, %v9257_v14  ;;  %11722 = vmatmul.mubr.msk.f32.gmra.mrb[118].mxu0 %vm450_vm7, %v15266_v19 }
 0x1c3   : > { %11893 = vmatpush3.bf16.msra.mxu1 %v15178_v17  ;;  %11125 = vmatprep.mubr.msk.f32.mxu1 %vm582_vm15, %v15311_v58  ;;  %v15444_v39 = vpop.f32.mrb[38].mxu0 }
 0x1c4   : > { %11909 = vmatprep.subr.bf16.mxu1 %v14401_v24  ;;  %v15447_v26 = vpop.f32.mrb[39].mxu0  ;;  %11764 = vmatprep.mubr.msk.f32.mxu0 %vm450_vm7, %v15352_v32  ;;  %v9268_v30 = vpop.permute.xlu1 %9267 }
 0x1c5   : > { %v12262_v58 = vpack.c.bf16 %v9268_v30, %v9275_v41 }
 0x1c7   : > { %v15454_v8 = vpop.f32.mrb[40].mxu0  ;;  %12264 = vmatprep.subr.msk.bf16.mxu0 %vm13600_vm14, %v12262_v58 }
 0x1c8   : > { %v15456_v42 = vpop.f32.mrb[41].mxu0  ;;  %12267 = vmatpush3.bf16.msk.msra.mxu0 %vm13600_vm14, %v12262_v58 }
 0x1ca   : > { %11126 = vmatmul.mubr.msk.f32.vlgmr.msra.gmra.mrb[4].mxu1 %vm582_vm15, %v15308_v51 }
 0x1cb   : > { %11911 = vmatpush3.bf16.msra.mxu1 %v14401_v24  ;;  %11156 = vmatprep.mubr.msk.f32.mxu1 %vm582_vm15, %v15332_v1  ;;  %v15465_v29 = vpop.f32.mrb[42].mxu0 }
 0x1cc   : > { %11913 = vmatprep.subr.bf16.mxu1 %v14462_v35  ;;  %v15468_v32 = vpop.f32.mrb[43].mxu0  ;;  %11765 = vmatmul.mubr.msk.f32.vlgmr.msra.gmra.mrb[120].mxu0 %vm450_vm7, %v15036_v12 }
 0x1cd   : > { %11767 = vmatprep.mubr.msk.f32.mxu0 %vm450_vm7, %v15046_v7 }
 0x1ce   : > { %11157 = vmatmul.mubr.msk.f32.vlgmr.msra.gmra.mrb[6].mxu1 %vm582_vm15, %v15325_v28 }
 0x1cf   : > { %11915 = vmatpush3.bf16.msra.mxu1 %v14462_v35  ;;  %11163 = vmatprep.mubr.msk.f32.mxu1 %vm582_vm15, %v15342_v11  ;;  %v15477_v51 = vpop.f32.mrb[44].mxu0 }
 0x1d0   : > { %11917 = vmatprep.subr.bf16.mxu1 %v15142_v62  ;;  %v15480_v1 = vpop.f32.mrb[45].mxu0  ;;  %11768 = vmatmul.mubr.msk.f32.gmra.mrb[122].mxu0 %vm450_vm7, %v15062_v2 }
 0x1d1   : > { %11770 = vmatprep.mubr.msk.f32.mxu0 %vm450_vm7, %v15074_v57 }
 0x1d3   : > { %v15486_v21 = vpop.f32.mrb[46].mxu0 }
 0x1d4   : > { %v15488_v28 = vpop.f32.mrb[47].mxu0  ;;  %11771 = vmatmul.mubr.msk.f32.gmra.mrb[124].mxu0 %vm450_vm7, %v15089_v47 }
 0x1d5   : > { %11773 = vmatprep.mubr.msk.f32.mxu0 %vm450_vm7, %v15246_v45 }
 0x1d6   : > { %11164 = vmatmul.mubr.msk.f32.vlgmr.msra.gmra.mrb[6].mxu1 %vm582_vm15, %v15340_v43 }
 0x1d7   : > { %11919 = vmatpush3.bf16.msra.mxu1 %v15142_v62  ;;  %11170 = vmatprep.mubr.msk.f32.mxu1 %vm582_vm15, %v15364_v4  ;;  %v15499_v12 = vpop.f32.mrb[48].mxu0 }
 0x1d8   : > { %11921 = vmatprep.subr.bf16.mxu1 %v15178_v17  ;;  %v15502_v7 = vpop.f32.mrb[49].mxu0  ;;  %11774 = vmatmul.mubr.msk.f32.gmra.mrb[126].mxu0 %vm450_vm7, %v15266_v19 }
 0x1db   : > { %v15508_v2 = vpop.f32.mrb[50].mxu0 }
 0x1dc   : > { %v15510_v57 = vpop.f32.mrb[51].mxu0 }
 0x1de   : > { %11171 = vmatmul.mubr.msk.f32.vlgmr.msra.gmra.mrb[6].mxu1 %vm582_vm15, %v15360_v10 }
 0x1df   : > { %11923 = vmatpush3.bf16.msra.mxu1 %v15178_v17  ;;  %11177 = vmatprep.mubr.msk.f32.mxu1 %vm582_vm15, %v15380_v33  ;;  %v15519_v43 = vpop.f32.mrb[52].mxu0 }
 0x1e0   : > { %11939 = vmatprep.subr.bf16.mxu1 %v14401_v24  ;;  %v15522_v47 = vpop.f32.mrb[53].mxu0 }
 0x1e2   : > { %v15732_v58 = vpop.permute.xlu0 %666 }
 0x1e3   : > { %v15524_v45 = vpop.f32.mrb[54].mxu0 }
 0x1e4   : > { %v15526_v11 = vpop.f32.mrb[55].mxu0 }
 0x1e6   : > { %11178 = vmatmul.mubr.msk.f32.vlgmr.msra.gmra.mrb[6].mxu1 %vm582_vm15, %v15374_v61 }
 0x1e7   : > { %11941 = vmatpush3.bf16.msra.mxu1 %v14401_v24  ;;  %11208 = vmatprep.mubr.msk.f32.mxu1 %vm582_vm15, %v15394_v6 }
 0x1e8   : > { %11943 = vmatprep.subr.bf16.mxu1 %v14462_v35  ;;  %v15534_v19 = vpop.f32.mrb[56].mxu0 }
 0x1e9   : > { %v15536_v10 = vpop.f32.mrb[57].mxu0 }
 0x1ea   : > { %11209 = vmatmul.mubr.msk.f32.vlgmr.msra.gmra.mrb[8].mxu1 %vm582_vm15, %v15388_v40 }
 0x1eb   : > { %11945 = vmatpush3.bf16.msra.mxu1 %v14462_v35  ;;  %11215 = vmatprep.mubr.msk.f32.mxu1 %vm582_vm15, %v15415_v18 }
 0x1ec   : > { %11947 = vmatprep.subr.bf16.mxu1 %v15142_v62  ;;  %v15544_v4 = vpop.f32.mrb[58].mxu0 }
 0x1ed   : > { %v15546_v61 = vpop.f32.mrb[59].mxu0 }
 0x1f0   : > { %v15548_v33 = vpop.f32.mrb[60].mxu0 }
 0x1f1   : > { %v15550_v36 = vpop.f32.mrb[61].mxu0 }
 0x1f2   : > { %11216 = vmatmul.mubr.msk.f32.vlgmr.msra.gmra.mrb[8].mxu1 %vm582_vm15, %v15409_v53 }
 0x1f3   : > { %11949 = vmatpush3.bf16.msra.mxu1 %v15142_v62  ;;  %11222 = vmatprep.mubr.msk.f32.mxu1 %vm582_vm15, %v15432_v31 }
 0x1f4   : > { %11951 = vmatprep.subr.bf16.mxu1 %v15178_v17  ;;  %v15558_v40 = vpop.f32.mrb[62].mxu0 }
 0x1f5   : > { %v15560_v22 = vpop.f32.mrb[63].mxu0 }
 0x1fa   : > { %11223 = vmatmul.mubr.msk.f32.vlgmr.msra.gmra.mrb[8].mxu1 %vm582_vm15, %v15427_v55 }
 0x1fb   : > { %11953 = vmatpush3.bf16.msra.mxu1 %v15178_v17  ;;  %11229 = vmatprep.mubr.msk.f32.mxu1 %vm582_vm15, %v15447_v26 }
 0x1fc   : > { %11969 = vmatprep.subr.bf16.mxu1 %v14401_v24 }
 0x1ff   : > { %v15568_v52 = vpop.f32.mrb[64].mxu0 }
 0x200   : > { %v15570_v60 = vpop.f32.mrb[65].mxu0 }
 0x202   : > { %11230 = vmatmul.mubr.msk.f32.vlgmr.msra.gmra.mrb[8].mxu1 %vm582_vm15, %v15444_v39 }
 0x203   : > { %11971 = vmatpush3.bf16.msra.mxu1 %v14401_v24  ;;  %11260 = vmatprep.mubr.msk.f32.mxu1 %vm582_vm15, %v15456_v42  ;;  %v15578_v6 = vpop.f32.mrb[66].mxu0  ;;  %v15728_v42 = vpop.permute.xlu1 %671 }
 0x204   : > { %11973 = vmatprep.subr.bf16.mxu1 %v14462_v35  ;;  %v15580_v20 = vpop.f32.mrb[67].mxu0 }
 0x206   : > { %11261 = vmatmul.mubr.msk.f32.vlgmr.msra.gmra.mrb[10].mxu1 %vm582_vm15, %v15454_v8 }
 0x207   : > { %11975 = vmatpush3.bf16.msra.mxu1 %v14462_v35  ;;  %11267 = vmatprep.mubr.msk.f32.mxu1 %vm582_vm15, %v15468_v32 }
 0x208   : > { %11977 = vmatprep.subr.bf16.mxu1 %v15142_v62  ;;  %v15588_v23 = vpop.f32.mrb[68].mxu0 }
 0x209   : > { %v15590_v48 = vpop.f32.mrb[69].mxu0 }
 0x20c   : > { %v15592_v44 = vpop.f32.mrb[70].mxu0 }
 0x20d   : > { %v15596_v0 = vpop.f32.mrb[71].mxu0 }
 0x20e   : > { %11268 = vmatmul.mubr.msk.f32.vlgmr.msra.gmra.mrb[10].mxu1 %vm582_vm15, %v15465_v29 }
 0x20f   : > { %11979 = vmatpush3.bf16.msra.mxu1 %v15142_v62  ;;  %11274 = vmatprep.mubr.msk.f32.mxu1 %vm582_vm15, %v15480_v1 }
 0x210   : > { %11981 = vmatprep.subr.bf16.mxu1 %v15178_v17 }
 0x216   : > { %11275 = vmatmul.mubr.msk.f32.vlgmr.msra.gmra.mrb[10].mxu1 %vm582_vm15, %v15477_v51 }
 0x217   : > { %11983 = vmatpush3.bf16.msra.mxu1 %v15178_v17  ;;  %11281 = vmatprep.mubr.msk.f32.mxu1 %vm582_vm15, %v15488_v28 }
 0x218   : > { %11999 = vmatprep.subr.bf16.mxu1 %v14401_v24 }
 0x21a   : > { %v15608_v38 = vpop.f32.mrb[72].mxu0 }
 0x21b   : > { %v15610_v53 = vpop.f32.mrb[73].mxu0 }
 0x21e   : > { %11282 = vmatmul.mubr.msk.f32.vlgmr.msra.gmra.mrb[10].mxu1 %vm582_vm15, %v15486_v21  ;;  %v15614_v50 = vpop.f32.mrb[74].mxu0 }
 0x21f   : > { %12001 = vmatpush3.bf16.msra.mxu1 %v14401_v24  ;;  %11312 = vmatprep.mubr.msk.f32.mxu1 %vm582_vm15, %v15502_v7  ;;  %v15619_v27 = vpop.f32.mrb[75].mxu0 }
 0x220   : > { %12003 = vmatprep.subr.bf16.mxu1 %v14462_v35 }
 0x222   : > { %11313 = vmatmul.mubr.msk.f32.vlgmr.msra.gmra.mrb[12].mxu1 %vm582_vm15, %v15499_v12  ;;  %v15624_v37 = vpop.f32.mrb[76].mxu0 }
 0x223   : > { %12005 = vmatpush3.bf16.msra.mxu1 %v14462_v35  ;;  %11319 = vmatprep.mubr.msk.f32.mxu1 %vm582_vm15, %v15510_v57  ;;  %v15629_v3 = vpop.f32.mrb[77].mxu0 }
 0x224   : > { %12007 = vmatprep.subr.bf16.mxu1 %v15142_v62 }
 0x226   : > { %v15632_v18 = vpop.f32.mrb[78].mxu0 }
 0x227   : > { %v15634_v13 = vpop.f32.mrb[79].mxu0 }
 0x22a   : > { %11320 = vmatmul.mubr.msk.f32.vlgmr.msra.gmra.mrb[12].mxu1 %vm582_vm15, %v15508_v2 }
 0x22b   : > { %12009 = vmatpush3.bf16.msra.mxu1 %v15142_v62  ;;  %11326 = vmatprep.mubr.msk.f32.mxu1 %vm582_vm15, %v15522_v47 }
 0x22c   : > { %12011 = vmatprep.subr.bf16.mxu1 %v15178_v17 }
 0x22f   : > { %v15642_v15 = vpop.f32.mrb[80].mxu0 }
 0x230   : > { %v15644_v63 = vpop.f32.mrb[81].mxu0 }
 0x232   : > { %11327 = vmatmul.mubr.msk.f32.vlgmr.msra.gmra.mrb[12].mxu1 %vm582_vm15, %v15519_v43 }
 0x233   : > { %v15648_v59 = vpop.f32.mrb[82].mxu0  ;;  %12013 = vmatpush3.bf16.msra.mxu1 %v15178_v17  ;;  %11333 = vmatprep.mubr.msk.f32.mxu1 %vm582_vm15, %v15526_v11 }
 0x234   : > { %v15653_v54 = vpop.f32.mrb[83].mxu0  ;;  %12029 = vmatprep.subr.bf16.mxu1 %v14401_v24 }
 0x237   : > { %v15656_v56 = vpop.f32.mrb[84].mxu0 }
 0x238   : > { %v15658_v9 = vpop.f32.mrb[85].mxu0 }
 0x23a   : > { %11334 = vmatmul.mubr.msk.f32.vlgmr.msra.gmra.mrb[12].mxu1 %vm582_vm15, %v15524_v45 }
 0x23b   : > { %v15662_v46 = vpop.f32.mrb[86].mxu0  ;;  %12031 = vmatpush3.bf16.msra.mxu1 %v14401_v24  ;;  %11364 = vmatprep.mubr.msk.f32.mxu1 %vm582_vm15, %v15536_v10 }
 0x23c   : > { %v15667_v25 = vpop.f32.mrb[87].mxu0  ;;  %12033 = vmatprep.subr.bf16.mxu1 %v14462_v35 }
 0x23e   : > { %11365 = vmatmul.mubr.msk.f32.vlgmr.msra.gmra.mrb[14].mxu1 %vm582_vm15, %v15534_v19 }
 0x23f   : > { %12035 = vmatpush3.bf16.msra.mxu1 %v14462_v35  ;;  %11371 = vmatprep.mubr.msk.f32.mxu1 %vm582_vm15, %v15546_v61 }
 0x240   : > { %12037 = vmatprep.subr.bf16.mxu1 %v15142_v62 }
 0x246   : > { %11372 = vmatmul.mubr.msk.f32.vlgmr.msra.gmra.mrb[14].mxu1 %vm582_vm15, %v15544_v4 }
 0x247   : > { %v15678_v55 = vpop.f32.mrb[88].mxu0  ;;  %12039 = vmatpush3.bf16.msra.mxu1 %v15142_v62  ;;  %11378 = vmatprep.mubr.msk.f32.mxu1 %vm582_vm15, %v15550_v36 }
 0x248   : > { %v15683_v49 = vpop.f32.mrb[89].mxu0  ;;  %12041 = vmatprep.subr.bf16.mxu1 %v15178_v17 }
 0x24b   : > { %v15686_v5 = vpop.f32.mrb[90].mxu0 }
 0x24c   : > { %v15688_v31 = vpop.f32.mrb[91].mxu0 }
 0x24e   : > { %11379 = vmatmul.mubr.msk.f32.vlgmr.msra.gmra.mrb[14].mxu1 %vm582_vm15, %v15548_v33 }
 0x24f   : > { %v15692_v16 = vpop.f32.mrb[92].mxu0  ;;  %12043 = vmatpush3.bf16.msra.mxu1 %v15178_v17  ;;  %11385 = vmatprep.mubr.msk.f32.mxu1 %vm582_vm15, %v15560_v22 }
 0x250   : > { %v15697_v14 = vpop.f32.mrb[93].mxu0  ;;  %12059 = vmatprep.subr.bf16.mxu1 %v14401_v24 }
 0x253   : > { %v15700_v34 = vpop.f32.mrb[94].mxu0 }
 0x254   : > { %v15702_v39 = vpop.f32.mrb[95].mxu0 }
 0x256   : > { %11386 = vmatmul.mubr.msk.f32.vlgmr.msra.gmra.mrb[14].mxu1 %vm582_vm15, %v15558_v40 }
 0x257   : > { %12061 = vmatpush3.bf16.msra.mxu1 %v14401_v24  ;;  %11416 = vmatprep.mubr.msk.f32.mxu1 %vm582_vm15, %v15570_v60 }
 0x258   : > { %12063 = vmatprep.subr.bf16.mxu1 %v14462_v35 }
 0x25a   : > { %11417 = vmatmul.mubr.msk.f32.vlgmr.msra.gmra.mrb[16].mxu1 %vm582_vm15, %v15568_v52 }
 0x25b   : > { %12065 = vmatpush3.bf16.msra.mxu1 %v14462_v35  ;;  %11423 = vmatprep.mubr.msk.f32.mxu1 %vm582_vm15, %v15580_v20 }
 0x25c   : > { %12067 = vmatprep.subr.bf16.mxu1 %v15142_v62  ;;  %v15716_v26 = vpop.f32.mrb[96].mxu0 }
 0x25d   : > { %v15718_v41 = vpop.f32.mrb[97].mxu0 }
 0x260   : > { %v15720_v8 = vpop.f32.mrb[98].mxu0 }
 0x261   : > { %v15722_v30 = vpop.f32.mrb[99].mxu0 }
 0x262   : > { %11424 = vmatmul.mubr.msk.f32.vlgmr.msra.gmra.mrb[16].mxu1 %vm582_vm15, %v15578_v6 }
 0x263   : > { %12069 = vmatpush3.bf16.msra.mxu1 %v15142_v62  ;;  %11430 = vmatprep.mubr.msk.f32.mxu1 %vm582_vm15, %v15590_v48 }
 0x264   : > { %12071 = vmatprep.subr.bf16.mxu1 %v15178_v17  ;;  %v15740_v32 = vpop.f32.mrb[100].mxu0 }
 0x265   : > { %v11023_v29 = vpop.f32.mrb[0].mxu1  ;;  %v15743_v21 = vpop.f32.mrb[101].mxu0 }
 0x266   : > { %v12284_v51 = vadd.f32 %v11023_v29, %v15728_v42  ;;  %v914_v1 = vpop.f32.mrb[1].mxu1 }
 0x267   : > { %v12285_v28 = vadd.f32 %v914_v1, %v15732_v58 }
 0x268   : > { %927 = vst.msk [vmem:[%s15738_s17 + $0x8] sm:$0xff] %vm925_vm2, %v12284_v51  ;;  %v15756_v12 = vpop.f32.mrb[102].mxu0  ;;  %v931_v40 = vmul.f32 %v12284_v51, %v12284_v51 }
 0x269   : > { %926 = vst.msk [vmem:[%s15738_s17] sm:$0xff] %vm925_vm2, %v12285_v28  ;;  %v15758_v7 = vpop.f32.mrb[103].mxu0  ;;  %v930_v60 = vmul.f32 %v12285_v28, %v12285_v28 }
 0x26a   : > { %11431 = vmatmul.mubr.msk.f32.vlgmr.msra.gmra.mrb[16].mxu1 %vm582_vm15, %v15588_v23 }
 0x26b   : > { %12073 = vmatpush3.bf16.msra.mxu1 %v15178_v17  ;;  %11437 = vmatprep.mubr.msk.f32.mxu1 %vm582_vm15, %v15596_v0 }
 0x26c   : > { %12089 = vmatprep.subr.bf16.mxu1 %v14401_v24 }
 0x272   : > { %11438 = vmatmul.mubr.msk.f32.vlgmr.msra.gmra.mrb[16].mxu1 %vm582_vm15, %v15592_v44 }
 0x273   : > { %12091 = vmatpush3.bf16.msra.mxu1 %v14401_v24  ;;  %11468 = vmatprep.mubr.msk.f32.mxu1 %vm582_vm15, %v15610_v53  ;;  %v15765_v2 = vpop.f32.mrb[104].mxu0 }
 0x274   : > { %12093 = vmatprep.subr.bf16.mxu1 %v14462_v35  ;;  %v15768_v57 = vpop.f32.mrb[105].mxu0 }
 0x276   : > { %11469 = vmatmul.mubr.msk.f32.vlgmr.msra.gmra.mrb[18].mxu1 %vm582_vm15, %v15608_v38 }
 0x277   : > { %12095 = vmatpush3.bf16.msra.mxu1 %v14462_v35  ;;  %11475 = vmatprep.mubr.msk.f32.mxu1 %vm582_vm15, %v15619_v27  ;;  %v15775_v43 = vpop.f32.mrb[106].mxu0 }
 0x278   : > { %12097 = vmatprep.subr.bf16.mxu1 %v15142_v62  ;;  %v15778_v47 = vpop.f32.mrb[107].mxu0 }
 0x27b   : > { %v15780_v45 = vpop.f32.mrb[108].mxu0 }
 0x27c   : > { %v15782_v11 = vpop.f32.mrb[109].mxu0 }
 0x27e   : > { %11476 = vmatmul.mubr.msk.f32.vlgmr.msra.gmra.mrb[18].mxu1 %vm582_vm15, %v15614_v50 }
 0x27f   : > { %12099 = vmatpush3.bf16.msra.mxu1 %v15142_v62  ;;  %11482 = vmatprep.mubr.msk.f32.mxu1 %vm582_vm15, %v15629_v3  ;;  %v15790_v19 = vpop.f32.mrb[110].mxu0 }
 0x280   : > { %12101 = vmatprep.subr.bf16.mxu1 %v15178_v17  ;;  %v15792_v4 = vpop.f32.mrb[111].mxu0 }
 0x281   : > { %v11075_v10 = vpop.f32.mrb[2].mxu1 }
 0x282   : > { %v12286_v61 = vadd.f32 %v11075_v10, %v15728_v42  ;;  %v1500_v33 = vpop.f32.mrb[3].mxu1 }
 0x283   : > { %v12287_v36 = vadd.f32 %v1500_v33, %v15732_v58 }
 0x284   : > { %10011 = vst.msk [vmem:[%s15738_s17 + $0x18] sm:$0xff] %vm925_vm2, %v12286_v61  ;;  %v1515_v22 = vadd.f32 %v12286_v61, %v12284_v51  ;;  %v1517_v52 = vmul.f32 %v12286_v61, %v12286_v61 }
 0x285   : > { %10010 = vst.msk [vmem:[%s15738_s17 + $0x10] sm:$0xff] %vm925_vm2, %v12287_v36  ;;  %v1514_v6 = vadd.f32 %v12287_v36, %v12285_v28  ;;  %v1516_v20 = vmul.f32 %v12287_v36, %v12287_v36 }
 0x286   : > { %v1519_v23 = vadd.f32 %v1517_v52, %v931_v40  ;;  %11483 = vmatmul.mubr.msk.f32.vlgmr.msra.gmra.mrb[18].mxu1 %vm582_vm15, %v15624_v37 }
 0x287   : > { %v1518_v48 = vadd.f32 %v1516_v20, %v930_v60  ;;  %12103 = vmatpush3.bf16.msra.mxu1 %v15178_v17  ;;  %11489 = vmatprep.mubr.msk.f32.mxu1 %vm582_vm15, %v15634_v13  ;;  %v15806_v44 = vpop.f32.mrb[112].mxu0 }
 0x288   : > { %12119 = vmatprep.subr.bf16.mxu1 %v14401_v24  ;;  %v15808_v0 = vpop.f32.mrb[113].mxu0 }
 0x28b   : > { %v15815_v38 = vpop.f32.mrb[114].mxu0 }
 0x28c   : > { %v15818_v53 = vpop.f32.mrb[115].mxu0 }
 0x28e   : > { %11490 = vmatmul.mubr.msk.f32.vlgmr.msra.gmra.mrb[18].mxu1 %vm582_vm15, %v15632_v18 }
 0x28f   : > { %12121 = vmatpush3.bf16.msra.mxu1 %v14401_v24  ;;  %11520 = vmatprep.mubr.msk.f32.mxu1 %vm582_vm15, %v15644_v63 }
 0x290   : > { %12123 = vmatprep.subr.bf16.mxu1 %v14462_v35 }
 0x291   : > { %v15825_v50 = vpop.f32.mrb[116].mxu0 }
 0x292   : > { %11521 = vmatmul.mubr.msk.f32.vlgmr.msra.gmra.mrb[20].mxu1 %vm582_vm15, %v15642_v15  ;;  %v15828_v27 = vpop.f32.mrb[117].mxu0 }
 0x293   : > { %12125 = vmatpush3.bf16.msra.mxu1 %v14462_v35  ;;  %11527 = vmatprep.mubr.msk.f32.mxu1 %vm582_vm15, %v15653_v54 }
 0x294   : > { %12127 = vmatprep.subr.bf16.mxu1 %v15142_v62 }
 0x295   : > { %v15830_v37 = vpop.f32.mrb[118].mxu0 }
 0x296   : > { %v15832_v3 = vpop.f32.mrb[119].mxu0 }
 0x29a   : > { %11528 = vmatmul.mubr.msk.f32.vlgmr.msra.gmra.mrb[20].mxu1 %vm582_vm15, %v15648_v59 }
 0x29b   : > { %12129 = vmatpush3.bf16.msra.mxu1 %v15142_v62  ;;  %11534 = vmatprep.mubr.msk.f32.mxu1 %vm582_vm15, %v15658_v9 }
 0x29c   : > { %12131 = vmatprep.subr.bf16.mxu1 %v15178_v17 }
 0x29d   : > { %v11127_v18 = vpop.f32.mrb[4].mxu1 }
 0x29e   : > { %v12288_v13 = vadd.f32 %v11127_v18, %v15728_v42  ;;  %v2086_v15 = vpop.f32.mrb[5].mxu1 }
 0x29f   : > { %v12289_v63 = vadd.f32 %v2086_v15, %v15732_v58  ;;  %v15851_v28 = vpop.f32.mrb[120].mxu0 }
 0x2a0   : > { %10045 = vst.msk [vmem:[%s15738_s17 + $0x28] sm:$0xff] %vm925_vm2, %v12288_v13  ;;  %v2101_v54 = vadd.f32 %v12288_v13, %v1515_v22  ;;  %v2103_v29 = vmul.f32 %v12288_v13, %v12288_v13  ;;  %v15854_v10 = vpop.f32.mrb[121].mxu0 }
 0x2a1   : > { %10044 = vst.msk [vmem:[%s15738_s17 + $0x20] sm:$0xff] %vm925_vm2, %v12289_v63  ;;  %v2100_v59 = vadd.f32 %v12289_v63, %v1514_v6  ;;  %v2102_v51 = vmul.f32 %v12289_v63, %v12289_v63 }
 0x2a2   : > { %v2105_v1 = vadd.f32 %v2103_v29, %v1519_v23  ;;  %11535 = vmatmul.mubr.msk.f32.vlgmr.msra.gmra.mrb[20].mxu1 %vm582_vm15, %v15656_v56 }
 0x2a3   : > { %v2104_v9 = vadd.f32 %v2102_v51, %v1518_v48  ;;  %12133 = vmatpush3.bf16.msra.mxu1 %v15178_v17  ;;  %11541 = vmatprep.mubr.msk.f32.mxu1 %vm582_vm15, %v15667_v25  ;;  %v15856_v61 = vpop.f32.mrb[122].mxu0 }
 0x2a4   : > { %12149 = vmatprep.subr.bf16.mxu1 %v14401_v24  ;;  %v15858_v33 = vpop.f32.mrb[123].mxu0 }
 0x2a7   : > { %v15866_v56 = vpop.f32.mrb[124].mxu0 }
 0x2a8   : > { %v15870_v25 = vpop.f32.mrb[125].mxu0 }
 0x2aa   : > { %11542 = vmatmul.mubr.msk.f32.vlgmr.msra.gmra.mrb[20].mxu1 %vm582_vm15, %v15662_v46 }
 0x2ab   : > { %12151 = vmatpush3.bf16.msra.mxu1 %v14401_v24  ;;  %11572 = vmatprep.mubr.msk.f32.mxu1 %vm582_vm15, %v15683_v49  ;;  %v15875_v46 = vpop.f32.mrb[126].mxu0 }
 0x2ac   : > { %12153 = vmatprep.subr.bf16.mxu1 %v14462_v35  ;;  %v15878_v49 = vpop.f32.mrb[127].mxu0 }
 0x2ae   : > { %11573 = vmatmul.mubr.msk.f32.vlgmr.msra.gmra.mrb[22].mxu1 %vm582_vm15, %v15678_v55 }
 0x2af   : > { %12155 = vmatpush3.bf16.msra.mxu1 %v14462_v35  ;;  %11579 = vmatprep.mubr.msk.f32.mxu1 %vm582_vm15, %v15688_v31 }
 0x2b0   : > { %12157 = vmatprep.subr.bf16.mxu1 %v15142_v62 }
 0x2b6   : > { %11580 = vmatmul.mubr.msk.f32.vlgmr.msra.gmra.mrb[22].mxu1 %vm582_vm15, %v15686_v5 }
 0x2b7   : > { %12159 = vmatpush3.bf16.msra.mxu1 %v15142_v62  ;;  %11586 = vmatprep.mubr.msk.f32.mxu1 %vm582_vm15, %v15697_v14 }
 0x2b8   : > { %12161 = vmatprep.subr.bf16.mxu1 %v15178_v17 }
 0x2b9   : > { %v11179_v55 = vpop.f32.mrb[6].mxu1 }
 0x2ba   : > { %v12290_v36 = vadd.f32 %v11179_v55, %v15728_v42  ;;  %v2672_v31 = vpop.f32.mrb[7].mxu1 }
 0x2bb   : > { %v12291_v40 = vadd.f32 %v2672_v31, %v15732_v58 }
 0x2bc   : > { %10079 = vst.msk [vmem:[%s15738_s17 + $0x38] sm:$0xff] %vm925_vm2, %v12290_v36  ;;  %v2687_v22 = vadd.f32 %v12290_v36, %v2101_v54  ;;  %v2689_v52 = vmul.f32 %v12290_v36, %v12290_v36 }
 0x2bd   : > { %10078 = vst.msk [vmem:[%s15738_s17 + $0x30] sm:$0xff] %vm925_vm2, %v12291_v40  ;;  %v2686_v5 = vadd.f32 %v12291_v40, %v2100_v59  ;;  %v2688_v60 = vmul.f32 %v12291_v40, %v12291_v40 }
 0x2be   : > { %v2691_v6 = vadd.f32 %v2689_v52, %v2105_v1  ;;  %11587 = vmatmul.mubr.msk.f32.vlgmr.msra.gmra.mrb[22].mxu1 %vm582_vm15, %v15692_v16 }
 0x2bf   : > { %v2690_v14 = vadd.f32 %v2688_v60, %v2104_v9  ;;  %12163 = vmatpush3.bf16.msra.mxu1 %v15178_v17  ;;  %11593 = vmatprep.mubr.msk.f32.mxu1 %vm582_vm15, %v15702_v39 }
 0x2c0   : > { %12179 = vmatprep.subr.bf16.mxu1 %v14401_v24 }
 0x2c6   : > { %11594 = vmatmul.mubr.msk.f32.vlgmr.msra.gmra.mrb[22].mxu1 %vm582_vm15, %v15700_v34 }
 0x2c7   : > { %12181 = vmatpush3.bf16.msra.mxu1 %v14401_v24  ;;  %11624 = vmatprep.mubr.msk.f32.mxu1 %vm582_vm15, %v15718_v41 }
 0x2c8   : > { %12183 = vmatprep.subr.bf16.mxu1 %v14462_v35 }
 0x2ca   : > { %11625 = vmatmul.mubr.msk.f32.vlgmr.msra.gmra.mrb[24].mxu1 %vm582_vm15, %v15716_v26 }
 0x2cb   : > { %12185 = vmatpush3.bf16.msra.mxu1 %v14462_v35  ;;  %11631 = vmatprep.mubr.msk.f32.mxu1 %vm582_vm15, %v15722_v30 }
 0x2cc   : > { %12187 = vmatprep.subr.bf16.mxu1 %v15142_v62 }
 0x2d2   : > { %11632 = vmatmul.mubr.msk.f32.vlgmr.msra.gmra.mrb[24].mxu1 %vm582_vm15, %v15720_v8 }
 0x2d3   : > { %12189 = vmatpush3.bf16.msra.mxu1 %v15142_v62  ;;  %11638 = vmatprep.mubr.msk.f32.mxu1 %vm582_vm15, %v15743_v21 }
 0x2d4   : > { %12191 = vmatprep.subr.bf16.mxu1 %v15178_v17 }
 0x2d5   : > { %v11231_v16 = vpop.f32.mrb[8].mxu1 }
 0x2d6   : > { %v12292_v34 = vadd.f32 %v11231_v16, %v15728_v42  ;;  %v3258_v39 = vpop.f32.mrb[9].mxu1 }
 0x2d7   : > { %v12293_v26 = vadd.f32 %v3258_v39, %v15732_v58 }
 0x2d8   : > { %10113 = vst.msk [vmem:[%s15738_s17 + $0x48] sm:$0xff] %vm925_vm2, %v12292_v34  ;;  %v3273_v41 = vadd.f32 %v12292_v34, %v2687_v22  ;;  %v3275_v30 = vmul.f32 %v12292_v34, %v12292_v34 }
 0x2d9   : > { %10112 = vst.msk [vmem:[%s15738_s17 + $0x40] sm:$0xff] %vm925_vm2, %v12293_v26  ;;  %v3272_v8 = vadd.f32 %v12293_v26, %v2686_v5  ;;  %v3274_v20 = vmul.f32 %v12293_v26, %v12293_v26 }
 0x2da   : > { %v3277_v23 = vadd.f32 %v3275_v30, %v2691_v6  ;;  %11639 = vmatmul.mubr.msk.f32.vlgmr.msra.gmra.mrb[24].mxu1 %vm582_vm15, %v15740_v32 }
 0x2db   : > { %v3276_v21 = vadd.f32 %v3274_v20, %v2690_v14  ;;  %12193 = vmatpush3.bf16.msra.mxu1 %v15178_v17  ;;  %11645 = vmatprep.mubr.msk.f32.mxu1 %vm582_vm15, %v15758_v7 }
 0x2dc   : > { %12209 = vmatprep.subr.bf16.mxu1 %v14401_v24 }
 0x2e2   : > { %11646 = vmatmul.mubr.msk.f32.vlgmr.msra.gmra.mrb[24].mxu1 %vm582_vm15, %v15756_v12 }
 0x2e3   : > { %12211 = vmatpush3.bf16.msra.mxu1 %v14401_v24  ;;  %11676 = vmatprep.mubr.msk.f32.mxu1 %vm582_vm15, %v15768_v57 }
 0x2e4   : > { %12213 = vmatprep.subr.bf16.mxu1 %v14462_v35 }
 0x2e6   : > { %11677 = vmatmul.mubr.msk.f32.vlgmr.msra.gmra.mrb[26].mxu1 %vm582_vm15, %v15765_v2 }
 0x2e7   : > { %12215 = vmatpush3.bf16.msra.mxu1 %v14462_v35  ;;  %11683 = vmatprep.mubr.msk.f32.mxu1 %vm582_vm15, %v15778_v47 }
 0x2e8   : > { %12217 = vmatprep.subr.bf16.mxu1 %v15142_v62 }
 0x2ee   : > { %11684 = vmatmul.mubr.msk.f32.vlgmr.msra.gmra.mrb[26].mxu1 %vm582_vm15, %v15775_v43 }
 0x2ef   : > { %12219 = vmatpush3.bf16.msra.mxu1 %v15142_v62  ;;  %11690 = vmatprep.mubr.msk.f32.mxu1 %vm582_vm15, %v15782_v11 }
 0x2f0   : > { %12221 = vmatprep.subr.bf16.mxu1 %v15178_v17 }
 0x2f1   : > { %v11283_v32 = vpop.f32.mrb[10].mxu1 }
 0x2f2   : > { %v12294_v12 = vadd.f32 %v11283_v32, %v15728_v42  ;;  %v3844_v7 = vpop.f32.mrb[11].mxu1 }
 0x2f3   : > { %v12295_v2 = vadd.f32 %v3844_v7, %v15732_v58 }
 0x2f4   : > { %10147 = vst.msk [vmem:[%s15738_s17 + $0x58] sm:$0xff] %vm925_vm2, %v12294_v12  ;;  %v3859_v57 = vadd.f32 %v12294_v12, %v3273_v41  ;;  %v3861_v47 = vmul.f32 %v12294_v12, %v12294_v12 }
 0x2f5   : > { %10146 = vst.msk [vmem:[%s15738_s17 + $0x50] sm:$0xff] %vm925_vm2, %v12295_v2  ;;  %v3858_v43 = vadd.f32 %v12295_v2, %v3272_v8  ;;  %v3860_v48 = vmul.f32 %v12295_v2, %v12295_v2 }
 0x2f6   : > { %v3863_v18 = vadd.f32 %v3861_v47, %v3277_v23  ;;  %11691 = vmatmul.mubr.msk.f32.vlgmr.msra.gmra.mrb[26].mxu1 %vm582_vm15, %v15780_v45 }
 0x2f7   : > { %v3862_v11 = vadd.f32 %v3860_v48, %v3276_v21  ;;  %12223 = vmatpush3.bf16.msra.mxu1 %v15178_v17  ;;  %11697 = vmatprep.mubr.msk.f32.mxu1 %vm582_vm15, %v15792_v4 }
 0x2f8   : > { %12239 = vmatprep.subr.bf16.mxu1 %v14401_v24 }
 0x2fe   : > { %11698 = vmatmul.mubr.msk.f32.vlgmr.msra.gmra.mrb[26].mxu1 %vm582_vm15, %v15790_v19 }
 0x2ff   : > { %12241 = vmatpush3.bf16.msra.mxu1 %v14401_v24  ;;  %11728 = vmatprep.mubr.msk.f32.mxu1 %vm582_vm15, %v15808_v0 }
 0x300   : > { %12243 = vmatprep.subr.bf16.mxu1 %v14462_v35 }
 0x302   : > { %11729 = vmatmul.mubr.msk.f32.vlgmr.msra.gmra.mrb[28].mxu1 %vm582_vm15, %v15806_v44 }
 0x303   : > { %12245 = vmatpush3.bf16.msra.mxu1 %v14462_v35  ;;  %11735 = vmatprep.mubr.msk.f32.mxu1 %vm582_vm15, %v15818_v53 }
 0x304   : > { %12247 = vmatprep.subr.bf16.mxu1 %v15142_v62 }
 0x30a   : > { %11736 = vmatmul.mubr.msk.f32.vlgmr.msra.gmra.mrb[28].mxu1 %vm582_vm15, %v15815_v38 }
 0x30b   : > { %12249 = vmatpush3.bf16.msra.mxu1 %v15142_v62  ;;  %11742 = vmatprep.mubr.msk.f32.mxu1 %vm582_vm15, %v15828_v27 }
 0x30c   : > { %12251 = vmatprep.subr.bf16.mxu1 %v15178_v17 }
 0x30d   : > { %v11335_v45 = vpop.f32.mrb[12].mxu1 }
 0x30e   : > { %v12296_v19 = vadd.f32 %v11335_v45, %v15728_v42  ;;  %v4430_v4 = vpop.f32.mrb[13].mxu1 }
 0x30f   : > { %v12297_v44 = vadd.f32 %v4430_v4, %v15732_v58 }
 0x310   : > { %10181 = vst.msk [vmem:[%s15738_s17 + $0x68] sm:$0xff] %vm925_vm2, %v12296_v19  ;;  %v4445_v0 = vadd.f32 %v12296_v19, %v3859_v57  ;;  %v4447_v53 = vmul.f32 %v12296_v19, %v12296_v19 }
 0x311   : > { %10180 = vst.msk [vmem:[%s15738_s17 + $0x60] sm:$0xff] %vm925_vm2, %v12297_v44  ;;  %v4444_v38 = vadd.f32 %v12297_v44, %v3858_v43  ;;  %v4446_v13 = vmul.f32 %v12297_v44, %v12297_v44 }
 0x312   : > { %v4449_v15 = vadd.f32 %v4447_v53, %v3863_v18  ;;  %11743 = vmatmul.mubr.msk.f32.vlgmr.msra.gmra.mrb[28].mxu1 %vm582_vm15, %v15825_v50 }
 0x313   : > { %v4448_v27 = vadd.f32 %v4446_v13, %v3862_v11  ;;  %12253 = vmatpush3.bf16.msra.mxu1 %v15178_v17  ;;  %11749 = vmatprep.mubr.msk.f32.mxu1 %vm582_vm15, %v15832_v3 }
 0x314   : > { %12269 = vmatprep.subr.bf16.mxu1 %v14401_v24 }
 0x31a   : > { %11750 = vmatmul.mubr.msk.f32.vlgmr.msra.gmra.mrb[28].mxu1 %vm582_vm15, %v15830_v37 }
 0x31b   : > { %12271 = vmatpush3.bf16.msra.mxu1 %v14401_v24  ;;  %11780 = vmatprep.mubr.msk.f32.mxu1 %vm582_vm15, %v15854_v10 }
 0x31c   : > { %12273 = vmatprep.subr.bf16.mxu1 %v14462_v35 }
 0x31e   : > { %11781 = vmatmul.mubr.msk.f32.vlgmr.msra.gmra.mrb[30].mxu1 %vm582_vm15, %v15851_v28 }
 0x31f   : > { %12275 = vmatpush3.bf16.msra.mxu1 %v14462_v35  ;;  %11787 = vmatprep.mubr.msk.f32.mxu1 %vm582_vm15, %v15858_v33 }
 0x320   : > { %12277 = vmatprep.subr.bf16.mxu1 %v15142_v62 }
 0x326   : > { %11788 = vmatmul.mubr.msk.f32.vlgmr.msra.gmra.mrb[30].mxu1 %vm582_vm15, %v15856_v61 }
 0x327   : > { %12279 = vmatpush3.bf16.msra.mxu1 %v15142_v62  ;;  %11794 = vmatprep.mubr.msk.f32.mxu1 %vm582_vm15, %v15870_v25 }
 0x328   : > { %12281 = vmatprep.subr.bf16.mxu1 %v15178_v17 }
 0x329   : > { %v11387_v24 = vpop.f32.mrb[14].mxu1 }
 0x32a   : > { %v12298_v50 = vadd.f32 %v11387_v24, %v15728_v42  ;;  %v5016_v37 = vpop.f32.mrb[15].mxu1 }
 0x32b   : > { %v12299_v35 = vadd.f32 %v5016_v37, %v15732_v58 }
 0x32c   : > { %10215 = vst.msk [vmem:[%s15738_s17 + $0x78] sm:$0xff] %vm925_vm2, %v12298_v50  ;;  %v5031_v3 = vadd.f32 %v12298_v50, %v4445_v0  ;;  %v5033_v63 = vmul.f32 %v12298_v50, %v12298_v50 }
 0x32d   : > { %10214 = vst.msk [vmem:[%s15738_s17 + $0x70] sm:$0xff] %vm925_vm2, %v12299_v35  ;;  %v5030_v62 = vadd.f32 %v12299_v35, %v4444_v38  ;;  %v5032_v54 = vmul.f32 %v12299_v35, %v12299_v35 }
 0x32e   : > { %v5035_v29 = vadd.f32 %v5033_v63, %v4449_v15  ;;  %11795 = vmatmul.mubr.msk.f32.vlgmr.msra.gmra.mrb[30].mxu1 %vm582_vm15, %v15866_v56 }
 0x32f   : > { %v5034_v59 = vadd.f32 %v5032_v54, %v4448_v27  ;;  %12283 = vmatpush3.bf16.msra.mxu1 %v15178_v17  ;;  %11801 = vmatprep.mubr.msk.f32.mxu1 %vm582_vm15, %v15878_v49 }
 0x336   : > { %11802 = vmatmul.mubr.msk.f32.vlgmr.msra.gmra.mrb[30].mxu1 %vm582_vm15, %v15875_v46 }
 0x345   : > { %v11439_v51 = vpop.f32.mrb[16].mxu1 }
 0x346   : > { %v12300_v1 = vadd.f32 %v11439_v51, %v15728_v42  ;;  %v5602_v9 = vpop.f32.mrb[17].mxu1 }
 0x347   : > { %v12301_v28 = vadd.f32 %v5602_v9, %v15732_v58 }
 0x348   : > { %10249 = vst.msk [vmem:[%s15738_s17 + $0x88] sm:$0xff] %vm925_vm2, %v12300_v1  ;;  %v5617_v10 = vadd.f32 %v12300_v1, %v5031_v3  ;;  %v5619_v61 = vmul.f32 %v12300_v1, %v12300_v1 }
 0x349   : > { %10248 = vst.msk [vmem:[%s15738_s17 + $0x80] sm:$0xff] %vm925_vm2, %v12301_v28  ;;  %v5616_v17 = vadd.f32 %v12301_v28, %v5030_v62  ;;  %v5618_v33 = vmul.f32 %v12301_v28, %v12301_v28 }
 0x34a   : > { %v5621_v56 = vadd.f32 %v5619_v61, %v5035_v29 }
 0x34b   : > { %v5620_v25 = vadd.f32 %v5618_v33, %v5034_v59 }
 0x361   : > { %v11491_v49 = vpop.f32.mrb[18].mxu1 }
 0x362   : > { %v12302_v46 = vadd.f32 %v11491_v49, %v15728_v42  ;;  %v6188_v55 = vpop.f32.mrb[19].mxu1 }
 0x363   : > { %v12303_v36 = vadd.f32 %v6188_v55, %v15732_v58 }
 0x364   : > { %10283 = vst.msk [vmem:[%s15738_s17 + $0x98] sm:$0xff] %vm925_vm2, %v12302_v46  ;;  %v6203_v31 = vadd.f32 %v12302_v46, %v5617_v10  ;;  %v6205_v40 = vmul.f32 %v12302_v46, %v12302_v46 }
 0x365   : > { %10282 = vst.msk [vmem:[%s15738_s17 + $0x90] sm:$0xff] %vm925_vm2, %v12303_v36  ;;  %v6202_v22 = vadd.f32 %v12303_v36, %v5616_v17  ;;  %v6204_v52 = vmul.f32 %v12303_v36, %v12303_v36 }
 0x366   : > { %v6207_v5 = vadd.f32 %v6205_v40, %v5621_v56 }
 0x367   : > { %v6206_v60 = vadd.f32 %v6204_v52, %v5620_v25 }
 0x37d   : > { %v11543_v6 = vpop.f32.mrb[20].mxu1 }
 0x37e   : > { %v12304_v14 = vadd.f32 %v11543_v6, %v15728_v42  ;;  %v6774_v16 = vpop.f32.mrb[21].mxu1 }
 0x37f   : > { %v12305_v34 = vadd.f32 %v6774_v16, %v15732_v58 }
 0x380   : > { %10317 = vst.msk [vmem:[%s15738_s17 + $0xa8] sm:$0xff] %vm925_vm2, %v12304_v14  ;;  %v6789_v39 = vadd.f32 %v12304_v14, %v6203_v31  ;;  %v6791_v26 = vmul.f32 %v12304_v14, %v12304_v14 }
 0x381   : > { %10316 = vst.msk [vmem:[%s15738_s17 + $0xa0] sm:$0xff] %vm925_vm2, %v12305_v34  ;;  %v6788_v41 = vadd.f32 %v12305_v34, %v6202_v22  ;;  %v6790_v30 = vmul.f32 %v12305_v34, %v12305_v34 }
 0x382   : > { %v6793_v8 = vadd.f32 %v6791_v26, %v6207_v5 }
 0x383   : > { %v6792_v20 = vadd.f32 %v6790_v30, %v6206_v60 }
 0x399   : > { %v11595_v23 = vpop.f32.mrb[22].mxu1 }
 0x39a   : > { %v12306_v21 = vadd.f32 %v11595_v23, %v15728_v42  ;;  %v7360_v32 = vpop.f32.mrb[23].mxu1 }
 0x39b   : > { %v12307_v12 = vadd.f32 %v7360_v32, %v15732_v58 }
 0x39c   : > { %10351 = vst.msk [vmem:[%s15738_s17 + $0xb8] sm:$0xff] %vm925_vm2, %v12306_v21  ;;  %v7375_v7 = vadd.f32 %v12306_v21, %v6789_v39  ;;  %v7377_v2 = vmul.f32 %v12306_v21, %v12306_v21 }
 0x39d   : > { %10350 = vst.msk [vmem:[%s15738_s17 + $0xb0] sm:$0xff] %vm925_vm2, %v12307_v12  ;;  %v7374_v57 = vadd.f32 %v12307_v12, %v6788_v41  ;;  %v7376_v47 = vmul.f32 %v12307_v12, %v12307_v12 }
 0x39e   : > { %v7379_v43 = vadd.f32 %v7377_v2, %v6793_v8 }
 0x39f   : > { %v7378_v48 = vadd.f32 %v7376_v47, %v6792_v20 }
 0x3b5   : > { %v11647_v18 = vpop.f32.mrb[24].mxu1 }
 0x3b6   : > { %v12308_v11 = vadd.f32 %v11647_v18, %v15728_v42  ;;  %v7946_v45 = vpop.f32.mrb[25].mxu1 }
 0x3b7   : > { %v12309_v19 = vadd.f32 %v7946_v45, %v15732_v58 }
 0x3b8   : > { %10385 = vst.msk [vmem:[%s15738_s17 + $0xc8] sm:$0xff] %vm925_vm2, %v12308_v11  ;;  %v7961_v4 = vadd.f32 %v12308_v11, %v7375_v7  ;;  %v7963_v44 = vmul.f32 %v12308_v11, %v12308_v11 }
 0x3b9   : > { %10384 = vst.msk [vmem:[%s15738_s17 + $0xc0] sm:$0xff] %vm925_vm2, %v12309_v19  ;;  %v7960_v0 = vadd.f32 %v12309_v19, %v7374_v57  ;;  %v7962_v53 = vmul.f32 %v12309_v19, %v12309_v19 }
 0x3ba   : > { %v7965_v38 = vadd.f32 %v7963_v44, %v7379_v43 }
 0x3bb   : > { %v7964_v13 = vadd.f32 %v7962_v53, %v7378_v48 }
 0x3d1   : > { %v11699_v15 = vpop.f32.mrb[26].mxu1 }
 0x3d2   : > { %v12310_v27 = vadd.f32 %v11699_v15, %v15728_v42  ;;  %v8532_v24 = vpop.f32.mrb[27].mxu1 }
 0x3d3   : > { %v12311_v50 = vadd.f32 %v8532_v24, %v15732_v58 }
 0x3d4   : > { %10419 = vst.msk [vmem:[%s15738_s17 + $0xd8] sm:$0xff] %vm925_vm2, %v12310_v27  ;;  %v8547_v37 = vadd.f32 %v12310_v27, %v7961_v4  ;;  %v8549_v35 = vmul.f32 %v12310_v27, %v12310_v27 }
 0x3d5   : > { %10418 = vst.msk [vmem:[%s15738_s17 + $0xd0] sm:$0xff] %vm925_vm2, %v12311_v50  ;;  %v8546_v3 = vadd.f32 %v12311_v50, %v7960_v0  ;;  %v8548_v63 = vmul.f32 %v12311_v50, %v12311_v50 }
 0x3d6   : > { %v8551_v62 = vadd.f32 %v8549_v35, %v7965_v38 }
 0x3d7   : > { %v8550_v54 = vadd.f32 %v8548_v63, %v7964_v13 }
 0x3ed   : > { %v11751_v29 = vpop.f32.mrb[28].mxu1 }
 0x3ee   : > { %v12312_v59 = vadd.f32 %v11751_v29, %v15728_v42  ;;  %v9118_v51 = vpop.f32.mrb[29].mxu1 }
 0x3ef   : > { %v12313_v1 = vadd.f32 %v9118_v51, %v15732_v58 }
 0x3f0   : > { %10453 = vst.msk [vmem:[%s15738_s17 + $0xe8] sm:$0xff] %vm925_vm2, %v12312_v59  ;;  %v9133_v9 = vadd.f32 %v12312_v59, %v8547_v37  ;;  %v9135_v28 = vmul.f32 %v12312_v59, %v12312_v59 }
 0x3f1   : > { %10452 = vst.msk [vmem:[%s15738_s17 + $0xe0] sm:$0xff] %vm925_vm2, %v12313_v1  ;;  %v9132_v10 = vadd.f32 %v12313_v1, %v8546_v3  ;;  %v9134_v61 = vmul.f32 %v12313_v1, %v12313_v1 }
 0x3f2   : > { %v9137_v17 = vadd.f32 %v9135_v28, %v8551_v62 }
 0x3f3   : > { %v9136_v33 = vadd.f32 %v9134_v61, %v8550_v54 }
 0x409   : > { %v11803_v56 = vpop.f32.mrb[30].mxu1 }
 0x40a   : > { %v12314_v25 = vadd.f32 %v11803_v56, %v15728_v42  ;;  %v9704_v49 = vpop.f32.mrb[31].mxu1 }
 0x40b   : > { %v12315_v46 = vadd.f32 %v9704_v49, %v15732_v58 }
 0x40c   : > { %10487 = vst.msk [vmem:[%s15738_s17 + $0xf8] sm:$0xff] %vm925_vm2, %v12314_v25  ;;  %v9721_v55 = vmul.f32 %v12314_v25, %v12314_v25  ;;  %v9719_v36 = vadd.f32 %v12314_v25, %v9133_v9 }
 0x40d   : > { %10486 = vst.msk [vmem:[%s15738_s17 + $0xf0] sm:$0xff] %vm925_vm2, %v12315_v46  ;;  %v9720_v31 = vmul.f32 %v12315_v46, %v12315_v46  ;;  %v9718_v40 = vadd.f32 %v12315_v46, %v9132_v10 }
 0x40e   : > { %v9727_v22 = vsel %vm925_vm2, %v9719_v36, 0.0  ;;  %v9723_v52 = vadd.f32 %v9721_v55, %v9137_v17 }
 0x40f   : > { %9728 = vadd.xlane.f32.xlu0 %v9727_v22  ;;  %v9724_v5 = vsel %vm925_vm2, %v9718_v40, 0.0  ;;  %v9722_v60 = vadd.f32 %v9720_v31, %v9136_v33 }
 0x410   : > { %9725 = vadd.xlane.f32.xlu1 %v9724_v5  ;;  %v9733_v58 = vsel %vm925_vm2, %v9723_v52, 0.0 }
 0x411   : > { %v9730_v42 = vsel %vm925_vm2, %v9722_v60, 0.0 }
 0x413   : > { %9731 = vadd.xlane.f32.xlu0 %v9730_v42 }
 0x414   : > { %9734 = vadd.xlane.f32.xlu1 %v9733_v58 }
 0x49c   : > { %v9729_v6 = vpop.xlane.xlu0 %9728 }
 0x49d   : > { %v9726_v14 = vpop.xlane.xlu1 %9725 }
 0x4a0   : > { %v9732_v16 = vpop.xlane.xlu0 %9731 }
 0x4a1   : > { %v9737_v34 = vsel %vm9736_vm4, %v9726_v14, %v9732_v16  ;;  %v9735_v39 = vpop.xlane.xlu1 %9734 }
 0x4a2   : > { %9740 = vst.msk [vmem:[%s272_s28] sm:$0xff] %vm9739_vm5, %v9737_v34  ;;  %v9738_v26 = vsel %vm9736_vm4, %v9729_v6, %v9735_v39 }
 0x4a3   : > { %9741 = vst.msk [vmem:[%s272_s28 + $0x8] sm:$0xff] %vm9739_vm5, %v9738_v26 }
 0x4a4 PF: > { %s16_s20 = sadd.s32 1, %s12770_s20   ;;  %s16210_s18 = smov %s12766_s19 }
 0x4a5   : > { %p13_p5 = scmp.ge.s32.totalorder %s16_s20, 4   ;;  %s16211_s19 = smov %s16213_s21 }
 0x4a7   :  { %15 = sbr.rel (!%p13_p5) target bundleno = 2 (0x2), region = 114 }

</bundles_post_ra>
